<compile_context>
chip_gen: v7x
topology: tpu7x:2x2x1
jax: 0.10.0
libtpu: 0.0.40
codegen_flags: <defaults>
</compile_context>

<pallas_src>
import jax
import jax.numpy as jnp
from jax import lax
from jax.experimental import pallas as pl
from jax.experimental.pallas import tpu as pltpu

POOL_K = 5
POOL_S = 3
OUT_HW = 4            # pooled spatial size implied by fc1 = 128*4*4
IN_HW = 14            # (14 - 5)//3 + 1 == 4
CONV_OUT = 128
FC1_OUT = 1024
NUM_POS = OUT_HW * OUT_HW   # 16 pooled spatial positions
PAD_CLASSES = 128           # lane-dense output width


def _round_up(x, m):
    return ((x + m - 1) // m) * m


def _pick_batch_block(n):
    """Adaptive batch block: big MXU M-fill, >=2 grid steps when batch allows,
    minimal padding waste for tiny batches."""
    n8 = _round_up(n, 8)
    if n8 <= 128:
        return n8          # small batch: single step, only sublane padding
    if n8 <= 512:
        return 128         # >=2 steps (v7x dual-TC sharding), M=128 MXU fill
    return 256             # large batch: M=256 for the 256-wide v6e/v7x MXU


def aux_classifier_kernel(xp_ref, wc_ref, bc_ref, w1_ref, b1_ref, w2_ref,
                          b2_ref, out_ref):
    nb = out_ref.shape[0]                       # batch rows in this block
    # fc1 accumulator (f32); built up position-by-position -> no relayout.
    acc = jnp.zeros((nb, FC1_OUT), jnp.float32)
    for p in range(NUM_POS):                    # static 16-step unrolled loop
        # 1x1 conv for pooled position p: (nb, Cpad) @ (Cpad, 128), f32 acc.
        conv = jnp.dot(xp_ref[p], wc_ref[...],
                       preferred_element_type=jnp.float32)
        conv = jnp.maximum(conv + bc_ref[...], 0.0)          # bias + ReLU
        # fc1 partial sum: contiguous K=128 slice of the permuted fc1 weight.
        acc = acc + jnp.dot(conv.astype(jnp.bfloat16),
                            w1_ref[p * CONV_OUT:(p + 1) * CONV_OUT, :],
                            preferred_element_type=jnp.float32)
    h1 = jnp.maximum(acc + b1_ref[...], 0.0)                  # (nb, 1024)
    # Dropout(p=0.7): identity in eval/inference mode.
    # TODO(synk): training-mode stochastic dropout masking not implemented.
    out = jnp.dot(h1.astype(jnp.bfloat16), w2_ref[...],
                  preferred_element_type=jnp.float32) + b2_ref[...]
    out_ref[...] = out.astype(out_ref.dtype)                  # (nb, 128)


def aux_classifier_forward(x, params):
    conv_w, conv_b, fc1_w, fc1_b, fc2_w, fc2_b = params
    N, C, H, W = x.shape
    assert H == IN_HW and W == IN_HW, "fc1=128*4*4 implies 14x14 input spatial"
    num_classes = fc2_w.shape[0]
    assert num_classes <= PAD_CLASSES

    blk = _pick_batch_block(N)
    n_pad = _round_up(N, blk)
    c_pad = _round_up(C, 128)

    # --- glue: AvgPool2d(5, stride=3) in ONE XLA pass (f32) ------------------
    pooled = lax.reduce_window(
        x, 0.0, lax.add,
        window_dimensions=(1, 1, POOL_K, POOL_K),
        window_strides=(1, 1, POOL_S, POOL_S),
        padding="VALID") * (1.0 / (POOL_K * POOL_K))          # (N, C, 4, 4)

    # Position-major, channels-last layout: (16, N, C), p = a*4 + b.
    xp = jnp.transpose(pooled, (2, 3, 0, 1)).reshape(NUM_POS, N, C)
    xp = jnp.pad(xp.astype(jnp.bfloat16),
                 ((0, 0), (0, n_pad - N), (0, c_pad - C)))    # (16, n_pad, Cpad)

    # --- glue: parameter re-layouts (layout-only, done once) -----------------
    wc = conv_w.reshape(CONV_OUT, C).T                        # (C, 128)
    wc = jnp.pad(wc, ((0, c_pad - C), (0, 0))).astype(jnp.bfloat16)
    bc = conv_b.reshape(1, CONV_OUT).astype(jnp.float32)
    # fc1 weight: row p*128 + k corresponds to PyTorch flatten index k*16 + p.
    w1 = (fc1_w.reshape(FC1_OUT, CONV_OUT, NUM_POS)
          .transpose(2, 1, 0)
          .reshape(NUM_POS * CONV_OUT, FC1_OUT)).astype(jnp.bfloat16)
    b1 = fc1_b.reshape(1, FC1_OUT).astype(jnp.float32)
    # fc2: lane-dense (classes zero-padded to 128).
    w2 = jnp.zeros((FC1_OUT, PAD_CLASSES), jnp.bfloat16)
    w2 = w2.at[:, :num_classes].set(fc2_w.T.astype(jnp.bfloat16))
    b2 = jnp.zeros((1, PAD_CLASSES), jnp.float32)
    b2 = b2.at[:, :num_classes].set(fc2_b.astype(jnp.float32))

    grid = (n_pad // blk,)

    flops = 2 * n_pad * (NUM_POS * c_pad * CONV_OUT
                         + NUM_POS * CONV_OUT * FC1_OUT
                         + FC1_OUT * PAD_CLASSES)
    bytes_accessed = int((xp.size + wc.size + w1.size + w2.size) * 2
                         + (bc.size + b1.size + b2.size) * 4
                         + n_pad * PAD_CLASSES * 4)

    # VMEM budget: double-buffered blocks + resident weights + intermediates.
    weight_bytes = ((wc.size + w1.size + w2.size) * 2
                    + (bc.size + b1.size + b2.size) * 4)
    in_block_bytes = NUM_POS * blk * c_pad * 2                # bf16 activations
    out_block_bytes = blk * PAD_CLASSES * 4
    interm_bytes = (blk * FC1_OUT * 4          # fc1 accumulator (f32)
                    + blk * FC1_OUT * 2        # h1 bf16 cast
                    + 2 * blk * CONV_OUT * 4   # per-position conv tiles
                    + blk * PAD_CLASSES * 4)   # fc2 result
    vmem_limit = int(2 * (weight_bytes + in_block_bytes + out_block_bytes)
                     + interm_bytes + (8 << 20))

    out = pl.pallas_call(
        aux_classifier_kernel,
        out_shape=jax.ShapeDtypeStruct((n_pad, PAD_CLASSES), jnp.float32),
        grid=grid,
        in_specs=[
            pl.BlockSpec((NUM_POS, blk, c_pad), lambda i: (0, i, 0)),
            pl.BlockSpec((c_pad, CONV_OUT), lambda i: (0, 0)),
            pl.BlockSpec((1, CONV_OUT), lambda i: (0, 0)),
            pl.BlockSpec((NUM_POS * CONV_OUT, FC1_OUT), lambda i: (0, 0)),
            pl.BlockSpec((1, FC1_OUT), lambda i: (0, 0)),
            pl.BlockSpec((FC1_OUT, PAD_CLASSES), lambda i: (0, 0)),
            pl.BlockSpec((1, PAD_CLASSES), lambda i: (0, 0)),
        ],
        out_specs=pl.BlockSpec((blk, PAD_CLASSES), lambda i: (i, 0)),
        compiler_params=pltpu.CompilerParams(
            dimension_semantics=("parallel",),
            vmem_limit_bytes=vmem_limit),
        cost_estimate=pl.CostEstimate(flops=flops, transcendentals=0,
                                      bytes_accessed=bytes_accessed),
    )(xp, wc, bc, w1, b1, w2, b2)

    return out[:N, :num_classes]


def aux_classifier_reference(x, params):
    """Pure-JAX f32 reference matching the PyTorch forward (eval mode)."""
    conv_w, conv_b, fc1_w, fc1_b, fc2_w, fc2_b = params
    N, C, H, W = x.shape
    pooled = jnp.stack(
        [jnp.mean(x[:, :, POOL_S * a:POOL_S * a + POOL_K,
                        POOL_S * b:POOL_S * b + POOL_K], axis=(2, 3))
         for a in range(OUT_HW) for b in range(OUT_HW)], axis=-1)      # (N,C,16)
    wc = conv_w.reshape(CONV_OUT, C)
    conv = jnp.einsum('ncp,kc->nkp', pooled, wc,
                      precision=jax.lax.Precision.HIGHEST) + conv_b[None, :, None]
    conv = jnp.maximum(conv, 0.0)
    flat = conv.reshape(N, CONV_OUT * NUM_POS)                         # k*16+p order
    h1 = jnp.maximum(
        jnp.dot(flat, fc1_w.T, precision=jax.lax.Precision.HIGHEST) + fc1_b, 0.0)
    return jnp.dot(h1, fc2_w.T, precision=jax.lax.Precision.HIGHEST) + fc2_b


if __name__ == "__main__":
    N, C, num_classes = 2, 16, 10
    key = jax.random.PRNGKey(0)
    ks = jax.random.split(key, 7)
    x = jax.random.normal(ks[0], (N, C, IN_HW, IN_HW), jnp.float32)
    conv_w = 0.10 * jax.random.normal(ks[1], (CONV_OUT, C, 1, 1), jnp.float32)
    conv_b = 0.10 * jax.random.normal(ks[2], (CONV_OUT,), jnp.float32)
    fc1_w = 0.02 * jax.random.normal(ks[3], (FC1_OUT, CONV_OUT * NUM_POS), jnp.float32)
    fc1_b = 0.02 * jax.random.normal(ks[4], (FC1_OUT,), jnp.float32)
    fc2_w = 0.05 * jax.random.normal(ks[5], (num_classes, FC1_OUT), jnp.float32)
    fc2_b = 0.05 * jax.random.normal(ks[6], (num_classes,), jnp.float32)
    params = (conv_w, conv_b, fc1_w, fc1_b, fc2_w, fc2_b)

    out = jax.block_until_ready(aux_classifier_forward(x, params))
    ref = jax.block_until_ready(aux_classifier_reference(x, params))
    assert out.shape == (N, num_classes)
    # bf16 activations/weights (f32 MXU accumulation) -> slightly loose tolerance.
    if not jnp.allclose(out, ref, rtol=5e-2, atol=2e-2):
        raise AssertionError(
            f"kernel/reference mismatch, max abs err {jnp.max(jnp.abs(out - ref))}")
    print("KERNEL_OK")
</pallas_src>

<mosaic_0001>
module attributes {stable_mosaic.version = 11 : i64} {
  func.func @aux_classifier_kernel(%arg0: i32, %arg1: memref<16x8x128xbf16, #tpu.memory_space<vmem>>, %arg2: memref<128x128xbf16, #tpu.memory_space<vmem>>, %arg3: memref<1x128xf32, #tpu.memory_space<vmem>>, %arg4: memref<2048x1024xbf16, #tpu.memory_space<vmem>>, %arg5: memref<1x1024xf32, #tpu.memory_space<vmem>>, %arg6: memref<1024x128xbf16, #tpu.memory_space<vmem>>, %arg7: memref<1x128xf32, #tpu.memory_space<vmem>>, %arg8: memref<8x128xf32, #tpu.memory_space<vmem>>) attributes {dimension_semantics = [#tpu.dimension_semantics<parallel>], iteration_bounds = array<i64: 1>, scalar_prefetch = 0 : i64, scratch_operands = 0 : i64, tpu.core_type = #tpu.core_type<tc>, window_params = [{transform_indices = @transform_0, window_bounds = array<i64: 16, 8, 128>}, {pipeline_mode = #tpu.pipeline_mode<synchronous>, transform_indices = @transform_1, window_bounds = array<i64: 128, 128>}, {pipeline_mode = #tpu.pipeline_mode<synchronous>, transform_indices = @transform_2, window_bounds = array<i64: 1, 128>}, {pipeline_mode = #tpu.pipeline_mode<synchronous>, transform_indices = @transform_3, window_bounds = array<i64: 2048, 1024>}, {pipeline_mode = #tpu.pipeline_mode<synchronous>, transform_indices = @transform_4, window_bounds = array<i64: 1, 1024>}, {pipeline_mode = #tpu.pipeline_mode<synchronous>, transform_indices = @transform_5, window_bounds = array<i64: 1024, 128>}, {pipeline_mode = #tpu.pipeline_mode<synchronous>, transform_indices = @transform_6, window_bounds = array<i64: 1, 128>}, {transform_indices = @transform_7, window_bounds = array<i64: 8, 128>}]} {
    %cst = arith.constant 0.000000e+00 : f32
    %0 = vector.broadcast %cst : f32 to vector<8x1024xf32>
    %c0 = arith.constant 0 : index
    %c0_0 = arith.constant 0 : index
    %c0_1 = arith.constant 0 : index
    %1 = vector.load %arg1[%c0, %c0_0, %c0_1] : memref<16x8x128xbf16, #tpu.memory_space<vmem>>, vector<1x8x128xbf16>
    %2 = vector.shape_cast %1 : vector<1x8x128xbf16> to vector<8x128xbf16>
    %c0_2 = arith.constant 0 : index
    %c0_3 = arith.constant 0 : index
    %3 = vector.load %arg2[%c0_2, %c0_3] : memref<128x128xbf16, #tpu.memory_space<vmem>>, vector<128x128xbf16>
    %cst_4 = arith.constant dense<0.000000e+00> : vector<8x128xf32>
    %4 = tpu.matmul %2, %3, %cst_4 {dimension_numbers = #tpu.dot_dimension_numbers<[1], [0], [0], [1], [0, 0, 1, 1], [], []>} : vector<8x128xbf16>, vector<128x128xbf16>, vector<8x128xf32> -> vector<8x128xf32>
    %c0_5 = arith.constant 0 : index
    %c0_6 = arith.constant 0 : index
    %5 = vector.load %arg3[%c0_5, %c0_6] : memref<1x128xf32, #tpu.memory_space<vmem>>, vector<1x128xf32>
    %6 = vector.broadcast %5 : vector<1x128xf32> to vector<8x128xf32>
    %7 = arith.addf %4, %6 : vector<8x128xf32>
    %cst_7 = arith.constant 0.000000e+00 : f32
    %8 = vector.broadcast %cst_7 : f32 to vector<8x128xf32>
    %9 = arith.maximumf %7, %8 : vector<8x128xf32>
    %10 = arith.truncf %9 : vector<8x128xf32> to vector<8x128xbf16>
    %c0_8 = arith.constant 0 : index
    %c0_9 = arith.constant 0 : index
    %11 = vector.load %arg4[%c0_8, %c0_9] : memref<2048x1024xbf16, #tpu.memory_space<vmem>>, vector<128x1024xbf16>
    %cst_10 = arith.constant dense<0.000000e+00> : vector<8x1024xf32>
    %12 = tpu.matmul %10, %11, %cst_10 {dimension_numbers = #tpu.dot_dimension_numbers<[1], [0], [0], [1], [0, 0, 1, 1], [], []>} : vector<8x128xbf16>, vector<128x1024xbf16>, vector<8x1024xf32> -> vector<8x1024xf32>
    %13 = arith.addf %0, %12 : vector<8x1024xf32>
    %c1 = arith.constant 1 : index
    %c0_11 = arith.constant 0 : index
    %c0_12 = arith.constant 0 : index
    %14 = vector.load %arg1[%c1, %c0_11, %c0_12] : memref<16x8x128xbf16, #tpu.memory_space<vmem>>, vector<1x8x128xbf16>
    %15 = vector.shape_cast %14 : vector<1x8x128xbf16> to vector<8x128xbf16>
    %c0_13 = arith.constant 0 : index
    %c0_14 = arith.constant 0 : index
    %16 = vector.load %arg2[%c0_13, %c0_14] : memref<128x128xbf16, #tpu.memory_space<vmem>>, vector<128x128xbf16>
    %cst_15 = arith.constant dense<0.000000e+00> : vector<8x128xf32>
    %17 = tpu.matmul %15, %16, %cst_15 {dimension_numbers = #tpu.dot_dimension_numbers<[1], [0], [0], [1], [0, 0, 1, 1], [], []>} : vector<8x128xbf16>, vector<128x128xbf16>, vector<8x128xf32> -> vector<8x128xf32>
    %c0_16 = arith.constant 0 : index
    %c0_17 = arith.constant 0 : index
    %18 = vector.load %arg3[%c0_16, %c0_17] : memref<1x128xf32, #tpu.memory_space<vmem>>, vector<1x128xf32>
    %19 = vector.broadcast %18 : vector<1x128xf32> to vector<8x128xf32>
    %20 = arith.addf %17, %19 : vector<8x128xf32>
    %cst_18 = arith.constant 0.000000e+00 : f32
    %21 = vector.broadcast %cst_18 : f32 to vector<8x128xf32>
    %22 = arith.maximumf %20, %21 : vector<8x128xf32>
    %23 = arith.truncf %22 : vector<8x128xf32> to vector<8x128xbf16>
    %c128 = arith.constant 128 : index
    %c0_19 = arith.constant 0 : index
    %24 = vector.load %arg4[%c128, %c0_19] : memref<2048x1024xbf16, #tpu.memory_space<vmem>>, vector<128x1024xbf16>
    %cst_20 = arith.constant dense<0.000000e+00> : vector<8x1024xf32>
    %25 = tpu.matmul %23, %24, %cst_20 {dimension_numbers = #tpu.dot_dimension_numbers<[1], [0], [0], [1], [0, 0, 1, 1], [], []>} : vector<8x128xbf16>, vector<128x1024xbf16>, vector<8x1024xf32> -> vector<8x1024xf32>
    %26 = arith.addf %13, %25 : vector<8x1024xf32>
    %c2 = arith.constant 2 : index
    %c0_21 = arith.constant 0 : index
    %c0_22 = arith.constant 0 : index
    %27 = vector.load %arg1[%c2, %c0_21, %c0_22] : memref<16x8x128xbf16, #tpu.memory_space<vmem>>, vector<1x8x128xbf16>
    %28 = vector.shape_cast %27 : vector<1x8x128xbf16> to vector<8x128xbf16>
    %c0_23 = arith.constant 0 : index
    %c0_24 = arith.constant 0 : index
    %29 = vector.load %arg2[%c0_23, %c0_24] : memref<128x128xbf16, #tpu.memory_space<vmem>>, vector<128x128xbf16>
    %cst_25 = arith.constant dense<0.000000e+00> : vector<8x128xf32>
    %30 = tpu.matmul %28, %29, %cst_25 {dimension_numbers = #tpu.dot_dimension_numbers<[1], [0], [0], [1], [0, 0, 1, 1], [], []>} : vector<8x128xbf16>, vector<128x128xbf16>, vector<8x128xf32> -> vector<8x128xf32>
    %c0_26 = arith.constant 0 : index
    %c0_27 = arith.constant 0 : index
    %31 = vector.load %arg3[%c0_26, %c0_27] : memref<1x128xf32, #tpu.memory_space<vmem>>, vector<1x128xf32>
    %32 = vector.broadcast %31 : vector<1x128xf32> to vector<8x128xf32>
    %33 = arith.addf %30, %32 : vector<8x128xf32>
    %cst_28 = arith.constant 0.000000e+00 : f32
    %34 = vector.broadcast %cst_28 : f32 to vector<8x128xf32>
    %35 = arith.maximumf %33, %34 : vector<8x128xf32>
    %36 = arith.truncf %35 : vector<8x128xf32> to vector<8x128xbf16>
    %c256 = arith.constant 256 : index
    %c0_29 = arith.constant 0 : index
    %37 = vector.load %arg4[%c256, %c0_29] : memref<2048x1024xbf16, #tpu.memory_space<vmem>>, vector<128x1024xbf16>
    %cst_30 = arith.constant dense<0.000000e+00> : vector<8x1024xf32>
    %38 = tpu.matmul %36, %37, %cst_30 {dimension_numbers = #tpu.dot_dimension_numbers<[1], [0], [0], [1], [0, 0, 1, 1], [], []>} : vector<8x128xbf16>, vector<128x1024xbf16>, vector<8x1024xf32> -> vector<8x1024xf32>
    %39 = arith.addf %26, %38 : vector<8x1024xf32>
    %c3 = arith.constant 3 : index
    %c0_31 = arith.constant 0 : index
    %c0_32 = arith.constant 0 : index
    %40 = vector.load %arg1[%c3, %c0_31, %c0_32] : memref<16x8x128xbf16, #tpu.memory_space<vmem>>, vector<1x8x128xbf16>
    %41 = vector.shape_cast %40 : vector<1x8x128xbf16> to vector<8x128xbf16>
    %c0_33 = arith.constant 0 : index
    %c0_34 = arith.constant 0 : index
    %42 = vector.load %arg2[%c0_33, %c0_34] : memref<128x128xbf16, #tpu.memory_space<vmem>>, vector<128x128xbf16>
    %cst_35 = arith.constant dense<0.000000e+00> : vector<8x128xf32>
    %43 = tpu.matmul %41, %42, %cst_35 {dimension_numbers = #tpu.dot_dimension_numbers<[1], [0], [0], [1], [0, 0, 1, 1], [], []>} : vector<8x128xbf16>, vector<128x128xbf16>, vector<8x128xf32> -> vector<8x128xf32>
    %c0_36 = arith.constant 0 : index
    %c0_37 = arith.constant 0 : index
    %44 = vector.load %arg3[%c0_36, %c0_37] : memref<1x128xf32, #tpu.memory_space<vmem>>, vector<1x128xf32>
    %45 = vector.broadcast %44 : vector<1x128xf32> to vector<8x128xf32>
    %46 = arith.addf %43, %45 : vector<8x128xf32>
    %cst_38 = arith.constant 0.000000e+00 : f32
    %47 = vector.broadcast %cst_38 : f32 to vector<8x128xf32>
    %48 = arith.maximumf %46, %47 : vector<8x128xf32>
    %49 = arith.truncf %48 : vector<8x128xf32> to vector<8x128xbf16>
    %c384 = arith.constant 384 : index
    %c0_39 = arith.constant 0 : index
    %50 = vector.load %arg4[%c384, %c0_39] : memref<2048x1024xbf16, #tpu.memory_space<vmem>>, vector<128x1024xbf16>
    %cst_40 = arith.constant dense<0.000000e+00> : vector<8x1024xf32>
    %51 = tpu.matmul %49, %50, %cst_40 {dimension_numbers = #tpu.dot_dimension_numbers<[1], [0], [0], [1], [0, 0, 1, 1], [], []>} : vector<8x128xbf16>, vector<128x1024xbf16>, vector<8x1024xf32> -> vector<8x1024xf32>
    %52 = arith.addf %39, %51 : vector<8x1024xf32>
    %c4 = arith.constant 4 : index
    %c0_41 = arith.constant 0 : index
    %c0_42 = arith.constant 0 : index
    %53 = vector.load %arg1[%c4, %c0_41, %c0_42] : memref<16x8x128xbf16, #tpu.memory_space<vmem>>, vector<1x8x128xbf16>
    %54 = vector.shape_cast %53 : vector<1x8x128xbf16> to vector<8x128xbf16>
    %c0_43 = arith.constant 0 : index
    %c0_44 = arith.constant 0 : index
    %55 = vector.load %arg2[%c0_43, %c0_44] : memref<128x128xbf16, #tpu.memory_space<vmem>>, vector<128x128xbf16>
    %cst_45 = arith.constant dense<0.000000e+00> : vector<8x128xf32>
    %56 = tpu.matmul %54, %55, %cst_45 {dimension_numbers = #tpu.dot_dimension_numbers<[1], [0], [0], [1], [0, 0, 1, 1], [], []>} : vector<8x128xbf16>, vector<128x128xbf16>, vector<8x128xf32> -> vector<8x128xf32>
    %c0_46 = arith.constant 0 : index
    %c0_47 = arith.constant 0 : index
    %57 = vector.load %arg3[%c0_46, %c0_47] : memref<1x128xf32, #tpu.memory_space<vmem>>, vector<1x128xf32>
    %58 = vector.broadcast %57 : vector<1x128xf32> to vector<8x128xf32>
    %59 = arith.addf %56, %58 : vector<8x128xf32>
    %cst_48 = arith.constant 0.000000e+00 : f32
    %60 = vector.broadcast %cst_48 : f32 to vector<8x128xf32>
    %61 = arith.maximumf %59, %60 : vector<8x128xf32>
    %62 = arith.truncf %61 : vector<8x128xf32> to vector<8x128xbf16>
    %c512 = arith.constant 512 : index
    %c0_49 = arith.constant 0 : index
    %63 = vector.load %arg4[%c512, %c0_49] : memref<2048x1024xbf16, #tpu.memory_space<vmem>>, vector<128x1024xbf16>
    %cst_50 = arith.constant dense<0.000000e+00> : vector<8x1024xf32>
    %64 = tpu.matmul %62, %63, %cst_50 {dimension_numbers = #tpu.dot_dimension_numbers<[1], [0], [0], [1], [0, 0, 1, 1], [], []>} : vector<8x128xbf16>, vector<128x1024xbf16>, vector<8x1024xf32> -> vector<8x1024xf32>
    %65 = arith.addf %52, %64 : vector<8x1024xf32>
    %c5 = arith.constant 5 : index
    %c0_51 = arith.constant 0 : index
    %c0_52 = arith.constant 0 : index
    %66 = vector.load %arg1[%c5, %c0_51, %c0_52] : memref<16x8x128xbf16, #tpu.memory_space<vmem>>, vector<1x8x128xbf16>
    %67 = vector.shape_cast %66 : vector<1x8x128xbf16> to vector<8x128xbf16>
    %c0_53 = arith.constant 0 : index
    %c0_54 = arith.constant 0 : index
    %68 = vector.load %arg2[%c0_53, %c0_54] : memref<128x128xbf16, #tpu.memory_space<vmem>>, vector<128x128xbf16>
    %cst_55 = arith.constant dense<0.000000e+00> : vector<8x128xf32>
    %69 = tpu.matmul %67, %68, %cst_55 {dimension_numbers = #tpu.dot_dimension_numbers<[1], [0], [0], [1], [0, 0, 1, 1], [], []>} : vector<8x128xbf16>, vector<128x128xbf16>, vector<8x128xf32> -> vector<8x128xf32>
    %c0_56 = arith.constant 0 : index
    %c0_57 = arith.constant 0 : index
    %70 = vector.load %arg3[%c0_56, %c0_57] : memref<1x128xf32, #tpu.memory_space<vmem>>, vector<1x128xf32>
    %71 = vector.broadcast %70 : vector<1x128xf32> to vector<8x128xf32>
    %72 = arith.addf %69, %71 : vector<8x128xf32>
    %cst_58 = arith.constant 0.000000e+00 : f32
    %73 = vector.broadcast %cst_58 : f32 to vector<8x128xf32>
    %74 = arith.maximumf %72, %73 : vector<8x128xf32>
    %75 = arith.truncf %74 : vector<8x128xf32> to vector<8x128xbf16>
    %c640 = arith.constant 640 : index
    %c0_59 = arith.constant 0 : index
    %76 = vector.load %arg4[%c640, %c0_59] : memref<2048x1024xbf16, #tpu.memory_space<vmem>>, vector<128x1024xbf16>
    %cst_60 = arith.constant dense<0.000000e+00> : vector<8x1024xf32>
    %77 = tpu.matmul %75, %76, %cst_60 {dimension_numbers = #tpu.dot_dimension_numbers<[1], [0], [0], [1], [0, 0, 1, 1], [], []>} : vector<8x128xbf16>, vector<128x1024xbf16>, vector<8x1024xf32> -> vector<8x1024xf32>
    %78 = arith.addf %65, %77 : vector<8x1024xf32>
    %c6 = arith.constant 6 : index
    %c0_61 = arith.constant 0 : index
    %c0_62 = arith.constant 0 : index
    %79 = vector.load %arg1[%c6, %c0_61, %c0_62] : memref<16x8x128xbf16, #tpu.memory_space<vmem>>, vector<1x8x128xbf16>
    %80 = vector.shape_cast %79 : vector<1x8x128xbf16> to vector<8x128xbf16>
    %c0_63 = arith.constant 0 : index
    %c0_64 = arith.constant 0 : index
    %81 = vector.load %arg2[%c0_63, %c0_64] : memref<128x128xbf16, #tpu.memory_space<vmem>>, vector<128x128xbf16>
    %cst_65 = arith.constant dense<0.000000e+00> : vector<8x128xf32>
    %82 = tpu.matmul %80, %81, %cst_65 {dimension_numbers = #tpu.dot_dimension_numbers<[1], [0], [0], [1], [0, 0, 1, 1], [], []>} : vector<8x128xbf16>, vector<128x128xbf16>, vector<8x128xf32> -> vector<8x128xf32>
    %c0_66 = arith.constant 0 : index
    %c0_67 = arith.constant 0 : index
    %83 = vector.load %arg3[%c0_66, %c0_67] : memref<1x128xf32, #tpu.memory_space<vmem>>, vector<1x128xf32>
    %84 = vector.broadcast %83 : vector<1x128xf32> to vector<8x128xf32>
    %85 = arith.addf %82, %84 : vector<8x128xf32>
    %cst_68 = arith.constant 0.000000e+00 : f32
    %86 = vector.broadcast %cst_68 : f32 to vector<8x128xf32>
    %87 = arith.maximumf %85, %86 : vector<8x128xf32>
    %88 = arith.truncf %87 : vector<8x128xf32> to vector<8x128xbf16>
    %c768 = arith.constant 768 : index
    %c0_69 = arith.constant 0 : index
    %89 = vector.load %arg4[%c768, %c0_69] : memref<2048x1024xbf16, #tpu.memory_space<vmem>>, vector<128x1024xbf16>
    %cst_70 = arith.constant dense<0.000000e+00> : vector<8x1024xf32>
    %90 = tpu.matmul %88, %89, %cst_70 {dimension_numbers = #tpu.dot_dimension_numbers<[1], [0], [0], [1], [0, 0, 1, 1], [], []>} : vector<8x128xbf16>, vector<128x1024xbf16>, vector<8x1024xf32> -> vector<8x1024xf32>
    %91 = arith.addf %78, %90 : vector<8x1024xf32>
    %c7 = arith.constant 7 : index
    %c0_71 = arith.constant 0 : index
    %c0_72 = arith.constant 0 : index
    %92 = vector.load %arg1[%c7, %c0_71, %c0_72] : memref<16x8x128xbf16, #tpu.memory_space<vmem>>, vector<1x8x128xbf16>
    %93 = vector.shape_cast %92 : vector<1x8x128xbf16> to vector<8x128xbf16>
    %c0_73 = arith.constant 0 : index
    %c0_74 = arith.constant 0 : index
    %94 = vector.load %arg2[%c0_73, %c0_74] : memref<128x128xbf16, #tpu.memory_space<vmem>>, vector<128x128xbf16>
    %cst_75 = arith.constant dense<0.000000e+00> : vector<8x128xf32>
    %95 = tpu.matmul %93, %94, %cst_75 {dimension_numbers = #tpu.dot_dimension_numbers<[1], [0], [0], [1], [0, 0, 1, 1], [], []>} : vector<8x128xbf16>, vector<128x128xbf16>, vector<8x128xf32> -> vector<8x128xf32>
    %c0_76 = arith.constant 0 : index
    %c0_77 = arith.constant 0 : index
    %96 = vector.load %arg3[%c0_76, %c0_77] : memref<1x128xf32, #tpu.memory_space<vmem>>, vector<1x128xf32>
    %97 = vector.broadcast %96 : vector<1x128xf32> to vector<8x128xf32>
    %98 = arith.addf %95, %97 : vector<8x128xf32>
    %cst_78 = arith.constant 0.000000e+00 : f32
    %99 = vector.broadcast %cst_78 : f32 to vector<8x128xf32>
    %100 = arith.maximumf %98, %99 : vector<8x128xf32>
    %101 = arith.truncf %100 : vector<8x128xf32> to vector<8x128xbf16>
    %c896 = arith.constant 896 : index
    %c0_79 = arith.constant 0 : index
    %102 = vector.load %arg4[%c896, %c0_79] : memref<2048x1024xbf16, #tpu.memory_space<vmem>>, vector<128x1024xbf16>
    %cst_80 = arith.constant dense<0.000000e+00> : vector<8x1024xf32>
    %103 = tpu.matmul %101, %102, %cst_80 {dimension_numbers = #tpu.dot_dimension_numbers<[1], [0], [0], [1], [0, 0, 1, 1], [], []>} : vector<8x128xbf16>, vector<128x1024xbf16>, vector<8x1024xf32> -> vector<8x1024xf32>
    %104 = arith.addf %91, %103 : vector<8x1024xf32>
    %c8 = arith.constant 8 : index
    %c0_81 = arith.constant 0 : index
    %c0_82 = arith.constant 0 : index
    %105 = vector.load %arg1[%c8, %c0_81, %c0_82] : memref<16x8x128xbf16, #tpu.memory_space<vmem>>, vector<1x8x128xbf16>
    %106 = vector.shape_cast %105 : vector<1x8x128xbf16> to vector<8x128xbf16>
    %c0_83 = arith.constant 0 : index
    %c0_84 = arith.constant 0 : index
    %107 = vector.load %arg2[%c0_83, %c0_84] : memref<128x128xbf16, #tpu.memory_space<vmem>>, vector<128x128xbf16>
    %cst_85 = arith.constant dense<0.000000e+00> : vector<8x128xf32>
    %108 = tpu.matmul %106, %107, %cst_85 {dimension_numbers = #tpu.dot_dimension_numbers<[1], [0], [0], [1], [0, 0, 1, 1], [], []>} : vector<8x128xbf16>, vector<128x128xbf16>, vector<8x128xf32> -> vector<8x128xf32>
    %c0_86 = arith.constant 0 : index
    %c0_87 = arith.constant 0 : index
    %109 = vector.load %arg3[%c0_86, %c0_87] : memref<1x128xf32, #tpu.memory_space<vmem>>, vector<1x128xf32>
    %110 = vector.broadcast %109 : vector<1x128xf32> to vector<8x128xf32>
    %111 = arith.addf %108, %110 : vector<8x128xf32>
    %cst_88 = arith.constant 0.000000e+00 : f32
    %112 = vector.broadcast %cst_88 : f32 to vector<8x128xf32>
    %113 = arith.maximumf %111, %112 : vector<8x128xf32>
    %114 = arith.truncf %113 : vector<8x128xf32> to vector<8x128xbf16>
    %c1024 = arith.constant 1024 : index
    %c0_89 = arith.constant 0 : index
    %115 = vector.load %arg4[%c1024, %c0_89] : memref<2048x1024xbf16, #tpu.memory_space<vmem>>, vector<128x1024xbf16>
    %cst_90 = arith.constant dense<0.000000e+00> : vector<8x1024xf32>
    %116 = tpu.matmul %114, %115, %cst_90 {dimension_numbers = #tpu.dot_dimension_numbers<[1], [0], [0], [1], [0, 0, 1, 1], [], []>} : vector<8x128xbf16>, vector<128x1024xbf16>, vector<8x1024xf32> -> vector<8x1024xf32>
    %117 = arith.addf %104, %116 : vector<8x1024xf32>
    %c9 = arith.constant 9 : index
    %c0_91 = arith.constant 0 : index
    %c0_92 = arith.constant 0 : index
    %118 = vector.load %arg1[%c9, %c0_91, %c0_92] : memref<16x8x128xbf16, #tpu.memory_space<vmem>>, vector<1x8x128xbf16>
    %119 = vector.shape_cast %118 : vector<1x8x128xbf16> to vector<8x128xbf16>
    %c0_93 = arith.constant 0 : index
    %c0_94 = arith.constant 0 : index
    %120 = vector.load %arg2[%c0_93, %c0_94] : memref<128x128xbf16, #tpu.memory_space<vmem>>, vector<128x128xbf16>
    %cst_95 = arith.constant dense<0.000000e+00> : vector<8x128xf32>
    %121 = tpu.matmul %119, %120, %cst_95 {dimension_numbers = #tpu.dot_dimension_numbers<[1], [0], [0], [1], [0, 0, 1, 1], [], []>} : vector<8x128xbf16>, vector<128x128xbf16>, vector<8x128xf32> -> vector<8x128xf32>
    %c0_96 = arith.constant 0 : index
    %c0_97 = arith.constant 0 : index
    %122 = vector.load %arg3[%c0_96, %c0_97] : memref<1x128xf32, #tpu.memory_space<vmem>>, vector<1x128xf32>
    %123 = vector.broadcast %122 : vector<1x128xf32> to vector<8x128xf32>
    %124 = arith.addf %121, %123 : vector<8x128xf32>
    %cst_98 = arith.constant 0.000000e+00 : f32
    %125 = vector.broadcast %cst_98 : f32 to vector<8x128xf32>
    %126 = arith.maximumf %124, %125 : vector<8x128xf32>
    %127 = arith.truncf %126 : vector<8x128xf32> to vector<8x128xbf16>
    %c1152 = arith.constant 1152 : index
    %c0_99 = arith.constant 0 : index
    %128 = vector.load %arg4[%c1152, %c0_99] : memref<2048x1024xbf16, #tpu.memory_space<vmem>>, vector<128x1024xbf16>
    %cst_100 = arith.constant dense<0.000000e+00> : vector<8x1024xf32>
    %129 = tpu.matmul %127, %128, %cst_100 {dimension_numbers = #tpu.dot_dimension_numbers<[1], [0], [0], [1], [0, 0, 1, 1], [], []>} : vector<8x128xbf16>, vector<128x1024xbf16>, vector<8x1024xf32> -> vector<8x1024xf32>
    %130 = arith.addf %117, %129 : vector<8x1024xf32>
    %c10 = arith.constant 10 : index
    %c0_101 = arith.constant 0 : index
    %c0_102 = arith.constant 0 : index
    %131 = vector.load %arg1[%c10, %c0_101, %c0_102] : memref<16x8x128xbf16, #tpu.memory_space<vmem>>, vector<1x8x128xbf16>
    %132 = vector.shape_cast %131 : vector<1x8x128xbf16> to vector<8x128xbf16>
    %c0_103 = arith.constant 0 : index
    %c0_104 = arith.constant 0 : index
    %133 = vector.load %arg2[%c0_103, %c0_104] : memref<128x128xbf16, #tpu.memory_space<vmem>>, vector<128x128xbf16>
    %cst_105 = arith.constant dense<0.000000e+00> : vector<8x128xf32>
    %134 = tpu.matmul %132, %133, %cst_105 {dimension_numbers = #tpu.dot_dimension_numbers<[1], [0], [0], [1], [0, 0, 1, 1], [], []>} : vector<8x128xbf16>, vector<128x128xbf16>, vector<8x128xf32> -> vector<8x128xf32>
    %c0_106 = arith.constant 0 : index
    %c0_107 = arith.constant 0 : index
    %135 = vector.load %arg3[%c0_106, %c0_107] : memref<1x128xf32, #tpu.memory_space<vmem>>, vector<1x128xf32>
    %136 = vector.broadcast %135 : vector<1x128xf32> to vector<8x128xf32>
    %137 = arith.addf %134, %136 : vector<8x128xf32>
    %cst_108 = arith.constant 0.000000e+00 : f32
    %138 = vector.broadcast %cst_108 : f32 to vector<8x128xf32>
    %139 = arith.maximumf %137, %138 : vector<8x128xf32>
    %140 = arith.truncf %139 : vector<8x128xf32> to vector<8x128xbf16>
    %c1280 = arith.constant 1280 : index
    %c0_109 = arith.constant 0 : index
    %141 = vector.load %arg4[%c1280, %c0_109] : memref<2048x1024xbf16, #tpu.memory_space<vmem>>, vector<128x1024xbf16>
    %cst_110 = arith.constant dense<0.000000e+00> : vector<8x1024xf32>
    %142 = tpu.matmul %140, %141, %cst_110 {dimension_numbers = #tpu.dot_dimension_numbers<[1], [0], [0], [1], [0, 0, 1, 1], [], []>} : vector<8x128xbf16>, vector<128x1024xbf16>, vector<8x1024xf32> -> vector<8x1024xf32>
    %143 = arith.addf %130, %142 : vector<8x1024xf32>
    %c11 = arith.constant 11 : index
    %c0_111 = arith.constant 0 : index
    %c0_112 = arith.constant 0 : index
    %144 = vector.load %arg1[%c11, %c0_111, %c0_112] : memref<16x8x128xbf16, #tpu.memory_space<vmem>>, vector<1x8x128xbf16>
    %145 = vector.shape_cast %144 : vector<1x8x128xbf16> to vector<8x128xbf16>
    %c0_113 = arith.constant 0 : index
    %c0_114 = arith.constant 0 : index
    %146 = vector.load %arg2[%c0_113, %c0_114] : memref<128x128xbf16, #tpu.memory_space<vmem>>, vector<128x128xbf16>
    %cst_115 = arith.constant dense<0.000000e+00> : vector<8x128xf32>
    %147 = tpu.matmul %145, %146, %cst_115 {dimension_numbers = #tpu.dot_dimension_numbers<[1], [0], [0], [1], [0, 0, 1, 1], [], []>} : vector<8x128xbf16>, vector<128x128xbf16>, vector<8x128xf32> -> vector<8x128xf32>
    %c0_116 = arith.constant 0 : index
    %c0_117 = arith.constant 0 : index
    %148 = vector.load %arg3[%c0_116, %c0_117] : memref<1x128xf32, #tpu.memory_space<vmem>>, vector<1x128xf32>
    %149 = vector.broadcast %148 : vector<1x128xf32> to vector<8x128xf32>
    %150 = arith.addf %147, %149 : vector<8x128xf32>
    %cst_118 = arith.constant 0.000000e+00 : f32
    %151 = vector.broadcast %cst_118 : f32 to vector<8x128xf32>
    %152 = arith.maximumf %150, %151 : vector<8x128xf32>
    %153 = arith.truncf %152 : vector<8x128xf32> to vector<8x128xbf16>
    %c1408 = arith.constant 1408 : index
    %c0_119 = arith.constant 0 : index
    %154 = vector.load %arg4[%c1408, %c0_119] : memref<2048x1024xbf16, #tpu.memory_space<vmem>>, vector<128x1024xbf16>
    %cst_120 = arith.constant dense<0.000000e+00> : vector<8x1024xf32>
    %155 = tpu.matmul %153, %154, %cst_120 {dimension_numbers = #tpu.dot_dimension_numbers<[1], [0], [0], [1], [0, 0, 1, 1], [], []>} : vector<8x128xbf16>, vector<128x1024xbf16>, vector<8x1024xf32> -> vector<8x1024xf32>
    %156 = arith.addf %143, %155 : vector<8x1024xf32>
    %c12 = arith.constant 12 : index
    %c0_121 = arith.constant 0 : index
    %c0_122 = arith.constant 0 : index
    %157 = vector.load %arg1[%c12, %c0_121, %c0_122] : memref<16x8x128xbf16, #tpu.memory_space<vmem>>, vector<1x8x128xbf16>
    %158 = vector.shape_cast %157 : vector<1x8x128xbf16> to vector<8x128xbf16>
    %c0_123 = arith.constant 0 : index
    %c0_124 = arith.constant 0 : index
    %159 = vector.load %arg2[%c0_123, %c0_124] : memref<128x128xbf16, #tpu.memory_space<vmem>>, vector<128x128xbf16>
    %cst_125 = arith.constant dense<0.000000e+00> : vector<8x128xf32>
    %160 = tpu.matmul %158, %159, %cst_125 {dimension_numbers = #tpu.dot_dimension_numbers<[1], [0], [0], [1], [0, 0, 1, 1], [], []>} : vector<8x128xbf16>, vector<128x128xbf16>, vector<8x128xf32> -> vector<8x128xf32>
    %c0_126 = arith.constant 0 : index
    %c0_127 = arith.constant 0 : index
    %161 = vector.load %arg3[%c0_126, %c0_127] : memref<1x128xf32, #tpu.memory_space<vmem>>, vector<1x128xf32>
    %162 = vector.broadcast %161 : vector<1x128xf32> to vector<8x128xf32>
    %163 = arith.addf %160, %162 : vector<8x128xf32>
    %cst_128 = arith.constant 0.000000e+00 : f32
    %164 = vector.broadcast %cst_128 : f32 to vector<8x128xf32>
    %165 = arith.maximumf %163, %164 : vector<8x128xf32>
    %166 = arith.truncf %165 : vector<8x128xf32> to vector<8x128xbf16>
    %c1536 = arith.constant 1536 : index
    %c0_129 = arith.constant 0 : index
    %167 = vector.load %arg4[%c1536, %c0_129] : memref<2048x1024xbf16, #tpu.memory_space<vmem>>, vector<128x1024xbf16>
    %cst_130 = arith.constant dense<0.000000e+00> : vector<8x1024xf32>
    %168 = tpu.matmul %166, %167, %cst_130 {dimension_numbers = #tpu.dot_dimension_numbers<[1], [0], [0], [1], [0, 0, 1, 1], [], []>} : vector<8x128xbf16>, vector<128x1024xbf16>, vector<8x1024xf32> -> vector<8x1024xf32>
    %169 = arith.addf %156, %168 : vector<8x1024xf32>
    %c13 = arith.constant 13 : index
    %c0_131 = arith.constant 0 : index
    %c0_132 = arith.constant 0 : index
    %170 = vector.load %arg1[%c13, %c0_131, %c0_132] : memref<16x8x128xbf16, #tpu.memory_space<vmem>>, vector<1x8x128xbf16>
    %171 = vector.shape_cast %170 : vector<1x8x128xbf16> to vector<8x128xbf16>
    %c0_133 = arith.constant 0 : index
    %c0_134 = arith.constant 0 : index
    %172 = vector.load %arg2[%c0_133, %c0_134] : memref<128x128xbf16, #tpu.memory_space<vmem>>, vector<128x128xbf16>
    %cst_135 = arith.constant dense<0.000000e+00> : vector<8x128xf32>
    %173 = tpu.matmul %171, %172, %cst_135 {dimension_numbers = #tpu.dot_dimension_numbers<[1], [0], [0], [1], [0, 0, 1, 1], [], []>} : vector<8x128xbf16>, vector<128x128xbf16>, vector<8x128xf32> -> vector<8x128xf32>
    %c0_136 = arith.constant 0 : index
    %c0_137 = arith.constant 0 : index
    %174 = vector.load %arg3[%c0_136, %c0_137] : memref<1x128xf32, #tpu.memory_space<vmem>>, vector<1x128xf32>
    %175 = vector.broadcast %174 : vector<1x128xf32> to vector<8x128xf32>
    %176 = arith.addf %173, %175 : vector<8x128xf32>
    %cst_138 = arith.constant 0.000000e+00 : f32
    %177 = vector.broadcast %cst_138 : f32 to vector<8x128xf32>
    %178 = arith.maximumf %176, %177 : vector<8x128xf32>
    %179 = arith.truncf %178 : vector<8x128xf32> to vector<8x128xbf16>
    %c1664 = arith.constant 1664 : index
    %c0_139 = arith.constant 0 : index
    %180 = vector.load %arg4[%c1664, %c0_139] : memref<2048x1024xbf16, #tpu.memory_space<vmem>>, vector<128x1024xbf16>
    %cst_140 = arith.constant dense<0.000000e+00> : vector<8x1024xf32>
    %181 = tpu.matmul %179, %180, %cst_140 {dimension_numbers = #tpu.dot_dimension_numbers<[1], [0], [0], [1], [0, 0, 1, 1], [], []>} : vector<8x128xbf16>, vector<128x1024xbf16>, vector<8x1024xf32> -> vector<8x1024xf32>
    %182 = arith.addf %169, %181 : vector<8x1024xf32>
    %c14 = arith.constant 14 : index
    %c0_141 = arith.constant 0 : index
    %c0_142 = arith.constant 0 : index
    %183 = vector.load %arg1[%c14, %c0_141, %c0_142] : memref<16x8x128xbf16, #tpu.memory_space<vmem>>, vector<1x8x128xbf16>
    %184 = vector.shape_cast %183 : vector<1x8x128xbf16> to vector<8x128xbf16>
    %c0_143 = arith.constant 0 : index
    %c0_144 = arith.constant 0 : index
    %185 = vector.load %arg2[%c0_143, %c0_144] : memref<128x128xbf16, #tpu.memory_space<vmem>>, vector<128x128xbf16>
    %cst_145 = arith.constant dense<0.000000e+00> : vector<8x128xf32>
    %186 = tpu.matmul %184, %185, %cst_145 {dimension_numbers = #tpu.dot_dimension_numbers<[1], [0], [0], [1], [0, 0, 1, 1], [], []>} : vector<8x128xbf16>, vector<128x128xbf16>, vector<8x128xf32> -> vector<8x128xf32>
    %c0_146 = arith.constant 0 : index
    %c0_147 = arith.constant 0 : index
    %187 = vector.load %arg3[%c0_146, %c0_147] : memref<1x128xf32, #tpu.memory_space<vmem>>, vector<1x128xf32>
    %188 = vector.broadcast %187 : vector<1x128xf32> to vector<8x128xf32>
    %189 = arith.addf %186, %188 : vector<8x128xf32>
    %cst_148 = arith.constant 0.000000e+00 : f32
    %190 = vector.broadcast %cst_148 : f32 to vector<8x128xf32>
    %191 = arith.maximumf %189, %190 : vector<8x128xf32>
    %192 = arith.truncf %191 : vector<8x128xf32> to vector<8x128xbf16>
    %c1792 = arith.constant 1792 : index
    %c0_149 = arith.constant 0 : index
    %193 = vector.load %arg4[%c1792, %c0_149] : memref<2048x1024xbf16, #tpu.memory_space<vmem>>, vector<128x1024xbf16>
    %cst_150 = arith.constant dense<0.000000e+00> : vector<8x1024xf32>
    %194 = tpu.matmul %192, %193, %cst_150 {dimension_numbers = #tpu.dot_dimension_numbers<[1], [0], [0], [1], [0, 0, 1, 1], [], []>} : vector<8x128xbf16>, vector<128x1024xbf16>, vector<8x1024xf32> -> vector<8x1024xf32>
    %195 = arith.addf %182, %194 : vector<8x1024xf32>
    %c15 = arith.constant 15 : index
    %c0_151 = arith.constant 0 : index
    %c0_152 = arith.constant 0 : index
    %196 = vector.load %arg1[%c15, %c0_151, %c0_152] : memref<16x8x128xbf16, #tpu.memory_space<vmem>>, vector<1x8x128xbf16>
    %197 = vector.shape_cast %196 : vector<1x8x128xbf16> to vector<8x128xbf16>
    %c0_153 = arith.constant 0 : index
    %c0_154 = arith.constant 0 : index
    %198 = vector.load %arg2[%c0_153, %c0_154] : memref<128x128xbf16, #tpu.memory_space<vmem>>, vector<128x128xbf16>
    %cst_155 = arith.constant dense<0.000000e+00> : vector<8x128xf32>
    %199 = tpu.matmul %197, %198, %cst_155 {dimension_numbers = #tpu.dot_dimension_numbers<[1], [0], [0], [1], [0, 0, 1, 1], [], []>} : vector<8x128xbf16>, vector<128x128xbf16>, vector<8x128xf32> -> vector<8x128xf32>
    %c0_156 = arith.constant 0 : index
    %c0_157 = arith.constant 0 : index
    %200 = vector.load %arg3[%c0_156, %c0_157] : memref<1x128xf32, #tpu.memory_space<vmem>>, vector<1x128xf32>
    %201 = vector.broadcast %200 : vector<1x128xf32> to vector<8x128xf32>
    %202 = arith.addf %199, %201 : vector<8x128xf32>
    %cst_158 = arith.constant 0.000000e+00 : f32
    %203 = vector.broadcast %cst_158 : f32 to vector<8x128xf32>
    %204 = arith.maximumf %202, %203 : vector<8x128xf32>
    %205 = arith.truncf %204 : vector<8x128xf32> to vector<8x128xbf16>
    %c1920 = arith.constant 1920 : index
    %c0_159 = arith.constant 0 : index
    %206 = vector.load %arg4[%c1920, %c0_159] : memref<2048x1024xbf16, #tpu.memory_space<vmem>>, vector<128x1024xbf16>
    %cst_160 = arith.constant dense<0.000000e+00> : vector<8x1024xf32>
    %207 = tpu.matmul %205, %206, %cst_160 {dimension_numbers = #tpu.dot_dimension_numbers<[1], [0], [0], [1], [0, 0, 1, 1], [], []>} : vector<8x128xbf16>, vector<128x1024xbf16>, vector<8x1024xf32> -> vector<8x1024xf32>
    %208 = arith.addf %195, %207 : vector<8x1024xf32>
    %c0_161 = arith.constant 0 : index
    %c0_162 = arith.constant 0 : index
    %209 = vector.load %arg5[%c0_161, %c0_162] : memref<1x1024xf32, #tpu.memory_space<vmem>>, vector<1x1024xf32>
    %210 = vector.broadcast %209 : vector<1x1024xf32> to vector<8x1024xf32>
    %211 = arith.addf %208, %210 : vector<8x1024xf32>
    %cst_163 = arith.constant 0.000000e+00 : f32
    %212 = vector.broadcast %cst_163 : f32 to vector<8x1024xf32>
    %213 = arith.maximumf %211, %212 : vector<8x1024xf32>
    %214 = arith.truncf %213 : vector<8x1024xf32> to vector<8x1024xbf16>
    %c0_164 = arith.constant 0 : index
    %c0_165 = arith.constant 0 : index
    %215 = vector.load %arg6[%c0_164, %c0_165] : memref<1024x128xbf16, #tpu.memory_space<vmem>>, vector<1024x128xbf16>
    %cst_166 = arith.constant dense<0.000000e+00> : vector<8x128xf32>
    %216 = tpu.matmul %214, %215, %cst_166 {dimension_numbers = #tpu.dot_dimension_numbers<[1], [0], [0], [1], [0, 0, 1, 1], [], []>} : vector<8x1024xbf16>, vector<1024x128xbf16>, vector<8x128xf32> -> vector<8x128xf32>
    %c0_167 = arith.constant 0 : index
    %c0_168 = arith.constant 0 : index
    %217 = vector.load %arg7[%c0_167, %c0_168] : memref<1x128xf32, #tpu.memory_space<vmem>>, vector<1x128xf32>
    %218 = vector.broadcast %217 : vector<1x128xf32> to vector<8x128xf32>
    %219 = arith.addf %216, %218 : vector<8x128xf32>
    %c0_169 = arith.constant 0 : index
    %c0_170 = arith.constant 0 : index
    %220 = vector.load %arg8[%c0_169, %c0_170] : memref<8x128xf32, #tpu.memory_space<vmem>>, vector<8x128xf32>
    tpu.vector_store %arg8[%c0_169, %c0_170], %219 {strides = array<i32>} : memref<8x128xf32, #tpu.memory_space<vmem>>, vector<8x128xf32>,
    return
  }
  func.func @transform_0(%arg0: i32) -> (i32, i32, i32) {
    %c0_i32 = arith.constant 0 : i32
    %c0_i32_0 = arith.constant 0 : i32
    %c0_i32_1 = arith.constant 0 : i32
    return %c0_i32, %arg0, %c0_i32_0 : i32, i32, i32
  }
  func.func @transform_1(%arg0: i32) -> (i32, i32) {
    %c0_i32 = arith.constant 0 : i32
    %c0_i32_0 = arith.constant 0 : i32
    %c0_i32_1 = arith.constant 0 : i32
    return %c0_i32, %c0_i32_0 : i32, i32
  }
  func.func @transform_2(%arg0: i32) -> (i32, i32) {
    %c0_i32 = arith.constant 0 : i32
    %c0_i32_0 = arith.constant 0 : i32
    %c0_i32_1 = arith.constant 0 : i32
    return %c0_i32, %c0_i32_0 : i32, i32
  }
  func.func @transform_3(%arg0: i32) -> (i32, i32) {
    %c0_i32 = arith.constant 0 : i32
    %c0_i32_0 = arith.constant 0 : i32
    %c0_i32_1 = arith.constant 0 : i32
    return %c0_i32, %c0_i32_0 : i32, i32
  }
  func.func @transform_4(%arg0: i32) -> (i32, i32) {
    %c0_i32 = arith.constant 0 : i32
    %c0_i32_0 = arith.constant 0 : i32
    %c0_i32_1 = arith.constant 0 : i32
    return %c0_i32, %c0_i32_0 : i32, i32
  }
  func.func @transform_5(%arg0: i32) -> (i32, i32) {
    %c0_i32 = arith.constant 0 : i32
    %c0_i32_0 = arith.constant 0 : i32
    %c0_i32_1 = arith.constant 0 : i32
    return %c0_i32, %c0_i32_0 : i32, i32
  }
  func.func @transform_6(%arg0: i32) -> (i32, i32) {
    %c0_i32 = arith.constant 0 : i32
    %c0_i32_0 = arith.constant 0 : i32
    %c0_i32_1 = arith.constant 0 : i32
    return %c0_i32, %c0_i32_0 : i32, i32
  }
  func.func @transform_7(%arg0: i32) -> (i32, i32) {
    %c0_i32 = arith.constant 0 : i32
    %c0_i32_0 = arith.constant 0 : i32
    return %arg0, %c0_i32 : i32, i32
  }
}

</mosaic_0001>

<bundles_post_ra>
// kernel: tpu_custom_call.1
= control target key start
LH: loop header
LB: loop body
LE: loop exit
PB: predicated region body
PF: predicated region fallthrough
CT: control target
= control target key end

     0   :  { %12 = vsyncpa [#allocation3], 0  ;;  %s13573_s0 = inlined_call_operand.hbm [shape: bf16[16,8,128], index: 0, kind: input, shape index: {}]   ;;  %s13574_s1 = inlined_call_operand.hbm [shape: bf16[128,128], index: 1, kind: input, shape index: {}]   ;;  %s13575_s2 = inlined_call_operand.hbm [shape: f32[1,128], index: 2, kind: input, shape index: {}]   ;;  %s13576_s3 = inlined_call_operand.hbm [shape: bf16[2048,1024], index: 3, kind: input, shape index: {}]   ;;  %s13577_s4 = inlined_call_operand.hbm [shape: f32[1,1024], index: 4, kind: input, shape index: {}]   ;;  %s13578_s5 = inlined_call_operand.hbm [shape: bf16[1024,128], index: 5, kind: input, shape index: {}]   ;;  %s13579_s6 = inlined_call_operand.hbm [shape: f32[1,128], index: 6, kind: input, shape index: {}]   ;;  %s13580_s7 = inlined_call_operand.hbm [shape: f32[8,128], index: 7, kind: output, shape index: {}]  }
   0x1   :  { %13 = vsyncpa [#allocation6], 0 }
   0x2   :  { %14 = vsyncpa [#allocation9], 0 }
   0x3   :  { %15 = vsyncpa [#allocation12], 0 }
   0x4   :  { %16 = vsyncpa [#allocation4], 0  ;;  %s12503_s24 = smov [#allocation5]   ;;  %s12504_s26 = smov [#allocation8]  }
   0x5   :  { %s34_s25 = sshll.u32 %s12503_s24, 4  ;;  %s56_s27 = sshll.u32 %s12504_s26, 4  ;;  %s35_s25 = int_to_ptr.vmem [resolvable:$true] %s34_s25  ;;  %s12558_s27 = int_to_ptr.vmem [resolvable:$true] %s56_s27 }
   0x6   :  { %s12317_s30 = scalar_lea.hbm %s13574_s1, 1024 }
   0x7   :  { %p12318_p0 = scmp.ne.s32.totalorder %s13574_s1, %s12317_s30  ;;  %p12321_p1 = scmp.lt.u32.totalorder %s12317_s30, %s13574_s1 }
   0x9   :  { %p12323_p2 = pnand %p12321_p1, %p12318_p0 }
   0xb   :  { %12326 = shalt.err (!%p12323_p2)
}
   0xc   :  { %s12327_s12 = scalar_lea.vmem %s35_s25, 1024  ;;  %p12332_p4 = scmp.lt.s32.totalorder %s35_s25, %s35_s25 }
   0xd   :  { %p12328_p3 = scmp.ne.s32.totalorder %s35_s25, %s12327_s12  ;;  %p12333_p5 = scmp.lt.s32.totalorder %s12327_s12, %s12327_s12 }
   0xf   :  { %p12334_p6 = por %p12333_p5, %p12332_p4 }
  0x11   :  { %p12335_p7 = pnand %p12334_p6, %p12328_p3 }
  0x13   :  { %12338 = shalt.err (!%p12335_p7)
}
  0x14   :  { %s12505_s13 = smov 64   ;;  %s12506_s14 = smov 4  }
  0x15   :  { %40 = dma.hbm_to_vmem [thread:$0]  %s13574_s1, 1024, %s35_s25, [#allocation6], %s12505_s13, %s12505_s13, %s12506_s14  }
  0x16   :  { %s12339_s19 = scalar_lea.hbm %s13576_s3, 131072 }
  0x17   :  { %p12340_p8 = scmp.ne.s32.totalorder %s13576_s3, %s12339_s19  ;;  %p12343_p9 = scmp.lt.u32.totalorder %s12339_s19, %s13576_s3 }
  0x19   :  { %p12345_p10 = pnand %p12343_p9, %p12340_p8 }
  0x1b   :  { %12348 = shalt.err (!%p12345_p10)
}
  0x1c   :  { %s12349_s24 = scalar_lea.vmem %s12558_s27, 131072  ;;  %p12354_p12 = scmp.lt.s32.totalorder %s12558_s27, %s12558_s27 }
  0x1d   :  { %p12350_p11 = scmp.ne.s32.totalorder %s12558_s27, %s12349_s24  ;;  %p12355_p13 = scmp.lt.s32.totalorder %s12349_s24, %s12349_s24 }
  0x1f   :  { %p12356_p0 = por %p12355_p13, %p12354_p12 }
  0x21   :  { %p12357_p1 = pnand %p12356_p0, %p12350_p11 }
  0x23   :  { %12360 = shalt.err (!%p12357_p1)
}
  0x24   :  { %s12507_s1 = smov 512   ;;  %s12508_s25 = smov 32  }
  0x25   :  { %62 = dma.hbm_to_vmem [thread:$0]  %s13576_s3, 131072, %s12558_s27, [#allocation9], %s12507_s1, %s12507_s1, %s12508_s25  }
  0x26   :  { %s12509_s29 = smov [#allocation11]   ;;  %s12510_s8 = smov [#allocation2]  }
  0x27   :  { %s78_s30 = sshll.u32 %s12509_s29, 4  ;;  %s22_s9 = sshll.u32 %s12510_s8, 4  ;;  %s79_s30 = int_to_ptr.vmem [resolvable:$true] %s78_s30  ;;  %s12592_s9 = int_to_ptr.vmem [resolvable:$true] %s22_s9 }
  0x28   :  { %s12361_s12 = scalar_lea.hbm %s13578_s5, 8192 }
  0x29   :  { %p12362_p2 = scmp.ne.s32.totalorder %s13578_s5, %s12361_s12  ;;  %p12365_p3 = scmp.lt.u32.totalorder %s12361_s12, %s13578_s5 }
  0x2b   :  { %p12367_p4 = pnand %p12365_p3, %p12362_p2 }
  0x2d   :  { %12370 = shalt.err (!%p12367_p4)
}
  0x2e   :  { %s12371_s3 = scalar_lea.vmem %s79_s30, 8192  ;;  %p12376_p6 = scmp.lt.s32.totalorder %s79_s30, %s79_s30 }
  0x2f   :  { %p12372_p5 = scmp.ne.s32.totalorder %s79_s30, %s12371_s3  ;;  %p12377_p7 = scmp.lt.s32.totalorder %s12371_s3, %s12371_s3 }
  0x31   :  { %p12378_p8 = por %p12377_p7, %p12376_p6 }
  0x33   :  { %p12379_p9 = pnand %p12378_p8, %p12372_p5 }
  0x35   :  { %12382 = shalt.err (!%p12379_p9)
}
  0x36   :  { %84 = dma.hbm_to_vmem [thread:$0]  %s13578_s5, 8192, %s79_s30, [#allocation12], %s12505_s13, %s12505_s13, %s12506_s14  }
  0x37   :  { %s12383_s22 = scalar_lea.hbm %s13573_s0, 1024 }
  0x38   :  { %p12384_p10 = scmp.ne.s32.totalorder %s13573_s0, %s12383_s22  ;;  %p12387_p11 = scmp.lt.u32.totalorder %s12383_s22, %s13573_s0 }
  0x3a   :  { %p12389_p12 = pnand %p12387_p11, %p12384_p10 }
  0x3c   :  { %12392 = shalt.err (!%p12389_p12)
}
  0x3d   :  { %s12393_s26 = scalar_lea.vmem %s12592_s9, 1024  ;;  %p12398_p0 = scmp.lt.s32.totalorder %s12592_s9, %s12592_s9 }
  0x3e   :  { %p12394_p13 = scmp.ne.s32.totalorder %s12592_s9, %s12393_s26  ;;  %p12399_p1 = scmp.lt.s32.totalorder %s12393_s26, %s12393_s26 }
  0x40   :  { %p12400_p2 = por %p12399_p1, %p12398_p0 }
  0x42   :  { %p12401_p3 = pnand %p12400_p2, %p12394_p13 }
  0x44   :  { %12404 = shalt.err (!%p12401_p3)
}
  0x45   :  { %28 = dma.hbm_to_vmem [thread:$0]  %s13573_s0, 1024, %s12592_s9, [#allocation3], %s12505_s13, %s12505_s13, %s12506_s14  }
  0x46   :  { %s12511_s29 = smov [#allocation7]   ;;  %s12512_s8 = smov [#allocation10]  }
  0x47   :  { %s47_s30 = sshll.u32 %s12511_s29, 4  ;;  %s69_s10 = sshll.u32 %s12512_s8, 4  ;;  %s48_s30 = int_to_ptr.vmem [resolvable:$true] %s47_s30  ;;  %s70_s10 = int_to_ptr.vmem [resolvable:$true] %s69_s10 }
  0x48   :  { %s12405_s15 = scalar_lea.hbm %s13575_s2, 16 }
  0x49   :  { %p12406_p4 = scmp.ne.s32.totalorder %s13575_s2, %s12405_s15  ;;  %p12409_p5 = scmp.lt.u32.totalorder %s12405_s15, %s13575_s2 }
  0x4b   :  { %p12411_p6 = pnand %p12409_p5, %p12406_p4 }
  0x4d   :  { %12414 = shalt.err (!%p12411_p6)
}
  0x4e   :  { %s12415_s0 = scalar_lea.vmem %s48_s30, 16  ;;  %s12419_s13 = scalar_lea.vmem %s48_s30, 32 }
  0x4f   :  { %p12416_p7 = scmp.ne.s32.totalorder %s48_s30, %s12415_s0  ;;  %p12420_p8 = scmp.lt.s32.totalorder %s48_s30, %s48_s30 }
  0x50   :  { %p12421_p9 = scmp.lt.s32.totalorder %s12419_s13, %s12415_s0 }
  0x52   :  { %p12422_p10 = por %p12421_p9, %p12420_p8 }
  0x54   :  { %p12423_p11 = pnand %p12422_p10, %p12416_p7 }
  0x56   :  { %12426 = shalt.err (!%p12423_p11)
}
  0x57   :  { %50 = dma.hbm_to_vmem [thread:$0]  %s13575_s2, 16, %s48_s30, [#allocation6]  }
  0x58   :  { %s12427_s20 = scalar_lea.hbm %s13577_s4, 128 }
  0x59   :  { %p12428_p12 = scmp.ne.s32.totalorder %s13577_s4, %s12427_s20  ;;  %p12431_p13 = scmp.lt.u32.totalorder %s12427_s20, %s13577_s4 }
  0x5b   :  { %p12433_p0 = pnand %p12431_p13, %p12428_p12 }
  0x5d   :  { %12436 = shalt.err (!%p12433_p0)
}
  0x5e   :  { %s12437_s1 = scalar_lea.vmem %s70_s10, 128  ;;  %p12442_p2 = scmp.lt.s32.totalorder %s70_s10, %s70_s10 }
  0x5f   :  { %p12438_p1 = scmp.ne.s32.totalorder %s70_s10, %s12437_s1  ;;  %p12443_p3 = scmp.lt.s32.totalorder %s12437_s1, %s12437_s1 }
  0x61   :  { %p12444_p4 = por %p12443_p3, %p12442_p2 }
  0x63   :  { %p12445_p5 = pnand %p12444_p4, %p12438_p1 }
  0x65   :  { %12448 = shalt.err (!%p12445_p5)
}
  0x66   :  { %72 = dma.hbm_to_vmem [thread:$0]  %s13577_s4, 128, %s70_s10, [#allocation9]  }
  0x67   :  { %s12513_s26 = smov [#allocation13]   ;;  %s12449_s30 = scalar_lea.hbm %s13579_s6, 16 }
  0x68   :  { %s91_s5 = sshll.u32 %s12513_s26, 4  ;;  %p12450_p6 = scmp.ne.s32.totalorder %s13579_s6, %s12449_s30  ;;  %s92_s5 = int_to_ptr.vmem [resolvable:$true] %s91_s5 }
  0x69   :  { %p12453_p7 = scmp.lt.u32.totalorder %s12449_s30, %s13579_s6 }
  0x6b   :  { %p12455_p8 = pnand %p12453_p7, %p12450_p6 }
  0x6d   :  { %12458 = shalt.err (!%p12455_p8)
}
  0x6e   :  { %s12459_s16 = scalar_lea.vmem %s92_s5, 16  ;;  %s12463_s4 = scalar_lea.vmem %s92_s5, 32 }
  0x6f   :  { %p12460_p9 = scmp.ne.s32.totalorder %s92_s5, %s12459_s16  ;;  %p12464_p10 = scmp.lt.s32.totalorder %s92_s5, %s92_s5 }
  0x70   :  { %p12465_p11 = scmp.lt.s32.totalorder %s12463_s4, %s12459_s16 }
  0x72   :  { %p12466_p12 = por %p12465_p11, %p12464_p10 }
  0x74   :  { %p12467_p13 = pnand %p12466_p12, %p12460_p9 }
  0x76   :  { %12470 = shalt.err (!%p12467_p13)
}
  0x77   :  { %94 = dma.hbm_to_vmem [thread:$0]  %s13579_s6, 16, %s92_s5, [#allocation12]  }
  0x78   :  { %12493 = dma.done.wait [#allocation3], 1024  }
  0x79   :  { %12494 = vsyncadd [#allocation3], 4294966272 }
  0x7a   :  { %12495 = dma.done.wait [#allocation6], 1040  }
  0x7b   :  { %12496 = vsyncadd [#allocation6], 4294966256 }
  0x7c   :  { %12497 = dma.done.wait [#allocation9], 131200  }
  0x7d   :  { %12498 = vsyncadd [#allocation9], 4294836096 }
  0x7e   :  { %12499 = dma.done.wait [#allocation12], 8208  }
  0x7f   :  { %12500 = vsyncadd [#allocation12], 4294959088  ;;  %v12514_v0 = vmov 0.0   ;;  %vm12515_vm0 = vmmov 0   ;;  %v12200_v1 = vld [vmem:[#allocation5] sm:$0xff]   ;;  %v12201_v2 = vld [vmem:[#allocation5 + $0x8] sm:$0xff]  }
  0x80   :  { %11885 = vmatprep.subr.bf16.mxu1 %v12514_v0  ;;  %11901 = vmatprep.mubr.msk.bf16.mxu1 %vm12515_vm0, %v12514_v0  ;;  %v12202_v3 = vld [vmem:[#allocation5 + $0x10] sm:$0xff]   ;;  %v12203_v4 = vld [vmem:[#allocation5 + $0x18] sm:$0xff]   ;;  %v12204_v5 = vld [vmem:[#allocation5 + $0x20] sm:$0xff]   ;;  %s12517_s6 = smov [#allocation14]  }
  0x81   :  { %11865 = vmatprep.subr.bf16.mxu0 %v12514_v0  ;;  %11881 = vmatprep.mubr.msk.bf16.mxu0 %vm12515_vm0, %v12514_v0  ;;  %v12205_v6 = vld [vmem:[#allocation5 + $0x28] sm:$0xff]   ;;  %v12206_v7 = vld [vmem:[#allocation5 + $0x30] sm:$0xff]   ;;  %v12207_v12 = vld [vmem:[#allocation5 + $0x38] sm:$0xff]   ;;  %s10523_s18 = sshll.u32 %s12517_s6, 4  ;;  %s10524_s18 = int_to_ptr.vmem [resolvable:$true] %s10523_s18 }
  0x82   :  { %11886 = vmatpush3.bf16.msra.mxu1 %v12200_v1  ;;  %11866 = vmatpush3.bf16.msra.mxu0 %v12200_v1  ;;  %v339_v8 = vld [vmem:[#allocation8 + $0x200] sm:$0xff]  ;;  %v340_v10 = vld [vmem:[#allocation8 + $0x208] sm:$0xff]  ;;  %s12471_s3 = scalar_lea.vmem %s10524_s18, 128  ;;  %p12476_p1 = scmp.lt.s32.totalorder %s10524_s18, %s10524_s18 }
  0x83   :  { %11887 = vmatprep.subr.bf16.mxu1 %v12514_v0  ;;  %11867 = vmatprep.subr.bf16.mxu0 %v12514_v0  ;;  %v343_v9 = vld [vmem:[#allocation8 + $0x220] sm:$0xff]  ;;  %v344_v11 = vld [vmem:[#allocation8 + $0x228] sm:$0xff]  ;;  %p12472_p0 = scmp.ne.s32.totalorder %s10524_s18, %s12471_s3  ;;  %p12477_p2 = scmp.lt.s32.totalorder %s12471_s3, %s12471_s3 }
  0x84   :  { %v347_v13 = vld [vmem:[#allocation8 + $0x240] sm:$0xff]  ;;  %v348_v15 = vld [vmem:[#allocation8 + $0x248] sm:$0xff]  ;;  %v10545_v17 = vcombine.high %v339_v8, %v343_v9  ;;  %v10547_v18 = vcombine.high %v340_v10, %v344_v11  ;;  %v10544_v21 = vcombine.low %v339_v8, %v343_v9  ;;  %v10546_v22 = vcombine.low %v340_v10, %v344_v11 }
  0x85   :  { %v351_v14 = vld [vmem:[#allocation8 + $0x260] sm:$0xff]  ;;  %v352_v16 = vld [vmem:[#allocation8 + $0x268] sm:$0xff]  ;;  %p12478_p3 = por %p12477_p2, %p12476_p1 }
  0x86   :  { %11888 = vmatpush3.bf16.msra.mxu1 %v12201_v2  ;;  %11868 = vmatpush3.bf16.msra.mxu0 %v12201_v2  ;;  %v296_v19 = vld [vmem:[#allocation2 + $0x4] sm:$0xf]  ;;  %v117_v20 = vld [vmem:[#allocation2] sm:$0xf]  ;;  %v356_v25 = vld [vmem:[#allocation8 + $0x288] sm:$0xff]  ;;  %v10553_v27 = vcombine.high %v347_v13, %v351_v14  ;;  %v10555_v28 = vcombine.high %v348_v15, %v352_v16  ;;  %v10552_v29 = vcombine.low %v347_v13, %v351_v14 }
  0x87   :  { %11889 = vmatprep.subr.bf16.mxu1 %v12514_v0  ;;  %11869 = vmatprep.subr.bf16.mxu0 %v12514_v0  ;;  %v355_v23 = vld [vmem:[#allocation8 + $0x280] sm:$0xff]  ;;  %v360_v26 = vld [vmem:[#allocation8 + $0x2a8] sm:$0xff]  ;;  %v10554_v30 = vcombine.low %v348_v15, %v352_v16  ;;  %v345_v13 = vld [vmem:[#allocation8 + $0x230] sm:$0xff]  ;;  %p12479_p4 = pnand %p12478_p3, %p12472_p0 }
  0x88   :  { %v359_v24 = vld [vmem:[#allocation8 + $0x2a0] sm:$0xff]  ;;  %v364_v33 = vld [vmem:[#allocation8 + $0x2c8] sm:$0xff]  ;;  %v10563_v36 = vcombine.high %v356_v25, %v360_v26  ;;  %v10562_v38 = vcombine.low %v356_v25, %v360_v26  ;;  %v342_v14 = vld [vmem:[#allocation8 + $0x218] sm:$0xff] }
  0x89   :  { %v363_v31 = vld [vmem:[#allocation8 + $0x2c0] sm:$0xff]  ;;  %v368_v34 = vld [vmem:[#allocation8 + $0x2e8] sm:$0xff]  ;;  %v10561_v35 = vcombine.high %v355_v23, %v359_v24  ;;  %v10560_v37 = vcombine.low %v355_v23, %v359_v24  ;;  %v346_v16 = vld [vmem:[#allocation8 + $0x238] sm:$0xff] }
  0x8a   :  { %11890 = vmatpush3.bf16.msra.mxu1 %v12202_v3  ;;  %11870 = vmatpush3.bf16.msra.mxu0 %v12202_v3  ;;  %v367_v32 = vld [vmem:[#allocation8 + $0x2e0] sm:$0xff]  ;;  %v372_v41 = vld [vmem:[#allocation8 + $0x308] sm:$0xff]  ;;  %v10571_v44 = vcombine.high %v364_v33, %v368_v34  ;;  %v10570_v46 = vcombine.low %v364_v33, %v368_v34  ;;  %v349_v26 = vld [vmem:[#allocation8 + $0x250] sm:$0xff] }
  0x8b   :  { %11891 = vmatprep.subr.bf16.mxu1 %v12514_v0  ;;  %11871 = vmatprep.subr.bf16.mxu0 %v12514_v0  ;;  %v371_v39 = vld [vmem:[#allocation8 + $0x300] sm:$0xff]  ;;  %v376_v42 = vld [vmem:[#allocation8 + $0x328] sm:$0xff]  ;;  %v10569_v43 = vcombine.high %v363_v31, %v367_v32  ;;  %v10568_v45 = vcombine.low %v363_v31, %v367_v32  ;;  %v354_v31 = vld [vmem:[#allocation8 + $0x278] sm:$0xff] }
  0x8c   :  { %v375_v40 = vld [vmem:[#allocation8 + $0x320] sm:$0xff]  ;;  %v380_v49 = vld [vmem:[#allocation8 + $0x348] sm:$0xff]  ;;  %v10579_v52 = vcombine.high %v372_v41, %v376_v42  ;;  %v10578_v54 = vcombine.low %v372_v41, %v376_v42  ;;  %v358_v41 = vld [vmem:[#allocation8 + $0x298] sm:$0xff] }
  0x8d   :  { %v379_v47 = vld [vmem:[#allocation8 + $0x340] sm:$0xff]  ;;  %v384_v50 = vld [vmem:[#allocation8 + $0x368] sm:$0xff]  ;;  %v10577_v51 = vcombine.high %v371_v39, %v375_v40  ;;  %v10576_v53 = vcombine.low %v371_v39, %v375_v40  ;;  %v357_v39 = vld [vmem:[#allocation8 + $0x290] sm:$0xff] }
  0x8e   :  { %11892 = vmatpush3.bf16.msra.mxu1 %v12203_v4  ;;  %11872 = vmatpush3.bf16.msra.mxu0 %v12203_v4  ;;  %v383_v48 = vld [vmem:[#allocation8 + $0x360] sm:$0xff]  ;;  %v388_v57 = vld [vmem:[#allocation8 + $0x388] sm:$0xff]  ;;  %v10587_v60 = vcombine.high %v380_v49, %v384_v50  ;;  %v10586_v62 = vcombine.low %v380_v49, %v384_v50  ;;  %v361_v40 = vld [vmem:[#allocation8 + $0x2b0] sm:$0xff] }
  0x8f   :  { %11893 = vmatprep.subr.bf16.mxu1 %v12514_v0  ;;  %11873 = vmatprep.subr.bf16.mxu0 %v12514_v0  ;;  %v387_v55 = vld [vmem:[#allocation8 + $0x380] sm:$0xff]  ;;  %v392_v58 = vld [vmem:[#allocation8 + $0x3a8] sm:$0xff]  ;;  %v10585_v59 = vcombine.high %v379_v47, %v383_v48  ;;  %v10584_v61 = vcombine.low %v379_v47, %v383_v48  ;;  %v362_v42 = vld [vmem:[#allocation8 + $0x2b8] sm:$0xff] }
  0x90   :  { %v391_v56 = vld [vmem:[#allocation8 + $0x3a0] sm:$0xff]  ;;  %v10595_v1 = vcombine.high %v388_v57, %v392_v58  ;;  %v10594_v3 = vcombine.low %v388_v57, %v392_v58  ;;  %v400_v8 = vld [vmem:[#allocation8 + $0x3e8] sm:$0xff]  ;;  %v365_v47 = vld [vmem:[#allocation8 + $0x2d0] sm:$0xff] }
  0x91   :  { %v10593_v63 = vcombine.high %v387_v55, %v391_v56  ;;  %v10592_v2 = vcombine.low %v387_v55, %v391_v56  ;;  %v395_v4 = vld [vmem:[#allocation8 + $0x3c0] sm:$0xff]  ;;  %v369_v48 = vld [vmem:[#allocation8 + $0x2f0] sm:$0xff]  ;;  %v366_v49 = vld [vmem:[#allocation8 + $0x2d8] sm:$0xff] }
  0x92   :  { %11894 = vmatpush3.bf16.msra.mxu1 %v12204_v5  ;;  %11874 = vmatpush3.bf16.msra.mxu0 %v12204_v5  ;;  %v399_v5 = vld [vmem:[#allocation8 + $0x3e0] sm:$0xff]  ;;  %v370_v50 = vld [vmem:[#allocation8 + $0x2f8] sm:$0xff]  ;;  %v373_v55 = vld [vmem:[#allocation8 + $0x310] sm:$0xff] }
  0x93   :  { %11895 = vmatprep.subr.bf16.mxu1 %v12514_v0  ;;  %11875 = vmatprep.subr.bf16.mxu0 %v12514_v0  ;;  %v10600_v9 = vcombine.low %v395_v4, %v399_v5  ;;  %v377_v56 = vld [vmem:[#allocation8 + $0x330] sm:$0xff]  ;;  %v374_v57 = vld [vmem:[#allocation8 + $0x318] sm:$0xff] }
  0x94   :  { %v378_v58 = vld [vmem:[#allocation8 + $0x338] sm:$0xff] }
  0x96   :  { %11896 = vmatpush3.bf16.msra.mxu1 %v12205_v6  ;;  %11876 = vmatpush3.bf16.msra.mxu0 %v12205_v6  ;;  %v396_v6 = vld [vmem:[#allocation8 + $0x3c8] sm:$0xff] }
  0x97   :  { %11897 = vmatprep.subr.bf16.mxu1 %v12514_v0  ;;  %11877 = vmatprep.subr.bf16.mxu0 %v12514_v0  ;;  %v10602_v10 = vcombine.low %v396_v6, %v400_v8  ;;  %v10603_v11 = vcombine.high %v396_v6, %v400_v8  ;;  %v389_v8 = vld [vmem:[#allocation8 + $0x390] sm:$0xff] }
  0x9a   :  { %11898 = vmatpush3.bf16.msra.mxu1 %v12206_v7  ;;  %11878 = vmatpush3.bf16.msra.mxu0 %v12206_v7  ;;  %v10601_v7 = vcombine.high %v395_v4, %v399_v5  ;;  %v10580_v4 = vcombine.low %v373_v55, %v377_v56  ;;  %v10582_v5 = vcombine.low %v374_v57, %v378_v58 }
  0x9b   :  { %11899 = vmatprep.subr.bf16.mxu1 %v12514_v0  ;;  %11879 = vmatprep.subr.bf16.mxu0 %v12514_v0 }
  0x9e   :  { %11900 = vmatpush3.bf16.msra.mxu1 %v12207_v12  ;;  %11880 = vmatpush3.bf16.msra.mxu0 %v12207_v12  ;;  %v341_v12 = vld [vmem:[#allocation8 + $0x210] sm:$0xff] }
  0x9f   :  { %723 = vmatprep.subr.bf16.mxu0 %v10545_v17  ;;  %764 = vmatprep.subr.bf16.mxu1 %v10547_v18  ;;  %v10549_v15 = vcombine.high %v341_v12, %v345_v13  ;;  %v10548_v17 = vcombine.low %v341_v12, %v345_v13  ;;  %v10550_v18 = vcombine.low %v342_v14, %v346_v16 }
  0xa1   :  { %11902 = vmatmul.mubr.bf16.vlgmr.msra.gmra.mrb[0].mxu1 %v296_v19  ;;  %11882 = vmatmul.mubr.bf16.vlgmr.msra.gmra.mrb[0].mxu0 %v117_v20  ;;  %v10551_v19 = vcombine.high %v342_v14, %v346_v16  ;;  %v12516_v20 = vmov 0   ;;  %v397_v16 = vld [vmem:[#allocation8 + $0x3d0] sm:$0xff] }
  0xa2   :  { %724 = vmatpush1.bf16.msra.mxu0 %v10544_v21  ;;  %765 = vmatpush1.bf16.msra.mxu1 %v10546_v22  ;;  %v12687_v21 = vld [vmem:[#allocation7] ss:$0 sm:$0xff] }
  0xa3   :  { %725 = vmatprep.subr.bf16.mxu0 %v10553_v27  ;;  %766 = vmatprep.subr.bf16.mxu1 %v10555_v28 }
  0xa4   :  { %755 = vmatprep.mubr.bf16.mxu0 %v12516_v20  ;;  %796 = vmatprep.mubr.bf16.mxu1 %v12516_v20 }
  0xa6   :  { %726 = vmatpush1.bf16.msra.mxu0 %v10552_v29  ;;  %767 = vmatpush1.bf16.msra.mxu1 %v10554_v30  ;;  %v353_v29 = vld [vmem:[#allocation8 + $0x270] sm:$0xff]  ;;  %v350_v30 = vld [vmem:[#allocation8 + $0x258] sm:$0xff] }
  0xa7   :  { %727 = vmatprep.subr.bf16.mxu0 %v10561_v35  ;;  %768 = vmatprep.subr.bf16.mxu1 %v10563_v36 }
  0xaa   :  { %728 = vmatpush1.bf16.msra.mxu0 %v10560_v37  ;;  %769 = vmatpush1.bf16.msra.mxu1 %v10562_v38  ;;  %v10557_v37 = vcombine.high %v349_v26, %v353_v29  ;;  %v10559_v38 = vcombine.high %v350_v30, %v354_v31 }
  0xab   :  { %729 = vmatprep.subr.bf16.mxu0 %v10569_v43  ;;  %770 = vmatprep.subr.bf16.mxu1 %v10571_v44  ;;  %v10556_v43 = vcombine.low %v349_v26, %v353_v29  ;;  %v10558_v44 = vcombine.low %v350_v30, %v354_v31  ;;  %v232_v29 = vld [vmem:[#allocation8 + $0x8] sm:$0xff] }
  0xac   :  { %v236_v30 = vld [vmem:[#allocation8 + $0x28] sm:$0xff] }
  0xae   :  { %730 = vmatpush1.bf16.msra.mxu0 %v10568_v45  ;;  %771 = vmatpush1.bf16.msra.mxu1 %v10570_v46  ;;  %v10565_v45 = vcombine.high %v357_v39, %v361_v40  ;;  %v10567_v46 = vcombine.high %v358_v41, %v362_v42 }
  0xaf   :  { %731 = vmatprep.subr.bf16.mxu0 %v10577_v51  ;;  %772 = vmatprep.subr.bf16.mxu1 %v10579_v52  ;;  %v10564_v51 = vcombine.low %v357_v39, %v361_v40  ;;  %v10566_v52 = vcombine.low %v358_v41, %v362_v42  ;;  %v244_v39 = vld [vmem:[#allocation8 + $0x68] sm:$0xff]  ;;  %v10610_v41 = vcombine.low %v232_v29, %v236_v30 }
  0xb2   :  { %732 = vmatpush1.bf16.msra.mxu0 %v10576_v53  ;;  %773 = vmatpush1.bf16.msra.mxu1 %v10578_v54  ;;  %v10573_v53 = vcombine.high %v365_v47, %v369_v48  ;;  %v10575_v54 = vcombine.high %v366_v49, %v370_v50 }
  0xb3   :  { %733 = vmatprep.subr.bf16.mxu0 %v10585_v59  ;;  %774 = vmatprep.subr.bf16.mxu1 %v10587_v60  ;;  %v10572_v59 = vcombine.low %v365_v47, %v369_v48  ;;  %v10574_v60 = vcombine.low %v366_v49, %v370_v50  ;;  %v252_v47 = vld [vmem:[#allocation8 + $0xa8] sm:$0xff] }
  0xb6   :  { %734 = vmatpush1.bf16.msra.mxu0 %v10584_v61  ;;  %775 = vmatpush1.bf16.msra.mxu1 %v10586_v62  ;;  %v10581_v61 = vcombine.high %v373_v55, %v377_v56  ;;  %v10583_v62 = vcombine.high %v374_v57, %v378_v58  ;;  %v260_v55 = vld [vmem:[#allocation8 + $0xe8] sm:$0xff] }
  0xb7   :  { %735 = vmatprep.subr.bf16.mxu0 %v10593_v63  ;;  %776 = vmatprep.subr.bf16.mxu1 %v10595_v1  ;;  %v381_v63 = vld [vmem:[#allocation8 + $0x350] sm:$0xff] }
  0xb8   :  { %v385_v1 = vld [vmem:[#allocation8 + $0x370] sm:$0xff] }
  0xb9   :  { %v10589_v6 = vcombine.high %v381_v63, %v385_v1  ;;  %v10588_v12 = vcombine.low %v381_v63, %v385_v1 }
  0xba   :  { %736 = vmatpush1.bf16.msra.mxu0 %v10592_v2  ;;  %777 = vmatpush1.bf16.msra.mxu1 %v10594_v3  ;;  %v382_v2 = vld [vmem:[#allocation8 + $0x358] sm:$0xff] }
  0xbb   :  { %737 = vmatprep.subr.bf16.mxu0 %v10601_v7  ;;  %778 = vmatprep.subr.bf16.mxu1 %v10603_v11  ;;  %v386_v3 = vld [vmem:[#allocation8 + $0x378] sm:$0xff] }
  0xbc   :  { %v10591_v7 = vcombine.high %v382_v2, %v386_v3  ;;  %v394_v11 = vld [vmem:[#allocation8 + $0x3b8] sm:$0xff]  ;;  %v10590_v13 = vcombine.low %v382_v2, %v386_v3 }
  0xbe   :  { %738 = vmatpush1.bf16.msra.mxu0 %v10600_v9  ;;  %779 = vmatpush1.bf16.msra.mxu1 %v10602_v10  ;;  %v393_v9 = vld [vmem:[#allocation8 + $0x3b0] sm:$0xff]  ;;  %v390_v10 = vld [vmem:[#allocation8 + $0x398] sm:$0xff] }
  0xbf   :  { %805 = vmatprep.subr.bf16.mxu0 %v10549_v15  ;;  %846 = vmatprep.subr.bf16.mxu1 %v10551_v19  ;;  %v10597_v14 = vcombine.high %v389_v8, %v393_v9  ;;  %v10599_v15 = vcombine.high %v390_v10, %v394_v11  ;;  %v402_v19 = vld [vmem:[#allocation8 + $0x3f8] sm:$0xff] }
 0x174   :  { %v331_v22 = vpop.f32.mrb[0].mxu1  ;;  %v12689_v23 = vpop.f32.mrb[0].mxu0 }
 0x175   :  { %v332_v24 = vadd.f32 %v12687_v21, %v331_v22  ;;  %v11903_v25 = vpop.f32.mrb[1].mxu1  ;;  %v11883_v27 = vpop.f32.mrb[1].mxu0  ;;  %v10596_v22 = vcombine.low %v389_v8, %v393_v9 }
 0x176   :  { %v334_v28 = vpop.f32.mrb[2].mxu1  ;;  %v226_v32 = vpop.f32.mrb[2].mxu0  ;;  %v231_v27 = vld [vmem:[#allocation8] sm:$0xff] }
 0x177   :  { %v337_v33 = vmax.f32 %v332_v24, 0.0  ;;  %v11904_v34 = vpop.f32.mrb[3].mxu1  ;;  %v11884_v35 = vpop.f32.mrb[3].mxu0  ;;  %v10598_v24 = vcombine.low %v390_v10, %v394_v11  ;;  %v235_v28 = vld [vmem:[#allocation8 + $0x20] sm:$0xff] }
 0x178   :  { %v10611_v34 = vcombine.high %v232_v29, %v236_v30  ;;  %v239_v35 = vld [vmem:[#allocation8 + $0x40] sm:$0xff]  ;;  %v10608_v40 = vcombine.low %v231_v27, %v235_v28 }
 0x179   :  { %v12692_v36 = vpack.c.bf16 %v337_v33, %v337_v33  ;;  %v10609_v33 = vcombine.high %v231_v27, %v235_v28  ;;  %v224_v27 = vadd.f32 %v12687_v21, %v12689_v23 }
 0x17b   :  { %756 = vmatmul.mubr.bf16.vlgmr.msra.gmra.mrb[4].mxu0 %v12692_v36  ;;  %797 = vmatmul.mubr.bf16.vlgmr.msra.gmra.mrb[4].mxu1 %v12692_v36 }
 0x17c   :  { %806 = vmatpush1.bf16.msra.mxu0 %v10548_v17  ;;  %847 = vmatpush1.bf16.msra.mxu1 %v10550_v18  ;;  %v401_v17 = vld [vmem:[#allocation8 + $0x3f0] sm:$0xff]  ;;  %v398_v18 = vld [vmem:[#allocation8 + $0x3d8] sm:$0xff] }
 0x17d   :  { %807 = vmatprep.subr.bf16.mxu0 %v10557_v37  ;;  %848 = vmatprep.subr.bf16.mxu1 %v10559_v38  ;;  %v10605_v25 = vcombine.high %v397_v16, %v401_v17  ;;  %v10607_v26 = vcombine.high %v398_v18, %v402_v19  ;;  %v10604_v31 = vcombine.low %v397_v16, %v401_v17  ;;  %v243_v37 = vld [vmem:[#allocation8 + $0x60] sm:$0xff]  ;;  %v240_v38 = vld [vmem:[#allocation8 + $0x48] sm:$0xff] }
 0x17e   :  { %837 = vmatprep.mubr.bf16.mxu0 %v12516_v20  ;;  %878 = vmatprep.mubr.bf16.mxu1 %v12516_v20  ;;  %v10606_v32 = vcombine.low %v398_v18, %v402_v19  ;;  %v10617_v42 = vcombine.high %v239_v35, %v243_v37  ;;  %v10616_v48 = vcombine.low %v239_v35, %v243_v37  ;;  %v238_v35 = vld [vmem:[#allocation8 + $0x38] sm:$0xff]  ;;  %v229_v37 = vmax.f32 %v224_v27, 0.0 }
 0x17f   :  { %v10618_v49 = vcombine.low %v240_v38, %v244_v39 }
 0x180   :  { %808 = vmatpush1.bf16.msra.mxu0 %v10556_v43  ;;  %849 = vmatpush1.bf16.msra.mxu1 %v10558_v44  ;;  %v10619_v43 = vcombine.high %v240_v38, %v244_v39  ;;  %v247_v44 = vld [vmem:[#allocation8 + $0x80] sm:$0xff] }
 0x181   :  { %809 = vmatprep.subr.bf16.mxu0 %v10565_v45  ;;  %850 = vmatprep.subr.bf16.mxu1 %v10567_v46  ;;  %v251_v45 = vld [vmem:[#allocation8 + $0xa0] sm:$0xff]  ;;  %v248_v46 = vld [vmem:[#allocation8 + $0x88] sm:$0xff] }
 0x182   :  { %v10625_v50 = vcombine.high %v247_v44, %v251_v45  ;;  %v10624_v56 = vcombine.low %v247_v44, %v251_v45  ;;  %v246_v44 = vld [vmem:[#allocation8 + $0x78] sm:$0xff]  ;;  %v12704_v45 = vpack.c.bf16 %v229_v37, %v229_v37 }
 0x184   :  { %810 = vmatpush1.bf16.msra.mxu0 %v10564_v51  ;;  %851 = vmatpush1.bf16.msra.mxu1 %v10566_v52  ;;  %v10627_v51 = vcombine.high %v248_v46, %v252_v47  ;;  %v255_v52 = vld [vmem:[#allocation8 + $0xc0] sm:$0xff] }
 0x185   :  { %811 = vmatprep.subr.bf16.mxu0 %v10573_v53  ;;  %852 = vmatprep.subr.bf16.mxu1 %v10575_v54  ;;  %v259_v53 = vld [vmem:[#allocation8 + $0xe0] sm:$0xff]  ;;  %v256_v54 = vld [vmem:[#allocation8 + $0xc8] sm:$0xff] }
 0x186   :  { %v10633_v57 = vcombine.high %v255_v52, %v259_v53  ;;  %v10635_v58 = vcombine.high %v256_v54, %v260_v55  ;;  %v10632_v63 = vcombine.low %v255_v52, %v259_v53  ;;  %v10634_v1 = vcombine.low %v256_v54, %v260_v55  ;;  %v250_v52 = vld [vmem:[#allocation8 + $0x98] sm:$0xff] }
 0x187   :  { %v254_v53 = vld [vmem:[#allocation8 + $0xb8] sm:$0xff] }
 0x188   :  { %812 = vmatpush1.bf16.msra.mxu0 %v10572_v59  ;;  %853 = vmatpush1.bf16.msra.mxu1 %v10574_v60  ;;  %v263_v59 = vld [vmem:[#allocation8 + $0x100] sm:$0xff] }
 0x189   :  { %813 = vmatprep.subr.bf16.mxu0 %v10581_v61  ;;  %854 = vmatprep.subr.bf16.mxu1 %v10583_v62  ;;  %v267_v60 = vld [vmem:[#allocation8 + $0x120] sm:$0xff]  ;;  %v264_v61 = vld [vmem:[#allocation8 + $0x108] sm:$0xff] }
 0x18a   :  { %v268_v62 = vld [vmem:[#allocation8 + $0x128] sm:$0xff]  ;;  %v10641_v2 = vcombine.high %v263_v59, %v267_v60  ;;  %v10640_v8 = vcombine.low %v263_v59, %v267_v60  ;;  %v258_v59 = vld [vmem:[#allocation8 + $0xd8] sm:$0xff] }
 0x18b   :  { %v10643_v3 = vcombine.high %v264_v61, %v268_v62  ;;  %v10642_v9 = vcombine.low %v264_v61, %v268_v62  ;;  %v262_v60 = vld [vmem:[#allocation8 + $0xf8] sm:$0xff]  ;;  %v10630_v62 = vcombine.low %v250_v52, %v254_v53 }
 0x18c   :  { %814 = vmatpush1.bf16.msra.mxu0 %v10580_v4  ;;  %855 = vmatpush1.bf16.msra.mxu1 %v10582_v5  ;;  %v271_v4 = vld [vmem:[#allocation8 + $0x140] sm:$0xff] }
 0x18d   :  { %815 = vmatprep.subr.bf16.mxu0 %v10589_v6  ;;  %856 = vmatprep.subr.bf16.mxu1 %v10591_v7  ;;  %v275_v5 = vld [vmem:[#allocation8 + $0x160] sm:$0xff]  ;;  %v272_v6 = vld [vmem:[#allocation8 + $0x148] sm:$0xff] }
 0x18e   :  { %v276_v7 = vld [vmem:[#allocation8 + $0x168] sm:$0xff]  ;;  %v10649_v10 = vcombine.high %v271_v4, %v275_v5  ;;  %v10648_v16 = vcombine.low %v271_v4, %v275_v5  ;;  %v266_v4 = vld [vmem:[#allocation8 + $0x118] sm:$0xff] }
 0x18f   :  { %v10651_v11 = vcombine.high %v272_v6, %v276_v7  ;;  %v10650_v17 = vcombine.low %v272_v6, %v276_v7  ;;  %v270_v5 = vld [vmem:[#allocation8 + $0x138] sm:$0xff]  ;;  %v10638_v7 = vcombine.low %v258_v59, %v262_v60 }
 0x190   :  { %816 = vmatpush1.bf16.msra.mxu0 %v10588_v12  ;;  %857 = vmatpush1.bf16.msra.mxu1 %v10590_v13  ;;  %v279_v12 = vld [vmem:[#allocation8 + $0x180] sm:$0xff] }
 0x191   :  { %817 = vmatprep.subr.bf16.mxu0 %v10597_v14  ;;  %858 = vmatprep.subr.bf16.mxu1 %v10599_v15  ;;  %v283_v13 = vld [vmem:[#allocation8 + $0x1a0] sm:$0xff]  ;;  %v280_v14 = vld [vmem:[#allocation8 + $0x188] sm:$0xff] }
 0x192   :  { %v284_v15 = vld [vmem:[#allocation8 + $0x1a8] sm:$0xff]  ;;  %v10657_v18 = vcombine.high %v279_v12, %v283_v13  ;;  %v10656_v28 = vcombine.low %v279_v12, %v283_v13  ;;  %v274_v12 = vld [vmem:[#allocation8 + $0x158] sm:$0xff] }
 0x193   :  { %v10659_v19 = vcombine.high %v280_v14, %v284_v15  ;;  %v10658_v29 = vcombine.low %v280_v14, %v284_v15  ;;  %v278_v13 = vld [vmem:[#allocation8 + $0x178] sm:$0xff]  ;;  %v10646_v15 = vcombine.low %v266_v4, %v270_v5 }
 0x194   :  { %818 = vmatpush1.bf16.msra.mxu0 %v10596_v22  ;;  %859 = vmatpush1.bf16.msra.mxu1 %v10598_v24  ;;  %v287_v22 = vld [vmem:[#allocation8 + $0x1c0] sm:$0xff] }
 0x195   :  { %819 = vmatprep.subr.bf16.mxu0 %v10605_v25  ;;  %860 = vmatprep.subr.bf16.mxu1 %v10607_v26  ;;  %v291_v24 = vld [vmem:[#allocation8 + $0x1e0] sm:$0xff]  ;;  %v288_v25 = vld [vmem:[#allocation8 + $0x1c8] sm:$0xff] }
 0x196   :  { %v292_v26 = vld [vmem:[#allocation8 + $0x1e8] sm:$0xff]  ;;  %v10665_v30 = vcombine.high %v287_v22, %v291_v24  ;;  %v10664_v38 = vcombine.low %v287_v22, %v291_v24  ;;  %v282_v22 = vld [vmem:[#allocation8 + $0x198] sm:$0xff] }
 0x197   :  { %v10666_v39 = vcombine.low %v288_v25, %v292_v26  ;;  %v286_v24 = vld [vmem:[#allocation8 + $0x1b8] sm:$0xff] }
 0x198   :  { %820 = vmatpush1.bf16.msra.mxu0 %v10604_v31  ;;  %861 = vmatpush1.bf16.msra.mxu1 %v10606_v32  ;;  %v10667_v31 = vcombine.high %v288_v25, %v292_v26  ;;  %v233_v32 = vld [vmem:[#allocation8 + $0x10] sm:$0xff]  ;;  %v10654_v26 = vcombine.low %v274_v12, %v278_v13 }
 0x199   :  { %1207 = vmatprep.subr.bf16.mxu0 %v10609_v33  ;;  %1248 = vmatprep.subr.bf16.mxu1 %v10611_v34  ;;  %v237_v33 = vld [vmem:[#allocation8 + $0x30] sm:$0xff]  ;;  %v234_v34 = vld [vmem:[#allocation8 + $0x18] sm:$0xff] }
 0x19a   :  { %v10613_v23 = vcombine.high %v233_v32, %v237_v33 }
 0x19b   :  { %838 = vmatmul.mubr.bf16.vlgmr.msra.gmra.mrb[8].mxu0 %v12692_v36  ;;  %879 = vmatmul.mubr.bf16.vlgmr.msra.gmra.mrb[8].mxu1 %v12692_v36  ;;  %v10626_v36 = vcombine.low %v248_v46, %v252_v47  ;;  %v10612_v46 = vcombine.low %v233_v32, %v237_v33  ;;  %v10614_v47 = vcombine.low %v234_v34, %v238_v35  ;;  %v294_v32 = vld [vmem:[#allocation8 + $0x1f8] sm:$0xff] }
 0x19c   :  { %1208 = vmatpush1.bf16.msra.mxu0 %v10608_v40  ;;  %1249 = vmatpush1.bf16.msra.mxu1 %v10610_v41  ;;  %v10615_v40 = vcombine.high %v234_v34, %v238_v35  ;;  %v241_v41 = vld [vmem:[#allocation8 + $0x50] sm:$0xff]  ;;  %v10662_v34 = vcombine.low %v282_v22, %v286_v24 }
 0x19d   :  { %1209 = vmatprep.subr.bf16.mxu0 %v10617_v42  ;;  %1250 = vmatprep.subr.bf16.mxu1 %v10619_v43  ;;  %v245_v42 = vld [vmem:[#allocation8 + $0x70] sm:$0xff]  ;;  %v242_v43 = vld [vmem:[#allocation8 + $0x58] sm:$0xff] }
 0x19e   :  { %1239 = vmatprep.mubr.bf16.mxu0 %v12516_v20  ;;  %1280 = vmatprep.mubr.bf16.mxu1 %v12516_v20  ;;  %v10620_v54 = vcombine.low %v241_v41, %v245_v42  ;;  %v10622_v55 = vcombine.low %v242_v43, %v246_v44 }
 0x1a0   :  { %1210 = vmatpush1.bf16.msra.mxu0 %v10616_v48  ;;  %1251 = vmatpush1.bf16.msra.mxu1 %v10618_v49  ;;  %v10621_v48 = vcombine.high %v241_v41, %v245_v42  ;;  %v10623_v49 = vcombine.high %v242_v43, %v246_v44  ;;  %v12724_v41 = vld [vmem:[#allocation5 + $0x10] sm:$0xff]   ;;  %v12728_v42 = vld [vmem:[#allocation5 + $0x18] sm:$0xff]   ;;  %v12732_v43 = vld [vmem:[#allocation5 + $0x20] sm:$0xff]  }
 0x1a1   :  { %1211 = vmatprep.subr.bf16.mxu0 %v10625_v50  ;;  %1252 = vmatprep.subr.bf16.mxu1 %v10627_v51  ;;  %v249_v50 = vld [vmem:[#allocation8 + $0x90] sm:$0xff]  ;;  %v12736_v44 = vld [vmem:[#allocation5 + $0x28] sm:$0xff]  }
 0x1a2   :  { %v253_v51 = vld [vmem:[#allocation8 + $0xb0] sm:$0xff] }
 0x1a3   :  { %v10628_v61 = vcombine.low %v249_v50, %v253_v51 }
 0x1a4   :  { %1212 = vmatpush1.bf16.msra.mxu0 %v10624_v56  ;;  %1253 = vmatpush1.bf16.msra.mxu1 %v10626_v36  ;;  %v10629_v56 = vcombine.high %v249_v50, %v253_v51  ;;  %v10631_v36 = vcombine.high %v250_v52, %v254_v53  ;;  %v1416_v50 = vld [vmem:[#allocation8 + $0x408] sm:$0xff] }
 0x1a5   :  { %1213 = vmatprep.subr.bf16.mxu0 %v10633_v57  ;;  %1254 = vmatprep.subr.bf16.mxu1 %v10635_v58  ;;  %v257_v57 = vld [vmem:[#allocation8 + $0xd0] sm:$0xff]  ;;  %v1420_v53 = vld [vmem:[#allocation8 + $0x428] sm:$0xff] }
 0x1a6   :  { %v261_v58 = vld [vmem:[#allocation8 + $0xf0] sm:$0xff] }
 0x1a7   :  { %v10636_v6 = vcombine.low %v257_v57, %v261_v58 }
 0x1a8   :  { %1214 = vmatpush1.bf16.msra.mxu0 %v10632_v63  ;;  %1255 = vmatpush1.bf16.msra.mxu1 %v10634_v1  ;;  %v10637_v63 = vcombine.high %v257_v57, %v261_v58  ;;  %v10639_v1 = vcombine.high %v258_v59, %v262_v60  ;;  %v1424_v58 = vld [vmem:[#allocation8 + $0x448] sm:$0xff]  ;;  %v1431_v60 = vld [vmem:[#allocation8 + $0x480] sm:$0xff] }
 0x1a9   :  { %1215 = vmatprep.subr.bf16.mxu0 %v10641_v2  ;;  %1256 = vmatprep.subr.bf16.mxu1 %v10643_v3  ;;  %v265_v2 = vld [vmem:[#allocation8 + $0x110] sm:$0xff]  ;;  %v1428_v59 = vld [vmem:[#allocation8 + $0x468] sm:$0xff] }
 0x1aa   :  { %v269_v3 = vld [vmem:[#allocation8 + $0x130] sm:$0xff] }
 0x1ab   :  { %v10644_v14 = vcombine.low %v265_v2, %v269_v3 }
 0x1ac   :  { %1216 = vmatpush1.bf16.msra.mxu0 %v10640_v8  ;;  %1257 = vmatpush1.bf16.msra.mxu1 %v10642_v9  ;;  %v10645_v8 = vcombine.high %v265_v2, %v269_v3  ;;  %v10647_v9 = vcombine.high %v266_v4, %v270_v5  ;;  %v10682_v3 = vcombine.low %v1424_v58, %v1428_v59 }
 0x1ad   :  { %1217 = vmatprep.subr.bf16.mxu0 %v10649_v10  ;;  %1258 = vmatprep.subr.bf16.mxu1 %v10651_v11  ;;  %v273_v10 = vld [vmem:[#allocation8 + $0x150] sm:$0xff] }
 0x1ae   :  { %v277_v11 = vld [vmem:[#allocation8 + $0x170] sm:$0xff] }
 0x1af   :  { %v10652_v25 = vcombine.low %v273_v10, %v277_v11 }
 0x1b0   :  { %1218 = vmatpush1.bf16.msra.mxu0 %v10648_v16  ;;  %1259 = vmatpush1.bf16.msra.mxu1 %v10650_v17  ;;  %v10653_v16 = vcombine.high %v273_v10, %v277_v11  ;;  %v10655_v17 = vcombine.high %v274_v12, %v278_v13 }
 0x1b1   :  { %1219 = vmatprep.subr.bf16.mxu0 %v10657_v18  ;;  %1260 = vmatprep.subr.bf16.mxu1 %v10659_v19  ;;  %v281_v18 = vld [vmem:[#allocation8 + $0x190] sm:$0xff] }
 0x1b2   :  { %v285_v19 = vld [vmem:[#allocation8 + $0x1b0] sm:$0xff] }
 0x1b3   :  { %v10661_v27 = vcombine.high %v281_v18, %v285_v19  ;;  %v10660_v33 = vcombine.low %v281_v18, %v285_v19 }
 0x1b4   :  { %1220 = vmatpush1.bf16.msra.mxu0 %v10656_v28  ;;  %1261 = vmatpush1.bf16.msra.mxu1 %v10658_v29  ;;  %v10663_v28 = vcombine.high %v282_v22, %v286_v24  ;;  %v289_v29 = vld [vmem:[#allocation8 + $0x1d0] sm:$0xff] }
 0x1b5   :  { %1221 = vmatprep.subr.bf16.mxu0 %v10665_v30  ;;  %1262 = vmatprep.subr.bf16.mxu1 %v10667_v31  ;;  %v293_v30 = vld [vmem:[#allocation8 + $0x1f0] sm:$0xff]  ;;  %v290_v31 = vld [vmem:[#allocation8 + $0x1d8] sm:$0xff] }
 0x1b6   :  { %v10669_v35 = vcombine.high %v289_v29, %v293_v30  ;;  %v10671_v37 = vcombine.high %v290_v31, %v294_v32 }
 0x1b8   :  { %1222 = vmatpush1.bf16.msra.mxu0 %v10664_v38  ;;  %1263 = vmatpush1.bf16.msra.mxu1 %v10666_v39  ;;  %v10668_v38 = vcombine.low %v289_v29, %v293_v30  ;;  %v10670_v39 = vcombine.low %v290_v31, %v294_v32 }
 0x1b9   :  { %1289 = vmatprep.subr.bf16.mxu0 %v10613_v23  ;;  %1330 = vmatprep.subr.bf16.mxu1 %v10615_v40  ;;  %v12713_v23 = vld [vmem:[#allocation5] sm:$0xff]   ;;  %v12720_v40 = vld [vmem:[#allocation5 + $0x8] sm:$0xff]  }
 0x1bb   :  { %1240 = vmatmul.mubr.bf16.vlgmr.msra.gmra.mrb[12].mxu0 %v12704_v45  ;;  %1281 = vmatmul.mubr.bf16.vlgmr.msra.gmra.mrb[12].mxu1 %v12704_v45 }
 0x1bc   :  { %1290 = vmatpush1.bf16.msra.mxu0 %v10612_v46  ;;  %1331 = vmatpush1.bf16.msra.mxu1 %v10614_v47  ;;  %v12744_v46 = vld [vmem:[#allocation5 + $0x38] sm:$0xff]   ;;  %v1372_v47 = vld [vmem:[#allocation2 + $0x8] sm:$0xf] }
 0x1bd   :  { %1291 = vmatprep.subr.bf16.mxu0 %v10621_v48  ;;  %1332 = vmatprep.subr.bf16.mxu1 %v10623_v49  ;;  %v1415_v48 = vld [vmem:[#allocation8 + $0x400] sm:$0xff] }
 0x1be   :  { %1321 = vmatprep.mubr.bf16.mxu0 %v12516_v20  ;;  %1362 = vmatprep.mubr.bf16.mxu1 %v12516_v20  ;;  %v1419_v49 = vld [vmem:[#allocation8 + $0x420] sm:$0xff] }
 0x1bf   :  { %v10672_v51 = vcombine.low %v1415_v48, %v1419_v49  ;;  %v10673_v52 = vcombine.high %v1415_v48, %v1419_v49 }
 0x1c0   :  { %1292 = vmatpush1.bf16.msra.mxu0 %v10620_v54  ;;  %1333 = vmatpush1.bf16.msra.mxu1 %v10622_v55  ;;  %v1423_v54 = vld [vmem:[#allocation8 + $0x440] sm:$0xff] }
 0x1c1   :  { %1293 = vmatprep.subr.bf16.mxu0 %v10629_v56  ;;  %1334 = vmatprep.subr.bf16.mxu1 %v10631_v36  ;;  %v1427_v55 = vld [vmem:[#allocation8 + $0x460] sm:$0xff]  ;;  %v10674_v56 = vcombine.low %v1416_v50, %v1420_v53  ;;  %v10675_v36 = vcombine.high %v1416_v50, %v1420_v53  ;;  %v1472_v53 = vld [vmem:[#allocation8 + $0x5c8] sm:$0xff] }
 0x1c2   :  { %v10681_v57 = vcombine.high %v1423_v54, %v1427_v55  ;;  %v10680_v2 = vcombine.low %v1423_v54, %v1427_v55 }
 0x1c4   :  { %1294 = vmatpush1.bf16.msra.mxu0 %v10628_v61  ;;  %1335 = vmatpush1.bf16.msra.mxu1 %v10630_v62  ;;  %v10683_v61 = vcombine.high %v1424_v58, %v1428_v59  ;;  %v1435_v62 = vld [vmem:[#allocation8 + $0x4a0] sm:$0xff] }
 0x1c5   :  { %1295 = vmatprep.subr.bf16.mxu0 %v10637_v63  ;;  %1336 = vmatprep.subr.bf16.mxu1 %v10639_v1  ;;  %v1432_v63 = vld [vmem:[#allocation8 + $0x488] sm:$0xff]  ;;  %v10689_v4 = vcombine.high %v1431_v60, %v1435_v62  ;;  %v10688_v10 = vcombine.low %v1431_v60, %v1435_v62 }
 0x1c6   :  { %v1436_v1 = vld [vmem:[#allocation8 + $0x4a8] sm:$0xff] }
 0x1c7   :  { %v10691_v5 = vcombine.high %v1432_v63, %v1436_v1  ;;  %v10690_v11 = vcombine.low %v1432_v63, %v1436_v1 }
 0x1c8   :  { %1296 = vmatpush1.bf16.msra.mxu0 %v10636_v6  ;;  %1337 = vmatpush1.bf16.msra.mxu1 %v10638_v7  ;;  %v1439_v6 = vld [vmem:[#allocation8 + $0x4c0] sm:$0xff] }
 0x1c9   :  { %1297 = vmatprep.subr.bf16.mxu0 %v10645_v8  ;;  %1338 = vmatprep.subr.bf16.mxu1 %v10647_v9  ;;  %v1443_v7 = vld [vmem:[#allocation8 + $0x4e0] sm:$0xff]  ;;  %v1440_v8 = vld [vmem:[#allocation8 + $0x4c8] sm:$0xff] }
 0x1ca   :  { %v1444_v9 = vld [vmem:[#allocation8 + $0x4e8] sm:$0xff]  ;;  %v10697_v12 = vcombine.high %v1439_v6, %v1443_v7  ;;  %v10696_v18 = vcombine.low %v1439_v6, %v1443_v7  ;;  %v1422_v7 = vld [vmem:[#allocation8 + $0x438] sm:$0xff] }
 0x1cb   :  { %v10699_v13 = vcombine.high %v1440_v8, %v1444_v9  ;;  %v10698_v19 = vcombine.low %v1440_v8, %v1444_v9 }
 0x1cc   :  { %1298 = vmatpush1.bf16.msra.mxu0 %v10644_v14  ;;  %1339 = vmatpush1.bf16.msra.mxu1 %v10646_v15  ;;  %v1447_v14 = vld [vmem:[#allocation8 + $0x500] sm:$0xff] }
 0x1cd   :  { %1299 = vmatprep.subr.bf16.mxu0 %v10653_v16  ;;  %1340 = vmatprep.subr.bf16.mxu1 %v10655_v17  ;;  %v1451_v15 = vld [vmem:[#allocation8 + $0x520] sm:$0xff]  ;;  %v1448_v16 = vld [vmem:[#allocation8 + $0x508] sm:$0xff] }
 0x1ce   :  { %v1452_v17 = vld [vmem:[#allocation8 + $0x528] sm:$0xff]  ;;  %v10705_v22 = vcombine.high %v1447_v14, %v1451_v15  ;;  %v10704_v29 = vcombine.low %v1447_v14, %v1451_v15 }
 0x1cf   :  { %v10707_v24 = vcombine.high %v1448_v16, %v1452_v17  ;;  %v10706_v30 = vcombine.low %v1448_v16, %v1452_v17 }
 0x1d0   :  { %1300 = vmatpush1.bf16.msra.mxu0 %v10652_v25  ;;  %1341 = vmatpush1.bf16.msra.mxu1 %v10654_v26  ;;  %v1455_v25 = vld [vmem:[#allocation8 + $0x540] sm:$0xff] }
 0x1d1   :  { %1301 = vmatprep.subr.bf16.mxu0 %v10661_v27  ;;  %1342 = vmatprep.subr.bf16.mxu1 %v10663_v28  ;;  %v1459_v26 = vld [vmem:[#allocation8 + $0x560] sm:$0xff]  ;;  %v1456_v27 = vld [vmem:[#allocation8 + $0x548] sm:$0xff] }
 0x1d2   :  { %v1460_v28 = vld [vmem:[#allocation8 + $0x568] sm:$0xff]  ;;  %v10713_v31 = vcombine.high %v1455_v25, %v1459_v26 }
 0x1d3   :  { %v10715_v32 = vcombine.high %v1456_v27, %v1460_v28 }
 0x1d4   :  { %1302 = vmatpush1.bf16.msra.mxu0 %v10660_v33  ;;  %1343 = vmatpush1.bf16.msra.mxu1 %v10662_v34  ;;  %v1463_v33 = vld [vmem:[#allocation8 + $0x580] sm:$0xff] }
 0x1d5   :  { %1303 = vmatprep.subr.bf16.mxu0 %v10669_v35  ;;  %1344 = vmatprep.subr.bf16.mxu1 %v10671_v37  ;;  %v1467_v34 = vld [vmem:[#allocation8 + $0x5a0] sm:$0xff]  ;;  %v1464_v35 = vld [vmem:[#allocation8 + $0x588] sm:$0xff] }
 0x1d6   :  { %v1468_v37 = vld [vmem:[#allocation8 + $0x5a8] sm:$0xff]  ;;  %v10720_v49 = vcombine.low %v1463_v33, %v1467_v34 }
 0x1d7   :  { %v10723_v48 = vcombine.high %v1464_v35, %v1468_v37  ;;  %v10722_v50 = vcombine.low %v1464_v35, %v1468_v37 }
 0x1d8   :  { %1304 = vmatpush1.bf16.msra.mxu0 %v10668_v38  ;;  %1345 = vmatpush1.bf16.msra.mxu1 %v10670_v39  ;;  %v10712_v38 = vcombine.low %v1455_v25, %v1459_v26  ;;  %v10714_v39 = vcombine.low %v1456_v27, %v1460_v28 }
 0x1d9   :  { %11905 = vmatprep.subr.bf16.mxu0 %v12514_v0  ;;  %1799 = vmatprep.subr.bf16.mxu1 %v10673_v52  ;;  %v1475_v52 = vld [vmem:[#allocation8 + $0x5e0] sm:$0xff] }
 0x1db   :  { %1322 = vmatmul.mubr.bf16.vlgmr.msra.gmra.mrb[16].mxu0 %v12704_v45  ;;  %1363 = vmatmul.mubr.bf16.vlgmr.msra.gmra.mrb[16].mxu1 %v12704_v45  ;;  %v12740_v45 = vld [vmem:[#allocation5 + $0x30] sm:$0xff]  }
 0x1dc   :  { %11906 = vmatpush3.bf16.msra.mxu0 %v12713_v23  ;;  %11921 = vmatprep.mubr.msk.bf16.mxu0 %vm12515_vm0, %v12514_v0 }
 0x1dd   :  { %11907 = vmatprep.subr.bf16.mxu0 %v12514_v0  ;;  %1831 = vmatprep.mubr.bf16.mxu1 %v12516_v20 }
 0x1de   :  { %1800 = vmatpush1.bf16.msra.mxu1 %v10672_v51  ;;  %v1471_v51 = vld [vmem:[#allocation8 + $0x5c0] sm:$0xff] }
 0x1df   :  { %1801 = vmatprep.subr.bf16.mxu1 %v10681_v57  ;;  %v10728_v59 = vcombine.low %v1471_v51, %v1475_v52 }
 0x1e0   :  { %11908 = vmatpush3.bf16.msra.mxu0 %v12720_v40 }
 0x1e1   :  { %11909 = vmatprep.subr.bf16.mxu0 %v12514_v0 }
 0x1e2   :  { %1802 = vmatpush1.bf16.msra.mxu1 %v10680_v2 }
 0x1e3   :  { %1803 = vmatprep.subr.bf16.mxu1 %v10689_v4  ;;  %v1421_v4 = vld [vmem:[#allocation8 + $0x430] sm:$0xff] }
 0x1e4   :  { %11910 = vmatpush3.bf16.msra.mxu0 %v12724_v41 }
 0x1e5   :  { %11911 = vmatprep.subr.bf16.mxu0 %v12514_v0 }
 0x1e6   :  { %1804 = vmatpush1.bf16.msra.mxu1 %v10688_v10 }
 0x1e7   :  { %1805 = vmatprep.subr.bf16.mxu1 %v10697_v12 }
 0x1e8   :  { %11912 = vmatpush3.bf16.msra.mxu0 %v12728_v42 }
 0x1e9   :  { %11913 = vmatprep.subr.bf16.mxu0 %v12514_v0 }
 0x1ea   :  { %1806 = vmatpush1.bf16.msra.mxu1 %v10696_v18 }
 0x1eb   :  { %1807 = vmatprep.subr.bf16.mxu1 %v10705_v22 }
 0x1ec   :  { %11914 = vmatpush3.bf16.msra.mxu0 %v12732_v43 }
 0x1ed   :  { %11915 = vmatprep.subr.bf16.mxu0 %v12514_v0 }
 0x1ee   :  { %1808 = vmatpush1.bf16.msra.mxu1 %v10704_v29 }
 0x1ef   :  { %1809 = vmatprep.subr.bf16.mxu1 %v10713_v31 }
 0x1f0   :  { %11916 = vmatpush3.bf16.msra.mxu0 %v12736_v44 }
 0x1f1   :  { %11917 = vmatprep.subr.bf16.mxu0 %v12514_v0 }
 0x1f2   :  { %1810 = vmatpush1.bf16.msra.mxu1 %v10712_v38 }
 0x1f4   :  { %11918 = vmatpush3.bf16.msra.mxu0 %v12740_v45 }
 0x1f5   :  { %11919 = vmatprep.subr.bf16.mxu0 %v12514_v0 }
 0x1f8   :  { %11920 = vmatpush3.bf16.msra.mxu0 %v12744_v46 }
 0x1f9   :  { %1840 = vmatprep.subr.bf16.mxu0 %v10675_v36  ;;  %v1476_v36 = vld [vmem:[#allocation8 + $0x5e8] sm:$0xff] }
 0x1fa   :  { %v10730_v60 = vcombine.low %v1472_v53, %v1476_v36 }
 0x1fb   :  { %11922 = vmatmul.mubr.bf16.vlgmr.msra.gmra.mrb[20].mxu0 %v1372_v47  ;;  %v10721_v47 = vcombine.high %v1463_v33, %v1467_v34 }
 0x1fc   :  { %1872 = vmatprep.mubr.bf16.mxu0 %v12516_v20  ;;  %1841 = vmatpush1.bf16.msra.mxu0 %v10674_v56  ;;  %v10729_v56 = vcombine.high %v1471_v51, %v1475_v52 }
 0x1fd   :  { %1842 = vmatprep.subr.bf16.mxu0 %v10683_v61  ;;  %1811 = vmatprep.subr.bf16.mxu1 %v10721_v47  ;;  %v10731_v61 = vcombine.high %v1472_v53, %v1476_v36  ;;  %v1425_v36 = vld [vmem:[#allocation8 + $0x450] sm:$0xff] }
 0x1fe   :  { %1812 = vmatpush1.bf16.msra.mxu1 %v10720_v49 }
 0x1ff   :  { %1813 = vmatprep.subr.bf16.mxu1 %v10729_v56 }
 0x200   :  { %1843 = vmatpush1.bf16.msra.mxu0 %v10682_v3  ;;  %v1417_v3 = vld [vmem:[#allocation8 + $0x410] sm:$0xff] }
 0x201   :  { %1844 = vmatprep.subr.bf16.mxu0 %v10691_v5  ;;  %v1418_v5 = vld [vmem:[#allocation8 + $0x418] sm:$0xff]  ;;  %v10677_v6 = vcombine.high %v1417_v3, %v1421_v4  ;;  %v10676_v8 = vcombine.low %v1417_v3, %v1421_v4  ;;  %v1433_v3 = vld [vmem:[#allocation8 + $0x490] sm:$0xff] }
 0x202   :  { %1814 = vmatpush1.bf16.msra.mxu1 %v10728_v59  ;;  %v10678_v9 = vcombine.low %v1418_v5, %v1422_v7  ;;  %v10679_v10 = vcombine.high %v1418_v5, %v1422_v7  ;;  %v1426_v59 = vld [vmem:[#allocation8 + $0x458] sm:$0xff]  ;;  %v1437_v4 = vld [vmem:[#allocation8 + $0x4b0] sm:$0xff] }
 0x203   :  { %1881 = vmatprep.subr.bf16.mxu1 %v10677_v6  ;;  %v1434_v5 = vld [vmem:[#allocation8 + $0x498] sm:$0xff] }
 0x204   :  { %1845 = vmatpush1.bf16.msra.mxu0 %v10690_v11  ;;  %v1438_v6 = vld [vmem:[#allocation8 + $0x4b8] sm:$0xff] }
 0x205   :  { %1846 = vmatprep.subr.bf16.mxu0 %v10699_v13 }
 0x208   :  { %1847 = vmatpush1.bf16.msra.mxu0 %v10698_v19 }
 0x209   :  { %1848 = vmatprep.subr.bf16.mxu0 %v10707_v24 }
 0x20c   :  { %1849 = vmatpush1.bf16.msra.mxu0 %v10706_v30 }
 0x20d   :  { %1850 = vmatprep.subr.bf16.mxu0 %v10715_v32 }
 0x210   :  { %1851 = vmatpush1.bf16.msra.mxu0 %v10714_v39 }
 0x211   :  { %1852 = vmatprep.subr.bf16.mxu0 %v10723_v48 }
 0x214   :  { %1853 = vmatpush1.bf16.msra.mxu0 %v10722_v50 }
 0x215   :  { %1854 = vmatprep.subr.bf16.mxu0 %v10731_v61 }
 0x218   :  { %1855 = vmatpush1.bf16.msra.mxu0 %v10730_v60  ;;  %v1430_v60 = vld [vmem:[#allocation8 + $0x478] sm:$0xff] }
 0x219   :  { %1922 = vmatprep.subr.bf16.mxu0 %v10679_v10  ;;  %v10686_v7 = vcombine.low %v1426_v59, %v1430_v60  ;;  %v10693_v10 = vcombine.high %v1433_v3, %v1437_v4 }
 0x24e   :  { %v757_v54 = vpop.f32.mrb[4].mxu0  ;;  %v798_v55 = vpop.f32.mrb[4].mxu1 }
 0x24f   :  { %v759_v57 = vpop.f32.mrb[5].mxu0  ;;  %v800_v58 = vpop.f32.mrb[5].mxu1 }
 0x250   :  { %v761_v62 = vpop.f32.mrb[6].mxu0  ;;  %v802_v63 = vpop.f32.mrb[6].mxu1 }
 0x251   :  { %v762_v1 = vpop.f32.mrb[7].mxu0  ;;  %v803_v2 = vpop.f32.mrb[7].mxu1 }
 0x252   :  { %v10687_v2 = vcombine.high %v1426_v59, %v1430_v60  ;;  %v1473_v60 = vld [vmem:[#allocation8 + $0x5d0] sm:$0xff] }
 0x26e   :  { %v839_v11 = vpop.f32.mrb[8].mxu0  ;;  %v880_v12 = vpop.f32.mrb[8].mxu1 }
 0x26f   :  { %v841_v13 = vpop.f32.mrb[9].mxu0  ;;  %v882_v14 = vpop.f32.mrb[9].mxu1 }
 0x270   :  { %v843_v15 = vpop.f32.mrb[10].mxu0  ;;  %v884_v16 = vpop.f32.mrb[10].mxu1 }
 0x271   :  { %v844_v17 = vpop.f32.mrb[11].mxu0  ;;  %v885_v18 = vpop.f32.mrb[11].mxu1  ;;  %v1446_v15 = vld [vmem:[#allocation8 + $0x4f8] sm:$0xff]  ;;  %v10692_v16 = vcombine.low %v1433_v3, %v1437_v4 }
 0x272   :  { %v10694_v17 = vcombine.low %v1434_v5, %v1438_v6  ;;  %v1449_v18 = vld [vmem:[#allocation8 + $0x510] sm:$0xff] }
 0x28e   :  { %v1241_v19 = vpop.f32.mrb[12].mxu0  ;;  %v1282_v22 = vpop.f32.mrb[12].mxu1 }
 0x28f   :  { %v12748_v24 = vadd.f32 %v1241_v19, %v757_v54  ;;  %v12750_v25 = vadd.f32 %v1282_v22, %v798_v55  ;;  %v1243_v26 = vpop.f32.mrb[13].mxu0  ;;  %v1284_v27 = vpop.f32.mrb[13].mxu1  ;;  %v1453_v19 = vld [vmem:[#allocation8 + $0x530] sm:$0xff]  ;;  %v1450_v22 = vld [vmem:[#allocation8 + $0x518] sm:$0xff] }
 0x290   :  { %v12752_v28 = vadd.f32 %v1243_v26, %v759_v57  ;;  %v12754_v29 = vadd.f32 %v1284_v27, %v800_v58  ;;  %v1245_v30 = vpop.f32.mrb[14].mxu0  ;;  %v1286_v31 = vpop.f32.mrb[14].mxu1  ;;  %v1429_v58 = vld [vmem:[#allocation8 + $0x470] sm:$0xff]  ;;  %v1454_v26 = vld [vmem:[#allocation8 + $0x538] sm:$0xff] }
 0x291   :  { %v1246_v32 = vpop.f32.mrb[15].mxu0  ;;  %v1287_v33 = vpop.f32.mrb[15].mxu1  ;;  %v10685_v1 = vcombine.high %v1425_v36, %v1429_v58  ;;  %v10709_v31 = vcombine.high %v1449_v18, %v1453_v19 }
 0x292   :  { %v10711_v32 = vcombine.high %v1450_v22, %v1454_v26  ;;  %v1457_v33 = vld [vmem:[#allocation8 + $0x550] sm:$0xff] }
 0x2ae   :  { %v1323_v34 = vpop.f32.mrb[16].mxu0  ;;  %v1364_v35 = vpop.f32.mrb[16].mxu1 }
 0x2af   :  { %v12756_v37 = vadd.f32 %v1323_v34, %v839_v11  ;;  %v12758_v38 = vadd.f32 %v1364_v35, %v880_v12  ;;  %v1325_v39 = vpop.f32.mrb[17].mxu0  ;;  %v1366_v47 = vpop.f32.mrb[17].mxu1  ;;  %v10695_v11 = vcombine.high %v1434_v5, %v1438_v6  ;;  %v1441_v12 = vld [vmem:[#allocation8 + $0x4d0] sm:$0xff]  ;;  %v1458_v35 = vld [vmem:[#allocation8 + $0x558] sm:$0xff] }
 0x2b0   :  { %v12760_v48 = vadd.f32 %v1325_v39, %v841_v13  ;;  %v12762_v49 = vadd.f32 %v1366_v47, %v882_v14  ;;  %v1327_v50 = vpop.f32.mrb[18].mxu0  ;;  %v1368_v51 = vpop.f32.mrb[18].mxu1  ;;  %v1445_v13 = vld [vmem:[#allocation8 + $0x4f0] sm:$0xff]  ;;  %v1442_v14 = vld [vmem:[#allocation8 + $0x4d8] sm:$0xff]  ;;  %v10708_v47 = vcombine.low %v1449_v18, %v1453_v19 }
 0x2b1   :  { %v1328_v52 = vpop.f32.mrb[19].mxu0  ;;  %v1369_v53 = vpop.f32.mrb[19].mxu1  ;;  %v10700_v27 = vcombine.low %v1441_v12, %v1445_v13  ;;  %v10702_v30 = vcombine.low %v1442_v14, %v1446_v15  ;;  %v1461_v34 = vld [vmem:[#allocation8 + $0x570] sm:$0xff]  ;;  %v1462_v39 = vld [vmem:[#allocation8 + $0x578] sm:$0xff]  ;;  %v10710_v50 = vcombine.low %v1450_v22, %v1454_v26  ;;  %v2039_v26 = vld [vmem:[#allocation8 + $0x6c0] sm:$0xff] }
 0x2b2   :  { %v10717_v51 = vcombine.high %v1457_v33, %v1461_v34  ;;  %v10719_v52 = vcombine.high %v1458_v35, %v1462_v39  ;;  %v1465_v53 = vld [vmem:[#allocation8 + $0x590] sm:$0xff] }
 0x2ce   :  { %v1407_v54 = vpop.f32.mrb[20].mxu0 }
 0x2cf   :  { %v1408_v55 = vadd.f32 %v12687_v21, %v1407_v54  ;;  %v11923_v56 = vpop.f32.mrb[21].mxu0  ;;  %v10684_v21 = vcombine.low %v1425_v36, %v1429_v58  ;;  %v1469_v54 = vld [vmem:[#allocation8 + $0x5b0] sm:$0xff]  ;;  %v10716_v36 = vcombine.low %v1457_v33, %v1461_v34 }
 0x2d0   :  { %v1410_v57 = vpop.f32.mrb[22].mxu0  ;;  %v1470_v56 = vld [vmem:[#allocation8 + $0x5b8] sm:$0xff]  ;;  %v10725_v58 = vcombine.high %v1465_v53, %v1469_v54 }
 0x2d1   :  { %v1413_v61 = vmax.f32 %v1408_v55, 0.0  ;;  %v11924_v62 = vpop.f32.mrb[23].mxu0  ;;  %v1466_v55 = vld [vmem:[#allocation8 + $0x598] sm:$0xff]  ;;  %v10718_v57 = vcombine.low %v1458_v35, %v1462_v39  ;;  %v2047_v39 = vld [vmem:[#allocation8 + $0x700] sm:$0xff] }
 0x2d2   :  { %v10727_v59 = vcombine.high %v1466_v55, %v1470_v56  ;;  %v1474_v62 = vld [vmem:[#allocation8 + $0x5d8] sm:$0xff]  ;;  %v10726_v3 = vcombine.low %v1466_v55, %v1470_v56  ;;  %v2055_v56 = vld [vmem:[#allocation8 + $0x740] sm:$0xff] }
 0x2d3   :  { %v12765_v63 = vpack.c.bf16 %v1413_v61, %v1413_v61  ;;  %v1477_v61 = vld [vmem:[#allocation8 + $0x5f0] sm:$0xff] }
 0x2d4   :  { %v10733_v4 = vcombine.high %v1473_v60, %v1477_v61  ;;  %v10732_v6 = vcombine.low %v1473_v60, %v1477_v61 }
 0x2d5   :  { %1832 = vmatmul.mubr.bf16.vlgmr.msra.gmra.mrb[20].mxu1 %v12765_v63  ;;  %1873 = vmatmul.mubr.bf16.vlgmr.msra.gmra.mrb[24].mxu0 %v12765_v63 }
 0x2d6   :  { %1882 = vmatpush1.bf16.msra.mxu1 %v10676_v8  ;;  %1923 = vmatpush1.bf16.msra.mxu0 %v10678_v9  ;;  %v10701_v8 = vcombine.high %v1441_v12, %v1445_v13  ;;  %v10703_v9 = vcombine.high %v1442_v14, %v1446_v15  ;;  %v2028_v14 = vld [vmem:[#allocation8 + $0x668] sm:$0xff]  ;;  %v2031_v15 = vld [vmem:[#allocation8 + $0x680] sm:$0xff] }
 0x2d7   :  { %1883 = vmatprep.subr.bf16.mxu1 %v10685_v1  ;;  %1924 = vmatprep.subr.bf16.mxu0 %v10687_v2  ;;  %v1478_v1 = vld [vmem:[#allocation8 + $0x5f8] sm:$0xff]  ;;  %v10724_v2 = vcombine.low %v1465_v53, %v1469_v54 }
 0x2d8   :  { %1913 = vmatprep.mubr.bf16.mxu1 %v12516_v20  ;;  %1954 = vmatprep.mubr.bf16.mxu0 %v12516_v20  ;;  %v10735_v5 = vcombine.high %v1474_v62, %v1478_v1 }
 0x2da   :  { %1884 = vmatpush1.bf16.msra.mxu1 %v10684_v21  ;;  %1925 = vmatpush1.bf16.msra.mxu0 %v10686_v7  ;;  %v10734_v21 = vcombine.low %v1474_v62, %v1478_v1  ;;  %v2020_v7 = vld [vmem:[#allocation8 + $0x628] sm:$0xff]  ;;  %v2063_v1 = vld [vmem:[#allocation8 + $0x780] sm:$0xff] }
 0x2db   :  { %1885 = vmatprep.subr.bf16.mxu1 %v10693_v10  ;;  %1926 = vmatprep.subr.bf16.mxu0 %v10695_v11  ;;  %v2023_v10 = vld [vmem:[#allocation8 + $0x640] sm:$0xff] }
 0x2de   :  { %1886 = vmatpush1.bf16.msra.mxu1 %v10692_v16  ;;  %1927 = vmatpush1.bf16.msra.mxu0 %v10694_v17  ;;  %v2035_v16 = vld [vmem:[#allocation8 + $0x6a0] sm:$0xff]  ;;  %v2032_v17 = vld [vmem:[#allocation8 + $0x688] sm:$0xff] }
 0x2df   :  { %1887 = vmatprep.subr.bf16.mxu1 %v10701_v8  ;;  %1928 = vmatprep.subr.bf16.mxu0 %v10703_v9  ;;  %v2036_v8 = vld [vmem:[#allocation8 + $0x6a8] sm:$0xff]  ;;  %v10753_v19 = vcombine.high %v2031_v15, %v2035_v16 }
 0x2e0   :  { %v10755_v22 = vcombine.high %v2032_v17, %v2036_v8  ;;  %v10754_v33 = vcombine.low %v2032_v17, %v2036_v8 }
 0x2e2   :  { %1888 = vmatpush1.bf16.msra.mxu1 %v10700_v27  ;;  %1929 = vmatpush1.bf16.msra.mxu0 %v10702_v30  ;;  %v2043_v27 = vld [vmem:[#allocation8 + $0x6e0] sm:$0xff]  ;;  %v2040_v30 = vld [vmem:[#allocation8 + $0x6c8] sm:$0xff] }
 0x2e3   :  { %1889 = vmatprep.subr.bf16.mxu1 %v10709_v31  ;;  %1930 = vmatprep.subr.bf16.mxu0 %v10711_v32  ;;  %v2044_v31 = vld [vmem:[#allocation8 + $0x6e8] sm:$0xff]  ;;  %v10752_v32 = vcombine.low %v2031_v15, %v2035_v16  ;;  %v10761_v34 = vcombine.high %v2039_v26, %v2043_v27 }
 0x2e4   :  { %v10763_v35 = vcombine.high %v2040_v30, %v2044_v31  ;;  %v10762_v53 = vcombine.low %v2040_v30, %v2044_v31 }
 0x2e6   :  { %1890 = vmatpush1.bf16.msra.mxu1 %v10708_v47  ;;  %1931 = vmatpush1.bf16.msra.mxu0 %v10710_v50  ;;  %v2051_v47 = vld [vmem:[#allocation8 + $0x720] sm:$0xff]  ;;  %v2048_v50 = vld [vmem:[#allocation8 + $0x708] sm:$0xff] }
 0x2e7   :  { %1891 = vmatprep.subr.bf16.mxu1 %v10717_v51  ;;  %1932 = vmatprep.subr.bf16.mxu0 %v10719_v52  ;;  %v2052_v51 = vld [vmem:[#allocation8 + $0x728] sm:$0xff]  ;;  %v10760_v52 = vcombine.low %v2039_v26, %v2043_v27  ;;  %v10769_v54 = vcombine.high %v2047_v39, %v2051_v47 }
 0x2e8   :  { %v10771_v55 = vcombine.high %v2048_v50, %v2052_v51  ;;  %v10770_v60 = vcombine.low %v2048_v50, %v2052_v51 }
 0x2ea   :  { %1892 = vmatpush1.bf16.msra.mxu1 %v10716_v36  ;;  %1933 = vmatpush1.bf16.msra.mxu0 %v10718_v57  ;;  %v2059_v36 = vld [vmem:[#allocation8 + $0x760] sm:$0xff]  ;;  %v2056_v57 = vld [vmem:[#allocation8 + $0x748] sm:$0xff] }
 0x2eb   :  { %1893 = vmatprep.subr.bf16.mxu1 %v10725_v58  ;;  %1934 = vmatprep.subr.bf16.mxu0 %v10727_v59  ;;  %v2060_v58 = vld [vmem:[#allocation8 + $0x768] sm:$0xff]  ;;  %v10768_v59 = vcombine.low %v2047_v39, %v2051_v47  ;;  %v10777_v61 = vcombine.high %v2055_v56, %v2059_v36 }
 0x2ec   :  { %v10779_v62 = vcombine.high %v2056_v57, %v2060_v58 }
 0x2ee   :  { %1894 = vmatpush1.bf16.msra.mxu1 %v10724_v2  ;;  %1935 = vmatpush1.bf16.msra.mxu0 %v10726_v3  ;;  %v2067_v2 = vld [vmem:[#allocation8 + $0x7a0] sm:$0xff]  ;;  %v2064_v3 = vld [vmem:[#allocation8 + $0x788] sm:$0xff] }
 0x2ef   :  { %1895 = vmatprep.subr.bf16.mxu1 %v10733_v4  ;;  %1936 = vmatprep.subr.bf16.mxu0 %v10735_v5  ;;  %v2068_v4 = vld [vmem:[#allocation8 + $0x7a8] sm:$0xff]  ;;  %v10776_v5 = vcombine.low %v2055_v56, %v2059_v36  ;;  %v12817_v36 = vld [vmem:[#allocation7] ss:$0 sm:$0xff] }
 0x2f2   :  { %1896 = vmatpush1.bf16.msra.mxu1 %v10732_v6  ;;  %1937 = vmatpush1.bf16.msra.mxu0 %v10734_v21  ;;  %v10778_v6 = vcombine.low %v2056_v57, %v2060_v58  ;;  %v10785_v21 = vcombine.high %v2063_v1, %v2067_v2 }
 0x2f3   :  { %11925 = vmatprep.subr.bf16.mxu1 %v12514_v0 }
 0x2f5   :  { %1914 = vmatmul.mubr.bf16.vlgmr.msra.gmra.mrb[24].mxu1 %v12765_v63  ;;  %1955 = vmatmul.mubr.bf16.vlgmr.msra.gmra.mrb[28].mxu0 %v12765_v63 }
 0x2f6   :  { %11926 = vmatpush3.bf16.msra.mxu1 %v12713_v23  ;;  %11941 = vmatprep.mubr.msk.bf16.mxu1 %vm12515_vm0, %v12514_v0  ;;  %v1972_v23 = vld [vmem:[#allocation2 + $0xc] sm:$0xf] }
 0x2f7   :  { %11927 = vmatprep.subr.bf16.mxu1 %v12514_v0  ;;  %2431 = vmatprep.mubr.bf16.mxu0 %v12516_v20 }
 0x2fa   :  { %11928 = vmatpush3.bf16.msra.mxu1 %v12720_v40  ;;  %v2015_v40 = vld [vmem:[#allocation8 + $0x600] sm:$0xff] }
 0x2fb   :  { %11929 = vmatprep.subr.bf16.mxu1 %v12514_v0 }
 0x2fe   :  { %11930 = vmatpush3.bf16.msra.mxu1 %v12724_v41  ;;  %v2019_v41 = vld [vmem:[#allocation8 + $0x620] sm:$0xff] }
 0x2ff   :  { %11931 = vmatprep.subr.bf16.mxu1 %v12514_v0  ;;  %v10737_v63 = vcombine.high %v2015_v40, %v2019_v41 }
 0x301   :  { %2399 = vmatprep.subr.bf16.mxu0 %v10737_v63  ;;  %v2072_v63 = vld [vmem:[#allocation8 + $0x7c8] sm:$0xff] }
 0x302   :  { %11932 = vmatpush3.bf16.msra.mxu1 %v12728_v42  ;;  %v2016_v42 = vld [vmem:[#allocation8 + $0x608] sm:$0xff] }
 0x303   :  { %11933 = vmatprep.subr.bf16.mxu1 %v12514_v0  ;;  %v10738_v11 = vcombine.low %v2016_v42, %v2020_v7  ;;  %v10739_v12 = vcombine.high %v2016_v42, %v2020_v7  ;;  %v2071_v42 = vld [vmem:[#allocation8 + $0x7c0] sm:$0xff] }
 0x306   :  { %11934 = vmatpush3.bf16.msra.mxu1 %v12732_v43  ;;  %v10736_v43 = vcombine.low %v2015_v40, %v2019_v41  ;;  %v10784_v40 = vcombine.low %v2063_v1, %v2067_v2  ;;  %v10786_v41 = vcombine.low %v2064_v3, %v2068_v4 }
 0x307   :  { %11935 = vmatprep.subr.bf16.mxu1 %v12514_v0 }
 0x308   :  { %2400 = vmatpush1.bf16.msra.mxu0 %v10736_v43  ;;  %v2075_v43 = vld [vmem:[#allocation8 + $0x7e0] sm:$0xff] }
 0x309   :  { %v10793_v7 = vcombine.high %v2071_v42, %v2075_v43 }
 0x30a   :  { %11936 = vmatpush3.bf16.msra.mxu1 %v12736_v44  ;;  %v2027_v44 = vld [vmem:[#allocation8 + $0x660] sm:$0xff] }
 0x30b   :  { %11937 = vmatprep.subr.bf16.mxu1 %v12514_v0  ;;  %v10745_v13 = vcombine.high %v2023_v10, %v2027_v44  ;;  %v10744_v9 = vcombine.low %v2023_v10, %v2027_v44  ;;  %v2076_v10 = vld [vmem:[#allocation8 + $0x7e8] sm:$0xff]  ;;  %v10792_v44 = vcombine.low %v2071_v42, %v2075_v43  ;;  %v2041_v42 = vld [vmem:[#allocation8 + $0x6d0] sm:$0xff] }
 0x30c   :  { %v2045_v43 = vld [vmem:[#allocation8 + $0x6f0] sm:$0xff] }
 0x30d   :  { %2401 = vmatprep.subr.bf16.mxu0 %v10745_v13  ;;  %v2017_v13 = vld [vmem:[#allocation8 + $0x610] sm:$0xff] }
 0x30e   :  { %11938 = vmatpush3.bf16.msra.mxu1 %v12740_v45  ;;  %v2024_v45 = vld [vmem:[#allocation8 + $0x648] sm:$0xff]  ;;  %2402 = vmatpush1.bf16.msra.mxu0 %v10744_v9 }
 0x30f   :  { %11939 = vmatprep.subr.bf16.mxu1 %v12514_v0  ;;  %v10746_v18 = vcombine.low %v2024_v45, %v2028_v14  ;;  %2403 = vmatprep.subr.bf16.mxu0 %v10753_v19 }
 0x312   :  { %11940 = vmatpush3.bf16.msra.mxu1 %v12744_v46  ;;  %v10747_v46 = vcombine.high %v2024_v45, %v2028_v14  ;;  %2404 = vmatpush1.bf16.msra.mxu0 %v10752_v32  ;;  %v2021_v45 = vld [vmem:[#allocation8 + $0x630] sm:$0xff]  ;;  %v2018_v14 = vld [vmem:[#allocation8 + $0x618] sm:$0xff] }
 0x313   :  { %2440 = vmatprep.subr.bf16.mxu1 %v10739_v12  ;;  %2405 = vmatprep.subr.bf16.mxu0 %v10761_v34  ;;  %v10795_v12 = vcombine.high %v2072_v63, %v2076_v10  ;;  %v10741_v15 = vcombine.high %v2017_v13, %v2021_v45  ;;  %v10740_v16 = vcombine.low %v2017_v13, %v2021_v45  ;;  %v2049_v13 = vld [vmem:[#allocation8 + $0x710] sm:$0xff] }
 0x314   :  { %v2053_v45 = vld [vmem:[#allocation8 + $0x730] sm:$0xff] }
 0x315   :  { %11942 = vmatmul.mubr.bf16.vlgmr.msra.gmra.mrb[28].mxu1 %v1972_v23  ;;  %v10787_v23 = vcombine.high %v2064_v3, %v2068_v4  ;;  %v2033_v3 = vld [vmem:[#allocation8 + $0x690] sm:$0xff] }
 0x316   :  { %2472 = vmatprep.mubr.bf16.mxu1 %v12516_v20  ;;  %2441 = vmatpush1.bf16.msra.mxu1 %v10738_v11  ;;  %v10794_v11 = vcombine.low %v2072_v63, %v2076_v10  ;;  %v2037_v4 = vld [vmem:[#allocation8 + $0x6b0] sm:$0xff]  ;;  %v2042_v63 = vld [vmem:[#allocation8 + $0x6d8] sm:$0xff] }
 0x317   :  { %2442 = vmatprep.subr.bf16.mxu1 %v10747_v46  ;;  %2406 = vmatpush1.bf16.msra.mxu0 %v10760_v52  ;;  %v2022_v46 = vld [vmem:[#allocation8 + $0x638] sm:$0xff]  ;;  %v10756_v10 = vcombine.low %v2033_v3, %v2037_v4 }
 0x318   :  { %2407 = vmatprep.subr.bf16.mxu0 %v10769_v54  ;;  %v10742_v17 = vcombine.low %v2018_v14, %v2022_v46  ;;  %v10743_v8 = vcombine.high %v2018_v14, %v2022_v46  ;;  %v2050_v14 = vld [vmem:[#allocation8 + $0x718] sm:$0xff]  ;;  %v10764_v46 = vcombine.low %v2041_v42, %v2045_v43 }
 0x31a   :  { %2443 = vmatpush1.bf16.msra.mxu1 %v10746_v18 }
 0x31b   :  { %2444 = vmatprep.subr.bf16.mxu1 %v10755_v22  ;;  %2408 = vmatpush1.bf16.msra.mxu0 %v10768_v59  ;;  %v2029_v59 = vld [vmem:[#allocation8 + $0x670] sm:$0xff] }
 0x31c   :  { %2409 = vmatprep.subr.bf16.mxu0 %v10777_v61  ;;  %v2030_v61 = vld [vmem:[#allocation8 + $0x678] sm:$0xff] }
 0x31e   :  { %2445 = vmatpush1.bf16.msra.mxu1 %v10754_v33 }
 0x31f   :  { %2446 = vmatprep.subr.bf16.mxu1 %v10763_v35  ;;  %2410 = vmatpush1.bf16.msra.mxu0 %v10776_v5  ;;  %v2034_v5 = vld [vmem:[#allocation8 + $0x698] sm:$0xff] }
 0x320   :  { %2411 = vmatprep.subr.bf16.mxu0 %v10785_v21 }
 0x322   :  { %2447 = vmatpush1.bf16.msra.mxu1 %v10762_v53 }
 0x323   :  { %2448 = vmatprep.subr.bf16.mxu1 %v10771_v55  ;;  %2412 = vmatpush1.bf16.msra.mxu0 %v10784_v40  ;;  %v10757_v40 = vcombine.high %v2033_v3, %v2037_v4  ;;  %v12840_v3 = vld [vmem:[#allocation5 + $0x10] sm:$0xff]   ;;  %v12848_v4 = vld [vmem:[#allocation5 + $0x20] sm:$0xff]  }
 0x324   :  { %2413 = vmatprep.subr.bf16.mxu0 %v10793_v7  ;;  %v2046_v7 = vld [vmem:[#allocation8 + $0x6f8] sm:$0xff] }
 0x326   :  { %2449 = vmatpush1.bf16.msra.mxu1 %v10770_v60  ;;  %v2026_v60 = vld [vmem:[#allocation8 + $0x658] sm:$0xff] }
 0x327   :  { %2450 = vmatprep.subr.bf16.mxu1 %v10779_v62  ;;  %2414 = vmatpush1.bf16.msra.mxu0 %v10792_v44  ;;  %v10751_v2 = vcombine.high %v2026_v60, %v2030_v61 }
 0x328   :  { %2481 = vmatprep.subr.bf16.mxu0 %v10741_v15  ;;  %v2054_v15 = vld [vmem:[#allocation8 + $0x738] sm:$0xff] }
 0x32a   :  { %2451 = vmatpush1.bf16.msra.mxu1 %v10778_v6  ;;  %v2038_v6 = vld [vmem:[#allocation8 + $0x6b8] sm:$0xff] }
 0x32b   :  { %2452 = vmatprep.subr.bf16.mxu1 %v10787_v23  ;;  %v10750_v23 = vcombine.low %v2026_v60, %v2030_v61  ;;  %v10758_v44 = vcombine.low %v2034_v5, %v2038_v6 }
 0x32e   :  { %2453 = vmatpush1.bf16.msra.mxu1 %v10786_v41  ;;  %v10759_v41 = vcombine.high %v2034_v5, %v2038_v6  ;;  %v12852_v5 = vld [vmem:[#allocation5 + $0x28] sm:$0xff]   ;;  %v12856_v6 = vld [vmem:[#allocation5 + $0x30] sm:$0xff]  }
 0x32f   :  { %2454 = vmatprep.subr.bf16.mxu1 %v10795_v12  ;;  %v10767_v12 = vcombine.high %v2042_v63, %v2046_v7 }
 0x332   :  { %2455 = vmatpush1.bf16.msra.mxu1 %v10794_v11  ;;  %v10765_v11 = vcombine.high %v2041_v42, %v2045_v43  ;;  %v2616_v42 = vld [vmem:[#allocation8 + $0x808] sm:$0xff] }
 0x333   :  { %2522 = vmatprep.subr.bf16.mxu1 %v10743_v8  ;;  %v10775_v8 = vcombine.high %v2050_v14, %v2054_v15 }
 0x3a8   :  { %v1833_v9 = vpop.f32.mrb[20].mxu1  ;;  %v1874_v18 = vpop.f32.mrb[24].mxu0 }
 0x3a9   :  { %v12794_v19 = vadd.f32 %v1833_v9, %v12748_v24  ;;  %v12797_v22 = vadd.f32 %v1874_v18, %v12750_v25  ;;  %v1835_v26 = vpop.f32.mrb[21].mxu1  ;;  %v1876_v27 = vpop.f32.mrb[25].mxu0  ;;  %v2057_v9 = vld [vmem:[#allocation8 + $0x750] sm:$0xff] }
 0x3aa   :  { %v12800_v30 = vadd.f32 %v1835_v26, %v12752_v28  ;;  %v12803_v31 = vadd.f32 %v1876_v27, %v12754_v29  ;;  %v1837_v32 = vpop.f32.mrb[22].mxu1  ;;  %v1878_v33 = vpop.f32.mrb[26].mxu0  ;;  %v2061_v18 = vld [vmem:[#allocation8 + $0x770] sm:$0xff]  ;;  %v2058_v26 = vld [vmem:[#allocation8 + $0x758] sm:$0xff] }
 0x3ab   :  { %v1838_v34 = vpop.f32.mrb[23].mxu1  ;;  %v1879_v35 = vpop.f32.mrb[27].mxu0  ;;  %v2062_v27 = vld [vmem:[#allocation8 + $0x778] sm:$0xff]  ;;  %v10772_v32 = vcombine.low %v2049_v13, %v2053_v45  ;;  %v10774_v33 = vcombine.low %v2050_v14, %v2054_v15  ;;  %v2628_v14 = vld [vmem:[#allocation8 + $0x868] sm:$0xff]  ;;  %v2631_v15 = vld [vmem:[#allocation8 + $0x880] sm:$0xff] }
 0x3ac   :  { %v10781_v34 = vcombine.high %v2057_v9, %v2061_v18  ;;  %v10783_v35 = vcombine.high %v2058_v26, %v2062_v27 }
 0x3c8   :  { %v1915_v39 = vpop.f32.mrb[24].mxu1  ;;  %v1956_v47 = vpop.f32.mrb[28].mxu0 }
 0x3c9   :  { %v12806_v24 = vadd.f32 %v1915_v39, %v12756_v37  ;;  %v12809_v25 = vadd.f32 %v1956_v47, %v12758_v38  ;;  %v1917_v50 = vpop.f32.mrb[25].mxu1  ;;  %v1958_v51 = vpop.f32.mrb[29].mxu0  ;;  %v2025_v38 = vld [vmem:[#allocation8 + $0x650] sm:$0xff] }
 0x3ca   :  { %v12812_v28 = vadd.f32 %v1917_v50, %v12760_v48  ;;  %v12815_v29 = vadd.f32 %v1958_v51, %v12762_v49  ;;  %v1919_v52 = vpop.f32.mrb[26].mxu1  ;;  %v1960_v53 = vpop.f32.mrb[30].mxu0  ;;  %v10749_v49 = vcombine.high %v2025_v38, %v2029_v59  ;;  %v10748_v21 = vcombine.low %v2025_v38, %v2029_v59  ;;  %v2065_v39 = vld [vmem:[#allocation8 + $0x790] sm:$0xff]  ;;  %v2066_v50 = vld [vmem:[#allocation8 + $0x798] sm:$0xff] }
 0x3cb   :  { %v1920_v54 = vpop.f32.mrb[27].mxu1  ;;  %v1961_v55 = vpop.f32.mrb[31].mxu0  ;;  %v2069_v47 = vld [vmem:[#allocation8 + $0x7b0] sm:$0xff]  ;;  %v2070_v51 = vld [vmem:[#allocation8 + $0x7b8] sm:$0xff]  ;;  %v10780_v52 = vcombine.low %v2057_v9, %v2061_v18  ;;  %v10782_v53 = vcombine.low %v2058_v26, %v2062_v27 }
 0x3cc   :  { %v10789_v54 = vcombine.high %v2065_v39, %v2069_v47  ;;  %v10791_v55 = vcombine.high %v2066_v50, %v2070_v51  ;;  %v2078_v38 = vld [vmem:[#allocation8 + $0x7f8] sm:$0xff]  ;;  %v10790_v59 = vcombine.low %v2066_v50, %v2070_v51 }
 0x3e8   :  { %v2007_v56 = vpop.f32.mrb[28].mxu1 }
 0x3e9   :  { %v2008_v37 = vadd.f32 %v12817_v36, %v2007_v56  ;;  %v11943_v57 = vpop.f32.mrb[29].mxu1  ;;  %v2073_v56 = vld [vmem:[#allocation8 + $0x7d0] sm:$0xff] }
 0x3ea   :  { %v2010_v58 = vpop.f32.mrb[30].mxu1  ;;  %v2074_v57 = vld [vmem:[#allocation8 + $0x7d8] sm:$0xff] }
 0x3eb   :  { %v2013_v48 = vmax.f32 %v2008_v37, 0.0  ;;  %v11944_v62 = vpop.f32.mrb[31].mxu1  ;;  %v2077_v37 = vld [vmem:[#allocation8 + $0x7f0] sm:$0xff]  ;;  %v10788_v58 = vcombine.low %v2065_v39, %v2069_v47  ;;  %v10799_v61 = vcombine.high %v2074_v57, %v2078_v38 }
 0x3ec   :  { %v10797_v60 = vcombine.high %v2073_v56, %v2077_v37  ;;  %v10798_v62 = vcombine.low %v2074_v57, %v2078_v38 }
 0x3ed   :  { %v12820_v1 = vpack.c.bf16 %v2013_v48, %v2013_v48  ;;  %v10796_v48 = vcombine.low %v2073_v56, %v2077_v37 }
 0x3ef   :  { %2432 = vmatmul.mubr.bf16.vlgmr.msra.gmra.mrb[32].mxu0 %v12820_v1  ;;  %2473 = vmatmul.mubr.bf16.vlgmr.msra.gmra.mrb[32].mxu1 %v12820_v1 }
 0x3f0   :  { %2482 = vmatpush1.bf16.msra.mxu0 %v10740_v16  ;;  %2523 = vmatpush1.bf16.msra.mxu1 %v10742_v17  ;;  %v10766_v16 = vcombine.low %v2042_v63, %v2046_v7  ;;  %v10773_v17 = vcombine.high %v2049_v13, %v2053_v45  ;;  %v2620_v7 = vld [vmem:[#allocation8 + $0x828] sm:$0xff] }
 0x3f1   :  { %2483 = vmatprep.subr.bf16.mxu0 %v10749_v49  ;;  %2524 = vmatprep.subr.bf16.mxu1 %v10751_v2  ;;  %v12829_v49 = vld [vmem:[#allocation5] sm:$0xff]   ;;  %v12836_v2 = vld [vmem:[#allocation5 + $0x8] sm:$0xff]  }
 0x3f2   :  { %2513 = vmatprep.mubr.bf16.mxu0 %v12516_v20  ;;  %2554 = vmatprep.mubr.bf16.mxu1 %v12516_v20  ;;  %v2624_v45 = vld [vmem:[#allocation8 + $0x848] sm:$0xff] }
 0x3f3   :  { %v10810_v18 = vcombine.low %v2624_v45, %v2628_v14 }
 0x3f4   :  { %2484 = vmatpush1.bf16.msra.mxu0 %v10748_v21  ;;  %2525 = vmatpush1.bf16.msra.mxu1 %v10750_v23  ;;  %v12860_v21 = vld [vmem:[#allocation5 + $0x38] sm:$0xff]   ;;  %v2572_v23 = vld [vmem:[#allocation2 + $0x10] sm:$0xf] }
 0x3f5   :  { %2485 = vmatprep.subr.bf16.mxu0 %v10757_v40  ;;  %2526 = vmatprep.subr.bf16.mxu1 %v10759_v41  ;;  %v2615_v40 = vld [vmem:[#allocation8 + $0x800] sm:$0xff] }
 0x3f6   :  { %v2619_v41 = vld [vmem:[#allocation8 + $0x820] sm:$0xff] }
 0x3f7   :  { %v10800_v43 = vcombine.low %v2615_v40, %v2619_v41  ;;  %v10801_v63 = vcombine.high %v2615_v40, %v2619_v41  ;;  %v2663_v41 = vld [vmem:[#allocation8 + $0x980] sm:$0xff] }
 0x3f8   :  { %2486 = vmatpush1.bf16.msra.mxu0 %v10756_v10  ;;  %2527 = vmatpush1.bf16.msra.mxu1 %v10758_v44  ;;  %v2623_v10 = vld [vmem:[#allocation8 + $0x840] sm:$0xff] }
 0x3f9   :  { %2487 = vmatprep.subr.bf16.mxu0 %v10765_v11  ;;  %2528 = vmatprep.subr.bf16.mxu1 %v10767_v12  ;;  %v2627_v44 = vld [vmem:[#allocation8 + $0x860] sm:$0xff]  ;;  %v10802_v11 = vcombine.low %v2616_v42, %v2620_v7  ;;  %v10803_v12 = vcombine.high %v2616_v42, %v2620_v7 }
 0x3fa   :  { %v10809_v13 = vcombine.high %v2623_v10, %v2627_v44  ;;  %v10808_v9 = vcombine.low %v2623_v10, %v2627_v44  ;;  %v2667_v42 = vld [vmem:[#allocation8 + $0x9a0] sm:$0xff] }
 0x3fb   :  { %v10849_v44 = vcombine.high %v2663_v41, %v2667_v42 }
 0x3fc   :  { %2488 = vmatpush1.bf16.msra.mxu0 %v10764_v46  ;;  %2529 = vmatpush1.bf16.msra.mxu1 %v10766_v16  ;;  %v10811_v46 = vcombine.high %v2624_v45, %v2628_v14  ;;  %v2635_v16 = vld [vmem:[#allocation8 + $0x8a0] sm:$0xff] }
 0x3fd   :  { %2489 = vmatprep.subr.bf16.mxu0 %v10773_v17  ;;  %2530 = vmatprep.subr.bf16.mxu1 %v10775_v8  ;;  %v2632_v17 = vld [vmem:[#allocation8 + $0x888] sm:$0xff]  ;;  %v10817_v26 = vcombine.high %v2631_v15, %v2635_v16  ;;  %v10816_v39 = vcombine.low %v2631_v15, %v2635_v16  ;;  %v2671_v45 = vld [vmem:[#allocation8 + $0x9c0] sm:$0xff] }
 0x3fe   :  { %v2636_v8 = vld [vmem:[#allocation8 + $0x8a8] sm:$0xff]  ;;  %v2675_v14 = vld [vmem:[#allocation8 + $0x9e0] sm:$0xff] }
 0x3ff   :  { %v10819_v27 = vcombine.high %v2632_v17, %v2636_v8  ;;  %v10818_v47 = vcombine.low %v2632_v17, %v2636_v8  ;;  %v2672_v15 = vld [vmem:[#allocation8 + $0x9c8] sm:$0xff]  ;;  %v10856_v17 = vcombine.low %v2671_v45, %v2675_v14 }
 0x400   :  { %2490 = vmatpush1.bf16.msra.mxu0 %v10772_v32  ;;  %2531 = vmatpush1.bf16.msra.mxu1 %v10774_v33  ;;  %v2639_v32 = vld [vmem:[#allocation8 + $0x8c0] sm:$0xff]  ;;  %v2676_v16 = vld [vmem:[#allocation8 + $0x9e8] sm:$0xff] }
 0x401   :  { %2491 = vmatprep.subr.bf16.mxu0 %v10781_v34  ;;  %2532 = vmatprep.subr.bf16.mxu1 %v10783_v35  ;;  %v2643_v33 = vld [vmem:[#allocation8 + $0x8e0] sm:$0xff]  ;;  %v2640_v34 = vld [vmem:[#allocation8 + $0x8c8] sm:$0xff]  ;;  %v10858_v8 = vcombine.low %v2672_v15, %v2676_v16 }
 0x402   :  { %v2644_v35 = vld [vmem:[#allocation8 + $0x8e8] sm:$0xff]  ;;  %v10825_v50 = vcombine.high %v2639_v32, %v2643_v33  ;;  %v10824_v56 = vcombine.low %v2639_v32, %v2643_v33  ;;  %v2622_v33 = vld [vmem:[#allocation8 + $0x838] sm:$0xff] }
 0x403   :  { %v10827_v51 = vcombine.high %v2640_v34, %v2644_v35  ;;  %v10826_v37 = vcombine.low %v2640_v34, %v2644_v35 }
 0x404   :  { %2492 = vmatpush1.bf16.msra.mxu0 %v10780_v52  ;;  %2533 = vmatpush1.bf16.msra.mxu1 %v10782_v53  ;;  %v2647_v52 = vld [vmem:[#allocation8 + $0x900] sm:$0xff] }
 0x405   :  { %2493 = vmatprep.subr.bf16.mxu0 %v10789_v54  ;;  %2534 = vmatprep.subr.bf16.mxu1 %v10791_v55  ;;  %v2651_v53 = vld [vmem:[#allocation8 + $0x920] sm:$0xff]  ;;  %v2648_v54 = vld [vmem:[#allocation8 + $0x908] sm:$0xff] }
 0x406   :  { %v2652_v55 = vld [vmem:[#allocation8 + $0x928] sm:$0xff]  ;;  %v10833_v57 = vcombine.high %v2647_v52, %v2651_v53 }
 0x407   :  { %v10835_v38 = vcombine.high %v2648_v54, %v2652_v55 }
 0x408   :  { %2494 = vmatpush1.bf16.msra.mxu0 %v10788_v58  ;;  %2535 = vmatpush1.bf16.msra.mxu1 %v10790_v59  ;;  %v2655_v58 = vld [vmem:[#allocation8 + $0x940] sm:$0xff] }
 0x409   :  { %2495 = vmatprep.subr.bf16.mxu0 %v10797_v60  ;;  %2536 = vmatprep.subr.bf16.mxu1 %v10799_v61  ;;  %v2659_v59 = vld [vmem:[#allocation8 + $0x960] sm:$0xff]  ;;  %v2656_v60 = vld [vmem:[#allocation8 + $0x948] sm:$0xff] }
 0x40a   :  { %v2660_v61 = vld [vmem:[#allocation8 + $0x968] sm:$0xff]  ;;  %v10840_v7 = vcombine.low %v2655_v58, %v2659_v59 }
 0x40b   :  { %v10843_v40 = vcombine.high %v2656_v60, %v2660_v61  ;;  %v10842_v10 = vcombine.low %v2656_v60, %v2660_v61 }
 0x40c   :  { %2496 = vmatpush1.bf16.msra.mxu0 %v10796_v48  ;;  %2537 = vmatpush1.bf16.msra.mxu1 %v10798_v62  ;;  %v10832_v48 = vcombine.low %v2647_v52, %v2651_v53  ;;  %v10834_v62 = vcombine.low %v2648_v54, %v2652_v55 }
 0x40d   :  { %11945 = vmatprep.subr.bf16.mxu0 %v12514_v0  ;;  %2999 = vmatprep.subr.bf16.mxu1 %v10801_v63  ;;  %v2668_v63 = vld [vmem:[#allocation8 + $0x9a8] sm:$0xff] }
 0x40f   :  { %2514 = vmatmul.mubr.bf16.vlgmr.msra.gmra.mrb[36].mxu0 %v12820_v1  ;;  %2555 = vmatmul.mubr.bf16.vlgmr.msra.gmra.mrb[36].mxu1 %v12820_v1  ;;  %v12844_v1 = vld [vmem:[#allocation5 + $0x18] sm:$0xff]  }
 0x410   :  { %11946 = vmatpush3.bf16.msra.mxu0 %v12829_v49  ;;  %11961 = vmatprep.mubr.msk.bf16.mxu0 %vm12515_vm0, %v12514_v0 }
 0x411   :  { %11947 = vmatprep.subr.bf16.mxu0 %v12514_v0  ;;  %3031 = vmatprep.mubr.bf16.mxu1 %v12516_v20 }
 0x412   :  { %3000 = vmatpush1.bf16.msra.mxu1 %v10800_v43  ;;  %v2664_v43 = vld [vmem:[#allocation8 + $0x988] sm:$0xff] }
 0x413   :  { %3001 = vmatprep.subr.bf16.mxu1 %v10809_v13  ;;  %v10850_v13 = vcombine.low %v2664_v43, %v2668_v63 }
 0x414   :  { %11948 = vmatpush3.bf16.msra.mxu0 %v12836_v2 }
 0x415   :  { %11949 = vmatprep.subr.bf16.mxu0 %v12514_v0 }
 0x416   :  { %3002 = vmatpush1.bf16.msra.mxu1 %v10808_v9  ;;  %v10859_v9 = vcombine.high %v2672_v15, %v2676_v16  ;;  %v2634_v15 = vld [vmem:[#allocation8 + $0x898] sm:$0xff] }
 0x417   :  { %3003 = vmatprep.subr.bf16.mxu1 %v10817_v26  ;;  %v2621_v26 = vld [vmem:[#allocation8 + $0x830] sm:$0xff] }
 0x418   :  { %11950 = vmatpush3.bf16.msra.mxu0 %v12840_v3 }
 0x419   :  { %11951 = vmatprep.subr.bf16.mxu0 %v12514_v0 }
 0x41a   :  { %3004 = vmatpush1.bf16.msra.mxu1 %v10816_v39 }
 0x41b   :  { %3005 = vmatprep.subr.bf16.mxu1 %v10825_v50 }
 0x41c   :  { %11952 = vmatpush3.bf16.msra.mxu0 %v12844_v1 }
 0x41d   :  { %11953 = vmatprep.subr.bf16.mxu0 %v12514_v0 }
 0x41e   :  { %3006 = vmatpush1.bf16.msra.mxu1 %v10824_v56 }
 0x41f   :  { %3007 = vmatprep.subr.bf16.mxu1 %v10833_v57 }
 0x420   :  { %11954 = vmatpush3.bf16.msra.mxu0 %v12848_v4 }
 0x421   :  { %11955 = vmatprep.subr.bf16.mxu0 %v12514_v0 }
 0x422   :  { %3008 = vmatpush1.bf16.msra.mxu1 %v10832_v48 }
 0x424   :  { %11956 = vmatpush3.bf16.msra.mxu0 %v12852_v5 }
 0x425   :  { %11957 = vmatprep.subr.bf16.mxu0 %v12514_v0 }
 0x428   :  { %11958 = vmatpush3.bf16.msra.mxu0 %v12856_v6 }
 0x429   :  { %11959 = vmatprep.subr.bf16.mxu0 %v12514_v0 }
 0x42c   :  { %11960 = vmatpush3.bf16.msra.mxu0 %v12860_v21 }
 0x42d   :  { %3040 = vmatprep.subr.bf16.mxu0 %v10803_v12  ;;  %v10848_v12 = vcombine.low %v2663_v41, %v2667_v42 }
 0x42f   :  { %11962 = vmatmul.mubr.bf16.vlgmr.msra.gmra.mrb[40].mxu0 %v2572_v23  ;;  %v10841_v23 = vcombine.high %v2655_v58, %v2659_v59 }
 0x430   :  { %3072 = vmatprep.mubr.bf16.mxu0 %v12516_v20  ;;  %3041 = vmatpush1.bf16.msra.mxu0 %v10802_v11  ;;  %v10851_v11 = vcombine.high %v2664_v43, %v2668_v63  ;;  %v2625_v63 = vld [vmem:[#allocation8 + $0x850] sm:$0xff] }
 0x431   :  { %3042 = vmatprep.subr.bf16.mxu0 %v10811_v46  ;;  %3009 = vmatprep.subr.bf16.mxu1 %v10841_v23  ;;  %v10857_v46 = vcombine.high %v2671_v45, %v2675_v14  ;;  %v2633_v45 = vld [vmem:[#allocation8 + $0x890] sm:$0xff] }
 0x432   :  { %3010 = vmatpush1.bf16.msra.mxu1 %v10840_v7  ;;  %v2637_v14 = vld [vmem:[#allocation8 + $0x8b0] sm:$0xff] }
 0x433   :  { %3011 = vmatprep.subr.bf16.mxu1 %v10849_v44  ;;  %v2630_v44 = vld [vmem:[#allocation8 + $0x878] sm:$0xff] }
 0x434   :  { %3043 = vmatpush1.bf16.msra.mxu0 %v10810_v18  ;;  %v2617_v18 = vld [vmem:[#allocation8 + $0x810] sm:$0xff] }
 0x435   :  { %3044 = vmatprep.subr.bf16.mxu0 %v10819_v27  ;;  %v2618_v27 = vld [vmem:[#allocation8 + $0x818] sm:$0xff]  ;;  %v10805_v32 = vcombine.high %v2617_v18, %v2621_v26  ;;  %v10804_v34 = vcombine.low %v2617_v18, %v2621_v26  ;;  %v2641_v18 = vld [vmem:[#allocation8 + $0x8d0] sm:$0xff] }
 0x436   :  { %3012 = vmatpush1.bf16.msra.mxu1 %v10848_v12  ;;  %v10806_v35 = vcombine.low %v2618_v27, %v2622_v33  ;;  %v10807_v39 = vcombine.high %v2618_v27, %v2622_v33  ;;  %v2645_v26 = vld [vmem:[#allocation8 + $0x8f0] sm:$0xff]  ;;  %v2642_v27 = vld [vmem:[#allocation8 + $0x8d8] sm:$0xff]  ;;  %v10820_v33 = vcombine.low %v2633_v45, %v2637_v14 }
 0x437   :  { %3013 = vmatprep.subr.bf16.mxu1 %v10857_v46  ;;  %v2638_v46 = vld [vmem:[#allocation8 + $0x8b8] sm:$0xff] }
 0x438   :  { %3045 = vmatpush1.bf16.msra.mxu0 %v10818_v47 }
 0x439   :  { %3046 = vmatprep.subr.bf16.mxu0 %v10827_v51 }
 0x43a   :  { %3014 = vmatpush1.bf16.msra.mxu1 %v10856_v17 }
 0x43b   :  { %3081 = vmatprep.subr.bf16.mxu1 %v10805_v32  ;;  %v2646_v32 = vld [vmem:[#allocation8 + $0x8f8] sm:$0xff] }
 0x43c   :  { %3047 = vmatpush1.bf16.msra.mxu0 %v10826_v37 }
 0x43d   :  { %3048 = vmatprep.subr.bf16.mxu0 %v10835_v38 }
 0x440   :  { %3049 = vmatpush1.bf16.msra.mxu0 %v10834_v62 }
 0x441   :  { %3050 = vmatprep.subr.bf16.mxu0 %v10843_v40 }
 0x444   :  { %3051 = vmatpush1.bf16.msra.mxu0 %v10842_v10  ;;  %v2626_v10 = vld [vmem:[#allocation8 + $0x858] sm:$0xff] }
 0x445   :  { %3052 = vmatprep.subr.bf16.mxu0 %v10851_v11  ;;  %v10814_v17 = vcombine.low %v2626_v10, %v2630_v44 }
 0x448   :  { %3053 = vmatpush1.bf16.msra.mxu0 %v10850_v13 }
 0x449   :  { %3054 = vmatprep.subr.bf16.mxu0 %v10859_v9  ;;  %v10823_v9 = vcombine.high %v2634_v15, %v2638_v46 }
 0x44c   :  { %3055 = vmatpush1.bf16.msra.mxu0 %v10858_v8  ;;  %v10821_v8 = vcombine.high %v2633_v45, %v2637_v14 }
 0x44d   :  { %3122 = vmatprep.subr.bf16.mxu0 %v10807_v39  ;;  %v10822_v39 = vcombine.low %v2634_v15, %v2638_v46 }
 0x4c2   :  { %v2433_v47 = vpop.f32.mrb[32].mxu0  ;;  %v2474_v50 = vpop.f32.mrb[32].mxu1 }
 0x4c3   :  { %v12865_v51 = vadd.f32 %v2433_v47, %v12794_v19  ;;  %v12868_v52 = vadd.f32 %v2474_v50, %v12797_v22  ;;  %v2435_v53 = vpop.f32.mrb[33].mxu0  ;;  %v2476_v54 = vpop.f32.mrb[33].mxu1  ;;  %v2649_v47 = vld [vmem:[#allocation8 + $0x910] sm:$0xff] }
 0x4c4   :  { %v12871_v55 = vadd.f32 %v2435_v53, %v12800_v30  ;;  %v12874_v56 = vadd.f32 %v2476_v54, %v12803_v31  ;;  %v2437_v37 = vpop.f32.mrb[34].mxu0  ;;  %v2478_v57 = vpop.f32.mrb[34].mxu1  ;;  %v2653_v50 = vld [vmem:[#allocation8 + $0x930] sm:$0xff]  ;;  %v2650_v53 = vld [vmem:[#allocation8 + $0x918] sm:$0xff] }
 0x4c5   :  { %v2438_v38 = vpop.f32.mrb[35].mxu0  ;;  %v2479_v58 = vpop.f32.mrb[35].mxu1  ;;  %v2654_v54 = vld [vmem:[#allocation8 + $0x938] sm:$0xff]  ;;  %v10828_v37 = vcombine.low %v2641_v18, %v2645_v26  ;;  %v10830_v57 = vcombine.low %v2642_v27, %v2646_v32 }
 0x4c6   :  { %v10837_v38 = vcombine.high %v2649_v47, %v2653_v50  ;;  %v10839_v58 = vcombine.high %v2650_v53, %v2654_v54 }
 0x4e2   :  { %v2515_v59 = vpop.f32.mrb[36].mxu0  ;;  %v2556_v60 = vpop.f32.mrb[36].mxu1 }
 0x4e3   :  { %v12877_v19 = vadd.f32 %v2515_v59, %v12806_v24  ;;  %v12880_v22 = vadd.f32 %v2556_v60, %v12809_v25  ;;  %v2517_v61 = vpop.f32.mrb[37].mxu0  ;;  %v2558_v48 = vpop.f32.mrb[37].mxu1  ;;  %v2629_v25 = vld [vmem:[#allocation8 + $0x870] sm:$0xff] }
 0x4e4   :  { %v12883_v30 = vadd.f32 %v2517_v61, %v12812_v28  ;;  %v12886_v31 = vadd.f32 %v2558_v48, %v12815_v29  ;;  %v2519_v62 = vpop.f32.mrb[38].mxu0  ;;  %v2560_v23 = vpop.f32.mrb[38].mxu1  ;;  %v10813_v13 = vcombine.high %v2625_v63, %v2629_v25  ;;  %v10815_v29 = vcombine.high %v2626_v10, %v2630_v44  ;;  %v2657_v59 = vld [vmem:[#allocation8 + $0x950] sm:$0xff]  ;;  %v2658_v61 = vld [vmem:[#allocation8 + $0x958] sm:$0xff] }
 0x4e5   :  { %v2520_v40 = vpop.f32.mrb[39].mxu0  ;;  %v2561_v41 = vpop.f32.mrb[39].mxu1  ;;  %v10812_v16 = vcombine.low %v2625_v63, %v2629_v25  ;;  %v2661_v60 = vld [vmem:[#allocation8 + $0x970] sm:$0xff]  ;;  %v2662_v48 = vld [vmem:[#allocation8 + $0x978] sm:$0xff]  ;;  %v10836_v62 = vcombine.low %v2649_v47, %v2653_v50  ;;  %v10838_v23 = vcombine.low %v2650_v53, %v2654_v54  ;;  %v3224_v50 = vld [vmem:[#allocation8 + $0xa48] sm:$0xff] }
 0x4e6   :  { %v10845_v40 = vcombine.high %v2657_v59, %v2661_v60  ;;  %v10847_v41 = vcombine.high %v2658_v61, %v2662_v48  ;;  %v2670_v63 = vld [vmem:[#allocation8 + $0x9b8] sm:$0xff]  ;;  %v10846_v25 = vcombine.low %v2658_v61, %v2662_v48  ;;  %v3228_v53 = vld [vmem:[#allocation8 + $0xa68] sm:$0xff]  ;;  %v3231_v54 = vld [vmem:[#allocation8 + $0xa80] sm:$0xff] }
 0x502   :  { %v2607_v42 = vpop.f32.mrb[40].mxu0 }
 0x503   :  { %v2608_v43 = vadd.f32 %v12817_v36, %v2607_v42  ;;  %v11963_v24 = vpop.f32.mrb[41].mxu0  ;;  %v2665_v42 = vld [vmem:[#allocation8 + $0x990] sm:$0xff] }
 0x504   :  { %v2610_v7 = vpop.f32.mrb[42].mxu0  ;;  %v2666_v24 = vld [vmem:[#allocation8 + $0x998] sm:$0xff] }
 0x505   :  { %v2613_v11 = vmax.f32 %v2608_v43, 0.0  ;;  %v11964_v12 = vpop.f32.mrb[43].mxu0  ;;  %v2669_v43 = vld [vmem:[#allocation8 + $0x9b0] sm:$0xff]  ;;  %v10844_v7 = vcombine.low %v2657_v59, %v2661_v60  ;;  %v10855_v44 = vcombine.high %v2666_v24, %v2670_v63  ;;  %v10854_v14 = vcombine.low %v2666_v24, %v2670_v63 }
 0x506   :  { %v10853_v10 = vcombine.high %v2665_v42, %v2669_v43  ;;  %v2677_v12 = vld [vmem:[#allocation8 + $0x9f0] sm:$0xff]  ;;  %v10852_v45 = vcombine.low %v2665_v42, %v2669_v43  ;;  %v10874_v60 = vcombine.low %v3224_v50, %v3228_v53 }
 0x507   :  { %v12889_v28 = vpack.c.bf16 %v2613_v11, %v2613_v11  ;;  %v2673_v11 = vld [vmem:[#allocation8 + $0x9d0] sm:$0xff] }
 0x508   :  { %v10861_v15 = vcombine.high %v2673_v11, %v2677_v12 }
 0x509   :  { %3032 = vmatmul.mubr.bf16.vlgmr.msra.gmra.mrb[40].mxu1 %v12889_v28  ;;  %3073 = vmatmul.mubr.bf16.vlgmr.msra.gmra.mrb[44].mxu0 %v12889_v28 }
 0x50a   :  { %3082 = vmatpush1.bf16.msra.mxu1 %v10804_v34  ;;  %3123 = vmatpush1.bf16.msra.mxu0 %v10806_v35  ;;  %v10829_v34 = vcombine.high %v2641_v18, %v2645_v26  ;;  %v10831_v35 = vcombine.high %v2642_v27, %v2646_v32  ;;  %v3216_v18 = vld [vmem:[#allocation8 + $0xa08] sm:$0xff] }
 0x50b   :  { %3083 = vmatprep.subr.bf16.mxu1 %v10813_v13  ;;  %3124 = vmatprep.subr.bf16.mxu0 %v10815_v29  ;;  %v2674_v13 = vld [vmem:[#allocation8 + $0x9d8] sm:$0xff]  ;;  %v3220_v32 = vld [vmem:[#allocation8 + $0xa28] sm:$0xff] }
 0x50c   :  { %3113 = vmatprep.mubr.bf16.mxu1 %v12516_v20  ;;  %3154 = vmatprep.mubr.bf16.mxu0 %v12516_v20  ;;  %v2678_v29 = vld [vmem:[#allocation8 + $0x9f8] sm:$0xff] }
 0x50d   :  { %v10863_v46 = vcombine.high %v2674_v13, %v2678_v29 }
 0x50e   :  { %3084 = vmatpush1.bf16.msra.mxu1 %v10812_v16  ;;  %3125 = vmatpush1.bf16.msra.mxu0 %v10814_v17  ;;  %v10860_v16 = vcombine.low %v2673_v11, %v2677_v12  ;;  %v10862_v17 = vcombine.low %v2674_v13, %v2678_v29 }
 0x50f   :  { %3085 = vmatprep.subr.bf16.mxu1 %v10821_v8  ;;  %3126 = vmatprep.subr.bf16.mxu0 %v10823_v9  ;;  %v3215_v8 = vld [vmem:[#allocation8 + $0xa00] sm:$0xff] }
 0x510   :  { %v3219_v9 = vld [vmem:[#allocation8 + $0xa20] sm:$0xff] }
 0x511   :  { %v10864_v26 = vcombine.low %v3215_v8, %v3219_v9  ;;  %v10865_v27 = vcombine.high %v3215_v8, %v3219_v9  ;;  %v3263_v9 = vld [vmem:[#allocation8 + $0xb80] sm:$0xff] }
 0x512   :  { %3086 = vmatpush1.bf16.msra.mxu1 %v10820_v33  ;;  %3127 = vmatpush1.bf16.msra.mxu0 %v10822_v39  ;;  %v3223_v33 = vld [vmem:[#allocation8 + $0xa40] sm:$0xff] }
 0x513   :  { %3087 = vmatprep.subr.bf16.mxu1 %v10829_v34  ;;  %3128 = vmatprep.subr.bf16.mxu0 %v10831_v35  ;;  %v3227_v39 = vld [vmem:[#allocation8 + $0xa60] sm:$0xff]  ;;  %v10866_v34 = vcombine.low %v3216_v18, %v3220_v32  ;;  %v10867_v35 = vcombine.high %v3216_v18, %v3220_v32 }
 0x514   :  { %v10873_v47 = vcombine.high %v3223_v33, %v3227_v39  ;;  %v10872_v59 = vcombine.low %v3223_v33, %v3227_v39  ;;  %v3267_v18 = vld [vmem:[#allocation8 + $0xba0] sm:$0xff] }
 0x515   :  { %v10913_v39 = vcombine.high %v3263_v9, %v3267_v18 }
 0x516   :  { %3088 = vmatpush1.bf16.msra.mxu1 %v10828_v37  ;;  %3129 = vmatpush1.bf16.msra.mxu0 %v10830_v57  ;;  %v10875_v37 = vcombine.high %v3224_v50, %v3228_v53  ;;  %v3235_v57 = vld [vmem:[#allocation8 + $0xaa0] sm:$0xff] }
 0x517   :  { %3089 = vmatprep.subr.bf16.mxu1 %v10837_v38  ;;  %3130 = vmatprep.subr.bf16.mxu0 %v10839_v58  ;;  %v3232_v38 = vld [vmem:[#allocation8 + $0xa88] sm:$0xff]  ;;  %v10881_v61 = vcombine.high %v3231_v54, %v3235_v57  ;;  %v10880_v42 = vcombine.low %v3231_v54, %v3235_v57  ;;  %v3271_v50 = vld [vmem:[#allocation8 + $0xbc0] sm:$0xff] }
 0x518   :  { %v3236_v58 = vld [vmem:[#allocation8 + $0xaa8] sm:$0xff]  ;;  %v3275_v53 = vld [vmem:[#allocation8 + $0xbe0] sm:$0xff] }
 0x519   :  { %v10883_v48 = vcombine.high %v3232_v38, %v3236_v58  ;;  %v10882_v43 = vcombine.low %v3232_v38, %v3236_v58  ;;  %v3272_v54 = vld [vmem:[#allocation8 + $0xbc8] sm:$0xff]  ;;  %v10920_v38 = vcombine.low %v3271_v50, %v3275_v53 }
 0x51a   :  { %3090 = vmatpush1.bf16.msra.mxu1 %v10836_v62  ;;  %3131 = vmatpush1.bf16.msra.mxu0 %v10838_v23  ;;  %v3239_v62 = vld [vmem:[#allocation8 + $0xac0] sm:$0xff]  ;;  %v3276_v57 = vld [vmem:[#allocation8 + $0xbe8] sm:$0xff] }
 0x51b   :  { %3091 = vmatprep.subr.bf16.mxu1 %v10845_v40  ;;  %3132 = vmatprep.subr.bf16.mxu0 %v10847_v41  ;;  %v3243_v23 = vld [vmem:[#allocation8 + $0xae0] sm:$0xff]  ;;  %v3240_v40 = vld [vmem:[#allocation8 + $0xac8] sm:$0xff]  ;;  %v10922_v58 = vcombine.low %v3272_v54, %v3276_v57 }
 0x51c   :  { %v3244_v41 = vld [vmem:[#allocation8 + $0xae8] sm:$0xff]  ;;  %v10889_v24 = vcombine.high %v3239_v62, %v3243_v23  ;;  %v10888_v11 = vcombine.low %v3239_v62, %v3243_v23  ;;  %v3222_v23 = vld [vmem:[#allocation8 + $0xa38] sm:$0xff] }
 0x51d   :  { %v10891_v63 = vcombine.high %v3240_v40, %v3244_v41  ;;  %v10890_v12 = vcombine.low %v3240_v40, %v3244_v41 }
 0x51e   :  { %3092 = vmatpush1.bf16.msra.mxu1 %v10844_v7  ;;  %3133 = vmatpush1.bf16.msra.mxu0 %v10846_v25  ;;  %v3247_v7 = vld [vmem:[#allocation8 + $0xb00] sm:$0xff] }
 0x51f   :  { %3093 = vmatprep.subr.bf16.mxu1 %v10853_v10  ;;  %3134 = vmatprep.subr.bf16.mxu0 %v10855_v44  ;;  %v3251_v25 = vld [vmem:[#allocation8 + $0xb20] sm:$0xff]  ;;  %v3248_v10 = vld [vmem:[#allocation8 + $0xb08] sm:$0xff] }
 0x520   :  { %v3252_v44 = vld [vmem:[#allocation8 + $0xb28] sm:$0xff]  ;;  %v10897_v13 = vcombine.high %v3247_v7, %v3251_v25 }
 0x521   :  { %v10899_v29 = vcombine.high %v3248_v10, %v3252_v44 }
 0x522   :  { %3094 = vmatpush1.bf16.msra.mxu1 %v10852_v45  ;;  %3135 = vmatpush1.bf16.msra.mxu0 %v10854_v14  ;;  %v3255_v45 = vld [vmem:[#allocation8 + $0xb40] sm:$0xff] }
 0x523   :  { %3095 = vmatprep.subr.bf16.mxu1 %v10861_v15  ;;  %3136 = vmatprep.subr.bf16.mxu0 %v10863_v46  ;;  %v3259_v14 = vld [vmem:[#allocation8 + $0xb60] sm:$0xff]  ;;  %v3256_v15 = vld [vmem:[#allocation8 + $0xb48] sm:$0xff] }
 0x524   :  { %v3260_v46 = vld [vmem:[#allocation8 + $0xb68] sm:$0xff]  ;;  %v10904_v32 = vcombine.low %v3255_v45, %v3259_v14 }
 0x525   :  { %v10907_v8 = vcombine.high %v3256_v15, %v3260_v46  ;;  %v10906_v33 = vcombine.low %v3256_v15, %v3260_v46 }
 0x526   :  { %3096 = vmatpush1.bf16.msra.mxu1 %v10860_v16  ;;  %3137 = vmatpush1.bf16.msra.mxu0 %v10862_v17  ;;  %v10896_v16 = vcombine.low %v3247_v7, %v3251_v25  ;;  %v10898_v17 = vcombine.low %v3248_v10, %v3252_v44 }
 0x527   :  { %11965 = vmatprep.subr.bf16.mxu1 %v12514_v0  ;;  %3599 = vmatprep.subr.bf16.mxu0 %v10865_v27  ;;  %v3268_v27 = vld [vmem:[#allocation8 + $0xba8] sm:$0xff] }
 0x529   :  { %3114 = vmatmul.mubr.bf16.vlgmr.msra.gmra.mrb[44].mxu1 %v12889_v28  ;;  %3155 = vmatmul.mubr.bf16.vlgmr.msra.gmra.mrb[48].mxu0 %v12889_v28  ;;  %v3172_v28 = vld [vmem:[#allocation2 + $0x14] sm:$0xf] }
 0x52a   :  { %11966 = vmatpush3.bf16.msra.mxu1 %v12829_v49  ;;  %11981 = vmatprep.mubr.msk.bf16.mxu1 %vm12515_vm0, %v12514_v0 }
 0x52b   :  { %11967 = vmatprep.subr.bf16.mxu1 %v12514_v0  ;;  %3631 = vmatprep.mubr.bf16.mxu0 %v12516_v20 }
 0x52c   :  { %3600 = vmatpush1.bf16.msra.mxu0 %v10864_v26  ;;  %v3264_v26 = vld [vmem:[#allocation8 + $0xb88] sm:$0xff] }
 0x52d   :  { %3601 = vmatprep.subr.bf16.mxu0 %v10873_v47  ;;  %v10914_v47 = vcombine.low %v3264_v26, %v3268_v27 }
 0x52e   :  { %11968 = vmatpush3.bf16.msra.mxu1 %v12836_v2 }
 0x52f   :  { %11969 = vmatprep.subr.bf16.mxu1 %v12514_v0 }
 0x530   :  { %3602 = vmatpush1.bf16.msra.mxu0 %v10872_v59  ;;  %v10923_v59 = vcombine.high %v3272_v54, %v3276_v57  ;;  %v3234_v54 = vld [vmem:[#allocation8 + $0xa98] sm:$0xff] }
 0x531   :  { %3603 = vmatprep.subr.bf16.mxu0 %v10881_v61  ;;  %v3221_v61 = vld [vmem:[#allocation8 + $0xa30] sm:$0xff] }
 0x532   :  { %11970 = vmatpush3.bf16.msra.mxu1 %v12840_v3 }
 0x533   :  { %11971 = vmatprep.subr.bf16.mxu1 %v12514_v0 }
 0x534   :  { %3604 = vmatpush1.bf16.msra.mxu0 %v10880_v42 }
 0x535   :  { %3605 = vmatprep.subr.bf16.mxu0 %v10889_v24 }
 0x536   :  { %11972 = vmatpush3.bf16.msra.mxu1 %v12844_v1 }
 0x537   :  { %11973 = vmatprep.subr.bf16.mxu1 %v12514_v0 }
 0x538   :  { %3606 = vmatpush1.bf16.msra.mxu0 %v10888_v11 }
 0x539   :  { %3607 = vmatprep.subr.bf16.mxu0 %v10897_v13 }
 0x53a   :  { %11974 = vmatpush3.bf16.msra.mxu1 %v12848_v4 }
 0x53b   :  { %11975 = vmatprep.subr.bf16.mxu1 %v12514_v0 }
 0x53c   :  { %3608 = vmatpush1.bf16.msra.mxu0 %v10896_v16 }
 0x53e   :  { %11976 = vmatpush3.bf16.msra.mxu1 %v12852_v5 }
 0x53f   :  { %11977 = vmatprep.subr.bf16.mxu1 %v12514_v0 }
 0x542   :  { %11978 = vmatpush3.bf16.msra.mxu1 %v12856_v6 }
 0x543   :  { %11979 = vmatprep.subr.bf16.mxu1 %v12514_v0 }
 0x546   :  { %11980 = vmatpush3.bf16.msra.mxu1 %v12860_v21 }
 0x547   :  { %3640 = vmatprep.subr.bf16.mxu1 %v10867_v35  ;;  %v10912_v35 = vcombine.low %v3263_v9, %v3267_v18 }
 0x549   :  { %11982 = vmatmul.mubr.bf16.vlgmr.msra.gmra.mrb[48].mxu1 %v3172_v28  ;;  %v10905_v28 = vcombine.high %v3255_v45, %v3259_v14 }
 0x54a   :  { %3672 = vmatprep.mubr.bf16.mxu1 %v12516_v20  ;;  %3641 = vmatpush1.bf16.msra.mxu1 %v10866_v34  ;;  %v10915_v34 = vcombine.high %v3264_v26, %v3268_v27  ;;  %v3225_v27 = vld [vmem:[#allocation8 + $0xa50] sm:$0xff] }
 0x54b   :  { %3642 = vmatprep.subr.bf16.mxu1 %v10875_v37  ;;  %3609 = vmatprep.subr.bf16.mxu0 %v10905_v28  ;;  %v10921_v37 = vcombine.high %v3271_v50, %v3275_v53  ;;  %v3233_v50 = vld [vmem:[#allocation8 + $0xa90] sm:$0xff] }
 0x54c   :  { %3610 = vmatpush1.bf16.msra.mxu0 %v10904_v32  ;;  %v3237_v53 = vld [vmem:[#allocation8 + $0xab0] sm:$0xff] }
 0x54d   :  { %3611 = vmatprep.subr.bf16.mxu0 %v10913_v39  ;;  %v3230_v39 = vld [vmem:[#allocation8 + $0xa78] sm:$0xff] }
 0x54e   :  { %3643 = vmatpush1.bf16.msra.mxu1 %v10874_v60  ;;  %v3217_v60 = vld [vmem:[#allocation8 + $0xa10] sm:$0xff] }
 0x54f   :  { %3644 = vmatprep.subr.bf16.mxu1 %v10883_v48  ;;  %v3218_v48 = vld [vmem:[#allocation8 + $0xa18] sm:$0xff]  ;;  %v10869_v62 = vcombine.high %v3217_v60, %v3221_v61  ;;  %v10868_v40 = vcombine.low %v3217_v60, %v3221_v61  ;;  %v3245_v60 = vld [vmem:[#allocation8 + $0xaf0] sm:$0xff] }
 0x550   :  { %3612 = vmatpush1.bf16.msra.mxu0 %v10912_v35  ;;  %v10870_v41 = vcombine.low %v3218_v48, %v3222_v23  ;;  %v10871_v42 = vcombine.high %v3218_v48, %v3222_v23  ;;  %v3242_v61 = vld [vmem:[#allocation8 + $0xad8] sm:$0xff] }
 0x551   :  { %3613 = vmatprep.subr.bf16.mxu0 %v10921_v37  ;;  %v3238_v37 = vld [vmem:[#allocation8 + $0xab8] sm:$0xff] }
 0x552   :  { %3645 = vmatpush1.bf16.msra.mxu1 %v10882_v43  ;;  %v3246_v48 = vld [vmem:[#allocation8 + $0xaf8] sm:$0xff]  ;;  %v10886_v23 = vcombine.low %v3234_v54, %v3238_v37 }
 0x553   :  { %3646 = vmatprep.subr.bf16.mxu1 %v10891_v63 }
 0x554   :  { %3614 = vmatpush1.bf16.msra.mxu0 %v10920_v38  ;;  %v10885_v38 = vcombine.high %v3233_v50, %v3237_v53 }
 0x555   :  { %3681 = vmatprep.subr.bf16.mxu0 %v10869_v62  ;;  %v10884_v62 = vcombine.low %v3233_v50, %v3237_v53 }
 0x556   :  { %3647 = vmatpush1.bf16.msra.mxu1 %v10890_v12 }
 0x557   :  { %3648 = vmatprep.subr.bf16.mxu1 %v10899_v29 }
 0x55a   :  { %3649 = vmatpush1.bf16.msra.mxu1 %v10898_v17 }
 0x55b   :  { %3650 = vmatprep.subr.bf16.mxu1 %v10907_v8 }
 0x55e   :  { %3651 = vmatpush1.bf16.msra.mxu1 %v10906_v33  ;;  %v3226_v33 = vld [vmem:[#allocation8 + $0xa58] sm:$0xff] }
 0x55f   :  { %3652 = vmatprep.subr.bf16.mxu1 %v10915_v34  ;;  %v10878_v57 = vcombine.low %v3226_v33, %v3230_v39 }
 0x562   :  { %3653 = vmatpush1.bf16.msra.mxu1 %v10914_v47 }
 0x563   :  { %3654 = vmatprep.subr.bf16.mxu1 %v10923_v59  ;;  %v3241_v59 = vld [vmem:[#allocation8 + $0xad0] sm:$0xff] }
 0x566   :  { %3655 = vmatpush1.bf16.msra.mxu1 %v10922_v58  ;;  %v10887_v58 = vcombine.high %v3234_v54, %v3238_v37 }
 0x567   :  { %3722 = vmatprep.subr.bf16.mxu1 %v10871_v42  ;;  %v3249_v42 = vld [vmem:[#allocation8 + $0xb10] sm:$0xff] }
 0x5dc   :  { %v3033_v43 = vpop.f32.mrb[40].mxu1  ;;  %v3074_v24 = vpop.f32.mrb[44].mxu0 }
 0x5dd   :  { %v12918_v63 = vadd.f32 %v3033_v43, %v12865_v51  ;;  %v12921_v7 = vadd.f32 %v3074_v24, %v12868_v52  ;;  %v3035_v25 = vpop.f32.mrb[41].mxu1  ;;  %v3076_v10 = vpop.f32.mrb[45].mxu0  ;;  %v3253_v43 = vld [vmem:[#allocation8 + $0xb30] sm:$0xff]  ;;  %v3250_v24 = vld [vmem:[#allocation8 + $0xb18] sm:$0xff] }
 0x5de   :  { %v12924_v44 = vadd.f32 %v3035_v25, %v12871_v55  ;;  %v12927_v11 = vadd.f32 %v3076_v10, %v12874_v56  ;;  %v3037_v12 = vpop.f32.mrb[42].mxu1  ;;  %v3078_v13 = vpop.f32.mrb[46].mxu0  ;;  %v3254_v25 = vld [vmem:[#allocation8 + $0xb38] sm:$0xff]  ;;  %v10892_v10 = vcombine.low %v3241_v59, %v3245_v60 }
 0x5df   :  { %v3038_v29 = vpop.f32.mrb[43].mxu1  ;;  %v3079_v45 = vpop.f32.mrb[47].mxu0  ;;  %v10894_v12 = vcombine.low %v3242_v61, %v3246_v48  ;;  %v10901_v13 = vcombine.high %v3249_v42, %v3253_v43 }
 0x5e0   :  { %v10903_v29 = vcombine.high %v3250_v24, %v3254_v25  ;;  %v3257_v45 = vld [vmem:[#allocation8 + $0xb50] sm:$0xff] }
 0x5fc   :  { %v3115_v14 = vpop.f32.mrb[44].mxu1  ;;  %v3156_v15 = vpop.f32.mrb[48].mxu0 }
 0x5fd   :  { %v12930_v51 = vadd.f32 %v3115_v14, %v12877_v19  ;;  %v12933_v52 = vadd.f32 %v3156_v15, %v12880_v22  ;;  %v3117_v46 = vpop.f32.mrb[45].mxu1  ;;  %v3158_v16 = vpop.f32.mrb[49].mxu0  ;;  %v3229_v22 = vld [vmem:[#allocation8 + $0xa70] sm:$0xff]  ;;  %v3258_v15 = vld [vmem:[#allocation8 + $0xb58] sm:$0xff] }
 0x5fe   :  { %v12936_v55 = vadd.f32 %v3117_v46, %v12883_v30  ;;  %v12939_v56 = vadd.f32 %v3158_v16, %v12886_v31  ;;  %v3119_v17 = vpop.f32.mrb[46].mxu1  ;;  %v3160_v28 = vpop.f32.mrb[50].mxu0  ;;  %v10877_v47 = vcombine.high %v3225_v27, %v3229_v22  ;;  %v10879_v31 = vcombine.high %v3226_v33, %v3230_v39  ;;  %v3261_v14 = vld [vmem:[#allocation8 + $0xb70] sm:$0xff]  ;;  %v3262_v46 = vld [vmem:[#allocation8 + $0xb78] sm:$0xff] }
 0x5ff   :  { %v3120_v8 = vpop.f32.mrb[47].mxu1  ;;  %v3161_v9 = vpop.f32.mrb[51].mxu0  ;;  %v10900_v16 = vcombine.low %v3249_v42, %v3253_v43  ;;  %v10902_v17 = vcombine.low %v3250_v24, %v3254_v25  ;;  %v10909_v28 = vcombine.high %v3257_v45, %v3261_v14  ;;  %v3273_v39 = vld [vmem:[#allocation8 + $0xbd0] sm:$0xff]  ;;  %v3839_v25 = vld [vmem:[#allocation8 + $0xcc0] sm:$0xff] }
 0x600   :  { %v10911_v8 = vcombine.high %v3258_v15, %v3262_v46  ;;  %v3265_v9 = vld [vmem:[#allocation8 + $0xb90] sm:$0xff] }
 0x61c   :  { %v3207_v18 = vpop.f32.mrb[48].mxu1 }
 0x61d   :  { %v3208_v26 = vadd.f32 %v12817_v36, %v3207_v18  ;;  %v11983_v19 = vpop.f32.mrb[49].mxu1  ;;  %v10876_v36 = vcombine.low %v3225_v27, %v3229_v22  ;;  %v3269_v18 = vld [vmem:[#allocation8 + $0xbb0] sm:$0xff]  ;;  %v10908_v27 = vcombine.low %v3257_v45, %v3261_v14 }
 0x61e   :  { %v3210_v32 = vpop.f32.mrb[50].mxu1  ;;  %v3270_v19 = vld [vmem:[#allocation8 + $0xbb8] sm:$0xff]  ;;  %v10917_v22 = vcombine.high %v3265_v9, %v3269_v18 }
 0x61f   :  { %v3213_v34 = vmax.f32 %v3208_v26, 0.0  ;;  %v11984_v35 = vpop.f32.mrb[51].mxu1  ;;  %v3266_v26 = vld [vmem:[#allocation8 + $0xb98] sm:$0xff]  ;;  %v10910_v32 = vcombine.low %v3258_v15, %v3262_v46  ;;  %v3847_v46 = vld [vmem:[#allocation8 + $0xd00] sm:$0xff] }
 0x620   :  { %v10919_v33 = vcombine.high %v3266_v26, %v3270_v19  ;;  %v3274_v35 = vld [vmem:[#allocation8 + $0xbd8] sm:$0xff]  ;;  %v10918_v50 = vcombine.low %v3266_v26, %v3270_v19  ;;  %v3855_v19 = vld [vmem:[#allocation8 + $0xd40] sm:$0xff] }
 0x621   :  { %v12942_v30 = vpack.c.bf16 %v3213_v34, %v3213_v34  ;;  %v3277_v34 = vld [vmem:[#allocation8 + $0xbf0] sm:$0xff] }
 0x622   :  { %v10925_v53 = vcombine.high %v3273_v39, %v3277_v34  ;;  %v10924_v37 = vcombine.low %v3273_v39, %v3277_v34 }
 0x623   :  { %3632 = vmatmul.mubr.bf16.vlgmr.msra.gmra.mrb[52].mxu0 %v12942_v30  ;;  %3673 = vmatmul.mubr.bf16.vlgmr.msra.gmra.mrb[52].mxu1 %v12942_v30 }
 0x624   :  { %3682 = vmatpush1.bf16.msra.mxu0 %v10868_v40  ;;  %3723 = vmatpush1.bf16.msra.mxu1 %v10870_v41  ;;  %v10893_v40 = vcombine.high %v3241_v59, %v3245_v60  ;;  %v10895_v41 = vcombine.high %v3242_v61, %v3246_v48  ;;  %v3828_v61 = vld [vmem:[#allocation8 + $0xc68] sm:$0xff]  ;;  %v3831_v48 = vld [vmem:[#allocation8 + $0xc80] sm:$0xff] }
 0x625   :  { %3683 = vmatprep.subr.bf16.mxu0 %v10877_v47  ;;  %3724 = vmatprep.subr.bf16.mxu1 %v10879_v31  ;;  %v3278_v47 = vld [vmem:[#allocation8 + $0xbf8] sm:$0xff]  ;;  %v10916_v31 = vcombine.low %v3265_v9, %v3269_v18 }
 0x626   :  { %3713 = vmatprep.mubr.bf16.mxu0 %v12516_v20  ;;  %3754 = vmatprep.mubr.bf16.mxu1 %v12516_v20  ;;  %v10927_v54 = vcombine.high %v3274_v35, %v3278_v47 }
 0x628   :  { %3684 = vmatpush1.bf16.msra.mxu0 %v10876_v36  ;;  %3725 = vmatpush1.bf16.msra.mxu1 %v10878_v57  ;;  %v10926_v36 = vcombine.low %v3274_v35, %v3278_v47  ;;  %v3820_v57 = vld [vmem:[#allocation8 + $0xc28] sm:$0xff]  ;;  %v3863_v47 = vld [vmem:[#allocation8 + $0xd80] sm:$0xff] }
 0x629   :  { %3685 = vmatprep.subr.bf16.mxu0 %v10885_v38  ;;  %3726 = vmatprep.subr.bf16.mxu1 %v10887_v58  ;;  %v3823_v38 = vld [vmem:[#allocation8 + $0xc40] sm:$0xff] }
 0x62c   :  { %3686 = vmatpush1.bf16.msra.mxu0 %v10884_v62  ;;  %3727 = vmatpush1.bf16.msra.mxu1 %v10886_v23  ;;  %v3835_v62 = vld [vmem:[#allocation8 + $0xca0] sm:$0xff]  ;;  %v3832_v23 = vld [vmem:[#allocation8 + $0xc88] sm:$0xff] }
 0x62d   :  { %3687 = vmatprep.subr.bf16.mxu0 %v10893_v40  ;;  %3728 = vmatprep.subr.bf16.mxu1 %v10895_v41  ;;  %v3836_v40 = vld [vmem:[#allocation8 + $0xca8] sm:$0xff]  ;;  %v10945_v43 = vcombine.high %v3831_v48, %v3835_v62 }
 0x62e   :  { %v10947_v24 = vcombine.high %v3832_v23, %v3836_v40  ;;  %v10946_v45 = vcombine.low %v3832_v23, %v3836_v40 }
 0x630   :  { %3688 = vmatpush1.bf16.msra.mxu0 %v10892_v10  ;;  %3729 = vmatpush1.bf16.msra.mxu1 %v10894_v12  ;;  %v3843_v10 = vld [vmem:[#allocation8 + $0xce0] sm:$0xff]  ;;  %v3840_v12 = vld [vmem:[#allocation8 + $0xcc8] sm:$0xff] }
 0x631   :  { %3689 = vmatprep.subr.bf16.mxu0 %v10901_v13  ;;  %3730 = vmatprep.subr.bf16.mxu1 %v10903_v29  ;;  %v3844_v13 = vld [vmem:[#allocation8 + $0xce8] sm:$0xff]  ;;  %v10944_v29 = vcombine.low %v3831_v48, %v3835_v62  ;;  %v10953_v14 = vcombine.high %v3839_v25, %v3843_v10 }
 0x632   :  { %v10955_v15 = vcombine.high %v3840_v12, %v3844_v13  ;;  %v10954_v9 = vcombine.low %v3840_v12, %v3844_v13 }
 0x634   :  { %3690 = vmatpush1.bf16.msra.mxu0 %v10900_v16  ;;  %3731 = vmatpush1.bf16.msra.mxu1 %v10902_v17  ;;  %v3851_v16 = vld [vmem:[#allocation8 + $0xd20] sm:$0xff]  ;;  %v3848_v17 = vld [vmem:[#allocation8 + $0xd08] sm:$0xff] }
 0x635   :  { %3691 = vmatprep.subr.bf16.mxu0 %v10909_v28  ;;  %3732 = vmatprep.subr.bf16.mxu1 %v10911_v8  ;;  %v3852_v28 = vld [vmem:[#allocation8 + $0xd28] sm:$0xff]  ;;  %v10952_v8 = vcombine.low %v3839_v25, %v3843_v10  ;;  %v10961_v18 = vcombine.high %v3847_v46, %v3851_v16 }
 0x636   :  { %v10963_v26 = vcombine.high %v3848_v17, %v3852_v28  ;;  %v10962_v39 = vcombine.low %v3848_v17, %v3852_v28 }
 0x638   :  { %3692 = vmatpush1.bf16.msra.mxu0 %v10908_v27  ;;  %3733 = vmatpush1.bf16.msra.mxu1 %v10910_v32  ;;  %v3859_v27 = vld [vmem:[#allocation8 + $0xd60] sm:$0xff]  ;;  %v3856_v32 = vld [vmem:[#allocation8 + $0xd48] sm:$0xff] }
 0x639   :  { %3693 = vmatprep.subr.bf16.mxu0 %v10917_v22  ;;  %3734 = vmatprep.subr.bf16.mxu1 %v10919_v33  ;;  %v3860_v22 = vld [vmem:[#allocation8 + $0xd68] sm:$0xff]  ;;  %v10960_v33 = vcombine.low %v3847_v46, %v3851_v16  ;;  %v10969_v34 = vcombine.high %v3855_v19, %v3859_v27 }
 0x63a   :  { %v10971_v35 = vcombine.high %v3856_v32, %v3860_v22 }
 0x63c   :  { %3694 = vmatpush1.bf16.msra.mxu0 %v10916_v31  ;;  %3735 = vmatpush1.bf16.msra.mxu1 %v10918_v50  ;;  %v3867_v31 = vld [vmem:[#allocation8 + $0xda0] sm:$0xff]  ;;  %v3864_v50 = vld [vmem:[#allocation8 + $0xd88] sm:$0xff] }
 0x63d   :  { %3695 = vmatprep.subr.bf16.mxu0 %v10925_v53  ;;  %3736 = vmatprep.subr.bf16.mxu1 %v10927_v54  ;;  %v3868_v53 = vld [vmem:[#allocation8 + $0xda8] sm:$0xff]  ;;  %v10968_v54 = vcombine.low %v3855_v19, %v3859_v27  ;;  %v12994_v27 = vld [vmem:[#allocation7] ss:$0 sm:$0xff] }
 0x640   :  { %3696 = vmatpush1.bf16.msra.mxu0 %v10924_v37  ;;  %3737 = vmatpush1.bf16.msra.mxu1 %v10926_v36  ;;  %v10970_v37 = vcombine.low %v3856_v32, %v3860_v22  ;;  %v10977_v36 = vcombine.high %v3863_v47, %v3867_v31 }
 0x641   :  { %11985 = vmatprep.subr.bf16.mxu0 %v12514_v0 }
 0x643   :  { %3714 = vmatmul.mubr.bf16.vlgmr.msra.gmra.mrb[56].mxu0 %v12942_v30  ;;  %3755 = vmatmul.mubr.bf16.vlgmr.msra.gmra.mrb[56].mxu1 %v12942_v30 }
 0x644   :  { %11986 = vmatpush3.bf16.msra.mxu0 %v12829_v49  ;;  %12001 = vmatprep.mubr.msk.bf16.mxu0 %vm12515_vm0, %v12514_v0  ;;  %v3772_v49 = vld [vmem:[#allocation2 + $0x18] sm:$0xf] }
 0x645   :  { %11987 = vmatprep.subr.bf16.mxu0 %v12514_v0  ;;  %4231 = vmatprep.mubr.bf16.mxu1 %v12516_v20 }
 0x648   :  { %11988 = vmatpush3.bf16.msra.mxu0 %v12836_v2  ;;  %v3815_v2 = vld [vmem:[#allocation8 + $0xc00] sm:$0xff] }
 0x649   :  { %11989 = vmatprep.subr.bf16.mxu0 %v12514_v0 }
 0x64c   :  { %11990 = vmatpush3.bf16.msra.mxu0 %v12840_v3  ;;  %v3819_v3 = vld [vmem:[#allocation8 + $0xc20] sm:$0xff] }
 0x64d   :  { %11991 = vmatprep.subr.bf16.mxu0 %v12514_v0  ;;  %v10929_v30 = vcombine.high %v3815_v2, %v3819_v3 }
 0x64f   :  { %4199 = vmatprep.subr.bf16.mxu1 %v10929_v30  ;;  %v3872_v30 = vld [vmem:[#allocation8 + $0xdc8] sm:$0xff] }
 0x650   :  { %11992 = vmatpush3.bf16.msra.mxu0 %v12844_v1  ;;  %v3816_v1 = vld [vmem:[#allocation8 + $0xc08] sm:$0xff] }
 0x651   :  { %11993 = vmatprep.subr.bf16.mxu0 %v12514_v0  ;;  %v10930_v58 = vcombine.low %v3816_v1, %v3820_v57  ;;  %v10931_v59 = vcombine.high %v3816_v1, %v3820_v57  ;;  %v3871_v1 = vld [vmem:[#allocation8 + $0xdc0] sm:$0xff] }
 0x654   :  { %11994 = vmatpush3.bf16.msra.mxu0 %v12848_v4  ;;  %v10928_v4 = vcombine.low %v3815_v2, %v3819_v3  ;;  %v10976_v2 = vcombine.low %v3863_v47, %v3867_v31  ;;  %v10978_v3 = vcombine.low %v3864_v50, %v3868_v53 }
 0x655   :  { %11995 = vmatprep.subr.bf16.mxu0 %v12514_v0 }
 0x656   :  { %4200 = vmatpush1.bf16.msra.mxu1 %v10928_v4  ;;  %v3875_v4 = vld [vmem:[#allocation8 + $0xde0] sm:$0xff] }
 0x657   :  { %v10985_v57 = vcombine.high %v3871_v1, %v3875_v4 }
 0x658   :  { %11996 = vmatpush3.bf16.msra.mxu0 %v12852_v5  ;;  %v3827_v5 = vld [vmem:[#allocation8 + $0xc60] sm:$0xff] }
 0x659   :  { %11997 = vmatprep.subr.bf16.mxu0 %v12514_v0  ;;  %v10937_v60 = vcombine.high %v3823_v38, %v3827_v5  ;;  %v10936_v41 = vcombine.low %v3823_v38, %v3827_v5  ;;  %v3876_v38 = vld [vmem:[#allocation8 + $0xde8] sm:$0xff]  ;;  %v10984_v5 = vcombine.low %v3871_v1, %v3875_v4  ;;  %v3841_v1 = vld [vmem:[#allocation8 + $0xcd0] sm:$0xff] }
 0x65a   :  { %v3845_v4 = vld [vmem:[#allocation8 + $0xcf0] sm:$0xff] }
 0x65b   :  { %4201 = vmatprep.subr.bf16.mxu1 %v10937_v60  ;;  %v3817_v60 = vld [vmem:[#allocation8 + $0xc10] sm:$0xff] }
 0x65c   :  { %11998 = vmatpush3.bf16.msra.mxu0 %v12856_v6  ;;  %v3824_v6 = vld [vmem:[#allocation8 + $0xc48] sm:$0xff]  ;;  %4202 = vmatpush1.bf16.msra.mxu1 %v10936_v41 }
 0x65d   :  { %11999 = vmatprep.subr.bf16.mxu0 %v12514_v0  ;;  %v10938_v42 = vcombine.low %v3824_v6, %v3828_v61  ;;  %4203 = vmatprep.subr.bf16.mxu1 %v10945_v43 }
 0x660   :  { %12000 = vmatpush3.bf16.msra.mxu0 %v12860_v21  ;;  %v10939_v21 = vcombine.high %v3824_v6, %v3828_v61  ;;  %4204 = vmatpush1.bf16.msra.mxu1 %v10944_v29  ;;  %v3821_v6 = vld [vmem:[#allocation8 + $0xc30] sm:$0xff]  ;;  %v3818_v61 = vld [vmem:[#allocation8 + $0xc18] sm:$0xff] }
 0x661   :  { %4240 = vmatprep.subr.bf16.mxu0 %v10931_v59  ;;  %4205 = vmatprep.subr.bf16.mxu1 %v10953_v14  ;;  %v10987_v59 = vcombine.high %v3872_v30, %v3876_v38  ;;  %v10933_v48 = vcombine.high %v3817_v60, %v3821_v6  ;;  %v10932_v62 = vcombine.low %v3817_v60, %v3821_v6  ;;  %v3849_v60 = vld [vmem:[#allocation8 + $0xd10] sm:$0xff] }
 0x662   :  { %v3853_v6 = vld [vmem:[#allocation8 + $0xd30] sm:$0xff] }
 0x663   :  { %12002 = vmatmul.mubr.bf16.vlgmr.msra.gmra.mrb[60].mxu0 %v3772_v49  ;;  %v10979_v49 = vcombine.high %v3864_v50, %v3868_v53  ;;  %v3833_v50 = vld [vmem:[#allocation8 + $0xc90] sm:$0xff] }
 0x664   :  { %4272 = vmatprep.mubr.bf16.mxu0 %v12516_v20  ;;  %4241 = vmatpush1.bf16.msra.mxu0 %v10930_v58  ;;  %v10986_v58 = vcombine.low %v3872_v30, %v3876_v38  ;;  %v3837_v53 = vld [vmem:[#allocation8 + $0xcb0] sm:$0xff]  ;;  %v3842_v30 = vld [vmem:[#allocation8 + $0xcd8] sm:$0xff] }
 0x665   :  { %4242 = vmatprep.subr.bf16.mxu0 %v10939_v21  ;;  %4206 = vmatpush1.bf16.msra.mxu1 %v10952_v8  ;;  %v3822_v21 = vld [vmem:[#allocation8 + $0xc38] sm:$0xff]  ;;  %v10948_v38 = vcombine.low %v3833_v50, %v3837_v53 }
 0x666   :  { %4207 = vmatprep.subr.bf16.mxu1 %v10961_v18  ;;  %v10934_v23 = vcombine.low %v3818_v61, %v3822_v21  ;;  %v10935_v40 = vcombine.high %v3818_v61, %v3822_v21  ;;  %v3850_v61 = vld [vmem:[#allocation8 + $0xd18] sm:$0xff]  ;;  %v10956_v21 = vcombine.low %v3841_v1, %v3845_v4 }
 0x668   :  { %4243 = vmatpush1.bf16.msra.mxu0 %v10938_v42 }
 0x669   :  { %4244 = vmatprep.subr.bf16.mxu0 %v10947_v24  ;;  %4208 = vmatpush1.bf16.msra.mxu1 %v10960_v33  ;;  %v3829_v33 = vld [vmem:[#allocation8 + $0xc70] sm:$0xff] }
 0x66a   :  { %4209 = vmatprep.subr.bf16.mxu1 %v10969_v34  ;;  %v3830_v34 = vld [vmem:[#allocation8 + $0xc78] sm:$0xff] }
 0x66c   :  { %4245 = vmatpush1.bf16.msra.mxu0 %v10946_v45 }
 0x66d   :  { %4246 = vmatprep.subr.bf16.mxu0 %v10955_v15  ;;  %4210 = vmatpush1.bf16.msra.mxu1 %v10968_v54  ;;  %v3834_v54 = vld [vmem:[#allocation8 + $0xc98] sm:$0xff] }
 0x66e   :  { %4211 = vmatprep.subr.bf16.mxu1 %v10977_v36 }
 0x670   :  { %4247 = vmatpush1.bf16.msra.mxu0 %v10954_v9 }
 0x671   :  { %4248 = vmatprep.subr.bf16.mxu0 %v10963_v26  ;;  %4212 = vmatpush1.bf16.msra.mxu1 %v10976_v2  ;;  %v10949_v2 = vcombine.high %v3833_v50, %v3837_v53  ;;  %v13017_v50 = vld [vmem:[#allocation5 + $0x10] sm:$0xff]   ;;  %v13025_v53 = vld [vmem:[#allocation5 + $0x20] sm:$0xff]  }
 0x672   :  { %4213 = vmatprep.subr.bf16.mxu1 %v10985_v57  ;;  %v3846_v57 = vld [vmem:[#allocation8 + $0xcf8] sm:$0xff] }
 0x674   :  { %4249 = vmatpush1.bf16.msra.mxu0 %v10962_v39  ;;  %v3826_v39 = vld [vmem:[#allocation8 + $0xc58] sm:$0xff] }
 0x675   :  { %4250 = vmatprep.subr.bf16.mxu0 %v10971_v35  ;;  %4214 = vmatpush1.bf16.msra.mxu1 %v10984_v5  ;;  %v10943_v31 = vcombine.high %v3826_v39, %v3830_v34 }
 0x676   :  { %4281 = vmatprep.subr.bf16.mxu1 %v10933_v48  ;;  %v3854_v48 = vld [vmem:[#allocation8 + $0xd38] sm:$0xff] }
 0x678   :  { %4251 = vmatpush1.bf16.msra.mxu0 %v10970_v37  ;;  %v3838_v37 = vld [vmem:[#allocation8 + $0xcb8] sm:$0xff] }
 0x679   :  { %4252 = vmatprep.subr.bf16.mxu0 %v10979_v49  ;;  %v10942_v49 = vcombine.low %v3826_v39, %v3830_v34  ;;  %v10950_v5 = vcombine.low %v3834_v54, %v3838_v37 }
 0x67c   :  { %4253 = vmatpush1.bf16.msra.mxu0 %v10978_v3  ;;  %v10951_v3 = vcombine.high %v3834_v54, %v3838_v37  ;;  %v13029_v54 = vld [vmem:[#allocation5 + $0x28] sm:$0xff]   ;;  %v13033_v37 = vld [vmem:[#allocation5 + $0x30] sm:$0xff]  }
 0x67d   :  { %4254 = vmatprep.subr.bf16.mxu0 %v10987_v59  ;;  %v10959_v59 = vcombine.high %v3842_v30, %v3846_v57 }
 0x680   :  { %4255 = vmatpush1.bf16.msra.mxu0 %v10986_v58  ;;  %v10957_v58 = vcombine.high %v3841_v1, %v3845_v4  ;;  %v4416_v1 = vld [vmem:[#allocation8 + $0xe08] sm:$0xff] }
 0x681   :  { %4322 = vmatprep.subr.bf16.mxu0 %v10935_v40  ;;  %v10967_v40 = vcombine.high %v3850_v61, %v3854_v48 }
 0x6f6   :  { %v3633_v41 = vpop.f32.mrb[52].mxu0  ;;  %v3674_v42 = vpop.f32.mrb[52].mxu1 }
 0x6f7   :  { %v12971_v43 = vadd.f32 %v3633_v41, %v12918_v63  ;;  %v12974_v24 = vadd.f32 %v3674_v42, %v12921_v7  ;;  %v3635_v25 = vpop.f32.mrb[53].mxu0  ;;  %v3676_v10 = vpop.f32.mrb[53].mxu1  ;;  %v3857_v41 = vld [vmem:[#allocation8 + $0xd50] sm:$0xff] }
 0x6f8   :  { %v12977_v12 = vadd.f32 %v3635_v25, %v12924_v44  ;;  %v12980_v13 = vadd.f32 %v3676_v10, %v12927_v11  ;;  %v3637_v29 = vpop.f32.mrb[54].mxu0  ;;  %v3678_v45 = vpop.f32.mrb[54].mxu1  ;;  %v3861_v42 = vld [vmem:[#allocation8 + $0xd70] sm:$0xff]  ;;  %v3858_v25 = vld [vmem:[#allocation8 + $0xd58] sm:$0xff] }
 0x6f9   :  { %v3638_v14 = vpop.f32.mrb[55].mxu0  ;;  %v3679_v15 = vpop.f32.mrb[55].mxu1  ;;  %v3862_v10 = vld [vmem:[#allocation8 + $0xd78] sm:$0xff]  ;;  %v10964_v29 = vcombine.low %v3849_v60, %v3853_v6  ;;  %v10966_v45 = vcombine.low %v3850_v61, %v3854_v48  ;;  %v4428_v61 = vld [vmem:[#allocation8 + $0xe68] sm:$0xff]  ;;  %v4431_v48 = vld [vmem:[#allocation8 + $0xe80] sm:$0xff] }
 0x6fa   :  { %v10973_v14 = vcombine.high %v3857_v41, %v3861_v42  ;;  %v10975_v15 = vcombine.high %v3858_v25, %v3862_v10 }
 0x716   :  { %v3715_v46 = vpop.f32.mrb[56].mxu0  ;;  %v3756_v16 = vpop.f32.mrb[56].mxu1 }
 0x717   :  { %v12983_v63 = vadd.f32 %v3715_v46, %v12930_v51  ;;  %v12986_v7 = vadd.f32 %v3756_v16, %v12933_v52  ;;  %v3717_v17 = vpop.f32.mrb[57].mxu0  ;;  %v3758_v28 = vpop.f32.mrb[57].mxu1  ;;  %v3825_v52 = vld [vmem:[#allocation8 + $0xc50] sm:$0xff] }
 0x718   :  { %v12989_v44 = vadd.f32 %v3717_v17, %v12936_v55  ;;  %v12992_v11 = vadd.f32 %v3758_v28, %v12939_v56  ;;  %v3719_v8 = vpop.f32.mrb[58].mxu0  ;;  %v3760_v9 = vpop.f32.mrb[58].mxu1  ;;  %v10941_v56 = vcombine.high %v3825_v52, %v3829_v33  ;;  %v10940_v36 = vcombine.low %v3825_v52, %v3829_v33  ;;  %v3865_v46 = vld [vmem:[#allocation8 + $0xd90] sm:$0xff]  ;;  %v3866_v17 = vld [vmem:[#allocation8 + $0xd98] sm:$0xff] }
 0x719   :  { %v3720_v18 = vpop.f32.mrb[59].mxu0  ;;  %v3761_v26 = vpop.f32.mrb[59].mxu1  ;;  %v3869_v16 = vld [vmem:[#allocation8 + $0xdb0] sm:$0xff]  ;;  %v3870_v28 = vld [vmem:[#allocation8 + $0xdb8] sm:$0xff]  ;;  %v10972_v8 = vcombine.low %v3857_v41, %v3861_v42  ;;  %v10974_v9 = vcombine.low %v3858_v25, %v3862_v10 }
 0x71a   :  { %v10981_v18 = vcombine.high %v3865_v46, %v3869_v16  ;;  %v10983_v26 = vcombine.high %v3866_v17, %v3870_v28  ;;  %v3878_v52 = vld [vmem:[#allocation8 + $0xdf8] sm:$0xff]  ;;  %v10982_v33 = vcombine.low %v3866_v17, %v3870_v28 }
 0x736   :  { %v3807_v19 = vpop.f32.mrb[60].mxu0 }
 0x737   :  { %v3808_v51 = vadd.f32 %v12994_v27, %v3807_v19  ;;  %v12003_v32 = vpop.f32.mrb[61].mxu0  ;;  %v3873_v19 = vld [vmem:[#allocation8 + $0xdd0] sm:$0xff] }
 0x738   :  { %v3810_v22 = vpop.f32.mrb[62].mxu0  ;;  %v3874_v32 = vld [vmem:[#allocation8 + $0xdd8] sm:$0xff] }
 0x739   :  { %v3813_v55 = vmax.f32 %v3808_v51, 0.0  ;;  %v12004_v35 = vpop.f32.mrb[63].mxu0  ;;  %v3877_v51 = vld [vmem:[#allocation8 + $0xdf0] sm:$0xff]  ;;  %v10980_v22 = vcombine.low %v3865_v46, %v3869_v16  ;;  %v10991_v34 = vcombine.high %v3874_v32, %v3878_v52 }
 0x73a   :  { %v10989_v39 = vcombine.high %v3873_v19, %v3877_v51  ;;  %v10990_v35 = vcombine.low %v3874_v32, %v3878_v52 }
 0x73b   :  { %v12997_v47 = vpack.c.bf16 %v3813_v55, %v3813_v55  ;;  %v10988_v55 = vcombine.low %v3873_v19, %v3877_v51 }
 0x73d   :  { %4232 = vmatmul.mubr.bf16.vlgmr.msra.gmra.mrb[60].mxu1 %v12997_v47  ;;  %4273 = vmatmul.mubr.bf16.vlgmr.msra.gmra.mrb[64].mxu0 %v12997_v47 }
 0x73e   :  { %4282 = vmatpush1.bf16.msra.mxu1 %v10932_v62  ;;  %4323 = vmatpush1.bf16.msra.mxu0 %v10934_v23  ;;  %v10958_v62 = vcombine.low %v3842_v30, %v3846_v57  ;;  %v10965_v23 = vcombine.high %v3849_v60, %v3853_v6  ;;  %v4420_v57 = vld [vmem:[#allocation8 + $0xe28] sm:$0xff] }
 0x73f   :  { %4283 = vmatprep.subr.bf16.mxu1 %v10941_v56  ;;  %4324 = vmatprep.subr.bf16.mxu0 %v10943_v31  ;;  %v13006_v56 = vld [vmem:[#allocation5] sm:$0xff]   ;;  %v13013_v31 = vld [vmem:[#allocation5 + $0x8] sm:$0xff]  }
 0x740   :  { %4313 = vmatprep.mubr.bf16.mxu1 %v12516_v20  ;;  %4354 = vmatprep.mubr.bf16.mxu0 %v12516_v20  ;;  %v4424_v6 = vld [vmem:[#allocation8 + $0xe48] sm:$0xff] }
 0x741   :  { %v11002_v42 = vcombine.low %v4424_v6, %v4428_v61 }
 0x742   :  { %4284 = vmatpush1.bf16.msra.mxu1 %v10940_v36  ;;  %4325 = vmatpush1.bf16.msra.mxu0 %v10942_v49  ;;  %v13037_v36 = vld [vmem:[#allocation5 + $0x38] sm:$0xff]  }
 0x743   :  { %4285 = vmatprep.subr.bf16.mxu1 %v10949_v2  ;;  %4326 = vmatprep.subr.bf16.mxu0 %v10951_v3  ;;  %v4372_v49 = vld [vmem:[#allocation2 + $0x1c] sm:$0xf]  ;;  %v4415_v2 = vld [vmem:[#allocation8 + $0xe00] sm:$0xff] }
 0x744   :  { %v4419_v3 = vld [vmem:[#allocation8 + $0xe20] sm:$0xff] }
 0x745   :  { %v10992_v4 = vcombine.low %v4415_v2, %v4419_v3  ;;  %v10993_v30 = vcombine.high %v4415_v2, %v4419_v3  ;;  %v4463_v3 = vld [vmem:[#allocation8 + $0xf80] sm:$0xff] }
 0x746   :  { %4286 = vmatpush1.bf16.msra.mxu1 %v10948_v38  ;;  %4327 = vmatpush1.bf16.msra.mxu0 %v10950_v5  ;;  %v4423_v38 = vld [vmem:[#allocation8 + $0xe40] sm:$0xff] }
 0x747   :  { %4287 = vmatprep.subr.bf16.mxu1 %v10957_v58  ;;  %4328 = vmatprep.subr.bf16.mxu0 %v10959_v59  ;;  %v4427_v5 = vld [vmem:[#allocation8 + $0xe60] sm:$0xff]  ;;  %v10994_v58 = vcombine.low %v4416_v1, %v4420_v57  ;;  %v10995_v59 = vcombine.high %v4416_v1, %v4420_v57 }
 0x748   :  { %v11001_v60 = vcombine.high %v4423_v38, %v4427_v5  ;;  %v11000_v41 = vcombine.low %v4423_v38, %v4427_v5  ;;  %v4467_v1 = vld [vmem:[#allocation8 + $0xfa0] sm:$0xff] }
 0x749   :  { %v11041_v5 = vcombine.high %v4463_v3, %v4467_v1 }
 0x74a   :  { %4288 = vmatpush1.bf16.msra.mxu1 %v10956_v21  ;;  %4329 = vmatpush1.bf16.msra.mxu0 %v10958_v62  ;;  %v11003_v21 = vcombine.high %v4424_v6, %v4428_v61  ;;  %v4435_v62 = vld [vmem:[#allocation8 + $0xea0] sm:$0xff] }
 0x74b   :  { %4289 = vmatprep.subr.bf16.mxu1 %v10965_v23  ;;  %4330 = vmatprep.subr.bf16.mxu0 %v10967_v40  ;;  %v4432_v23 = vld [vmem:[#allocation8 + $0xe88] sm:$0xff]  ;;  %v11009_v25 = vcombine.high %v4431_v48, %v4435_v62  ;;  %v11008_v46 = vcombine.low %v4431_v48, %v4435_v62  ;;  %v4471_v6 = vld [vmem:[#allocation8 + $0xfc0] sm:$0xff] }
 0x74c   :  { %v4436_v40 = vld [vmem:[#allocation8 + $0xea8] sm:$0xff]  ;;  %v4475_v61 = vld [vmem:[#allocation8 + $0xfe0] sm:$0xff] }
 0x74d   :  { %v11011_v10 = vcombine.high %v4432_v23, %v4436_v40  ;;  %v11010_v16 = vcombine.low %v4432_v23, %v4436_v40  ;;  %v4472_v48 = vld [vmem:[#allocation8 + $0xfc8] sm:$0xff]  ;;  %v11048_v23 = vcombine.low %v4471_v6, %v4475_v61 }
 0x74e   :  { %4290 = vmatpush1.bf16.msra.mxu1 %v10964_v29  ;;  %4331 = vmatpush1.bf16.msra.mxu0 %v10966_v45  ;;  %v4439_v29 = vld [vmem:[#allocation8 + $0xec0] sm:$0xff]  ;;  %v4476_v62 = vld [vmem:[#allocation8 + $0xfe8] sm:$0xff] }
 0x74f   :  { %4291 = vmatprep.subr.bf16.mxu1 %v10973_v14  ;;  %4332 = vmatprep.subr.bf16.mxu0 %v10975_v15  ;;  %v4443_v45 = vld [vmem:[#allocation8 + $0xee0] sm:$0xff]  ;;  %v4440_v14 = vld [vmem:[#allocation8 + $0xec8] sm:$0xff]  ;;  %v11050_v40 = vcombine.low %v4472_v48, %v4476_v62 }
 0x750   :  { %v4444_v15 = vld [vmem:[#allocation8 + $0xee8] sm:$0xff]  ;;  %v11017_v17 = vcombine.high %v4439_v29, %v4443_v45  ;;  %v11016_v19 = vcombine.low %v4439_v29, %v4443_v45  ;;  %v4422_v45 = vld [vmem:[#allocation8 + $0xe38] sm:$0xff] }
 0x751   :  { %v11019_v28 = vcombine.high %v4440_v14, %v4444_v15  ;;  %v11018_v51 = vcombine.low %v4440_v14, %v4444_v15 }
 0x752   :  { %4292 = vmatpush1.bf16.msra.mxu1 %v10972_v8  ;;  %4333 = vmatpush1.bf16.msra.mxu0 %v10974_v9  ;;  %v4447_v8 = vld [vmem:[#allocation8 + $0xf00] sm:$0xff] }
 0x753   :  { %4293 = vmatprep.subr.bf16.mxu1 %v10981_v18  ;;  %4334 = vmatprep.subr.bf16.mxu0 %v10983_v26  ;;  %v4451_v9 = vld [vmem:[#allocation8 + $0xf20] sm:$0xff]  ;;  %v4448_v18 = vld [vmem:[#allocation8 + $0xf08] sm:$0xff] }
 0x754   :  { %v4452_v26 = vld [vmem:[#allocation8 + $0xf28] sm:$0xff]  ;;  %v11025_v32 = vcombine.high %v4447_v8, %v4451_v9 }
 0x755   :  { %v11027_v52 = vcombine.high %v4448_v18, %v4452_v26 }
 0x756   :  { %4294 = vmatpush1.bf16.msra.mxu1 %v10980_v22  ;;  %4335 = vmatpush1.bf16.msra.mxu0 %v10982_v33  ;;  %v4455_v22 = vld [vmem:[#allocation8 + $0xf40] sm:$0xff] }
 0x757   :  { %4295 = vmatprep.subr.bf16.mxu1 %v10989_v39  ;;  %4336 = vmatprep.subr.bf16.mxu0 %v10991_v34  ;;  %v4459_v33 = vld [vmem:[#allocation8 + $0xf60] sm:$0xff]  ;;  %v4456_v39 = vld [vmem:[#allocation8 + $0xf48] sm:$0xff] }
 0x758   :  { %v4460_v34 = vld [vmem:[#allocation8 + $0xf68] sm:$0xff]  ;;  %v11032_v57 = vcombine.low %v4455_v22, %v4459_v33 }
 0x759   :  { %v11035_v2 = vcombine.high %v4456_v39, %v4460_v34  ;;  %v11034_v38 = vcombine.low %v4456_v39, %v4460_v34 }
 0x75a   :  { %4296 = vmatpush1.bf16.msra.mxu1 %v10988_v55  ;;  %4337 = vmatpush1.bf16.msra.mxu0 %v10990_v35  ;;  %v11024_v55 = vcombine.low %v4447_v8, %v4451_v9  ;;  %v11026_v35 = vcombine.low %v4448_v18, %v4452_v26 }
 0x75b   :  { %12005 = vmatprep.subr.bf16.mxu1 %v12514_v0  ;;  %4799 = vmatprep.subr.bf16.mxu0 %v10993_v30  ;;  %v4468_v30 = vld [vmem:[#allocation8 + $0xfa8] sm:$0xff] }
 0x75d   :  { %4314 = vmatmul.mubr.bf16.vlgmr.msra.gmra.mrb[64].mxu1 %v12997_v47  ;;  %4355 = vmatmul.mubr.bf16.vlgmr.msra.gmra.mrb[68].mxu0 %v12997_v47  ;;  %v13021_v47 = vld [vmem:[#allocation5 + $0x18] sm:$0xff]  }
 0x75e   :  { %12006 = vmatpush3.bf16.msra.mxu1 %v13006_v56  ;;  %12021 = vmatprep.mubr.msk.bf16.mxu1 %vm12515_vm0, %v12514_v0 }
 0x75f   :  { %12007 = vmatprep.subr.bf16.mxu1 %v12514_v0  ;;  %4831 = vmatprep.mubr.bf16.mxu0 %v12516_v20 }
 0x760   :  { %4800 = vmatpush1.bf16.msra.mxu0 %v10992_v4  ;;  %v4464_v4 = vld [vmem:[#allocation8 + $0xf88] sm:$0xff] }
 0x761   :  { %4801 = vmatprep.subr.bf16.mxu0 %v11001_v60  ;;  %v11042_v60 = vcombine.low %v4464_v4, %v4468_v30 }
 0x762   :  { %12008 = vmatpush3.bf16.msra.mxu1 %v13013_v31 }
 0x763   :  { %12009 = vmatprep.subr.bf16.mxu1 %v12514_v0 }
 0x764   :  { %4802 = vmatpush1.bf16.msra.mxu0 %v11000_v41  ;;  %v11051_v41 = vcombine.high %v4472_v48, %v4476_v62  ;;  %v4434_v48 = vld [vmem:[#allocation8 + $0xe98] sm:$0xff] }
 0x765   :  { %4803 = vmatprep.subr.bf16.mxu0 %v11009_v25  ;;  %v4421_v25 = vld [vmem:[#allocation8 + $0xe30] sm:$0xff] }
 0x766   :  { %12010 = vmatpush3.bf16.msra.mxu1 %v13017_v50 }
 0x767   :  { %12011 = vmatprep.subr.bf16.mxu1 %v12514_v0 }
 0x768   :  { %4804 = vmatpush1.bf16.msra.mxu0 %v11008_v46 }
 0x769   :  { %4805 = vmatprep.subr.bf16.mxu0 %v11017_v17 }
 0x76a   :  { %12012 = vmatpush3.bf16.msra.mxu1 %v13021_v47 }
 0x76b   :  { %12013 = vmatprep.subr.bf16.mxu1 %v12514_v0 }
 0x76c   :  { %4806 = vmatpush1.bf16.msra.mxu0 %v11016_v19 }
 0x76d   :  { %4807 = vmatprep.subr.bf16.mxu0 %v11025_v32 }
 0x76e   :  { %12014 = vmatpush3.bf16.msra.mxu1 %v13025_v53 }
 0x76f   :  { %12015 = vmatprep.subr.bf16.mxu1 %v12514_v0 }
 0x770   :  { %4808 = vmatpush1.bf16.msra.mxu0 %v11024_v55 }
 0x772   :  { %12016 = vmatpush3.bf16.msra.mxu1 %v13029_v54 }
 0x773   :  { %12017 = vmatprep.subr.bf16.mxu1 %v12514_v0 }
 0x776   :  { %12018 = vmatpush3.bf16.msra.mxu1 %v13033_v37 }
 0x777   :  { %12019 = vmatprep.subr.bf16.mxu1 %v12514_v0 }
 0x77a   :  { %12020 = vmatpush3.bf16.msra.mxu1 %v13037_v36 }
 0x77b   :  { %4840 = vmatprep.subr.bf16.mxu1 %v10995_v59  ;;  %v11040_v59 = vcombine.low %v4463_v3, %v4467_v1 }
 0x77d   :  { %12022 = vmatmul.mubr.bf16.vlgmr.msra.gmra.mrb[68].mxu1 %v4372_v49  ;;  %v11033_v49 = vcombine.high %v4455_v22, %v4459_v33 }
 0x77e   :  { %4872 = vmatprep.mubr.bf16.mxu1 %v12516_v20  ;;  %4841 = vmatpush1.bf16.msra.mxu1 %v10994_v58  ;;  %v11043_v58 = vcombine.high %v4464_v4, %v4468_v30  ;;  %v4425_v30 = vld [vmem:[#allocation8 + $0xe50] sm:$0xff] }
 0x77f   :  { %4842 = vmatprep.subr.bf16.mxu1 %v11003_v21  ;;  %4809 = vmatprep.subr.bf16.mxu0 %v11033_v49  ;;  %v11049_v21 = vcombine.high %v4471_v6, %v4475_v61  ;;  %v4433_v6 = vld [vmem:[#allocation8 + $0xe90] sm:$0xff] }
 0x780   :  { %4810 = vmatpush1.bf16.msra.mxu0 %v11032_v57  ;;  %v4437_v61 = vld [vmem:[#allocation8 + $0xeb0] sm:$0xff] }
 0x781   :  { %4811 = vmatprep.subr.bf16.mxu0 %v11041_v5  ;;  %v4430_v5 = vld [vmem:[#allocation8 + $0xe78] sm:$0xff] }
 0x782   :  { %4843 = vmatpush1.bf16.msra.mxu1 %v11002_v42  ;;  %v4417_v42 = vld [vmem:[#allocation8 + $0xe10] sm:$0xff] }
 0x783   :  { %4844 = vmatprep.subr.bf16.mxu1 %v11011_v10  ;;  %v4418_v10 = vld [vmem:[#allocation8 + $0xe18] sm:$0xff]  ;;  %v10997_v29 = vcombine.high %v4417_v42, %v4421_v25  ;;  %v10996_v14 = vcombine.low %v4417_v42, %v4421_v25  ;;  %v4441_v42 = vld [vmem:[#allocation8 + $0xed0] sm:$0xff] }
 0x784   :  { %4812 = vmatpush1.bf16.msra.mxu0 %v11040_v59  ;;  %v10998_v15 = vcombine.low %v4418_v10, %v4422_v45  ;;  %v10999_v46 = vcombine.high %v4418_v10, %v4422_v45  ;;  %v4445_v25 = vld [vmem:[#allocation8 + $0xef0] sm:$0xff]  ;;  %v4442_v10 = vld [vmem:[#allocation8 + $0xed8] sm:$0xff]  ;;  %v11012_v45 = vcombine.low %v4433_v6, %v4437_v61 }
 0x785   :  { %4813 = vmatprep.subr.bf16.mxu0 %v11049_v21  ;;  %v4438_v21 = vld [vmem:[#allocation8 + $0xeb8] sm:$0xff] }
 0x786   :  { %4845 = vmatpush1.bf16.msra.mxu1 %v11010_v16 }
 0x787   :  { %4846 = vmatprep.subr.bf16.mxu1 %v11019_v28 }
 0x788   :  { %4814 = vmatpush1.bf16.msra.mxu0 %v11048_v23 }
 0x789   :  { %4881 = vmatprep.subr.bf16.mxu0 %v10997_v29  ;;  %v4446_v29 = vld [vmem:[#allocation8 + $0xef8] sm:$0xff] }
 0x78a   :  { %4847 = vmatpush1.bf16.msra.mxu1 %v11018_v51 }
 0x78b   :  { %4848 = vmatprep.subr.bf16.mxu1 %v11027_v52 }
 0x78e   :  { %4849 = vmatpush1.bf16.msra.mxu1 %v11026_v35 }
 0x78f   :  { %4850 = vmatprep.subr.bf16.mxu1 %v11035_v2 }
 0x792   :  { %4851 = vmatpush1.bf16.msra.mxu1 %v11034_v38  ;;  %v4426_v38 = vld [vmem:[#allocation8 + $0xe58] sm:$0xff] }
 0x793   :  { %4852 = vmatprep.subr.bf16.mxu1 %v11043_v58  ;;  %v11006_v23 = vcombine.low %v4426_v38, %v4430_v5 }
 0x796   :  { %4853 = vmatpush1.bf16.msra.mxu1 %v11042_v60 }
 0x797   :  { %4854 = vmatprep.subr.bf16.mxu1 %v11051_v41  ;;  %v11015_v41 = vcombine.high %v4434_v48, %v4438_v21 }
 0x79a   :  { %4855 = vmatpush1.bf16.msra.mxu1 %v11050_v40  ;;  %v11013_v40 = vcombine.high %v4433_v6, %v4437_v61 }
 0x79b   :  { %4922 = vmatprep.subr.bf16.mxu1 %v10999_v46  ;;  %v11014_v46 = vcombine.low %v4434_v48, %v4438_v21 }
 0x810   :  { %v4233_v16 = vpop.f32.mrb[60].mxu1  ;;  %v4274_v17 = vpop.f32.mrb[64].mxu0 }
 0x811   :  { %v13042_v28 = vadd.f32 %v4233_v16, %v12971_v43  ;;  %v13045_v8 = vadd.f32 %v4274_v17, %v12974_v24  ;;  %v4235_v9 = vpop.f32.mrb[61].mxu1  ;;  %v4276_v18 = vpop.f32.mrb[65].mxu0  ;;  %v4449_v16 = vld [vmem:[#allocation8 + $0xf10] sm:$0xff] }
 0x812   :  { %v13048_v26 = vadd.f32 %v4235_v9, %v12977_v12  ;;  %v13051_v19 = vadd.f32 %v4276_v18, %v12980_v13  ;;  %v4237_v51 = vpop.f32.mrb[62].mxu1  ;;  %v4278_v32 = vpop.f32.mrb[66].mxu0  ;;  %v4453_v17 = vld [vmem:[#allocation8 + $0xf30] sm:$0xff]  ;;  %v4450_v9 = vld [vmem:[#allocation8 + $0xf18] sm:$0xff] }
 0x813   :  { %v4238_v52 = vpop.f32.mrb[63].mxu1  ;;  %v4279_v22 = vpop.f32.mrb[67].mxu0  ;;  %v4454_v18 = vld [vmem:[#allocation8 + $0xf38] sm:$0xff]  ;;  %v11020_v51 = vcombine.low %v4441_v42, %v4445_v25  ;;  %v11022_v32 = vcombine.low %v4442_v10, %v4446_v29 }
 0x814   :  { %v11029_v52 = vcombine.high %v4449_v16, %v4453_v17  ;;  %v11031_v22 = vcombine.high %v4450_v9, %v4454_v18 }
 0x830   :  { %v4315_v33 = vpop.f32.mrb[64].mxu1  ;;  %v4356_v39 = vpop.f32.mrb[68].mxu0 }
 0x831   :  { %v13054_v43 = vadd.f32 %v4315_v33, %v12983_v63  ;;  %v13057_v24 = vadd.f32 %v4356_v39, %v12986_v7  ;;  %v4317_v34 = vpop.f32.mrb[65].mxu1  ;;  %v4358_v55 = vpop.f32.mrb[69].mxu0  ;;  %v4429_v7 = vld [vmem:[#allocation8 + $0xe70] sm:$0xff] }
 0x832   :  { %v13060_v12 = vadd.f32 %v4317_v34, %v12989_v44  ;;  %v13063_v13 = vadd.f32 %v4358_v55, %v12992_v11  ;;  %v4319_v35 = vpop.f32.mrb[66].mxu1  ;;  %v4360_v49 = vpop.f32.mrb[70].mxu0  ;;  %v11005_v60 = vcombine.high %v4425_v30, %v4429_v7  ;;  %v11007_v11 = vcombine.high %v4426_v38, %v4430_v5  ;;  %v4457_v33 = vld [vmem:[#allocation8 + $0xf50] sm:$0xff]  ;;  %v4458_v34 = vld [vmem:[#allocation8 + $0xf58] sm:$0xff] }
 0x833   :  { %v4320_v2 = vpop.f32.mrb[67].mxu1  ;;  %v4361_v3 = vpop.f32.mrb[71].mxu0  ;;  %v11004_v62 = vcombine.low %v4425_v30, %v4429_v7  ;;  %v4461_v39 = vld [vmem:[#allocation8 + $0xf70] sm:$0xff]  ;;  %v4462_v55 = vld [vmem:[#allocation8 + $0xf78] sm:$0xff]  ;;  %v11028_v35 = vcombine.low %v4449_v16, %v4453_v17  ;;  %v11030_v49 = vcombine.low %v4450_v9, %v4454_v18  ;;  %v5024_v17 = vld [vmem:[#allocation8 + $0x1048] sm:$0xff] }
 0x834   :  { %v11037_v2 = vcombine.high %v4457_v33, %v4461_v39  ;;  %v11039_v3 = vcombine.high %v4458_v34, %v4462_v55  ;;  %v4470_v30 = vld [vmem:[#allocation8 + $0xfb8] sm:$0xff]  ;;  %v11038_v7 = vcombine.low %v4458_v34, %v4462_v55  ;;  %v5028_v9 = vld [vmem:[#allocation8 + $0x1068] sm:$0xff]  ;;  %v5031_v18 = vld [vmem:[#allocation8 + $0x1080] sm:$0xff] }
 0x850   :  { %v4407_v1 = vpop.f32.mrb[68].mxu1 }
 0x851   :  { %v4408_v4 = vadd.f32 %v12994_v27, %v4407_v1  ;;  %v12023_v63 = vpop.f32.mrb[69].mxu1  ;;  %v4465_v1 = vld [vmem:[#allocation8 + $0xf90] sm:$0xff] }
 0x852   :  { %v4410_v57 = vpop.f32.mrb[70].mxu1  ;;  %v4466_v63 = vld [vmem:[#allocation8 + $0xf98] sm:$0xff] }
 0x853   :  { %v4413_v58 = vmax.f32 %v4408_v4, 0.0  ;;  %v12024_v59 = vpop.f32.mrb[71].mxu1  ;;  %v4469_v4 = vld [vmem:[#allocation8 + $0xfb0] sm:$0xff]  ;;  %v11036_v57 = vcombine.low %v4457_v33, %v4461_v39  ;;  %v11047_v5 = vcombine.high %v4466_v63, %v4470_v30  ;;  %v11046_v61 = vcombine.low %v4466_v63, %v4470_v30 }
 0x854   :  { %v11045_v38 = vcombine.high %v4465_v1, %v4469_v4  ;;  %v4477_v59 = vld [vmem:[#allocation8 + $0xff0] sm:$0xff]  ;;  %v11044_v6 = vcombine.low %v4465_v1, %v4469_v4  ;;  %v11066_v39 = vcombine.low %v5024_v17, %v5028_v9 }
 0x855   :  { %v13066_v44 = vpack.c.bf16 %v4413_v58, %v4413_v58  ;;  %v4473_v58 = vld [vmem:[#allocation8 + $0xfd0] sm:$0xff] }
 0x856   :  { %v11053_v48 = vcombine.high %v4473_v58, %v4477_v59 }
 0x857   :  { %4832 = vmatmul.mubr.bf16.vlgmr.msra.gmra.mrb[72].mxu0 %v13066_v44  ;;  %4873 = vmatmul.mubr.bf16.vlgmr.msra.gmra.mrb[72].mxu1 %v13066_v44 }
 0x858   :  { %4882 = vmatpush1.bf16.msra.mxu0 %v10996_v14  ;;  %4923 = vmatpush1.bf16.msra.mxu1 %v10998_v15  ;;  %v11021_v14 = vcombine.high %v4441_v42, %v4445_v25  ;;  %v11023_v15 = vcombine.high %v4442_v10, %v4446_v29  ;;  %v5016_v42 = vld [vmem:[#allocation8 + $0x1008] sm:$0xff] }
 0x859   :  { %4883 = vmatprep.subr.bf16.mxu0 %v11005_v60  ;;  %4924 = vmatprep.subr.bf16.mxu1 %v11007_v11  ;;  %v4474_v60 = vld [vmem:[#allocation8 + $0xfd8] sm:$0xff]  ;;  %v5020_v29 = vld [vmem:[#allocation8 + $0x1028] sm:$0xff] }
 0x85a   :  { %4913 = vmatprep.mubr.bf16.mxu0 %v12516_v20  ;;  %4954 = vmatprep.mubr.bf16.mxu1 %v12516_v20  ;;  %v4478_v11 = vld [vmem:[#allocation8 + $0xff8] sm:$0xff] }
 0x85b   :  { %v11055_v21 = vcombine.high %v4474_v60, %v4478_v11 }
 0x85c   :  { %4884 = vmatpush1.bf16.msra.mxu0 %v11004_v62  ;;  %4925 = vmatpush1.bf16.msra.mxu1 %v11006_v23  ;;  %v11052_v62 = vcombine.low %v4473_v58, %v4477_v59  ;;  %v11054_v23 = vcombine.low %v4474_v60, %v4478_v11 }
 0x85d   :  { %4885 = vmatprep.subr.bf16.mxu0 %v11013_v40  ;;  %4926 = vmatprep.subr.bf16.mxu1 %v11015_v41  ;;  %v5015_v40 = vld [vmem:[#allocation8 + $0x1000] sm:$0xff] }
 0x85e   :  { %v5019_v41 = vld [vmem:[#allocation8 + $0x1020] sm:$0xff] }
 0x85f   :  { %v11056_v25 = vcombine.low %v5015_v40, %v5019_v41  ;;  %v11057_v10 = vcombine.high %v5015_v40, %v5019_v41  ;;  %v5063_v41 = vld [vmem:[#allocation8 + $0x1180] sm:$0xff] }
 0x860   :  { %4886 = vmatpush1.bf16.msra.mxu0 %v11012_v45  ;;  %4927 = vmatpush1.bf16.msra.mxu1 %v11014_v46  ;;  %v5023_v45 = vld [vmem:[#allocation8 + $0x1040] sm:$0xff] }
 0x861   :  { %4887 = vmatprep.subr.bf16.mxu0 %v11021_v14  ;;  %4928 = vmatprep.subr.bf16.mxu1 %v11023_v15  ;;  %v5027_v46 = vld [vmem:[#allocation8 + $0x1060] sm:$0xff]  ;;  %v11058_v14 = vcombine.low %v5016_v42, %v5020_v29  ;;  %v11059_v15 = vcombine.high %v5016_v42, %v5020_v29 }
 0x862   :  { %v11065_v16 = vcombine.high %v5023_v45, %v5027_v46  ;;  %v11064_v33 = vcombine.low %v5023_v45, %v5027_v46  ;;  %v5067_v42 = vld [vmem:[#allocation8 + $0x11a0] sm:$0xff] }
 0x863   :  { %v11105_v46 = vcombine.high %v5063_v41, %v5067_v42 }
 0x864   :  { %4888 = vmatpush1.bf16.msra.mxu0 %v11020_v51  ;;  %4929 = vmatpush1.bf16.msra.mxu1 %v11022_v32  ;;  %v11067_v51 = vcombine.high %v5024_v17, %v5028_v9  ;;  %v5035_v32 = vld [vmem:[#allocation8 + $0x10a0] sm:$0xff] }
 0x865   :  { %4889 = vmatprep.subr.bf16.mxu0 %v11029_v52  ;;  %4930 = vmatprep.subr.bf16.mxu1 %v11031_v22  ;;  %v5032_v52 = vld [vmem:[#allocation8 + $0x1088] sm:$0xff]  ;;  %v11073_v34 = vcombine.high %v5031_v18, %v5035_v32  ;;  %v11072_v1 = vcombine.low %v5031_v18, %v5035_v32  ;;  %v5071_v17 = vld [vmem:[#allocation8 + $0x11c0] sm:$0xff] }
 0x866   :  { %v5036_v22 = vld [vmem:[#allocation8 + $0x10a8] sm:$0xff]  ;;  %v5075_v9 = vld [vmem:[#allocation8 + $0x11e0] sm:$0xff] }
 0x867   :  { %v11075_v55 = vcombine.high %v5032_v52, %v5036_v22  ;;  %v11074_v4 = vcombine.low %v5032_v52, %v5036_v22  ;;  %v5072_v18 = vld [vmem:[#allocation8 + $0x11c8] sm:$0xff]  ;;  %v11112_v52 = vcombine.low %v5071_v17, %v5075_v9 }
 0x868   :  { %4890 = vmatpush1.bf16.msra.mxu0 %v11028_v35  ;;  %4931 = vmatpush1.bf16.msra.mxu1 %v11030_v49  ;;  %v5039_v35 = vld [vmem:[#allocation8 + $0x10c0] sm:$0xff]  ;;  %v5076_v32 = vld [vmem:[#allocation8 + $0x11e8] sm:$0xff] }
 0x869   :  { %4891 = vmatprep.subr.bf16.mxu0 %v11037_v2  ;;  %4932 = vmatprep.subr.bf16.mxu1 %v11039_v3  ;;  %v5043_v49 = vld [vmem:[#allocation8 + $0x10e0] sm:$0xff]  ;;  %v5040_v2 = vld [vmem:[#allocation8 + $0x10c8] sm:$0xff]  ;;  %v11114_v22 = vcombine.low %v5072_v18, %v5076_v32 }
 0x86a   :  { %v5044_v3 = vld [vmem:[#allocation8 + $0x10e8] sm:$0xff]  ;;  %v11081_v63 = vcombine.high %v5039_v35, %v5043_v49  ;;  %v11080_v58 = vcombine.low %v5039_v35, %v5043_v49  ;;  %v5022_v49 = vld [vmem:[#allocation8 + $0x1038] sm:$0xff] }
 0x86b   :  { %v11083_v30 = vcombine.high %v5040_v2, %v5044_v3  ;;  %v11082_v59 = vcombine.low %v5040_v2, %v5044_v3 }
 0x86c   :  { %4892 = vmatpush1.bf16.msra.mxu0 %v11036_v57  ;;  %4933 = vmatpush1.bf16.msra.mxu1 %v11038_v7  ;;  %v5047_v57 = vld [vmem:[#allocation8 + $0x1100] sm:$0xff] }
 0x86d   :  { %4893 = vmatprep.subr.bf16.mxu0 %v11045_v38  ;;  %4934 = vmatprep.subr.bf16.mxu1 %v11047_v5  ;;  %v5051_v7 = vld [vmem:[#allocation8 + $0x1120] sm:$0xff]  ;;  %v5048_v38 = vld [vmem:[#allocation8 + $0x1108] sm:$0xff] }
 0x86e   :  { %v5052_v5 = vld [vmem:[#allocation8 + $0x1128] sm:$0xff]  ;;  %v11089_v60 = vcombine.high %v5047_v57, %v5051_v7 }
 0x86f   :  { %v11091_v11 = vcombine.high %v5048_v38, %v5052_v5 }
 0x870   :  { %4894 = vmatpush1.bf16.msra.mxu0 %v11044_v6  ;;  %4935 = vmatpush1.bf16.msra.mxu1 %v11046_v61  ;;  %v5055_v6 = vld [vmem:[#allocation8 + $0x1140] sm:$0xff] }
 0x871   :  { %4895 = vmatprep.subr.bf16.mxu0 %v11053_v48  ;;  %4936 = vmatprep.subr.bf16.mxu1 %v11055_v21  ;;  %v5059_v61 = vld [vmem:[#allocation8 + $0x1160] sm:$0xff]  ;;  %v5056_v48 = vld [vmem:[#allocation8 + $0x1148] sm:$0xff] }
 0x872   :  { %v5060_v21 = vld [vmem:[#allocation8 + $0x1168] sm:$0xff]  ;;  %v11096_v29 = vcombine.low %v5055_v6, %v5059_v61 }
 0x873   :  { %v11099_v40 = vcombine.high %v5056_v48, %v5060_v21  ;;  %v11098_v45 = vcombine.low %v5056_v48, %v5060_v21 }
 0x874   :  { %4896 = vmatpush1.bf16.msra.mxu0 %v11052_v62  ;;  %4937 = vmatpush1.bf16.msra.mxu1 %v11054_v23  ;;  %v11088_v62 = vcombine.low %v5047_v57, %v5051_v7  ;;  %v11090_v23 = vcombine.low %v5048_v38, %v5052_v5 }
 0x875   :  { %12025 = vmatprep.subr.bf16.mxu0 %v12514_v0  ;;  %5399 = vmatprep.subr.bf16.mxu1 %v11057_v10  ;;  %v5068_v10 = vld [vmem:[#allocation8 + $0x11a8] sm:$0xff] }
 0x877   :  { %4914 = vmatmul.mubr.bf16.vlgmr.msra.gmra.mrb[76].mxu0 %v13066_v44  ;;  %4955 = vmatmul.mubr.bf16.vlgmr.msra.gmra.mrb[76].mxu1 %v13066_v44  ;;  %v4972_v44 = vld [vmem:[#allocation2 + $0x20] sm:$0xf] }
 0x878   :  { %12026 = vmatpush3.bf16.msra.mxu0 %v13006_v56  ;;  %12041 = vmatprep.mubr.msk.bf16.mxu0 %vm12515_vm0, %v12514_v0 }
 0x879   :  { %12027 = vmatprep.subr.bf16.mxu0 %v12514_v0  ;;  %5431 = vmatprep.mubr.bf16.mxu1 %v12516_v20 }
 0x87a   :  { %5400 = vmatpush1.bf16.msra.mxu1 %v11056_v25  ;;  %v5064_v25 = vld [vmem:[#allocation8 + $0x1188] sm:$0xff] }
 0x87b   :  { %5401 = vmatprep.subr.bf16.mxu1 %v11065_v16  ;;  %v11106_v16 = vcombine.low %v5064_v25, %v5068_v10 }
 0x87c   :  { %12028 = vmatpush3.bf16.msra.mxu0 %v13013_v31 }
 0x87d   :  { %12029 = vmatprep.subr.bf16.mxu0 %v12514_v0 }
 0x87e   :  { %5402 = vmatpush1.bf16.msra.mxu1 %v11064_v33  ;;  %v11115_v33 = vcombine.high %v5072_v18, %v5076_v32  ;;  %v5034_v18 = vld [vmem:[#allocation8 + $0x1098] sm:$0xff] }
 0x87f   :  { %5403 = vmatprep.subr.bf16.mxu1 %v11073_v34  ;;  %v5021_v34 = vld [vmem:[#allocation8 + $0x1030] sm:$0xff] }
 0x880   :  { %12030 = vmatpush3.bf16.msra.mxu0 %v13017_v50 }
 0x881   :  { %12031 = vmatprep.subr.bf16.mxu0 %v12514_v0 }
 0x882   :  { %5404 = vmatpush1.bf16.msra.mxu1 %v11072_v1 }
 0x883   :  { %5405 = vmatprep.subr.bf16.mxu1 %v11081_v63 }
 0x884   :  { %12032 = vmatpush3.bf16.msra.mxu0 %v13021_v47 }
 0x885   :  { %12033 = vmatprep.subr.bf16.mxu0 %v12514_v0 }
 0x886   :  { %5406 = vmatpush1.bf16.msra.mxu1 %v11080_v58 }
 0x887   :  { %5407 = vmatprep.subr.bf16.mxu1 %v11089_v60 }
 0x888   :  { %12034 = vmatpush3.bf16.msra.mxu0 %v13025_v53 }
 0x889   :  { %12035 = vmatprep.subr.bf16.mxu0 %v12514_v0 }
 0x88a   :  { %5408 = vmatpush1.bf16.msra.mxu1 %v11088_v62 }
 0x88c   :  { %12036 = vmatpush3.bf16.msra.mxu0 %v13029_v54 }
 0x88d   :  { %12037 = vmatprep.subr.bf16.mxu0 %v12514_v0 }
 0x890   :  { %12038 = vmatpush3.bf16.msra.mxu0 %v13033_v37 }
 0x891   :  { %12039 = vmatprep.subr.bf16.mxu0 %v12514_v0 }
 0x894   :  { %12040 = vmatpush3.bf16.msra.mxu0 %v13037_v36 }
 0x895   :  { %5440 = vmatprep.subr.bf16.mxu0 %v11059_v15  ;;  %v11104_v15 = vcombine.low %v5063_v41, %v5067_v42 }
 0x897   :  { %12042 = vmatmul.mubr.bf16.vlgmr.msra.gmra.mrb[80].mxu0 %v4972_v44  ;;  %v11097_v44 = vcombine.high %v5055_v6, %v5059_v61 }
 0x898   :  { %5472 = vmatprep.mubr.bf16.mxu0 %v12516_v20  ;;  %5441 = vmatpush1.bf16.msra.mxu0 %v11058_v14  ;;  %v11107_v14 = vcombine.high %v5064_v25, %v5068_v10  ;;  %v5025_v10 = vld [vmem:[#allocation8 + $0x1050] sm:$0xff] }
 0x899   :  { %5442 = vmatprep.subr.bf16.mxu0 %v11067_v51  ;;  %5409 = vmatprep.subr.bf16.mxu1 %v11097_v44  ;;  %v11113_v51 = vcombine.high %v5071_v17, %v5075_v9  ;;  %v5033_v17 = vld [vmem:[#allocation8 + $0x1090] sm:$0xff] }
 0x89a   :  { %5410 = vmatpush1.bf16.msra.mxu1 %v11096_v29  ;;  %v5037_v9 = vld [vmem:[#allocation8 + $0x10b0] sm:$0xff] }
 0x89b   :  { %5411 = vmatprep.subr.bf16.mxu1 %v11105_v46  ;;  %v5030_v46 = vld [vmem:[#allocation8 + $0x1078] sm:$0xff] }
 0x89c   :  { %5443 = vmatpush1.bf16.msra.mxu0 %v11066_v39  ;;  %v5017_v39 = vld [vmem:[#allocation8 + $0x1010] sm:$0xff] }
 0x89d   :  { %5444 = vmatprep.subr.bf16.mxu0 %v11075_v55  ;;  %v5018_v55 = vld [vmem:[#allocation8 + $0x1018] sm:$0xff]  ;;  %v11061_v35 = vcombine.high %v5017_v39, %v5021_v34  ;;  %v11060_v2 = vcombine.low %v5017_v39, %v5021_v34  ;;  %v5045_v39 = vld [vmem:[#allocation8 + $0x10f0] sm:$0xff] }
 0x89e   :  { %5412 = vmatpush1.bf16.msra.mxu1 %v11104_v15  ;;  %v11062_v3 = vcombine.low %v5018_v55, %v5022_v49  ;;  %v11063_v1 = vcombine.high %v5018_v55, %v5022_v49  ;;  %v5042_v34 = vld [vmem:[#allocation8 + $0x10d8] sm:$0xff] }
 0x89f   :  { %5413 = vmatprep.subr.bf16.mxu1 %v11113_v51  ;;  %v5038_v51 = vld [vmem:[#allocation8 + $0x10b8] sm:$0xff] }
 0x8a0   :  { %5445 = vmatpush1.bf16.msra.mxu0 %v11074_v4  ;;  %v5046_v55 = vld [vmem:[#allocation8 + $0x10f8] sm:$0xff]  ;;  %v11078_v49 = vcombine.low %v5034_v18, %v5038_v51 }
 0x8a1   :  { %5446 = vmatprep.subr.bf16.mxu0 %v11083_v30 }
 0x8a2   :  { %5414 = vmatpush1.bf16.msra.mxu1 %v11112_v52  ;;  %v11077_v52 = vcombine.high %v5033_v17, %v5037_v9 }
 0x8a3   :  { %5481 = vmatprep.subr.bf16.mxu1 %v11061_v35  ;;  %v11076_v35 = vcombine.low %v5033_v17, %v5037_v9 }
 0x8a4   :  { %5447 = vmatpush1.bf16.msra.mxu0 %v11082_v59 }
 0x8a5   :  { %5448 = vmatprep.subr.bf16.mxu0 %v11091_v11 }
 0x8a8   :  { %5449 = vmatpush1.bf16.msra.mxu0 %v11090_v23 }
 0x8a9   :  { %5450 = vmatprep.subr.bf16.mxu0 %v11099_v40 }
 0x8ac   :  { %5451 = vmatpush1.bf16.msra.mxu0 %v11098_v45  ;;  %v5026_v45 = vld [vmem:[#allocation8 + $0x1058] sm:$0xff] }
 0x8ad   :  { %5452 = vmatprep.subr.bf16.mxu0 %v11107_v14  ;;  %v11070_v32 = vcombine.low %v5026_v45, %v5030_v46 }
 0x8b0   :  { %5453 = vmatpush1.bf16.msra.mxu0 %v11106_v16 }
 0x8b1   :  { %5454 = vmatprep.subr.bf16.mxu0 %v11115_v33  ;;  %v5041_v33 = vld [vmem:[#allocation8 + $0x10d0] sm:$0xff] }
 0x8b4   :  { %5455 = vmatpush1.bf16.msra.mxu0 %v11114_v22  ;;  %v11079_v22 = vcombine.high %v5034_v18, %v5038_v51 }
 0x8b5   :  { %5522 = vmatprep.subr.bf16.mxu0 %v11063_v1  ;;  %v5049_v1 = vld [vmem:[#allocation8 + $0x1110] sm:$0xff] }
 0x92a   :  { %v4833_v4 = vpop.f32.mrb[72].mxu0  ;;  %v4874_v63 = vpop.f32.mrb[72].mxu1 }
 0x92b   :  { %v13095_v30 = vadd.f32 %v4833_v4, %v13042_v28  ;;  %v13098_v57 = vadd.f32 %v4874_v63, %v13045_v8  ;;  %v4835_v7 = vpop.f32.mrb[73].mxu0  ;;  %v4876_v38 = vpop.f32.mrb[73].mxu1  ;;  %v5053_v4 = vld [vmem:[#allocation8 + $0x1130] sm:$0xff]  ;;  %v5050_v63 = vld [vmem:[#allocation8 + $0x1118] sm:$0xff] }
 0x92c   :  { %v13101_v5 = vadd.f32 %v4835_v7, %v13048_v26  ;;  %v13104_v58 = vadd.f32 %v4876_v38, %v13051_v19  ;;  %v4837_v59 = vpop.f32.mrb[74].mxu0  ;;  %v4878_v60 = vpop.f32.mrb[74].mxu1  ;;  %v5054_v7 = vld [vmem:[#allocation8 + $0x1138] sm:$0xff]  ;;  %v11084_v38 = vcombine.low %v5041_v33, %v5045_v39 }
 0x92d   :  { %v4838_v11 = vpop.f32.mrb[75].mxu0  ;;  %v4879_v6 = vpop.f32.mrb[75].mxu1  ;;  %v11086_v59 = vcombine.low %v5042_v34, %v5046_v55  ;;  %v11093_v60 = vcombine.high %v5049_v1, %v5053_v4 }
 0x92e   :  { %v11095_v11 = vcombine.high %v5050_v63, %v5054_v7  ;;  %v5057_v6 = vld [vmem:[#allocation8 + $0x1150] sm:$0xff] }
 0x94a   :  { %v4915_v61 = vpop.f32.mrb[76].mxu0  ;;  %v4956_v48 = vpop.f32.mrb[76].mxu1 }
 0x94b   :  { %v13107_v28 = vadd.f32 %v4915_v61, %v13054_v43  ;;  %v13110_v8 = vadd.f32 %v4956_v48, %v13057_v24  ;;  %v4917_v21 = vpop.f32.mrb[77].mxu0  ;;  %v4958_v62 = vpop.f32.mrb[77].mxu1  ;;  %v5029_v24 = vld [vmem:[#allocation8 + $0x1070] sm:$0xff]  ;;  %v5058_v48 = vld [vmem:[#allocation8 + $0x1158] sm:$0xff] }
 0x94c   :  { %v13113_v26 = vadd.f32 %v4917_v21, %v13060_v12  ;;  %v13116_v19 = vadd.f32 %v4958_v62, %v13063_v13  ;;  %v4919_v23 = vpop.f32.mrb[78].mxu0  ;;  %v4960_v44 = vpop.f32.mrb[78].mxu1  ;;  %v11069_v16 = vcombine.high %v5025_v10, %v5029_v24  ;;  %v11071_v13 = vcombine.high %v5026_v45, %v5030_v46  ;;  %v5061_v61 = vld [vmem:[#allocation8 + $0x1170] sm:$0xff]  ;;  %v5062_v21 = vld [vmem:[#allocation8 + $0x1178] sm:$0xff] }
 0x94d   :  { %v4920_v40 = vpop.f32.mrb[79].mxu0  ;;  %v4961_v41 = vpop.f32.mrb[79].mxu1  ;;  %v11092_v62 = vcombine.low %v5049_v1, %v5053_v4  ;;  %v11094_v23 = vcombine.low %v5050_v63, %v5054_v7  ;;  %v11101_v44 = vcombine.high %v5057_v6, %v5061_v61  ;;  %v5073_v46 = vld [vmem:[#allocation8 + $0x11d0] sm:$0xff]  ;;  %v5639_v7 = vld [vmem:[#allocation8 + $0x12c0] sm:$0xff] }
 0x94e   :  { %v11103_v40 = vcombine.high %v5058_v48, %v5062_v21  ;;  %v5065_v41 = vld [vmem:[#allocation8 + $0x1190] sm:$0xff] }
 0x96a   :  { %v5007_v42 = vpop.f32.mrb[80].mxu0 }
 0x96b   :  { %v5008_v25 = vadd.f32 %v12994_v27, %v5007_v42  ;;  %v12043_v43 = vpop.f32.mrb[81].mxu0  ;;  %v11068_v27 = vcombine.low %v5025_v10, %v5029_v24  ;;  %v5069_v42 = vld [vmem:[#allocation8 + $0x11b0] sm:$0xff]  ;;  %v11100_v10 = vcombine.low %v5057_v6, %v5061_v61 }
 0x96c   :  { %v5010_v29 = vpop.f32.mrb[82].mxu0  ;;  %v5070_v43 = vld [vmem:[#allocation8 + $0x11b8] sm:$0xff]  ;;  %v11109_v24 = vcombine.high %v5065_v41, %v5069_v42 }
 0x96d   :  { %v5013_v14 = vmax.f32 %v5008_v25, 0.0  ;;  %v12044_v15 = vpop.f32.mrb[83].mxu0  ;;  %v5066_v25 = vld [vmem:[#allocation8 + $0x1198] sm:$0xff]  ;;  %v11102_v29 = vcombine.low %v5058_v48, %v5062_v21  ;;  %v5647_v21 = vld [vmem:[#allocation8 + $0x1300] sm:$0xff] }
 0x96e   :  { %v11111_v45 = vcombine.high %v5066_v25, %v5070_v43  ;;  %v5074_v15 = vld [vmem:[#allocation8 + $0x11d8] sm:$0xff]  ;;  %v11110_v17 = vcombine.low %v5066_v25, %v5070_v43  ;;  %v5655_v43 = vld [vmem:[#allocation8 + $0x1340] sm:$0xff] }
 0x96f   :  { %v13119_v12 = vpack.c.bf16 %v5013_v14, %v5013_v14  ;;  %v5077_v14 = vld [vmem:[#allocation8 + $0x11f0] sm:$0xff] }
 0x970   :  { %v11117_v9 = vcombine.high %v5073_v46, %v5077_v14  ;;  %v11116_v51 = vcombine.low %v5073_v46, %v5077_v14 }
 0x971   :  { %5432 = vmatmul.mubr.bf16.vlgmr.msra.gmra.mrb[80].mxu1 %v13119_v12  ;;  %5473 = vmatmul.mubr.bf16.vlgmr.msra.gmra.mrb[84].mxu0 %v13119_v12 }
 0x972   :  { %5482 = vmatpush1.bf16.msra.mxu1 %v11060_v2  ;;  %5523 = vmatpush1.bf16.msra.mxu0 %v11062_v3  ;;  %v11085_v2 = vcombine.high %v5041_v33, %v5045_v39  ;;  %v11087_v3 = vcombine.high %v5042_v34, %v5046_v55  ;;  %v5628_v34 = vld [vmem:[#allocation8 + $0x1268] sm:$0xff]  ;;  %v5631_v55 = vld [vmem:[#allocation8 + $0x1280] sm:$0xff] }
 0x973   :  { %5483 = vmatprep.subr.bf16.mxu1 %v11069_v16  ;;  %5524 = vmatprep.subr.bf16.mxu0 %v11071_v13  ;;  %v5078_v16 = vld [vmem:[#allocation8 + $0x11f8] sm:$0xff]  ;;  %v11108_v13 = vcombine.low %v5065_v41, %v5069_v42 }
 0x974   :  { %5513 = vmatprep.mubr.bf16.mxu1 %v12516_v20  ;;  %5554 = vmatprep.mubr.bf16.mxu0 %v12516_v20  ;;  %v11119_v18 = vcombine.high %v5074_v15, %v5078_v16 }
 0x976   :  { %5484 = vmatpush1.bf16.msra.mxu1 %v11068_v27  ;;  %5525 = vmatpush1.bf16.msra.mxu0 %v11070_v32  ;;  %v11118_v27 = vcombine.low %v5074_v15, %v5078_v16  ;;  %v5620_v32 = vld [vmem:[#allocation8 + $0x1228] sm:$0xff]  ;;  %v5663_v16 = vld [vmem:[#allocation8 + $0x1380] sm:$0xff] }
 0x977   :  { %5485 = vmatprep.subr.bf16.mxu1 %v11077_v52  ;;  %5526 = vmatprep.subr.bf16.mxu0 %v11079_v22  ;;  %v5623_v52 = vld [vmem:[#allocation8 + $0x1240] sm:$0xff] }
 0x97a   :  { %5486 = vmatpush1.bf16.msra.mxu1 %v11076_v35  ;;  %5527 = vmatpush1.bf16.msra.mxu0 %v11078_v49  ;;  %v5635_v35 = vld [vmem:[#allocation8 + $0x12a0] sm:$0xff]  ;;  %v5632_v49 = vld [vmem:[#allocation8 + $0x1288] sm:$0xff] }
 0x97b   :  { %5487 = vmatprep.subr.bf16.mxu1 %v11085_v2  ;;  %5528 = vmatprep.subr.bf16.mxu0 %v11087_v3  ;;  %v5636_v2 = vld [vmem:[#allocation8 + $0x12a8] sm:$0xff]  ;;  %v11137_v4 = vcombine.high %v5631_v55, %v5635_v35 }
 0x97c   :  { %v11139_v63 = vcombine.high %v5632_v49, %v5636_v2  ;;  %v11138_v6 = vcombine.low %v5632_v49, %v5636_v2 }
 0x97e   :  { %5488 = vmatpush1.bf16.msra.mxu1 %v11084_v38  ;;  %5529 = vmatpush1.bf16.msra.mxu0 %v11086_v59  ;;  %v5643_v38 = vld [vmem:[#allocation8 + $0x12e0] sm:$0xff]  ;;  %v5640_v59 = vld [vmem:[#allocation8 + $0x12c8] sm:$0xff] }
 0x97f   :  { %5489 = vmatprep.subr.bf16.mxu1 %v11093_v60  ;;  %5530 = vmatprep.subr.bf16.mxu0 %v11095_v11  ;;  %v5644_v60 = vld [vmem:[#allocation8 + $0x12e8] sm:$0xff]  ;;  %v11136_v11 = vcombine.low %v5631_v55, %v5635_v35  ;;  %v11145_v61 = vcombine.high %v5639_v7, %v5643_v38 }
 0x980   :  { %v11147_v48 = vcombine.high %v5640_v59, %v5644_v60  ;;  %v11146_v41 = vcombine.low %v5640_v59, %v5644_v60 }
 0x982   :  { %5490 = vmatpush1.bf16.msra.mxu1 %v11092_v62  ;;  %5531 = vmatpush1.bf16.msra.mxu0 %v11094_v23  ;;  %v5651_v62 = vld [vmem:[#allocation8 + $0x1320] sm:$0xff]  ;;  %v5648_v23 = vld [vmem:[#allocation8 + $0x1308] sm:$0xff] }
 0x983   :  { %5491 = vmatprep.subr.bf16.mxu1 %v11101_v44  ;;  %5532 = vmatprep.subr.bf16.mxu0 %v11103_v40  ;;  %v5652_v44 = vld [vmem:[#allocation8 + $0x1328] sm:$0xff]  ;;  %v11144_v40 = vcombine.low %v5639_v7, %v5643_v38  ;;  %v11153_v42 = vcombine.high %v5647_v21, %v5651_v62 }
 0x984   :  { %v11155_v25 = vcombine.high %v5648_v23, %v5652_v44  ;;  %v11154_v46 = vcombine.low %v5648_v23, %v5652_v44 }
 0x986   :  { %5492 = vmatpush1.bf16.msra.mxu1 %v11100_v10  ;;  %5533 = vmatpush1.bf16.msra.mxu0 %v11102_v29  ;;  %v5659_v10 = vld [vmem:[#allocation8 + $0x1360] sm:$0xff]  ;;  %v5656_v29 = vld [vmem:[#allocation8 + $0x1348] sm:$0xff] }
 0x987   :  { %5493 = vmatprep.subr.bf16.mxu1 %v11109_v24  ;;  %5534 = vmatprep.subr.bf16.mxu0 %v11111_v45  ;;  %v5660_v24 = vld [vmem:[#allocation8 + $0x1368] sm:$0xff]  ;;  %v11152_v45 = vcombine.low %v5647_v21, %v5651_v62  ;;  %v11161_v14 = vcombine.high %v5655_v43, %v5659_v10 }
 0x988   :  { %v11163_v15 = vcombine.high %v5656_v29, %v5660_v24 }
 0x98a   :  { %5494 = vmatpush1.bf16.msra.mxu1 %v11108_v13  ;;  %5535 = vmatpush1.bf16.msra.mxu0 %v11110_v17  ;;  %v5667_v13 = vld [vmem:[#allocation8 + $0x13a0] sm:$0xff]  ;;  %v5664_v17 = vld [vmem:[#allocation8 + $0x1388] sm:$0xff] }
 0x98b   :  { %5495 = vmatprep.subr.bf16.mxu1 %v11117_v9  ;;  %5536 = vmatprep.subr.bf16.mxu0 %v11119_v18  ;;  %v5668_v9 = vld [vmem:[#allocation8 + $0x13a8] sm:$0xff]  ;;  %v11160_v18 = vcombine.low %v5655_v43, %v5659_v10  ;;  %v13171_v10 = vld [vmem:[#allocation7] ss:$0 sm:$0xff] }
 0x98e   :  { %5496 = vmatpush1.bf16.msra.mxu1 %v11116_v51  ;;  %5537 = vmatpush1.bf16.msra.mxu0 %v11118_v27  ;;  %v11162_v51 = vcombine.low %v5656_v29, %v5660_v24  ;;  %v11169_v27 = vcombine.high %v5663_v16, %v5667_v13 }
 0x98f   :  { %12045 = vmatprep.subr.bf16.mxu1 %v12514_v0 }
 0x991   :  { %5514 = vmatmul.mubr.bf16.vlgmr.msra.gmra.mrb[84].mxu1 %v13119_v12  ;;  %5555 = vmatmul.mubr.bf16.vlgmr.msra.gmra.mrb[88].mxu0 %v13119_v12 }
 0x992   :  { %12046 = vmatpush3.bf16.msra.mxu1 %v13006_v56  ;;  %12061 = vmatprep.mubr.msk.bf16.mxu1 %vm12515_vm0, %v12514_v0  ;;  %v5572_v56 = vld [vmem:[#allocation2 + $0x24] sm:$0xf] }
 0x993   :  { %12047 = vmatprep.subr.bf16.mxu1 %v12514_v0  ;;  %6031 = vmatprep.mubr.bf16.mxu0 %v12516_v20 }
 0x996   :  { %12048 = vmatpush3.bf16.msra.mxu1 %v13013_v31  ;;  %v5615_v31 = vld [vmem:[#allocation8 + $0x1200] sm:$0xff] }
 0x997   :  { %12049 = vmatprep.subr.bf16.mxu1 %v12514_v0 }
 0x99a   :  { %12050 = vmatpush3.bf16.msra.mxu1 %v13017_v50  ;;  %v5619_v50 = vld [vmem:[#allocation8 + $0x1220] sm:$0xff] }
 0x99b   :  { %12051 = vmatprep.subr.bf16.mxu1 %v12514_v0  ;;  %v11121_v12 = vcombine.high %v5615_v31, %v5619_v50 }
 0x99d   :  { %5999 = vmatprep.subr.bf16.mxu0 %v11121_v12  ;;  %v5672_v12 = vld [vmem:[#allocation8 + $0x13c8] sm:$0xff] }
 0x99e   :  { %12052 = vmatpush3.bf16.msra.mxu1 %v13021_v47  ;;  %v5616_v47 = vld [vmem:[#allocation8 + $0x1208] sm:$0xff] }
 0x99f   :  { %12053 = vmatprep.subr.bf16.mxu1 %v12514_v0  ;;  %v11122_v22 = vcombine.low %v5616_v47, %v5620_v32  ;;  %v11123_v33 = vcombine.high %v5616_v47, %v5620_v32  ;;  %v5671_v47 = vld [vmem:[#allocation8 + $0x13c0] sm:$0xff] }
 0x9a2   :  { %12054 = vmatpush3.bf16.msra.mxu1 %v13025_v53  ;;  %v11120_v53 = vcombine.low %v5615_v31, %v5619_v50  ;;  %v11168_v31 = vcombine.low %v5663_v16, %v5667_v13  ;;  %v11170_v50 = vcombine.low %v5664_v17, %v5668_v9 }
 0x9a3   :  { %12055 = vmatprep.subr.bf16.mxu1 %v12514_v0 }
 0x9a4   :  { %6000 = vmatpush1.bf16.msra.mxu0 %v11120_v53  ;;  %v5675_v53 = vld [vmem:[#allocation8 + $0x13e0] sm:$0xff] }
 0x9a5   :  { %v11177_v32 = vcombine.high %v5671_v47, %v5675_v53 }
 0x9a6   :  { %12056 = vmatpush3.bf16.msra.mxu1 %v13029_v54  ;;  %v5627_v54 = vld [vmem:[#allocation8 + $0x1260] sm:$0xff] }
 0x9a7   :  { %12057 = vmatprep.subr.bf16.mxu1 %v12514_v0  ;;  %v11129_v39 = vcombine.high %v5623_v52, %v5627_v54  ;;  %v11128_v3 = vcombine.low %v5623_v52, %v5627_v54  ;;  %v5676_v52 = vld [vmem:[#allocation8 + $0x13e8] sm:$0xff]  ;;  %v11176_v54 = vcombine.low %v5671_v47, %v5675_v53  ;;  %v5641_v47 = vld [vmem:[#allocation8 + $0x12d0] sm:$0xff] }
 0x9a8   :  { %v5645_v53 = vld [vmem:[#allocation8 + $0x12f0] sm:$0xff] }
 0x9a9   :  { %6001 = vmatprep.subr.bf16.mxu0 %v11129_v39  ;;  %v5617_v39 = vld [vmem:[#allocation8 + $0x1210] sm:$0xff] }
 0x9aa   :  { %12058 = vmatpush3.bf16.msra.mxu1 %v13033_v37  ;;  %v5624_v37 = vld [vmem:[#allocation8 + $0x1248] sm:$0xff]  ;;  %6002 = vmatpush1.bf16.msra.mxu0 %v11128_v3 }
 0x9ab   :  { %12059 = vmatprep.subr.bf16.mxu1 %v12514_v0  ;;  %v11130_v1 = vcombine.low %v5624_v37, %v5628_v34  ;;  %6003 = vmatprep.subr.bf16.mxu0 %v11137_v4 }
 0x9ae   :  { %12060 = vmatpush3.bf16.msra.mxu1 %v13037_v36  ;;  %v11131_v36 = vcombine.high %v5624_v37, %v5628_v34  ;;  %6004 = vmatpush1.bf16.msra.mxu0 %v11136_v11  ;;  %v5621_v37 = vld [vmem:[#allocation8 + $0x1230] sm:$0xff]  ;;  %v5618_v34 = vld [vmem:[#allocation8 + $0x1218] sm:$0xff] }
 0x9af   :  { %6040 = vmatprep.subr.bf16.mxu1 %v11123_v33  ;;  %6005 = vmatprep.subr.bf16.mxu0 %v11145_v61  ;;  %v11179_v33 = vcombine.high %v5672_v12, %v5676_v52  ;;  %v11125_v55 = vcombine.high %v5617_v39, %v5621_v37  ;;  %v11124_v35 = vcombine.low %v5617_v39, %v5621_v37  ;;  %v5649_v39 = vld [vmem:[#allocation8 + $0x1310] sm:$0xff] }
 0x9b0   :  { %v5653_v37 = vld [vmem:[#allocation8 + $0x1330] sm:$0xff] }
 0x9b1   :  { %12062 = vmatmul.mubr.bf16.vlgmr.msra.gmra.mrb[88].mxu1 %v5572_v56  ;;  %v11171_v56 = vcombine.high %v5664_v17, %v5668_v9  ;;  %v5633_v17 = vld [vmem:[#allocation8 + $0x1290] sm:$0xff] }
 0x9b2   :  { %6072 = vmatprep.mubr.bf16.mxu1 %v12516_v20  ;;  %6041 = vmatpush1.bf16.msra.mxu1 %v11122_v22  ;;  %v11178_v22 = vcombine.low %v5672_v12, %v5676_v52  ;;  %v5637_v9 = vld [vmem:[#allocation8 + $0x12b0] sm:$0xff]  ;;  %v5642_v12 = vld [vmem:[#allocation8 + $0x12d8] sm:$0xff] }
 0x9b3   :  { %6042 = vmatprep.subr.bf16.mxu1 %v11131_v36  ;;  %6006 = vmatpush1.bf16.msra.mxu0 %v11144_v40  ;;  %v5622_v36 = vld [vmem:[#allocation8 + $0x1238] sm:$0xff]  ;;  %v11140_v52 = vcombine.low %v5633_v17, %v5637_v9 }
 0x9b4   :  { %6007 = vmatprep.subr.bf16.mxu0 %v11153_v42  ;;  %v11126_v49 = vcombine.low %v5618_v34, %v5622_v36  ;;  %v11127_v2 = vcombine.high %v5618_v34, %v5622_v36  ;;  %v5650_v34 = vld [vmem:[#allocation8 + $0x1318] sm:$0xff]  ;;  %v11148_v36 = vcombine.low %v5641_v47, %v5645_v53 }
 0x9b6   :  { %6043 = vmatpush1.bf16.msra.mxu1 %v11130_v1 }
 0x9b7   :  { %6044 = vmatprep.subr.bf16.mxu1 %v11139_v63  ;;  %6008 = vmatpush1.bf16.msra.mxu0 %v11152_v45  ;;  %v5629_v45 = vld [vmem:[#allocation8 + $0x1270] sm:$0xff] }
 0x9b8   :  { %6009 = vmatprep.subr.bf16.mxu0 %v11161_v14  ;;  %v5630_v14 = vld [vmem:[#allocation8 + $0x1278] sm:$0xff] }
 0x9ba   :  { %6045 = vmatpush1.bf16.msra.mxu1 %v11138_v6 }
 0x9bb   :  { %6046 = vmatprep.subr.bf16.mxu1 %v11147_v48  ;;  %6010 = vmatpush1.bf16.msra.mxu0 %v11160_v18  ;;  %v5634_v18 = vld [vmem:[#allocation8 + $0x1298] sm:$0xff] }
 0x9bc   :  { %6011 = vmatprep.subr.bf16.mxu0 %v11169_v27 }
 0x9be   :  { %6047 = vmatpush1.bf16.msra.mxu1 %v11146_v41 }
 0x9bf   :  { %6048 = vmatprep.subr.bf16.mxu1 %v11155_v25  ;;  %6012 = vmatpush1.bf16.msra.mxu0 %v11168_v31  ;;  %v11141_v31 = vcombine.high %v5633_v17, %v5637_v9  ;;  %v13194_v17 = vld [vmem:[#allocation5 + $0x10] sm:$0xff]   ;;  %v13202_v9 = vld [vmem:[#allocation5 + $0x20] sm:$0xff]  }
 0x9c0   :  { %6013 = vmatprep.subr.bf16.mxu0 %v11177_v32  ;;  %v5646_v32 = vld [vmem:[#allocation8 + $0x12f8] sm:$0xff] }
 0x9c2   :  { %6049 = vmatpush1.bf16.msra.mxu1 %v11154_v46  ;;  %v5626_v46 = vld [vmem:[#allocation8 + $0x1258] sm:$0xff] }
 0x9c3   :  { %6050 = vmatprep.subr.bf16.mxu1 %v11163_v15  ;;  %6014 = vmatpush1.bf16.msra.mxu0 %v11176_v54  ;;  %v11135_v13 = vcombine.high %v5626_v46, %v5630_v14 }
 0x9c4   :  { %6081 = vmatprep.subr.bf16.mxu0 %v11125_v55  ;;  %v5654_v55 = vld [vmem:[#allocation8 + $0x1338] sm:$0xff] }
 0x9c6   :  { %6051 = vmatpush1.bf16.msra.mxu1 %v11162_v51  ;;  %v5638_v51 = vld [vmem:[#allocation8 + $0x12b8] sm:$0xff] }
 0x9c7   :  { %6052 = vmatprep.subr.bf16.mxu1 %v11171_v56  ;;  %v11134_v56 = vcombine.low %v5626_v46, %v5630_v14  ;;  %v11142_v54 = vcombine.low %v5634_v18, %v5638_v51 }
 0x9ca   :  { %6053 = vmatpush1.bf16.msra.mxu1 %v11170_v50  ;;  %v11143_v50 = vcombine.high %v5634_v18, %v5638_v51  ;;  %v13206_v18 = vld [vmem:[#allocation5 + $0x28] sm:$0xff]   ;;  %v13210_v51 = vld [vmem:[#allocation5 + $0x30] sm:$0xff]  }
 0x9cb   :  { %6054 = vmatprep.subr.bf16.mxu1 %v11179_v33  ;;  %v11151_v33 = vcombine.high %v5642_v12, %v5646_v32 }
 0x9ce   :  { %6055 = vmatpush1.bf16.msra.mxu1 %v11178_v22  ;;  %v11149_v22 = vcombine.high %v5641_v47, %v5645_v53  ;;  %v6216_v47 = vld [vmem:[#allocation8 + $0x1408] sm:$0xff] }
 0x9cf   :  { %6122 = vmatprep.subr.bf16.mxu1 %v11127_v2  ;;  %v11159_v2 = vcombine.high %v5650_v34, %v5654_v55 }
 0xa44   :  { %v5433_v3 = vpop.f32.mrb[80].mxu1  ;;  %v5474_v1 = vpop.f32.mrb[84].mxu0 }
 0xa45   :  { %v13148_v4 = vadd.f32 %v5433_v3, %v13095_v30  ;;  %v13151_v63 = vadd.f32 %v5474_v1, %v13098_v57  ;;  %v5435_v7 = vpop.f32.mrb[81].mxu1  ;;  %v5476_v38 = vpop.f32.mrb[85].mxu0  ;;  %v5657_v3 = vld [vmem:[#allocation8 + $0x1350] sm:$0xff] }
 0xa46   :  { %v13154_v59 = vadd.f32 %v5435_v7, %v13101_v5  ;;  %v13157_v60 = vadd.f32 %v5476_v38, %v13104_v58  ;;  %v5437_v11 = vpop.f32.mrb[82].mxu1  ;;  %v5478_v6 = vpop.f32.mrb[86].mxu0  ;;  %v5661_v1 = vld [vmem:[#allocation8 + $0x1370] sm:$0xff]  ;;  %v5658_v7 = vld [vmem:[#allocation8 + $0x1358] sm:$0xff] }
 0xa47   :  { %v5438_v61 = vpop.f32.mrb[83].mxu1  ;;  %v5479_v48 = vpop.f32.mrb[87].mxu0  ;;  %v5662_v38 = vld [vmem:[#allocation8 + $0x1378] sm:$0xff]  ;;  %v11156_v11 = vcombine.low %v5649_v39, %v5653_v37  ;;  %v11158_v6 = vcombine.low %v5650_v34, %v5654_v55  ;;  %v6228_v34 = vld [vmem:[#allocation8 + $0x1468] sm:$0xff]  ;;  %v6231_v55 = vld [vmem:[#allocation8 + $0x1480] sm:$0xff] }
 0xa48   :  { %v11165_v61 = vcombine.high %v5657_v3, %v5661_v1  ;;  %v11167_v48 = vcombine.high %v5658_v7, %v5662_v38 }
 0xa64   :  { %v5515_v21 = vpop.f32.mrb[84].mxu1  ;;  %v5556_v62 = vpop.f32.mrb[88].mxu0 }
 0xa65   :  { %v13160_v30 = vadd.f32 %v5515_v21, %v13107_v28  ;;  %v13163_v57 = vadd.f32 %v5556_v62, %v13110_v8  ;;  %v5517_v23 = vpop.f32.mrb[85].mxu1  ;;  %v5558_v44 = vpop.f32.mrb[89].mxu0  ;;  %v5625_v8 = vld [vmem:[#allocation8 + $0x1250] sm:$0xff] }
 0xa66   :  { %v13166_v5 = vadd.f32 %v5517_v23, %v13113_v26  ;;  %v13169_v58 = vadd.f32 %v5558_v44, %v13116_v19  ;;  %v5519_v40 = vpop.f32.mrb[86].mxu1  ;;  %v5560_v41 = vpop.f32.mrb[90].mxu0  ;;  %v11133_v19 = vcombine.high %v5625_v8, %v5629_v45  ;;  %v11132_v27 = vcombine.low %v5625_v8, %v5629_v45  ;;  %v5665_v21 = vld [vmem:[#allocation8 + $0x1390] sm:$0xff]  ;;  %v5666_v23 = vld [vmem:[#allocation8 + $0x1398] sm:$0xff] }
 0xa67   :  { %v5520_v42 = vpop.f32.mrb[87].mxu1  ;;  %v5561_v25 = vpop.f32.mrb[91].mxu0  ;;  %v5669_v62 = vld [vmem:[#allocation8 + $0x13b0] sm:$0xff]  ;;  %v5670_v44 = vld [vmem:[#allocation8 + $0x13b8] sm:$0xff]  ;;  %v11164_v40 = vcombine.low %v5657_v3, %v5661_v1  ;;  %v11166_v41 = vcombine.low %v5658_v7, %v5662_v38 }
 0xa68   :  { %v11173_v42 = vcombine.high %v5665_v21, %v5669_v62  ;;  %v11175_v25 = vcombine.high %v5666_v23, %v5670_v44  ;;  %v5678_v8 = vld [vmem:[#allocation8 + $0x13f8] sm:$0xff]  ;;  %v11174_v45 = vcombine.low %v5666_v23, %v5670_v44 }
 0xa84   :  { %v5607_v43 = vpop.f32.mrb[88].mxu1 }
 0xa85   :  { %v5608_v28 = vadd.f32 %v13171_v10, %v5607_v43  ;;  %v12063_v29 = vpop.f32.mrb[89].mxu1  ;;  %v5673_v43 = vld [vmem:[#allocation8 + $0x13d0] sm:$0xff] }
 0xa86   :  { %v5610_v24 = vpop.f32.mrb[90].mxu1  ;;  %v5674_v29 = vld [vmem:[#allocation8 + $0x13d8] sm:$0xff] }
 0xa87   :  { %v5613_v26 = vmax.f32 %v5608_v28, 0.0  ;;  %v12064_v15 = vpop.f32.mrb[91].mxu1  ;;  %v5677_v28 = vld [vmem:[#allocation8 + $0x13f0] sm:$0xff]  ;;  %v11172_v24 = vcombine.low %v5665_v21, %v5669_v62  ;;  %v11183_v14 = vcombine.high %v5674_v29, %v5678_v8 }
 0xa88   :  { %v11181_v46 = vcombine.high %v5673_v43, %v5677_v28  ;;  %v11182_v15 = vcombine.low %v5674_v29, %v5678_v8 }
 0xa89   :  { %v13174_v16 = vpack.c.bf16 %v5613_v26, %v5613_v26  ;;  %v11180_v26 = vcombine.low %v5673_v43, %v5677_v28 }
 0xa8b   :  { %6032 = vmatmul.mubr.bf16.vlgmr.msra.gmra.mrb[92].mxu0 %v13174_v16  ;;  %6073 = vmatmul.mubr.bf16.vlgmr.msra.gmra.mrb[92].mxu1 %v13174_v16 }
 0xa8c   :  { %6082 = vmatpush1.bf16.msra.mxu0 %v11124_v35  ;;  %6123 = vmatpush1.bf16.msra.mxu1 %v11126_v49  ;;  %v11150_v35 = vcombine.low %v5642_v12, %v5646_v32  ;;  %v11157_v49 = vcombine.high %v5649_v39, %v5653_v37  ;;  %v6220_v32 = vld [vmem:[#allocation8 + $0x1428] sm:$0xff] }
 0xa8d   :  { %6083 = vmatprep.subr.bf16.mxu0 %v11133_v19  ;;  %6124 = vmatprep.subr.bf16.mxu1 %v11135_v13  ;;  %v13183_v19 = vld [vmem:[#allocation5] sm:$0xff]   ;;  %v13190_v13 = vld [vmem:[#allocation5 + $0x8] sm:$0xff]  }
 0xa8e   :  { %6113 = vmatprep.mubr.bf16.mxu0 %v12516_v20  ;;  %6154 = vmatprep.mubr.bf16.mxu1 %v12516_v20  ;;  %v6224_v37 = vld [vmem:[#allocation8 + $0x1448] sm:$0xff] }
 0xa8f   :  { %v11194_v1 = vcombine.low %v6224_v37, %v6228_v34 }
 0xa90   :  { %6084 = vmatpush1.bf16.msra.mxu0 %v11132_v27  ;;  %6125 = vmatpush1.bf16.msra.mxu1 %v11134_v56  ;;  %v13214_v27 = vld [vmem:[#allocation5 + $0x38] sm:$0xff]   ;;  %v6172_v56 = vld [vmem:[#allocation2 + $0x28] sm:$0xf] }
 0xa91   :  { %6085 = vmatprep.subr.bf16.mxu0 %v11141_v31  ;;  %6126 = vmatprep.subr.bf16.mxu1 %v11143_v50  ;;  %v6215_v31 = vld [vmem:[#allocation8 + $0x1400] sm:$0xff] }
 0xa92   :  { %v6219_v50 = vld [vmem:[#allocation8 + $0x1420] sm:$0xff] }
 0xa93   :  { %v11184_v53 = vcombine.low %v6215_v31, %v6219_v50  ;;  %v11185_v12 = vcombine.high %v6215_v31, %v6219_v50  ;;  %v6263_v50 = vld [vmem:[#allocation8 + $0x1580] sm:$0xff] }
 0xa94   :  { %6086 = vmatpush1.bf16.msra.mxu0 %v11140_v52  ;;  %6127 = vmatpush1.bf16.msra.mxu1 %v11142_v54  ;;  %v6223_v52 = vld [vmem:[#allocation8 + $0x1440] sm:$0xff] }
 0xa95   :  { %6087 = vmatprep.subr.bf16.mxu0 %v11149_v22  ;;  %6128 = vmatprep.subr.bf16.mxu1 %v11151_v33  ;;  %v6227_v54 = vld [vmem:[#allocation8 + $0x1460] sm:$0xff]  ;;  %v11186_v22 = vcombine.low %v6216_v47, %v6220_v32  ;;  %v11187_v33 = vcombine.high %v6216_v47, %v6220_v32 }
 0xa96   :  { %v11193_v39 = vcombine.high %v6223_v52, %v6227_v54  ;;  %v11192_v3 = vcombine.low %v6223_v52, %v6227_v54  ;;  %v6267_v47 = vld [vmem:[#allocation8 + $0x15a0] sm:$0xff] }
 0xa97   :  { %v11233_v54 = vcombine.high %v6263_v50, %v6267_v47 }
 0xa98   :  { %6088 = vmatpush1.bf16.msra.mxu0 %v11148_v36  ;;  %6129 = vmatpush1.bf16.msra.mxu1 %v11150_v35  ;;  %v11195_v36 = vcombine.high %v6224_v37, %v6228_v34  ;;  %v6235_v35 = vld [vmem:[#allocation8 + $0x14a0] sm:$0xff] }
 0xa99   :  { %6089 = vmatprep.subr.bf16.mxu0 %v11157_v49  ;;  %6130 = vmatprep.subr.bf16.mxu1 %v11159_v2  ;;  %v6232_v49 = vld [vmem:[#allocation8 + $0x1488] sm:$0xff]  ;;  %v11201_v7 = vcombine.high %v6231_v55, %v6235_v35  ;;  %v11200_v21 = vcombine.low %v6231_v55, %v6235_v35  ;;  %v6271_v37 = vld [vmem:[#allocation8 + $0x15c0] sm:$0xff] }
 0xa9a   :  { %v6236_v2 = vld [vmem:[#allocation8 + $0x14a8] sm:$0xff]  ;;  %v6275_v34 = vld [vmem:[#allocation8 + $0x15e0] sm:$0xff] }
 0xa9b   :  { %v11203_v38 = vcombine.high %v6232_v49, %v6236_v2  ;;  %v11202_v62 = vcombine.low %v6232_v49, %v6236_v2  ;;  %v6272_v55 = vld [vmem:[#allocation8 + $0x15c8] sm:$0xff]  ;;  %v11240_v49 = vcombine.low %v6271_v37, %v6275_v34 }
 0xa9c   :  { %6090 = vmatpush1.bf16.msra.mxu0 %v11156_v11  ;;  %6131 = vmatpush1.bf16.msra.mxu1 %v11158_v6  ;;  %v6239_v11 = vld [vmem:[#allocation8 + $0x14c0] sm:$0xff]  ;;  %v6276_v35 = vld [vmem:[#allocation8 + $0x15e8] sm:$0xff] }
 0xa9d   :  { %6091 = vmatprep.subr.bf16.mxu0 %v11165_v61  ;;  %6132 = vmatprep.subr.bf16.mxu1 %v11167_v48  ;;  %v6243_v6 = vld [vmem:[#allocation8 + $0x14e0] sm:$0xff]  ;;  %v6240_v61 = vld [vmem:[#allocation8 + $0x14c8] sm:$0xff]  ;;  %v11242_v2 = vcombine.low %v6272_v55, %v6276_v35 }
 0xa9e   :  { %v6244_v48 = vld [vmem:[#allocation8 + $0x14e8] sm:$0xff]  ;;  %v11209_v23 = vcombine.high %v6239_v11, %v6243_v6  ;;  %v11208_v43 = vcombine.low %v6239_v11, %v6243_v6  ;;  %v6222_v6 = vld [vmem:[#allocation8 + $0x1438] sm:$0xff] }
 0xa9f   :  { %v11211_v44 = vcombine.high %v6240_v61, %v6244_v48  ;;  %v11210_v28 = vcombine.low %v6240_v61, %v6244_v48 }
 0xaa0   :  { %6092 = vmatpush1.bf16.msra.mxu0 %v11164_v40  ;;  %6133 = vmatpush1.bf16.msra.mxu1 %v11166_v41  ;;  %v6247_v40 = vld [vmem:[#allocation8 + $0x1500] sm:$0xff] }
 0xaa1   :  { %6093 = vmatprep.subr.bf16.mxu0 %v11173_v42  ;;  %6134 = vmatprep.subr.bf16.mxu1 %v11175_v25  ;;  %v6251_v41 = vld [vmem:[#allocation8 + $0x1520] sm:$0xff]  ;;  %v6248_v42 = vld [vmem:[#allocation8 + $0x1508] sm:$0xff] }
 0xaa2   :  { %v6252_v25 = vld [vmem:[#allocation8 + $0x1528] sm:$0xff]  ;;  %v11217_v29 = vcombine.high %v6247_v40, %v6251_v41 }
 0xaa3   :  { %v11219_v8 = vcombine.high %v6248_v42, %v6252_v25 }
 0xaa4   :  { %6094 = vmatpush1.bf16.msra.mxu0 %v11172_v24  ;;  %6135 = vmatpush1.bf16.msra.mxu1 %v11174_v45  ;;  %v6255_v24 = vld [vmem:[#allocation8 + $0x1540] sm:$0xff] }
 0xaa5   :  { %6095 = vmatprep.subr.bf16.mxu0 %v11181_v46  ;;  %6136 = vmatprep.subr.bf16.mxu1 %v11183_v14  ;;  %v6259_v45 = vld [vmem:[#allocation8 + $0x1560] sm:$0xff]  ;;  %v6256_v46 = vld [vmem:[#allocation8 + $0x1548] sm:$0xff] }
 0xaa6   :  { %v6260_v14 = vld [vmem:[#allocation8 + $0x1568] sm:$0xff]  ;;  %v11224_v32 = vcombine.low %v6255_v24, %v6259_v45 }
 0xaa7   :  { %v11227_v31 = vcombine.high %v6256_v46, %v6260_v14  ;;  %v11226_v52 = vcombine.low %v6256_v46, %v6260_v14 }
 0xaa8   :  { %6096 = vmatpush1.bf16.msra.mxu0 %v11180_v26  ;;  %6137 = vmatpush1.bf16.msra.mxu1 %v11182_v15  ;;  %v11216_v26 = vcombine.low %v6247_v40, %v6251_v41  ;;  %v11218_v15 = vcombine.low %v6248_v42, %v6252_v25 }
 0xaa9   :  { %12065 = vmatprep.subr.bf16.mxu0 %v12514_v0  ;;  %6599 = vmatprep.subr.bf16.mxu1 %v11185_v12  ;;  %v6268_v12 = vld [vmem:[#allocation8 + $0x15a8] sm:$0xff] }
 0xaab   :  { %6114 = vmatmul.mubr.bf16.vlgmr.msra.gmra.mrb[96].mxu0 %v13174_v16  ;;  %6155 = vmatmul.mubr.bf16.vlgmr.msra.gmra.mrb[96].mxu1 %v13174_v16  ;;  %v13198_v16 = vld [vmem:[#allocation5 + $0x18] sm:$0xff]  }
 0xaac   :  { %12066 = vmatpush3.bf16.msra.mxu0 %v13183_v19  ;;  %12081 = vmatprep.mubr.msk.bf16.mxu0 %vm12515_vm0, %v12514_v0 }
 0xaad   :  { %12067 = vmatprep.subr.bf16.mxu0 %v12514_v0  ;;  %6631 = vmatprep.mubr.bf16.mxu1 %v12516_v20 }
 0xaae   :  { %6600 = vmatpush1.bf16.msra.mxu1 %v11184_v53  ;;  %v6264_v53 = vld [vmem:[#allocation8 + $0x1588] sm:$0xff] }
 0xaaf   :  { %6601 = vmatprep.subr.bf16.mxu1 %v11193_v39  ;;  %v11234_v39 = vcombine.low %v6264_v53, %v6268_v12 }
 0xab0   :  { %12068 = vmatpush3.bf16.msra.mxu0 %v13190_v13 }
 0xab1   :  { %12069 = vmatprep.subr.bf16.mxu0 %v12514_v0 }
 0xab2   :  { %6602 = vmatpush1.bf16.msra.mxu1 %v11192_v3  ;;  %v11243_v3 = vcombine.high %v6272_v55, %v6276_v35  ;;  %v6234_v55 = vld [vmem:[#allocation8 + $0x1498] sm:$0xff] }
 0xab3   :  { %6603 = vmatprep.subr.bf16.mxu1 %v11201_v7  ;;  %v6221_v7 = vld [vmem:[#allocation8 + $0x1430] sm:$0xff] }
 0xab4   :  { %12070 = vmatpush3.bf16.msra.mxu0 %v13194_v17 }
 0xab5   :  { %12071 = vmatprep.subr.bf16.mxu0 %v12514_v0 }
 0xab6   :  { %6604 = vmatpush1.bf16.msra.mxu1 %v11200_v21 }
 0xab7   :  { %6605 = vmatprep.subr.bf16.mxu1 %v11209_v23 }
 0xab8   :  { %12072 = vmatpush3.bf16.msra.mxu0 %v13198_v16 }
 0xab9   :  { %12073 = vmatprep.subr.bf16.mxu0 %v12514_v0 }
 0xaba   :  { %6606 = vmatpush1.bf16.msra.mxu1 %v11208_v43 }
 0xabb   :  { %6607 = vmatprep.subr.bf16.mxu1 %v11217_v29 }
 0xabc   :  { %12074 = vmatpush3.bf16.msra.mxu0 %v13202_v9 }
 0xabd   :  { %12075 = vmatprep.subr.bf16.mxu0 %v12514_v0 }
 0xabe   :  { %6608 = vmatpush1.bf16.msra.mxu1 %v11216_v26 }
 0xac0   :  { %12076 = vmatpush3.bf16.msra.mxu0 %v13206_v18 }
 0xac1   :  { %12077 = vmatprep.subr.bf16.mxu0 %v12514_v0 }
 0xac4   :  { %12078 = vmatpush3.bf16.msra.mxu0 %v13210_v51 }
 0xac5   :  { %12079 = vmatprep.subr.bf16.mxu0 %v12514_v0 }
 0xac8   :  { %12080 = vmatpush3.bf16.msra.mxu0 %v13214_v27 }
 0xac9   :  { %6640 = vmatprep.subr.bf16.mxu0 %v11187_v33  ;;  %v11232_v33 = vcombine.low %v6263_v50, %v6267_v47 }
 0xacb   :  { %12082 = vmatmul.mubr.bf16.vlgmr.msra.gmra.mrb[100].mxu0 %v6172_v56  ;;  %v11225_v56 = vcombine.high %v6255_v24, %v6259_v45 }
 0xacc   :  { %6672 = vmatprep.mubr.bf16.mxu0 %v12516_v20  ;;  %6641 = vmatpush1.bf16.msra.mxu0 %v11186_v22  ;;  %v11235_v22 = vcombine.high %v6264_v53, %v6268_v12  ;;  %v6225_v12 = vld [vmem:[#allocation8 + $0x1450] sm:$0xff] }
 0xacd   :  { %6642 = vmatprep.subr.bf16.mxu0 %v11195_v36  ;;  %6609 = vmatprep.subr.bf16.mxu1 %v11225_v56  ;;  %v11241_v36 = vcombine.high %v6271_v37, %v6275_v34  ;;  %v6233_v37 = vld [vmem:[#allocation8 + $0x1490] sm:$0xff] }
 0xace   :  { %6610 = vmatpush1.bf16.msra.mxu1 %v11224_v32  ;;  %v6237_v34 = vld [vmem:[#allocation8 + $0x14b0] sm:$0xff] }
 0xacf   :  { %6611 = vmatprep.subr.bf16.mxu1 %v11233_v54  ;;  %v6230_v54 = vld [vmem:[#allocation8 + $0x1478] sm:$0xff] }
 0xad0   :  { %6643 = vmatpush1.bf16.msra.mxu0 %v11194_v1  ;;  %v6217_v1 = vld [vmem:[#allocation8 + $0x1410] sm:$0xff] }
 0xad1   :  { %6644 = vmatprep.subr.bf16.mxu0 %v11203_v38  ;;  %v6218_v38 = vld [vmem:[#allocation8 + $0x1418] sm:$0xff]  ;;  %v11189_v11 = vcombine.high %v6217_v1, %v6221_v7  ;;  %v11188_v61 = vcombine.low %v6217_v1, %v6221_v7  ;;  %v6241_v1 = vld [vmem:[#allocation8 + $0x14d0] sm:$0xff] }
 0xad2   :  { %6612 = vmatpush1.bf16.msra.mxu1 %v11232_v33  ;;  %v11190_v48 = vcombine.low %v6218_v38, %v6222_v6  ;;  %v11191_v21 = vcombine.high %v6218_v38, %v6222_v6  ;;  %v6245_v7 = vld [vmem:[#allocation8 + $0x14f0] sm:$0xff]  ;;  %v6242_v38 = vld [vmem:[#allocation8 + $0x14d8] sm:$0xff]  ;;  %v11204_v6 = vcombine.low %v6233_v37, %v6237_v34 }
 0xad3   :  { %6613 = vmatprep.subr.bf16.mxu1 %v11241_v36  ;;  %v6238_v36 = vld [vmem:[#allocation8 + $0x14b8] sm:$0xff] }
 0xad4   :  { %6645 = vmatpush1.bf16.msra.mxu0 %v11202_v62 }
 0xad5   :  { %6646 = vmatprep.subr.bf16.mxu0 %v11211_v44 }
 0xad6   :  { %6614 = vmatpush1.bf16.msra.mxu1 %v11240_v49 }
 0xad7   :  { %6681 = vmatprep.subr.bf16.mxu1 %v11189_v11  ;;  %v6246_v11 = vld [vmem:[#allocation8 + $0x14f8] sm:$0xff] }
 0xad8   :  { %6647 = vmatpush1.bf16.msra.mxu0 %v11210_v28 }
 0xad9   :  { %6648 = vmatprep.subr.bf16.mxu0 %v11219_v8 }
 0xadc   :  { %6649 = vmatpush1.bf16.msra.mxu0 %v11218_v15 }
 0xadd   :  { %6650 = vmatprep.subr.bf16.mxu0 %v11227_v31 }
 0xae0   :  { %6651 = vmatpush1.bf16.msra.mxu0 %v11226_v52  ;;  %v6226_v52 = vld [vmem:[#allocation8 + $0x1458] sm:$0xff] }
 0xae1   :  { %6652 = vmatprep.subr.bf16.mxu0 %v11235_v22  ;;  %v11198_v49 = vcombine.low %v6226_v52, %v6230_v54 }
 0xae4   :  { %6653 = vmatpush1.bf16.msra.mxu0 %v11234_v39 }
 0xae5   :  { %6654 = vmatprep.subr.bf16.mxu0 %v11243_v3  ;;  %v11207_v3 = vcombine.high %v6234_v55, %v6238_v36 }
 0xae8   :  { %6655 = vmatpush1.bf16.msra.mxu0 %v11242_v2  ;;  %v11205_v2 = vcombine.high %v6233_v37, %v6237_v34 }
 0xae9   :  { %6722 = vmatprep.subr.bf16.mxu0 %v11191_v21  ;;  %v11206_v21 = vcombine.low %v6234_v55, %v6238_v36 }
 0xb5e   :  { %v6033_v62 = vpop.f32.mrb[92].mxu0  ;;  %v6074_v23 = vpop.f32.mrb[92].mxu1 }
 0xb5f   :  { %v13219_v44 = vadd.f32 %v6033_v62, %v13148_v4  ;;  %v13222_v40 = vadd.f32 %v6074_v23, %v13151_v63  ;;  %v6035_v41 = vpop.f32.mrb[93].mxu0  ;;  %v6076_v42 = vpop.f32.mrb[93].mxu1  ;;  %v6249_v62 = vld [vmem:[#allocation8 + $0x1510] sm:$0xff] }
 0xb60   :  { %v13225_v25 = vadd.f32 %v6035_v41, %v13154_v59  ;;  %v13228_v43 = vadd.f32 %v6076_v42, %v13157_v60  ;;  %v6037_v28 = vpop.f32.mrb[94].mxu0  ;;  %v6078_v29 = vpop.f32.mrb[94].mxu1  ;;  %v6253_v23 = vld [vmem:[#allocation8 + $0x1530] sm:$0xff]  ;;  %v6250_v41 = vld [vmem:[#allocation8 + $0x1518] sm:$0xff] }
 0xb61   :  { %v6038_v8 = vpop.f32.mrb[95].mxu0  ;;  %v6079_v24 = vpop.f32.mrb[95].mxu1  ;;  %v6254_v42 = vld [vmem:[#allocation8 + $0x1538] sm:$0xff]  ;;  %v11212_v28 = vcombine.low %v6241_v1, %v6245_v7  ;;  %v11214_v29 = vcombine.low %v6242_v38, %v6246_v11 }
 0xb62   :  { %v11221_v8 = vcombine.high %v6249_v62, %v6253_v23  ;;  %v11223_v24 = vcombine.high %v6250_v41, %v6254_v42 }
 0xb7e   :  { %v6115_v45 = vpop.f32.mrb[96].mxu0  ;;  %v6156_v46 = vpop.f32.mrb[96].mxu1 }
 0xb7f   :  { %v13231_v4 = vadd.f32 %v6115_v45, %v13160_v30  ;;  %v13234_v63 = vadd.f32 %v6156_v46, %v13163_v57  ;;  %v6117_v14 = vpop.f32.mrb[97].mxu0  ;;  %v6158_v26 = vpop.f32.mrb[97].mxu1  ;;  %v6229_v57 = vld [vmem:[#allocation8 + $0x1470] sm:$0xff] }
 0xb80   :  { %v13237_v59 = vadd.f32 %v6117_v14, %v13166_v5  ;;  %v13240_v60 = vadd.f32 %v6158_v26, %v13169_v58  ;;  %v6119_v15 = vpop.f32.mrb[98].mxu0  ;;  %v6160_v56 = vpop.f32.mrb[98].mxu1  ;;  %v11197_v39 = vcombine.high %v6225_v12, %v6229_v57  ;;  %v11199_v58 = vcombine.high %v6226_v52, %v6230_v54  ;;  %v6257_v45 = vld [vmem:[#allocation8 + $0x1550] sm:$0xff]  ;;  %v6258_v14 = vld [vmem:[#allocation8 + $0x1558] sm:$0xff] }
 0xb81   :  { %v6120_v31 = vpop.f32.mrb[99].mxu0  ;;  %v6161_v50 = vpop.f32.mrb[99].mxu1  ;;  %v11196_v35 = vcombine.low %v6225_v12, %v6229_v57  ;;  %v6261_v46 = vld [vmem:[#allocation8 + $0x1570] sm:$0xff]  ;;  %v6262_v26 = vld [vmem:[#allocation8 + $0x1578] sm:$0xff]  ;;  %v11220_v15 = vcombine.low %v6249_v62, %v6253_v23  ;;  %v11222_v56 = vcombine.low %v6250_v41, %v6254_v42  ;;  %v6824_v23 = vld [vmem:[#allocation8 + $0x1648] sm:$0xff] }
 0xb82   :  { %v11229_v31 = vcombine.high %v6257_v45, %v6261_v46  ;;  %v11231_v50 = vcombine.high %v6258_v14, %v6262_v26  ;;  %v6270_v12 = vld [vmem:[#allocation8 + $0x15b8] sm:$0xff]  ;;  %v11230_v57 = vcombine.low %v6258_v14, %v6262_v26  ;;  %v6828_v41 = vld [vmem:[#allocation8 + $0x1668] sm:$0xff]  ;;  %v6831_v42 = vld [vmem:[#allocation8 + $0x1680] sm:$0xff] }
 0xb9e   :  { %v6207_v47 = vpop.f32.mrb[100].mxu0 }
 0xb9f   :  { %v6208_v53 = vadd.f32 %v13171_v10, %v6207_v47  ;;  %v12083_v30 = vpop.f32.mrb[101].mxu0  ;;  %v6265_v47 = vld [vmem:[#allocation8 + $0x1590] sm:$0xff] }
 0xba0   :  { %v6210_v32 = vpop.f32.mrb[102].mxu0  ;;  %v6266_v30 = vld [vmem:[#allocation8 + $0x1598] sm:$0xff] }
 0xba1   :  { %v6213_v22 = vmax.f32 %v6208_v53, 0.0  ;;  %v12084_v33 = vpop.f32.mrb[103].mxu0  ;;  %v6269_v53 = vld [vmem:[#allocation8 + $0x15b0] sm:$0xff]  ;;  %v11228_v32 = vcombine.low %v6257_v45, %v6261_v46  ;;  %v11239_v54 = vcombine.high %v6266_v30, %v6270_v12  ;;  %v11238_v34 = vcombine.low %v6266_v30, %v6270_v12 }
 0xba2   :  { %v11237_v52 = vcombine.high %v6265_v47, %v6269_v53  ;;  %v6277_v33 = vld [vmem:[#allocation8 + $0x15f0] sm:$0xff]  ;;  %v11236_v37 = vcombine.low %v6265_v47, %v6269_v53  ;;  %v11258_v46 = vcombine.low %v6824_v23, %v6828_v41 }
 0xba3   :  { %v13243_v5 = vpack.c.bf16 %v6213_v22, %v6213_v22  ;;  %v6273_v22 = vld [vmem:[#allocation8 + $0x15d0] sm:$0xff] }
 0xba4   :  { %v11245_v55 = vcombine.high %v6273_v22, %v6277_v33 }
 0xba5   :  { %6632 = vmatmul.mubr.bf16.vlgmr.msra.gmra.mrb[100].mxu1 %v13243_v5  ;;  %6673 = vmatmul.mubr.bf16.vlgmr.msra.gmra.mrb[104].mxu0 %v13243_v5 }
 0xba6   :  { %6682 = vmatpush1.bf16.msra.mxu1 %v11188_v61  ;;  %6723 = vmatpush1.bf16.msra.mxu0 %v11190_v48  ;;  %v11213_v61 = vcombine.high %v6241_v1, %v6245_v7  ;;  %v11215_v48 = vcombine.high %v6242_v38, %v6246_v11  ;;  %v6816_v1 = vld [vmem:[#allocation8 + $0x1608] sm:$0xff] }
 0xba7   :  { %6683 = vmatprep.subr.bf16.mxu1 %v11197_v39  ;;  %6724 = vmatprep.subr.bf16.mxu0 %v11199_v58  ;;  %v6274_v39 = vld [vmem:[#allocation8 + $0x15d8] sm:$0xff]  ;;  %v6820_v11 = vld [vmem:[#allocation8 + $0x1628] sm:$0xff] }
 0xba8   :  { %6713 = vmatprep.mubr.bf16.mxu1 %v12516_v20  ;;  %6754 = vmatprep.mubr.bf16.mxu0 %v12516_v20  ;;  %v6278_v58 = vld [vmem:[#allocation8 + $0x15f8] sm:$0xff] }
 0xba9   :  { %v11247_v36 = vcombine.high %v6274_v39, %v6278_v58 }
 0xbaa   :  { %6684 = vmatpush1.bf16.msra.mxu1 %v11196_v35  ;;  %6725 = vmatpush1.bf16.msra.mxu0 %v11198_v49  ;;  %v11244_v35 = vcombine.low %v6273_v22, %v6277_v33  ;;  %v11246_v49 = vcombine.low %v6274_v39, %v6278_v58 }
 0xbab   :  { %6685 = vmatprep.subr.bf16.mxu1 %v11205_v2  ;;  %6726 = vmatprep.subr.bf16.mxu0 %v11207_v3  ;;  %v6815_v2 = vld [vmem:[#allocation8 + $0x1600] sm:$0xff] }
 0xbac   :  { %v6819_v3 = vld [vmem:[#allocation8 + $0x1620] sm:$0xff] }
 0xbad   :  { %v11248_v7 = vcombine.low %v6815_v2, %v6819_v3  ;;  %v11249_v38 = vcombine.high %v6815_v2, %v6819_v3  ;;  %v6863_v3 = vld [vmem:[#allocation8 + $0x1780] sm:$0xff] }
 0xbae   :  { %6686 = vmatpush1.bf16.msra.mxu1 %v11204_v6  ;;  %6727 = vmatpush1.bf16.msra.mxu0 %v11206_v21  ;;  %v6823_v6 = vld [vmem:[#allocation8 + $0x1640] sm:$0xff] }
 0xbaf   :  { %6687 = vmatprep.subr.bf16.mxu1 %v11213_v61  ;;  %6728 = vmatprep.subr.bf16.mxu0 %v11215_v48  ;;  %v6827_v21 = vld [vmem:[#allocation8 + $0x1660] sm:$0xff]  ;;  %v11250_v61 = vcombine.low %v6816_v1, %v6820_v11  ;;  %v11251_v48 = vcombine.high %v6816_v1, %v6820_v11 }
 0xbb0   :  { %v11257_v62 = vcombine.high %v6823_v6, %v6827_v21  ;;  %v11256_v45 = vcombine.low %v6823_v6, %v6827_v21  ;;  %v6867_v1 = vld [vmem:[#allocation8 + $0x17a0] sm:$0xff] }
 0xbb1   :  { %v11297_v21 = vcombine.high %v6863_v3, %v6867_v1 }
 0xbb2   :  { %6688 = vmatpush1.bf16.msra.mxu1 %v11212_v28  ;;  %6729 = vmatpush1.bf16.msra.mxu0 %v11214_v29  ;;  %v11259_v28 = vcombine.high %v6824_v23, %v6828_v41  ;;  %v6835_v29 = vld [vmem:[#allocation8 + $0x16a0] sm:$0xff] }
 0xbb3   :  { %6689 = vmatprep.subr.bf16.mxu1 %v11221_v8  ;;  %6730 = vmatprep.subr.bf16.mxu0 %v11223_v24  ;;  %v6832_v8 = vld [vmem:[#allocation8 + $0x1688] sm:$0xff]  ;;  %v11265_v14 = vcombine.high %v6831_v42, %v6835_v29  ;;  %v11264_v47 = vcombine.low %v6831_v42, %v6835_v29  ;;  %v6871_v23 = vld [vmem:[#allocation8 + $0x17c0] sm:$0xff] }
 0xbb4   :  { %v6836_v24 = vld [vmem:[#allocation8 + $0x16a8] sm:$0xff]  ;;  %v6875_v41 = vld [vmem:[#allocation8 + $0x17e0] sm:$0xff] }
 0xbb5   :  { %v11267_v26 = vcombine.high %v6832_v8, %v6836_v24  ;;  %v11266_v53 = vcombine.low %v6832_v8, %v6836_v24  ;;  %v6872_v42 = vld [vmem:[#allocation8 + $0x17c8] sm:$0xff]  ;;  %v11304_v8 = vcombine.low %v6871_v23, %v6875_v41 }
 0xbb6   :  { %6690 = vmatpush1.bf16.msra.mxu1 %v11220_v15  ;;  %6731 = vmatpush1.bf16.msra.mxu0 %v11222_v56  ;;  %v6839_v15 = vld [vmem:[#allocation8 + $0x16c0] sm:$0xff]  ;;  %v6876_v29 = vld [vmem:[#allocation8 + $0x17e8] sm:$0xff] }
 0xbb7   :  { %6691 = vmatprep.subr.bf16.mxu1 %v11229_v31  ;;  %6732 = vmatprep.subr.bf16.mxu0 %v11231_v50  ;;  %v6843_v56 = vld [vmem:[#allocation8 + $0x16e0] sm:$0xff]  ;;  %v6840_v31 = vld [vmem:[#allocation8 + $0x16c8] sm:$0xff]  ;;  %v11306_v24 = vcombine.low %v6872_v42, %v6876_v29 }
 0xbb8   :  { %v6844_v50 = vld [vmem:[#allocation8 + $0x16e8] sm:$0xff]  ;;  %v11273_v30 = vcombine.high %v6839_v15, %v6843_v56  ;;  %v11272_v22 = vcombine.low %v6839_v15, %v6843_v56  ;;  %v6822_v56 = vld [vmem:[#allocation8 + $0x1638] sm:$0xff] }
 0xbb9   :  { %v11275_v12 = vcombine.high %v6840_v31, %v6844_v50  ;;  %v11274_v33 = vcombine.low %v6840_v31, %v6844_v50 }
 0xbba   :  { %6692 = vmatpush1.bf16.msra.mxu1 %v11228_v32  ;;  %6733 = vmatpush1.bf16.msra.mxu0 %v11230_v57  ;;  %v6847_v32 = vld [vmem:[#allocation8 + $0x1700] sm:$0xff] }
 0xbbb   :  { %6693 = vmatprep.subr.bf16.mxu1 %v11237_v52  ;;  %6734 = vmatprep.subr.bf16.mxu0 %v11239_v54  ;;  %v6851_v57 = vld [vmem:[#allocation8 + $0x1720] sm:$0xff]  ;;  %v6848_v52 = vld [vmem:[#allocation8 + $0x1708] sm:$0xff] }
 0xbbc   :  { %v6852_v54 = vld [vmem:[#allocation8 + $0x1728] sm:$0xff]  ;;  %v11281_v39 = vcombine.high %v6847_v32, %v6851_v57 }
 0xbbd   :  { %v11283_v58 = vcombine.high %v6848_v52, %v6852_v54 }
 0xbbe   :  { %6694 = vmatpush1.bf16.msra.mxu1 %v11236_v37  ;;  %6735 = vmatpush1.bf16.msra.mxu0 %v11238_v34  ;;  %v6855_v37 = vld [vmem:[#allocation8 + $0x1740] sm:$0xff] }
 0xbbf   :  { %6695 = vmatprep.subr.bf16.mxu1 %v11245_v55  ;;  %6736 = vmatprep.subr.bf16.mxu0 %v11247_v36  ;;  %v6859_v34 = vld [vmem:[#allocation8 + $0x1760] sm:$0xff]  ;;  %v6856_v55 = vld [vmem:[#allocation8 + $0x1748] sm:$0xff] }
 0xbc0   :  { %v6860_v36 = vld [vmem:[#allocation8 + $0x1768] sm:$0xff]  ;;  %v11288_v11 = vcombine.low %v6855_v37, %v6859_v34 }
 0xbc1   :  { %v11291_v2 = vcombine.high %v6856_v55, %v6860_v36  ;;  %v11290_v6 = vcombine.low %v6856_v55, %v6860_v36 }
 0xbc2   :  { %6696 = vmatpush1.bf16.msra.mxu1 %v11244_v35  ;;  %6737 = vmatpush1.bf16.msra.mxu0 %v11246_v49  ;;  %v11280_v35 = vcombine.low %v6847_v32, %v6851_v57  ;;  %v11282_v49 = vcombine.low %v6848_v52, %v6852_v54 }
 0xbc3   :  { %12085 = vmatprep.subr.bf16.mxu1 %v12514_v0  ;;  %7199 = vmatprep.subr.bf16.mxu0 %v11249_v38  ;;  %v6868_v38 = vld [vmem:[#allocation8 + $0x17a8] sm:$0xff] }
 0xbc5   :  { %6714 = vmatmul.mubr.bf16.vlgmr.msra.gmra.mrb[104].mxu1 %v13243_v5  ;;  %6755 = vmatmul.mubr.bf16.vlgmr.msra.gmra.mrb[108].mxu0 %v13243_v5  ;;  %v6772_v5 = vld [vmem:[#allocation2 + $0x2c] sm:$0xf] }
 0xbc6   :  { %12086 = vmatpush3.bf16.msra.mxu1 %v13183_v19  ;;  %12101 = vmatprep.mubr.msk.bf16.mxu1 %vm12515_vm0, %v12514_v0 }
 0xbc7   :  { %12087 = vmatprep.subr.bf16.mxu1 %v12514_v0  ;;  %7231 = vmatprep.mubr.bf16.mxu0 %v12516_v20 }
 0xbc8   :  { %7200 = vmatpush1.bf16.msra.mxu0 %v11248_v7  ;;  %v6864_v7 = vld [vmem:[#allocation8 + $0x1788] sm:$0xff] }
 0xbc9   :  { %7201 = vmatprep.subr.bf16.mxu0 %v11257_v62  ;;  %v11298_v62 = vcombine.low %v6864_v7, %v6868_v38 }
 0xbca   :  { %12088 = vmatpush3.bf16.msra.mxu1 %v13190_v13 }
 0xbcb   :  { %12089 = vmatprep.subr.bf16.mxu1 %v12514_v0 }
 0xbcc   :  { %7202 = vmatpush1.bf16.msra.mxu0 %v11256_v45  ;;  %v11307_v45 = vcombine.high %v6872_v42, %v6876_v29  ;;  %v6834_v42 = vld [vmem:[#allocation8 + $0x1698] sm:$0xff] }
 0xbcd   :  { %7203 = vmatprep.subr.bf16.mxu0 %v11265_v14  ;;  %v6821_v14 = vld [vmem:[#allocation8 + $0x1630] sm:$0xff] }
 0xbce   :  { %12090 = vmatpush3.bf16.msra.mxu1 %v13194_v17 }
 0xbcf   :  { %12091 = vmatprep.subr.bf16.mxu1 %v12514_v0 }
 0xbd0   :  { %7204 = vmatpush1.bf16.msra.mxu0 %v11264_v47 }
 0xbd1   :  { %7205 = vmatprep.subr.bf16.mxu0 %v11273_v30 }
 0xbd2   :  { %12092 = vmatpush3.bf16.msra.mxu1 %v13198_v16 }
 0xbd3   :  { %12093 = vmatprep.subr.bf16.mxu1 %v12514_v0 }
 0xbd4   :  { %7206 = vmatpush1.bf16.msra.mxu0 %v11272_v22 }
 0xbd5   :  { %7207 = vmatprep.subr.bf16.mxu0 %v11281_v39 }
 0xbd6   :  { %12094 = vmatpush3.bf16.msra.mxu1 %v13202_v9 }
 0xbd7   :  { %12095 = vmatprep.subr.bf16.mxu1 %v12514_v0 }
 0xbd8   :  { %7208 = vmatpush1.bf16.msra.mxu0 %v11280_v35 }
 0xbda   :  { %12096 = vmatpush3.bf16.msra.mxu1 %v13206_v18 }
 0xbdb   :  { %12097 = vmatprep.subr.bf16.mxu1 %v12514_v0 }
 0xbde   :  { %12098 = vmatpush3.bf16.msra.mxu1 %v13210_v51 }
 0xbdf   :  { %12099 = vmatprep.subr.bf16.mxu1 %v12514_v0 }
 0xbe2   :  { %12100 = vmatpush3.bf16.msra.mxu1 %v13214_v27 }
 0xbe3   :  { %7240 = vmatprep.subr.bf16.mxu1 %v11251_v48  ;;  %v11296_v48 = vcombine.low %v6863_v3, %v6867_v1 }
 0xbe5   :  { %12102 = vmatmul.mubr.bf16.vlgmr.msra.gmra.mrb[108].mxu1 %v6772_v5  ;;  %v11289_v5 = vcombine.high %v6855_v37, %v6859_v34 }
 0xbe6   :  { %7272 = vmatprep.mubr.bf16.mxu1 %v12516_v20  ;;  %7241 = vmatpush1.bf16.msra.mxu1 %v11250_v61  ;;  %v11299_v61 = vcombine.high %v6864_v7, %v6868_v38  ;;  %v6825_v38 = vld [vmem:[#allocation8 + $0x1650] sm:$0xff] }
 0xbe7   :  { %7242 = vmatprep.subr.bf16.mxu1 %v11259_v28  ;;  %7209 = vmatprep.subr.bf16.mxu0 %v11289_v5  ;;  %v11305_v28 = vcombine.high %v6871_v23, %v6875_v41  ;;  %v6833_v23 = vld [vmem:[#allocation8 + $0x1690] sm:$0xff] }
 0xbe8   :  { %7210 = vmatpush1.bf16.msra.mxu0 %v11288_v11  ;;  %v6837_v41 = vld [vmem:[#allocation8 + $0x16b0] sm:$0xff] }
 0xbe9   :  { %7211 = vmatprep.subr.bf16.mxu0 %v11297_v21  ;;  %v6830_v21 = vld [vmem:[#allocation8 + $0x1678] sm:$0xff] }
 0xbea   :  { %7243 = vmatpush1.bf16.msra.mxu1 %v11258_v46  ;;  %v6817_v46 = vld [vmem:[#allocation8 + $0x1610] sm:$0xff] }
 0xbeb   :  { %7244 = vmatprep.subr.bf16.mxu1 %v11267_v26  ;;  %v6818_v26 = vld [vmem:[#allocation8 + $0x1618] sm:$0xff]  ;;  %v11253_v15 = vcombine.high %v6817_v46, %v6821_v14  ;;  %v11252_v31 = vcombine.low %v6817_v46, %v6821_v14  ;;  %v6845_v46 = vld [vmem:[#allocation8 + $0x16f0] sm:$0xff] }
 0xbec   :  { %7212 = vmatpush1.bf16.msra.mxu0 %v11296_v48  ;;  %v11254_v50 = vcombine.low %v6818_v26, %v6822_v56  ;;  %v11255_v47 = vcombine.high %v6818_v26, %v6822_v56  ;;  %v6842_v14 = vld [vmem:[#allocation8 + $0x16d8] sm:$0xff] }
 0xbed   :  { %7213 = vmatprep.subr.bf16.mxu0 %v11305_v28  ;;  %v6838_v28 = vld [vmem:[#allocation8 + $0x16b8] sm:$0xff] }
 0xbee   :  { %7245 = vmatpush1.bf16.msra.mxu1 %v11266_v53  ;;  %v6846_v26 = vld [vmem:[#allocation8 + $0x16f8] sm:$0xff]  ;;  %v11270_v56 = vcombine.low %v6834_v42, %v6838_v28 }
 0xbef   :  { %7246 = vmatprep.subr.bf16.mxu1 %v11275_v12 }
 0xbf0   :  { %7214 = vmatpush1.bf16.msra.mxu0 %v11304_v8  ;;  %v11269_v8 = vcombine.high %v6833_v23, %v6837_v41 }
 0xbf1   :  { %7281 = vmatprep.subr.bf16.mxu0 %v11253_v15  ;;  %v11268_v15 = vcombine.low %v6833_v23, %v6837_v41 }
 0xbf2   :  { %7247 = vmatpush1.bf16.msra.mxu1 %v11274_v33 }
 0xbf3   :  { %7248 = vmatprep.subr.bf16.mxu1 %v11283_v58 }
 0xbf6   :  { %7249 = vmatpush1.bf16.msra.mxu1 %v11282_v49 }
 0xbf7   :  { %7250 = vmatprep.subr.bf16.mxu1 %v11291_v2 }
 0xbfa   :  { %7251 = vmatpush1.bf16.msra.mxu1 %v11290_v6  ;;  %v6826_v6 = vld [vmem:[#allocation8 + $0x1658] sm:$0xff] }
 0xbfb   :  { %7252 = vmatprep.subr.bf16.mxu1 %v11299_v61  ;;  %v11262_v29 = vcombine.low %v6826_v6, %v6830_v21 }
 0xbfe   :  { %7253 = vmatpush1.bf16.msra.mxu1 %v11298_v62 }
 0xbff   :  { %7254 = vmatprep.subr.bf16.mxu1 %v11307_v45  ;;  %v6841_v45 = vld [vmem:[#allocation8 + $0x16d0] sm:$0xff] }
 0xc02   :  { %7255 = vmatpush1.bf16.msra.mxu1 %v11306_v24  ;;  %v11271_v24 = vcombine.high %v6834_v42, %v6838_v28 }
 0xc03   :  { %7322 = vmatprep.subr.bf16.mxu1 %v11255_v47  ;;  %v6849_v47 = vld [vmem:[#allocation8 + $0x1710] sm:$0xff] }
 0xc78   :  { %v6633_v53 = vpop.f32.mrb[100].mxu1  ;;  %v6674_v30 = vpop.f32.mrb[104].mxu0 }
 0xc79   :  { %v13272_v12 = vadd.f32 %v6633_v53, %v13219_v44  ;;  %v13275_v32 = vadd.f32 %v6674_v30, %v13222_v40  ;;  %v6635_v57 = vpop.f32.mrb[101].mxu1  ;;  %v6676_v52 = vpop.f32.mrb[105].mxu0  ;;  %v6853_v53 = vld [vmem:[#allocation8 + $0x1730] sm:$0xff]  ;;  %v6850_v30 = vld [vmem:[#allocation8 + $0x1718] sm:$0xff] }
 0xc7a   :  { %v13278_v54 = vadd.f32 %v6635_v57, %v13225_v25  ;;  %v13281_v22 = vadd.f32 %v6676_v52, %v13228_v43  ;;  %v6637_v33 = vpop.f32.mrb[102].mxu1  ;;  %v6678_v39 = vpop.f32.mrb[106].mxu0  ;;  %v6854_v57 = vld [vmem:[#allocation8 + $0x1738] sm:$0xff]  ;;  %v11276_v52 = vcombine.low %v6841_v45, %v6845_v46 }
 0xc7b   :  { %v6638_v58 = vpop.f32.mrb[103].mxu1  ;;  %v6679_v37 = vpop.f32.mrb[107].mxu0  ;;  %v11278_v33 = vcombine.low %v6842_v14, %v6846_v26  ;;  %v11285_v39 = vcombine.high %v6849_v47, %v6853_v53 }
 0xc7c   :  { %v11287_v58 = vcombine.high %v6850_v30, %v6854_v57  ;;  %v6857_v37 = vld [vmem:[#allocation8 + $0x1750] sm:$0xff] }
 0xc98   :  { %v6715_v34 = vpop.f32.mrb[104].mxu1  ;;  %v6756_v55 = vpop.f32.mrb[108].mxu0 }
 0xc99   :  { %v13284_v44 = vadd.f32 %v6715_v34, %v13231_v4  ;;  %v13287_v40 = vadd.f32 %v6756_v55, %v13234_v63  ;;  %v6717_v36 = vpop.f32.mrb[105].mxu1  ;;  %v6758_v35 = vpop.f32.mrb[109].mxu0  ;;  %v6829_v63 = vld [vmem:[#allocation8 + $0x1670] sm:$0xff]  ;;  %v6858_v55 = vld [vmem:[#allocation8 + $0x1758] sm:$0xff] }
 0xc9a   :  { %v13290_v25 = vadd.f32 %v6717_v36, %v13237_v59  ;;  %v13293_v43 = vadd.f32 %v6758_v35, %v13240_v60  ;;  %v6719_v49 = vpop.f32.mrb[106].mxu1  ;;  %v6760_v5 = vpop.f32.mrb[110].mxu0  ;;  %v11261_v62 = vcombine.high %v6825_v38, %v6829_v63  ;;  %v11263_v60 = vcombine.high %v6826_v6, %v6830_v21  ;;  %v6861_v34 = vld [vmem:[#allocation8 + $0x1770] sm:$0xff]  ;;  %v6862_v36 = vld [vmem:[#allocation8 + $0x1778] sm:$0xff] }
 0xc9b   :  { %v6720_v2 = vpop.f32.mrb[107].mxu1  ;;  %v6761_v3 = vpop.f32.mrb[111].mxu0  ;;  %v11284_v35 = vcombine.low %v6849_v47, %v6853_v53  ;;  %v11286_v49 = vcombine.low %v6850_v30, %v6854_v57  ;;  %v11293_v5 = vcombine.high %v6857_v37, %v6861_v34  ;;  %v6873_v21 = vld [vmem:[#allocation8 + $0x17d0] sm:$0xff]  ;;  %v7439_v57 = vld [vmem:[#allocation8 + $0x18c0] sm:$0xff] }
 0xc9c   :  { %v11295_v2 = vcombine.high %v6858_v55, %v6862_v36  ;;  %v6865_v3 = vld [vmem:[#allocation8 + $0x1790] sm:$0xff] }
 0xcb8   :  { %v6807_v1 = vpop.f32.mrb[108].mxu1 }
 0xcb9   :  { %v6808_v7 = vadd.f32 %v13171_v10, %v6807_v1  ;;  %v12103_v4 = vpop.f32.mrb[109].mxu1  ;;  %v11260_v10 = vcombine.low %v6825_v38, %v6829_v63  ;;  %v6869_v1 = vld [vmem:[#allocation8 + $0x17b0] sm:$0xff]  ;;  %v11292_v38 = vcombine.low %v6857_v37, %v6861_v34 }
 0xcba   :  { %v6810_v11 = vpop.f32.mrb[110].mxu1  ;;  %v6870_v4 = vld [vmem:[#allocation8 + $0x17b8] sm:$0xff]  ;;  %v11301_v63 = vcombine.high %v6865_v3, %v6869_v1 }
 0xcbb   :  { %v6813_v61 = vmax.f32 %v6808_v7, 0.0  ;;  %v12104_v48 = vpop.f32.mrb[111].mxu1  ;;  %v6866_v7 = vld [vmem:[#allocation8 + $0x1798] sm:$0xff]  ;;  %v11294_v11 = vcombine.low %v6858_v55, %v6862_v36  ;;  %v7447_v36 = vld [vmem:[#allocation8 + $0x1900] sm:$0xff] }
 0xcbc   :  { %v11303_v6 = vcombine.high %v6866_v7, %v6870_v4  ;;  %v6874_v48 = vld [vmem:[#allocation8 + $0x17d8] sm:$0xff]  ;;  %v11302_v23 = vcombine.low %v6866_v7, %v6870_v4  ;;  %v7455_v4 = vld [vmem:[#allocation8 + $0x1940] sm:$0xff] }
 0xcbd   :  { %v13296_v59 = vpack.c.bf16 %v6813_v61, %v6813_v61  ;;  %v6877_v61 = vld [vmem:[#allocation8 + $0x17f0] sm:$0xff] }
 0xcbe   :  { %v11309_v41 = vcombine.high %v6873_v21, %v6877_v61  ;;  %v11308_v28 = vcombine.low %v6873_v21, %v6877_v61 }
 0xcbf   :  { %7232 = vmatmul.mubr.bf16.vlgmr.msra.gmra.mrb[112].mxu0 %v13296_v59  ;;  %7273 = vmatmul.mubr.bf16.vlgmr.msra.gmra.mrb[112].mxu1 %v13296_v59 }
 0xcc0   :  { %7282 = vmatpush1.bf16.msra.mxu0 %v11252_v31  ;;  %7323 = vmatpush1.bf16.msra.mxu1 %v11254_v50  ;;  %v11277_v31 = vcombine.high %v6841_v45, %v6845_v46  ;;  %v11279_v50 = vcombine.high %v6842_v14, %v6846_v26  ;;  %v7428_v14 = vld [vmem:[#allocation8 + $0x1868] sm:$0xff]  ;;  %v7431_v26 = vld [vmem:[#allocation8 + $0x1880] sm:$0xff] }
 0xcc1   :  { %7283 = vmatprep.subr.bf16.mxu0 %v11261_v62  ;;  %7324 = vmatprep.subr.bf16.mxu1 %v11263_v60  ;;  %v6878_v62 = vld [vmem:[#allocation8 + $0x17f8] sm:$0xff]  ;;  %v11300_v60 = vcombine.low %v6865_v3, %v6869_v1 }
 0xcc2   :  { %7313 = vmatprep.mubr.bf16.mxu0 %v12516_v20  ;;  %7354 = vmatprep.mubr.bf16.mxu1 %v12516_v20  ;;  %v11311_v42 = vcombine.high %v6874_v48, %v6878_v62 }
 0xcc4   :  { %7284 = vmatpush1.bf16.msra.mxu0 %v11260_v10  ;;  %7325 = vmatpush1.bf16.msra.mxu1 %v11262_v29  ;;  %v11310_v10 = vcombine.low %v6874_v48, %v6878_v62  ;;  %v7420_v29 = vld [vmem:[#allocation8 + $0x1828] sm:$0xff]  ;;  %v7463_v62 = vld [vmem:[#allocation8 + $0x1980] sm:$0xff] }
 0xcc5   :  { %7285 = vmatprep.subr.bf16.mxu0 %v11269_v8  ;;  %7326 = vmatprep.subr.bf16.mxu1 %v11271_v24  ;;  %v7423_v8 = vld [vmem:[#allocation8 + $0x1840] sm:$0xff] }
 0xcc8   :  { %7286 = vmatpush1.bf16.msra.mxu0 %v11268_v15  ;;  %7327 = vmatpush1.bf16.msra.mxu1 %v11270_v56  ;;  %v7435_v15 = vld [vmem:[#allocation8 + $0x18a0] sm:$0xff]  ;;  %v7432_v56 = vld [vmem:[#allocation8 + $0x1888] sm:$0xff] }
 0xcc9   :  { %7287 = vmatprep.subr.bf16.mxu0 %v11277_v31  ;;  %7328 = vmatprep.subr.bf16.mxu1 %v11279_v50  ;;  %v7436_v31 = vld [vmem:[#allocation8 + $0x18a8] sm:$0xff]  ;;  %v11329_v53 = vcombine.high %v7431_v26, %v7435_v15 }
 0xcca   :  { %v11331_v30 = vcombine.high %v7432_v56, %v7436_v31  ;;  %v11330_v37 = vcombine.low %v7432_v56, %v7436_v31 }
 0xccc   :  { %7288 = vmatpush1.bf16.msra.mxu0 %v11276_v52  ;;  %7329 = vmatpush1.bf16.msra.mxu1 %v11278_v33  ;;  %v7443_v52 = vld [vmem:[#allocation8 + $0x18e0] sm:$0xff]  ;;  %v7440_v33 = vld [vmem:[#allocation8 + $0x18c8] sm:$0xff] }
 0xccd   :  { %7289 = vmatprep.subr.bf16.mxu0 %v11285_v39  ;;  %7330 = vmatprep.subr.bf16.mxu1 %v11287_v58  ;;  %v7444_v39 = vld [vmem:[#allocation8 + $0x18e8] sm:$0xff]  ;;  %v11328_v58 = vcombine.low %v7431_v26, %v7435_v15  ;;  %v11337_v34 = vcombine.high %v7439_v57, %v7443_v52 }
 0xcce   :  { %v11339_v55 = vcombine.high %v7440_v33, %v7444_v39  ;;  %v11338_v3 = vcombine.low %v7440_v33, %v7444_v39 }
 0xcd0   :  { %7290 = vmatpush1.bf16.msra.mxu0 %v11284_v35  ;;  %7331 = vmatpush1.bf16.msra.mxu1 %v11286_v49  ;;  %v7451_v35 = vld [vmem:[#allocation8 + $0x1920] sm:$0xff]  ;;  %v7448_v49 = vld [vmem:[#allocation8 + $0x1908] sm:$0xff] }
 0xcd1   :  { %7291 = vmatprep.subr.bf16.mxu0 %v11293_v5  ;;  %7332 = vmatprep.subr.bf16.mxu1 %v11295_v2  ;;  %v7452_v5 = vld [vmem:[#allocation8 + $0x1928] sm:$0xff]  ;;  %v11336_v2 = vcombine.low %v7439_v57, %v7443_v52  ;;  %v11345_v1 = vcombine.high %v7447_v36, %v7451_v35 }
 0xcd2   :  { %v11347_v7 = vcombine.high %v7448_v49, %v7452_v5  ;;  %v11346_v21 = vcombine.low %v7448_v49, %v7452_v5 }
 0xcd4   :  { %7292 = vmatpush1.bf16.msra.mxu0 %v11292_v38  ;;  %7333 = vmatpush1.bf16.msra.mxu1 %v11294_v11  ;;  %v7459_v38 = vld [vmem:[#allocation8 + $0x1960] sm:$0xff]  ;;  %v7456_v11 = vld [vmem:[#allocation8 + $0x1948] sm:$0xff] }
 0xcd5   :  { %7293 = vmatprep.subr.bf16.mxu0 %v11301_v63  ;;  %7334 = vmatprep.subr.bf16.mxu1 %v11303_v6  ;;  %v7460_v63 = vld [vmem:[#allocation8 + $0x1968] sm:$0xff]  ;;  %v11344_v6 = vcombine.low %v7447_v36, %v7451_v35  ;;  %v11353_v61 = vcombine.high %v7455_v4, %v7459_v38 }
 0xcd6   :  { %v11355_v48 = vcombine.high %v7456_v11, %v7460_v63 }
 0xcd8   :  { %7294 = vmatpush1.bf16.msra.mxu0 %v11300_v60  ;;  %7335 = vmatpush1.bf16.msra.mxu1 %v11302_v23  ;;  %v7467_v60 = vld [vmem:[#allocation8 + $0x19a0] sm:$0xff]  ;;  %v7464_v23 = vld [vmem:[#allocation8 + $0x1988] sm:$0xff] }
 0xcd9   :  { %7295 = vmatprep.subr.bf16.mxu0 %v11309_v41  ;;  %7336 = vmatprep.subr.bf16.mxu1 %v11311_v42  ;;  %v7468_v41 = vld [vmem:[#allocation8 + $0x19a8] sm:$0xff]  ;;  %v11352_v42 = vcombine.low %v7455_v4, %v7459_v38  ;;  %v13348_v38 = vld [vmem:[#allocation7] ss:$0 sm:$0xff] }
 0xcdc   :  { %7296 = vmatpush1.bf16.msra.mxu0 %v11308_v28  ;;  %7337 = vmatpush1.bf16.msra.mxu1 %v11310_v10  ;;  %v11354_v28 = vcombine.low %v7456_v11, %v7460_v63  ;;  %v11361_v10 = vcombine.high %v7463_v62, %v7467_v60 }
 0xcdd   :  { %12105 = vmatprep.subr.bf16.mxu0 %v12514_v0 }
 0xcdf   :  { %7314 = vmatmul.mubr.bf16.vlgmr.msra.gmra.mrb[116].mxu0 %v13296_v59  ;;  %7355 = vmatmul.mubr.bf16.vlgmr.msra.gmra.mrb[116].mxu1 %v13296_v59 }
 0xce0   :  { %12106 = vmatpush3.bf16.msra.mxu0 %v13183_v19  ;;  %12121 = vmatprep.mubr.msk.bf16.mxu0 %vm12515_vm0, %v12514_v0  ;;  %v7372_v19 = vld [vmem:[#allocation2 + $0x30] sm:$0xf] }
 0xce1   :  { %12107 = vmatprep.subr.bf16.mxu0 %v12514_v0  ;;  %7831 = vmatprep.mubr.bf16.mxu1 %v12516_v20 }
 0xce4   :  { %12108 = vmatpush3.bf16.msra.mxu0 %v13190_v13  ;;  %v7415_v13 = vld [vmem:[#allocation8 + $0x1800] sm:$0xff] }
 0xce5   :  { %12109 = vmatprep.subr.bf16.mxu0 %v12514_v0 }
 0xce8   :  { %12110 = vmatpush3.bf16.msra.mxu0 %v13194_v17  ;;  %v7419_v17 = vld [vmem:[#allocation8 + $0x1820] sm:$0xff] }
 0xce9   :  { %12111 = vmatprep.subr.bf16.mxu0 %v12514_v0  ;;  %v11313_v59 = vcombine.high %v7415_v13, %v7419_v17 }
 0xceb   :  { %7799 = vmatprep.subr.bf16.mxu1 %v11313_v59  ;;  %v7472_v59 = vld [vmem:[#allocation8 + $0x19c8] sm:$0xff] }
 0xcec   :  { %12112 = vmatpush3.bf16.msra.mxu0 %v13198_v16  ;;  %v7416_v16 = vld [vmem:[#allocation8 + $0x1808] sm:$0xff] }
 0xced   :  { %12113 = vmatprep.subr.bf16.mxu0 %v12514_v0  ;;  %v11314_v24 = vcombine.low %v7416_v16, %v7420_v29  ;;  %v11315_v45 = vcombine.high %v7416_v16, %v7420_v29  ;;  %v7471_v16 = vld [vmem:[#allocation8 + $0x19c0] sm:$0xff] }
 0xcf0   :  { %12114 = vmatpush3.bf16.msra.mxu0 %v13202_v9  ;;  %v11312_v9 = vcombine.low %v7415_v13, %v7419_v17  ;;  %v11360_v13 = vcombine.low %v7463_v62, %v7467_v60  ;;  %v11362_v17 = vcombine.low %v7464_v23, %v7468_v41 }
 0xcf1   :  { %12115 = vmatprep.subr.bf16.mxu0 %v12514_v0 }
 0xcf2   :  { %7800 = vmatpush1.bf16.msra.mxu1 %v11312_v9  ;;  %v7475_v9 = vld [vmem:[#allocation8 + $0x19e0] sm:$0xff] }
 0xcf3   :  { %v11369_v29 = vcombine.high %v7471_v16, %v7475_v9 }
 0xcf4   :  { %12116 = vmatpush3.bf16.msra.mxu0 %v13206_v18  ;;  %v7427_v18 = vld [vmem:[#allocation8 + $0x1860] sm:$0xff] }
 0xcf5   :  { %12117 = vmatprep.subr.bf16.mxu0 %v12514_v0  ;;  %v11321_v46 = vcombine.high %v7423_v8, %v7427_v18  ;;  %v11320_v50 = vcombine.low %v7423_v8, %v7427_v18  ;;  %v7476_v8 = vld [vmem:[#allocation8 + $0x19e8] sm:$0xff]  ;;  %v11368_v18 = vcombine.low %v7471_v16, %v7475_v9  ;;  %v7441_v16 = vld [vmem:[#allocation8 + $0x18d0] sm:$0xff] }
 0xcf6   :  { %v7445_v9 = vld [vmem:[#allocation8 + $0x18f0] sm:$0xff] }
 0xcf7   :  { %7801 = vmatprep.subr.bf16.mxu1 %v11321_v46  ;;  %v7417_v46 = vld [vmem:[#allocation8 + $0x1810] sm:$0xff] }
 0xcf8   :  { %12118 = vmatpush3.bf16.msra.mxu0 %v13210_v51  ;;  %v7424_v51 = vld [vmem:[#allocation8 + $0x1848] sm:$0xff]  ;;  %7802 = vmatpush1.bf16.msra.mxu1 %v11320_v50 }
 0xcf9   :  { %12119 = vmatprep.subr.bf16.mxu0 %v12514_v0  ;;  %v11322_v47 = vcombine.low %v7424_v51, %v7428_v14  ;;  %7803 = vmatprep.subr.bf16.mxu1 %v11329_v53 }
 0xcfc   :  { %12120 = vmatpush3.bf16.msra.mxu0 %v13214_v27  ;;  %v11323_v27 = vcombine.high %v7424_v51, %v7428_v14  ;;  %7804 = vmatpush1.bf16.msra.mxu1 %v11328_v58  ;;  %v7421_v51 = vld [vmem:[#allocation8 + $0x1830] sm:$0xff]  ;;  %v7418_v14 = vld [vmem:[#allocation8 + $0x1818] sm:$0xff] }
 0xcfd   :  { %7840 = vmatprep.subr.bf16.mxu0 %v11315_v45  ;;  %7805 = vmatprep.subr.bf16.mxu1 %v11337_v34  ;;  %v11371_v45 = vcombine.high %v7472_v59, %v7476_v8  ;;  %v11317_v26 = vcombine.high %v7417_v46, %v7421_v51  ;;  %v11316_v15 = vcombine.low %v7417_v46, %v7421_v51  ;;  %v7449_v46 = vld [vmem:[#allocation8 + $0x1910] sm:$0xff] }
 0xcfe   :  { %v7453_v51 = vld [vmem:[#allocation8 + $0x1930] sm:$0xff] }
 0xcff   :  { %12122 = vmatmul.mubr.bf16.vlgmr.msra.gmra.mrb[120].mxu0 %v7372_v19  ;;  %v11363_v19 = vcombine.high %v7464_v23, %v7468_v41  ;;  %v7433_v23 = vld [vmem:[#allocation8 + $0x1890] sm:$0xff] }
 0xd00   :  { %7872 = vmatprep.mubr.bf16.mxu0 %v12516_v20  ;;  %7841 = vmatpush1.bf16.msra.mxu0 %v11314_v24  ;;  %v11370_v24 = vcombine.low %v7472_v59, %v7476_v8  ;;  %v7437_v41 = vld [vmem:[#allocation8 + $0x18b0] sm:$0xff]  ;;  %v7442_v59 = vld [vmem:[#allocation8 + $0x18d8] sm:$0xff] }
 0xd01   :  { %7842 = vmatprep.subr.bf16.mxu0 %v11323_v27  ;;  %7806 = vmatpush1.bf16.msra.mxu1 %v11336_v2  ;;  %v7422_v27 = vld [vmem:[#allocation8 + $0x1838] sm:$0xff]  ;;  %v11332_v8 = vcombine.low %v7433_v23, %v7437_v41 }
 0xd02   :  { %7807 = vmatprep.subr.bf16.mxu1 %v11345_v1  ;;  %v11318_v56 = vcombine.low %v7418_v14, %v7422_v27  ;;  %v11319_v31 = vcombine.high %v7418_v14, %v7422_v27  ;;  %v7450_v14 = vld [vmem:[#allocation8 + $0x1918] sm:$0xff]  ;;  %v11340_v27 = vcombine.low %v7441_v16, %v7445_v9 }
 0xd04   :  { %7843 = vmatpush1.bf16.msra.mxu0 %v11322_v47 }
 0xd05   :  { %7844 = vmatprep.subr.bf16.mxu0 %v11331_v30  ;;  %7808 = vmatpush1.bf16.msra.mxu1 %v11344_v6  ;;  %v7429_v6 = vld [vmem:[#allocation8 + $0x1870] sm:$0xff] }
 0xd06   :  { %7809 = vmatprep.subr.bf16.mxu1 %v11353_v61  ;;  %v7430_v61 = vld [vmem:[#allocation8 + $0x1878] sm:$0xff] }
 0xd08   :  { %7845 = vmatpush1.bf16.msra.mxu0 %v11330_v37 }
 0xd09   :  { %7846 = vmatprep.subr.bf16.mxu0 %v11339_v55  ;;  %7810 = vmatpush1.bf16.msra.mxu1 %v11352_v42  ;;  %v7434_v42 = vld [vmem:[#allocation8 + $0x1898] sm:$0xff] }
 0xd0a   :  { %7811 = vmatprep.subr.bf16.mxu1 %v11361_v10 }
 0xd0c   :  { %7847 = vmatpush1.bf16.msra.mxu0 %v11338_v3 }
 0xd0d   :  { %7848 = vmatprep.subr.bf16.mxu0 %v11347_v7  ;;  %7812 = vmatpush1.bf16.msra.mxu1 %v11360_v13  ;;  %v11333_v13 = vcombine.high %v7433_v23, %v7437_v41  ;;  %v13371_v23 = vld [vmem:[#allocation5 + $0x10] sm:$0xff]   ;;  %v13379_v41 = vld [vmem:[#allocation5 + $0x20] sm:$0xff]  }
 0xd0e   :  { %7813 = vmatprep.subr.bf16.mxu1 %v11369_v29  ;;  %v7446_v29 = vld [vmem:[#allocation8 + $0x18f8] sm:$0xff] }
 0xd10   :  { %7849 = vmatpush1.bf16.msra.mxu0 %v11346_v21  ;;  %v7426_v21 = vld [vmem:[#allocation8 + $0x1858] sm:$0xff] }
 0xd11   :  { %7850 = vmatprep.subr.bf16.mxu0 %v11355_v48  ;;  %7814 = vmatpush1.bf16.msra.mxu1 %v11368_v18  ;;  %v11327_v60 = vcombine.high %v7426_v21, %v7430_v61 }
 0xd12   :  { %7881 = vmatprep.subr.bf16.mxu1 %v11317_v26  ;;  %v7454_v26 = vld [vmem:[#allocation8 + $0x1938] sm:$0xff] }
 0xd14   :  { %7851 = vmatpush1.bf16.msra.mxu0 %v11354_v28  ;;  %v7438_v28 = vld [vmem:[#allocation8 + $0x18b8] sm:$0xff] }
 0xd15   :  { %7852 = vmatprep.subr.bf16.mxu0 %v11363_v19  ;;  %v11326_v19 = vcombine.low %v7426_v21, %v7430_v61  ;;  %v11334_v18 = vcombine.low %v7434_v42, %v7438_v28 }
 0xd18   :  { %7853 = vmatpush1.bf16.msra.mxu0 %v11362_v17  ;;  %v11335_v17 = vcombine.high %v7434_v42, %v7438_v28  ;;  %v13383_v42 = vld [vmem:[#allocation5 + $0x28] sm:$0xff]   ;;  %v13387_v28 = vld [vmem:[#allocation5 + $0x30] sm:$0xff]  }
 0xd19   :  { %7854 = vmatprep.subr.bf16.mxu0 %v11371_v45  ;;  %v11343_v45 = vcombine.high %v7442_v59, %v7446_v29 }
 0xd1c   :  { %7855 = vmatpush1.bf16.msra.mxu0 %v11370_v24  ;;  %v11341_v24 = vcombine.high %v7441_v16, %v7445_v9  ;;  %v8016_v16 = vld [vmem:[#allocation8 + $0x1a08] sm:$0xff] }
 0xd1d   :  { %7922 = vmatprep.subr.bf16.mxu0 %v11319_v31  ;;  %v11351_v31 = vcombine.high %v7450_v14, %v7454_v26 }
 0xd92   :  { %v7233_v50 = vpop.f32.mrb[112].mxu0  ;;  %v7274_v47 = vpop.f32.mrb[112].mxu1 }
 0xd93   :  { %v13325_v53 = vadd.f32 %v7233_v50, %v13272_v12  ;;  %v13328_v30 = vadd.f32 %v7274_v47, %v13275_v32  ;;  %v7235_v57 = vpop.f32.mrb[113].mxu0  ;;  %v7276_v52 = vpop.f32.mrb[113].mxu1  ;;  %v7457_v50 = vld [vmem:[#allocation8 + $0x1950] sm:$0xff] }
 0xd94   :  { %v13331_v33 = vadd.f32 %v7235_v57, %v13278_v54  ;;  %v13334_v39 = vadd.f32 %v7276_v52, %v13281_v22  ;;  %v7237_v58 = vpop.f32.mrb[114].mxu0  ;;  %v7278_v37 = vpop.f32.mrb[114].mxu1  ;;  %v7461_v47 = vld [vmem:[#allocation8 + $0x1970] sm:$0xff]  ;;  %v7458_v57 = vld [vmem:[#allocation8 + $0x1958] sm:$0xff] }
 0xd95   :  { %v7238_v34 = vpop.f32.mrb[115].mxu0  ;;  %v7279_v55 = vpop.f32.mrb[115].mxu1  ;;  %v7462_v52 = vld [vmem:[#allocation8 + $0x1978] sm:$0xff]  ;;  %v11348_v58 = vcombine.low %v7449_v46, %v7453_v51  ;;  %v11350_v37 = vcombine.low %v7450_v14, %v7454_v26  ;;  %v8028_v14 = vld [vmem:[#allocation8 + $0x1a68] sm:$0xff]  ;;  %v8031_v26 = vld [vmem:[#allocation8 + $0x1a80] sm:$0xff] }
 0xd96   :  { %v11357_v34 = vcombine.high %v7457_v50, %v7461_v47  ;;  %v11359_v55 = vcombine.high %v7458_v57, %v7462_v52 }
 0xdb2   :  { %v7315_v36 = vpop.f32.mrb[116].mxu0  ;;  %v7356_v35 = vpop.f32.mrb[116].mxu1 }
 0xdb3   :  { %v13337_v12 = vadd.f32 %v7315_v36, %v13284_v44  ;;  %v13340_v32 = vadd.f32 %v7356_v35, %v13287_v40  ;;  %v7317_v49 = vpop.f32.mrb[117].mxu0  ;;  %v7358_v5 = vpop.f32.mrb[117].mxu1  ;;  %v7425_v40 = vld [vmem:[#allocation8 + $0x1850] sm:$0xff] }
 0xdb4   :  { %v13343_v54 = vadd.f32 %v7317_v49, %v13290_v25  ;;  %v13346_v22 = vadd.f32 %v7358_v5, %v13293_v43  ;;  %v7319_v2 = vpop.f32.mrb[118].mxu0  ;;  %v7360_v3 = vpop.f32.mrb[118].mxu1  ;;  %v11325_v43 = vcombine.high %v7425_v40, %v7429_v6  ;;  %v11324_v10 = vcombine.low %v7425_v40, %v7429_v6  ;;  %v7465_v36 = vld [vmem:[#allocation8 + $0x1990] sm:$0xff]  ;;  %v7466_v49 = vld [vmem:[#allocation8 + $0x1998] sm:$0xff] }
 0xdb5   :  { %v7320_v1 = vpop.f32.mrb[119].mxu0  ;;  %v7361_v7 = vpop.f32.mrb[119].mxu1  ;;  %v7469_v35 = vld [vmem:[#allocation8 + $0x19b0] sm:$0xff]  ;;  %v7470_v5 = vld [vmem:[#allocation8 + $0x19b8] sm:$0xff]  ;;  %v11356_v2 = vcombine.low %v7457_v50, %v7461_v47  ;;  %v11358_v3 = vcombine.low %v7458_v57, %v7462_v52 }
 0xdb6   :  { %v11365_v1 = vcombine.high %v7465_v36, %v7469_v35  ;;  %v11367_v7 = vcombine.high %v7466_v49, %v7470_v5  ;;  %v7478_v40 = vld [vmem:[#allocation8 + $0x19f8] sm:$0xff]  ;;  %v11366_v6 = vcombine.low %v7466_v49, %v7470_v5 }
 0xdd2   :  { %v7407_v4 = vpop.f32.mrb[120].mxu0 }
 0xdd3   :  { %v7408_v44 = vadd.f32 %v13348_v38, %v7407_v4  ;;  %v12123_v11 = vpop.f32.mrb[121].mxu0  ;;  %v7473_v4 = vld [vmem:[#allocation8 + $0x19d0] sm:$0xff] }
 0xdd4   :  { %v7410_v63 = vpop.f32.mrb[122].mxu0  ;;  %v7474_v11 = vld [vmem:[#allocation8 + $0x19d8] sm:$0xff] }
 0xdd5   :  { %v7413_v25 = vmax.f32 %v7408_v44, 0.0  ;;  %v12124_v48 = vpop.f32.mrb[123].mxu0  ;;  %v7477_v44 = vld [vmem:[#allocation8 + $0x19f0] sm:$0xff]  ;;  %v11364_v63 = vcombine.low %v7465_v36, %v7469_v35  ;;  %v11375_v61 = vcombine.high %v7474_v11, %v7478_v40 }
 0xdd6   :  { %v11373_v21 = vcombine.high %v7473_v4, %v7477_v44  ;;  %v11374_v48 = vcombine.low %v7474_v11, %v7478_v40 }
 0xdd7   :  { %v13351_v62 = vpack.c.bf16 %v7413_v25, %v7413_v25  ;;  %v11372_v25 = vcombine.low %v7473_v4, %v7477_v44 }
 0xdd9   :  { %7832 = vmatmul.mubr.bf16.vlgmr.msra.gmra.mrb[120].mxu1 %v13351_v62  ;;  %7873 = vmatmul.mubr.bf16.vlgmr.msra.gmra.mrb[124].mxu0 %v13351_v62 }
 0xdda   :  { %7882 = vmatpush1.bf16.msra.mxu1 %v11316_v15  ;;  %7923 = vmatpush1.bf16.msra.mxu0 %v11318_v56  ;;  %v11342_v15 = vcombine.low %v7442_v59, %v7446_v29  ;;  %v11349_v56 = vcombine.high %v7449_v46, %v7453_v51  ;;  %v8020_v29 = vld [vmem:[#allocation8 + $0x1a28] sm:$0xff] }
 0xddb   :  { %7883 = vmatprep.subr.bf16.mxu1 %v11325_v43  ;;  %7924 = vmatprep.subr.bf16.mxu0 %v11327_v60  ;;  %v13360_v43 = vld [vmem:[#allocation5] sm:$0xff]   ;;  %v13367_v60 = vld [vmem:[#allocation5 + $0x8] sm:$0xff]  }
 0xddc   :  { %7913 = vmatprep.mubr.bf16.mxu1 %v12516_v20  ;;  %7954 = vmatprep.mubr.bf16.mxu0 %v12516_v20  ;;  %v8024_v51 = vld [vmem:[#allocation8 + $0x1a48] sm:$0xff] }
 0xddd   :  { %v11386_v47 = vcombine.low %v8024_v51, %v8028_v14 }
 0xdde   :  { %7884 = vmatpush1.bf16.msra.mxu1 %v11324_v10  ;;  %7925 = vmatpush1.bf16.msra.mxu0 %v11326_v19  ;;  %v13391_v10 = vld [vmem:[#allocation5 + $0x38] sm:$0xff]   ;;  %v7972_v19 = vld [vmem:[#allocation2 + $0x34] sm:$0xf] }
 0xddf   :  { %7885 = vmatprep.subr.bf16.mxu1 %v11333_v13  ;;  %7926 = vmatprep.subr.bf16.mxu0 %v11335_v17  ;;  %v8015_v13 = vld [vmem:[#allocation8 + $0x1a00] sm:$0xff] }
 0xde0   :  { %v8019_v17 = vld [vmem:[#allocation8 + $0x1a20] sm:$0xff] }
 0xde1   :  { %v11376_v9 = vcombine.low %v8015_v13, %v8019_v17  ;;  %v11377_v59 = vcombine.high %v8015_v13, %v8019_v17  ;;  %v8063_v17 = vld [vmem:[#allocation8 + $0x1b80] sm:$0xff] }
 0xde2   :  { %7886 = vmatpush1.bf16.msra.mxu1 %v11332_v8  ;;  %7927 = vmatpush1.bf16.msra.mxu0 %v11334_v18  ;;  %v8023_v8 = vld [vmem:[#allocation8 + $0x1a40] sm:$0xff] }
 0xde3   :  { %7887 = vmatprep.subr.bf16.mxu1 %v11341_v24  ;;  %7928 = vmatprep.subr.bf16.mxu0 %v11343_v45  ;;  %v8027_v18 = vld [vmem:[#allocation8 + $0x1a60] sm:$0xff]  ;;  %v11378_v24 = vcombine.low %v8016_v16, %v8020_v29  ;;  %v11379_v45 = vcombine.high %v8016_v16, %v8020_v29 }
 0xde4   :  { %v11385_v46 = vcombine.high %v8023_v8, %v8027_v18  ;;  %v11384_v50 = vcombine.low %v8023_v8, %v8027_v18  ;;  %v8067_v16 = vld [vmem:[#allocation8 + $0x1ba0] sm:$0xff] }
 0xde5   :  { %v11425_v18 = vcombine.high %v8063_v17, %v8067_v16 }
 0xde6   :  { %7888 = vmatpush1.bf16.msra.mxu1 %v11340_v27  ;;  %7929 = vmatpush1.bf16.msra.mxu0 %v11342_v15  ;;  %v11387_v27 = vcombine.high %v8024_v51, %v8028_v14  ;;  %v8035_v15 = vld [vmem:[#allocation8 + $0x1aa0] sm:$0xff] }
 0xde7   :  { %7889 = vmatprep.subr.bf16.mxu1 %v11349_v56  ;;  %7930 = vmatprep.subr.bf16.mxu0 %v11351_v31  ;;  %v8032_v56 = vld [vmem:[#allocation8 + $0x1a88] sm:$0xff]  ;;  %v11393_v57 = vcombine.high %v8031_v26, %v8035_v15  ;;  %v11392_v36 = vcombine.low %v8031_v26, %v8035_v15  ;;  %v8071_v51 = vld [vmem:[#allocation8 + $0x1bc0] sm:$0xff] }
 0xde8   :  { %v8036_v31 = vld [vmem:[#allocation8 + $0x1aa8] sm:$0xff]  ;;  %v8075_v14 = vld [vmem:[#allocation8 + $0x1be0] sm:$0xff] }
 0xde9   :  { %v11395_v52 = vcombine.high %v8032_v56, %v8036_v31  ;;  %v11394_v35 = vcombine.low %v8032_v56, %v8036_v31  ;;  %v8072_v26 = vld [vmem:[#allocation8 + $0x1bc8] sm:$0xff]  ;;  %v11432_v56 = vcombine.low %v8071_v51, %v8075_v14 }
 0xdea   :  { %7890 = vmatpush1.bf16.msra.mxu1 %v11348_v58  ;;  %7931 = vmatpush1.bf16.msra.mxu0 %v11350_v37  ;;  %v8039_v58 = vld [vmem:[#allocation8 + $0x1ac0] sm:$0xff]  ;;  %v8076_v15 = vld [vmem:[#allocation8 + $0x1be8] sm:$0xff] }
 0xdeb   :  { %7891 = vmatprep.subr.bf16.mxu1 %v11357_v34  ;;  %7932 = vmatprep.subr.bf16.mxu0 %v11359_v55  ;;  %v8043_v37 = vld [vmem:[#allocation8 + $0x1ae0] sm:$0xff]  ;;  %v8040_v34 = vld [vmem:[#allocation8 + $0x1ac8] sm:$0xff]  ;;  %v11434_v31 = vcombine.low %v8072_v26, %v8076_v15 }
 0xdec   :  { %v8044_v55 = vld [vmem:[#allocation8 + $0x1ae8] sm:$0xff]  ;;  %v11401_v49 = vcombine.high %v8039_v58, %v8043_v37  ;;  %v11400_v4 = vcombine.low %v8039_v58, %v8043_v37  ;;  %v8022_v37 = vld [vmem:[#allocation8 + $0x1a38] sm:$0xff] }
 0xded   :  { %v11403_v5 = vcombine.high %v8040_v34, %v8044_v55  ;;  %v11402_v44 = vcombine.low %v8040_v34, %v8044_v55 }
 0xdee   :  { %7892 = vmatpush1.bf16.msra.mxu1 %v11356_v2  ;;  %7933 = vmatpush1.bf16.msra.mxu0 %v11358_v3  ;;  %v8047_v2 = vld [vmem:[#allocation8 + $0x1b00] sm:$0xff] }
 0xdef   :  { %7893 = vmatprep.subr.bf16.mxu1 %v11365_v1  ;;  %7934 = vmatprep.subr.bf16.mxu0 %v11367_v7  ;;  %v8051_v3 = vld [vmem:[#allocation8 + $0x1b20] sm:$0xff]  ;;  %v8048_v1 = vld [vmem:[#allocation8 + $0x1b08] sm:$0xff] }
 0xdf0   :  { %v8052_v7 = vld [vmem:[#allocation8 + $0x1b28] sm:$0xff]  ;;  %v11409_v11 = vcombine.high %v8047_v2, %v8051_v3 }
 0xdf1   :  { %v11411_v40 = vcombine.high %v8048_v1, %v8052_v7 }
 0xdf2   :  { %7894 = vmatpush1.bf16.msra.mxu1 %v11364_v63  ;;  %7935 = vmatpush1.bf16.msra.mxu0 %v11366_v6  ;;  %v8055_v63 = vld [vmem:[#allocation8 + $0x1b40] sm:$0xff] }
 0xdf3   :  { %7895 = vmatprep.subr.bf16.mxu1 %v11373_v21  ;;  %7936 = vmatprep.subr.bf16.mxu0 %v11375_v61  ;;  %v8059_v6 = vld [vmem:[#allocation8 + $0x1b60] sm:$0xff]  ;;  %v8056_v21 = vld [vmem:[#allocation8 + $0x1b48] sm:$0xff] }
 0xdf4   :  { %v8060_v61 = vld [vmem:[#allocation8 + $0x1b68] sm:$0xff]  ;;  %v11416_v29 = vcombine.low %v8055_v63, %v8059_v6 }
 0xdf5   :  { %v11419_v13 = vcombine.high %v8056_v21, %v8060_v61  ;;  %v11418_v8 = vcombine.low %v8056_v21, %v8060_v61 }
 0xdf6   :  { %7896 = vmatpush1.bf16.msra.mxu1 %v11372_v25  ;;  %7937 = vmatpush1.bf16.msra.mxu0 %v11374_v48  ;;  %v11408_v25 = vcombine.low %v8047_v2, %v8051_v3  ;;  %v11410_v48 = vcombine.low %v8048_v1, %v8052_v7 }
 0xdf7   :  { %12125 = vmatprep.subr.bf16.mxu1 %v12514_v0  ;;  %8399 = vmatprep.subr.bf16.mxu0 %v11377_v59  ;;  %v8068_v59 = vld [vmem:[#allocation8 + $0x1ba8] sm:$0xff] }
 0xdf9   :  { %7914 = vmatmul.mubr.bf16.vlgmr.msra.gmra.mrb[124].mxu1 %v13351_v62  ;;  %7955 = vmatmul.mubr.bf16.vlgmr.msra.gmra.mrb[128].mxu0 %v13351_v62  ;;  %v13375_v62 = vld [vmem:[#allocation5 + $0x18] sm:$0xff]  }
 0xdfa   :  { %12126 = vmatpush3.bf16.msra.mxu1 %v13360_v43  ;;  %12141 = vmatprep.mubr.msk.bf16.mxu1 %vm12515_vm0, %v12514_v0 }
 0xdfb   :  { %12127 = vmatprep.subr.bf16.mxu1 %v12514_v0  ;;  %8431 = vmatprep.mubr.bf16.mxu0 %v12516_v20 }
 0xdfc   :  { %8400 = vmatpush1.bf16.msra.mxu0 %v11376_v9  ;;  %v8064_v9 = vld [vmem:[#allocation8 + $0x1b88] sm:$0xff] }
 0xdfd   :  { %8401 = vmatprep.subr.bf16.mxu0 %v11385_v46  ;;  %v11426_v46 = vcombine.low %v8064_v9, %v8068_v59 }
 0xdfe   :  { %12128 = vmatpush3.bf16.msra.mxu1 %v13367_v60 }
 0xdff   :  { %12129 = vmatprep.subr.bf16.mxu1 %v12514_v0 }
 0xe00   :  { %8402 = vmatpush1.bf16.msra.mxu0 %v11384_v50  ;;  %v11435_v50 = vcombine.high %v8072_v26, %v8076_v15  ;;  %v8034_v26 = vld [vmem:[#allocation8 + $0x1a98] sm:$0xff] }
 0xe01   :  { %8403 = vmatprep.subr.bf16.mxu0 %v11393_v57  ;;  %v8021_v57 = vld [vmem:[#allocation8 + $0x1a30] sm:$0xff] }
 0xe02   :  { %12130 = vmatpush3.bf16.msra.mxu1 %v13371_v23 }
 0xe03   :  { %12131 = vmatprep.subr.bf16.mxu1 %v12514_v0 }
 0xe04   :  { %8404 = vmatpush1.bf16.msra.mxu0 %v11392_v36 }
 0xe05   :  { %8405 = vmatprep.subr.bf16.mxu0 %v11401_v49 }
 0xe06   :  { %12132 = vmatpush3.bf16.msra.mxu1 %v13375_v62 }
 0xe07   :  { %12133 = vmatprep.subr.bf16.mxu1 %v12514_v0 }
 0xe08   :  { %8406 = vmatpush1.bf16.msra.mxu0 %v11400_v4 }
 0xe09   :  { %8407 = vmatprep.subr.bf16.mxu0 %v11409_v11 }
 0xe0a   :  { %12134 = vmatpush3.bf16.msra.mxu1 %v13379_v41 }
 0xe0b   :  { %12135 = vmatprep.subr.bf16.mxu1 %v12514_v0 }
 0xe0c   :  { %8408 = vmatpush1.bf16.msra.mxu0 %v11408_v25 }
 0xe0e   :  { %12136 = vmatpush3.bf16.msra.mxu1 %v13383_v42 }
 0xe0f   :  { %12137 = vmatprep.subr.bf16.mxu1 %v12514_v0 }
 0xe12   :  { %12138 = vmatpush3.bf16.msra.mxu1 %v13387_v28 }
 0xe13   :  { %12139 = vmatprep.subr.bf16.mxu1 %v12514_v0 }
 0xe16   :  { %12140 = vmatpush3.bf16.msra.mxu1 %v13391_v10 }
 0xe17   :  { %8440 = vmatprep.subr.bf16.mxu1 %v11379_v45  ;;  %v11424_v45 = vcombine.low %v8063_v17, %v8067_v16 }
 0xe19   :  { %12142 = vmatmul.mubr.bf16.vlgmr.msra.gmra.mrb[128].mxu1 %v7972_v19  ;;  %v11417_v19 = vcombine.high %v8055_v63, %v8059_v6 }
 0xe1a   :  { %8472 = vmatprep.mubr.bf16.mxu1 %v12516_v20  ;;  %8441 = vmatpush1.bf16.msra.mxu1 %v11378_v24  ;;  %v11427_v24 = vcombine.high %v8064_v9, %v8068_v59  ;;  %v8025_v59 = vld [vmem:[#allocation8 + $0x1a50] sm:$0xff] }
 0xe1b   :  { %8442 = vmatprep.subr.bf16.mxu1 %v11387_v27  ;;  %8409 = vmatprep.subr.bf16.mxu0 %v11417_v19  ;;  %v11433_v27 = vcombine.high %v8071_v51, %v8075_v14  ;;  %v8033_v51 = vld [vmem:[#allocation8 + $0x1a90] sm:$0xff] }
 0xe1c   :  { %8410 = vmatpush1.bf16.msra.mxu0 %v11416_v29  ;;  %v8037_v14 = vld [vmem:[#allocation8 + $0x1ab0] sm:$0xff] }
 0xe1d   :  { %8411 = vmatprep.subr.bf16.mxu0 %v11425_v18  ;;  %v8030_v18 = vld [vmem:[#allocation8 + $0x1a78] sm:$0xff] }
 0xe1e   :  { %8443 = vmatpush1.bf16.msra.mxu1 %v11386_v47  ;;  %v8017_v47 = vld [vmem:[#allocation8 + $0x1a10] sm:$0xff] }
 0xe1f   :  { %8444 = vmatprep.subr.bf16.mxu1 %v11395_v52  ;;  %v8018_v52 = vld [vmem:[#allocation8 + $0x1a18] sm:$0xff]  ;;  %v11381_v58 = vcombine.high %v8017_v47, %v8021_v57  ;;  %v11380_v34 = vcombine.low %v8017_v47, %v8021_v57  ;;  %v8041_v47 = vld [vmem:[#allocation8 + $0x1ad0] sm:$0xff] }
 0xe20   :  { %8412 = vmatpush1.bf16.msra.mxu0 %v11424_v45  ;;  %v11382_v55 = vcombine.low %v8018_v52, %v8022_v37  ;;  %v11383_v36 = vcombine.high %v8018_v52, %v8022_v37  ;;  %v8045_v57 = vld [vmem:[#allocation8 + $0x1af0] sm:$0xff]  ;;  %v8042_v52 = vld [vmem:[#allocation8 + $0x1ad8] sm:$0xff]  ;;  %v11396_v37 = vcombine.low %v8033_v51, %v8037_v14 }
 0xe21   :  { %8413 = vmatprep.subr.bf16.mxu0 %v11433_v27  ;;  %v8038_v27 = vld [vmem:[#allocation8 + $0x1ab8] sm:$0xff] }
 0xe22   :  { %8445 = vmatpush1.bf16.msra.mxu1 %v11394_v35 }
 0xe23   :  { %8446 = vmatprep.subr.bf16.mxu1 %v11403_v5 }
 0xe24   :  { %8414 = vmatpush1.bf16.msra.mxu0 %v11432_v56 }
 0xe25   :  { %8481 = vmatprep.subr.bf16.mxu0 %v11381_v58  ;;  %v8046_v58 = vld [vmem:[#allocation8 + $0x1af8] sm:$0xff] }
 0xe26   :  { %8447 = vmatpush1.bf16.msra.mxu1 %v11402_v44 }
 0xe27   :  { %8448 = vmatprep.subr.bf16.mxu1 %v11411_v40 }
 0xe2a   :  { %8449 = vmatpush1.bf16.msra.mxu1 %v11410_v48 }
 0xe2b   :  { %8450 = vmatprep.subr.bf16.mxu1 %v11419_v13 }
 0xe2e   :  { %8451 = vmatpush1.bf16.msra.mxu1 %v11418_v8  ;;  %v8026_v8 = vld [vmem:[#allocation8 + $0x1a58] sm:$0xff] }
 0xe2f   :  { %8452 = vmatprep.subr.bf16.mxu1 %v11427_v24  ;;  %v11390_v56 = vcombine.low %v8026_v8, %v8030_v18 }
 0xe32   :  { %8453 = vmatpush1.bf16.msra.mxu1 %v11426_v46 }
 0xe33   :  { %8454 = vmatprep.subr.bf16.mxu1 %v11435_v50  ;;  %v11399_v50 = vcombine.high %v8034_v26, %v8038_v27 }
 0xe36   :  { %8455 = vmatpush1.bf16.msra.mxu1 %v11434_v31  ;;  %v11397_v31 = vcombine.high %v8033_v51, %v8037_v14 }
 0xe37   :  { %8522 = vmatprep.subr.bf16.mxu1 %v11383_v36  ;;  %v11398_v36 = vcombine.low %v8034_v26, %v8038_v27 }
 0xeac   :  { %v7833_v35 = vpop.f32.mrb[120].mxu1  ;;  %v7874_v49 = vpop.f32.mrb[124].mxu0 }
 0xead   :  { %v13396_v5 = vadd.f32 %v7833_v35, %v13325_v53  ;;  %v13399_v2 = vadd.f32 %v7874_v49, %v13328_v30  ;;  %v7835_v3 = vpop.f32.mrb[121].mxu1  ;;  %v7876_v1 = vpop.f32.mrb[125].mxu0  ;;  %v8049_v35 = vld [vmem:[#allocation8 + $0x1b10] sm:$0xff] }
 0xeae   :  { %v13402_v7 = vadd.f32 %v7835_v3, %v13331_v33  ;;  %v13405_v4 = vadd.f32 %v7876_v1, %v13334_v39  ;;  %v7837_v44 = vpop.f32.mrb[122].mxu1  ;;  %v7878_v11 = vpop.f32.mrb[126].mxu0  ;;  %v8053_v49 = vld [vmem:[#allocation8 + $0x1b30] sm:$0xff]  ;;  %v8050_v3 = vld [vmem:[#allocation8 + $0x1b18] sm:$0xff] }
 0xeaf   :  { %v7838_v40 = vpop.f32.mrb[123].mxu1  ;;  %v7879_v63 = vpop.f32.mrb[127].mxu0  ;;  %v8054_v1 = vld [vmem:[#allocation8 + $0x1b38] sm:$0xff]  ;;  %v11404_v44 = vcombine.low %v8041_v47, %v8045_v57  ;;  %v11406_v11 = vcombine.low %v8042_v52, %v8046_v58 }
 0xeb0   :  { %v11413_v40 = vcombine.high %v8049_v35, %v8053_v49  ;;  %v11415_v63 = vcombine.high %v8050_v3, %v8054_v1 }
 0xecc   :  { %v7915_v6 = vpop.f32.mrb[124].mxu1  ;;  %v7956_v21 = vpop.f32.mrb[128].mxu0 }
 0xecd   :  { %v13408_v53 = vadd.f32 %v7915_v6, %v13337_v12  ;;  %v13411_v30 = vadd.f32 %v7956_v21, %v13340_v32  ;;  %v7917_v61 = vpop.f32.mrb[125].mxu1  ;;  %v7958_v25 = vpop.f32.mrb[129].mxu0  ;;  %v8029_v32 = vld [vmem:[#allocation8 + $0x1a70] sm:$0xff] }
 0xece   :  { %v13414_v33 = vadd.f32 %v7917_v61, %v13343_v54  ;;  %v13417_v39 = vadd.f32 %v7958_v25, %v13346_v22  ;;  %v7919_v48 = vpop.f32.mrb[126].mxu1  ;;  %v7960_v19 = vpop.f32.mrb[130].mxu0  ;;  %v11389_v46 = vcombine.high %v8025_v59, %v8029_v32  ;;  %v11391_v22 = vcombine.high %v8026_v8, %v8030_v18  ;;  %v8057_v6 = vld [vmem:[#allocation8 + $0x1b50] sm:$0xff]  ;;  %v8058_v61 = vld [vmem:[#allocation8 + $0x1b58] sm:$0xff] }
 0xecf   :  { %v7920_v13 = vpop.f32.mrb[127].mxu1  ;;  %v7961_v17 = vpop.f32.mrb[131].mxu0  ;;  %v11388_v15 = vcombine.low %v8025_v59, %v8029_v32  ;;  %v8061_v21 = vld [vmem:[#allocation8 + $0x1b70] sm:$0xff]  ;;  %v8062_v25 = vld [vmem:[#allocation8 + $0x1b78] sm:$0xff]  ;;  %v11412_v48 = vcombine.low %v8049_v35, %v8053_v49  ;;  %v11414_v19 = vcombine.low %v8050_v3, %v8054_v1  ;;  %v8624_v49 = vld [vmem:[#allocation8 + $0x1c48] sm:$0xff] }
 0xed0   :  { %v11421_v13 = vcombine.high %v8057_v6, %v8061_v21  ;;  %v11423_v17 = vcombine.high %v8058_v61, %v8062_v25  ;;  %v8070_v59 = vld [vmem:[#allocation8 + $0x1bb8] sm:$0xff]  ;;  %v11422_v32 = vcombine.low %v8058_v61, %v8062_v25  ;;  %v8628_v3 = vld [vmem:[#allocation8 + $0x1c68] sm:$0xff]  ;;  %v8631_v1 = vld [vmem:[#allocation8 + $0x1c80] sm:$0xff] }
 0xeec   :  { %v8007_v16 = vpop.f32.mrb[128].mxu1 }
 0xeed   :  { %v8008_v9 = vadd.f32 %v13348_v38, %v8007_v16  ;;  %v12143_v12 = vpop.f32.mrb[129].mxu1  ;;  %v8065_v16 = vld [vmem:[#allocation8 + $0x1b90] sm:$0xff] }
 0xeee   :  { %v8010_v29 = vpop.f32.mrb[130].mxu1  ;;  %v8066_v12 = vld [vmem:[#allocation8 + $0x1b98] sm:$0xff] }
 0xeef   :  { %v8013_v24 = vmax.f32 %v8008_v9, 0.0  ;;  %v12144_v45 = vpop.f32.mrb[131].mxu1  ;;  %v8069_v9 = vld [vmem:[#allocation8 + $0x1bb0] sm:$0xff]  ;;  %v11420_v29 = vcombine.low %v8057_v6, %v8061_v21  ;;  %v11431_v18 = vcombine.high %v8066_v12, %v8070_v59  ;;  %v11430_v14 = vcombine.low %v8066_v12, %v8070_v59 }
 0xef0   :  { %v11429_v8 = vcombine.high %v8065_v16, %v8069_v9  ;;  %v8077_v45 = vld [vmem:[#allocation8 + $0x1bf0] sm:$0xff]  ;;  %v11428_v51 = vcombine.low %v8065_v16, %v8069_v9  ;;  %v11450_v21 = vcombine.low %v8624_v49, %v8628_v3 }
 0xef1   :  { %v13420_v54 = vpack.c.bf16 %v8013_v24, %v8013_v24  ;;  %v8073_v24 = vld [vmem:[#allocation8 + $0x1bd0] sm:$0xff] }
 0xef2   :  { %v11437_v26 = vcombine.high %v8073_v24, %v8077_v45 }
 0xef3   :  { %8432 = vmatmul.mubr.bf16.vlgmr.msra.gmra.mrb[132].mxu0 %v13420_v54  ;;  %8473 = vmatmul.mubr.bf16.vlgmr.msra.gmra.mrb[132].mxu1 %v13420_v54 }
 0xef4   :  { %8482 = vmatpush1.bf16.msra.mxu0 %v11380_v34  ;;  %8523 = vmatpush1.bf16.msra.mxu1 %v11382_v55  ;;  %v11405_v34 = vcombine.high %v8041_v47, %v8045_v57  ;;  %v11407_v55 = vcombine.high %v8042_v52, %v8046_v58  ;;  %v8616_v47 = vld [vmem:[#allocation8 + $0x1c08] sm:$0xff] }
 0xef5   :  { %8483 = vmatprep.subr.bf16.mxu0 %v11389_v46  ;;  %8524 = vmatprep.subr.bf16.mxu1 %v11391_v22  ;;  %v8074_v46 = vld [vmem:[#allocation8 + $0x1bd8] sm:$0xff]  ;;  %v8620_v58 = vld [vmem:[#allocation8 + $0x1c28] sm:$0xff] }
 0xef6   :  { %8513 = vmatprep.mubr.bf16.mxu0 %v12516_v20  ;;  %8554 = vmatprep.mubr.bf16.mxu1 %v12516_v20  ;;  %v8078_v22 = vld [vmem:[#allocation8 + $0x1bf8] sm:$0xff] }
 0xef7   :  { %v11439_v27 = vcombine.high %v8074_v46, %v8078_v22 }
 0xef8   :  { %8484 = vmatpush1.bf16.msra.mxu0 %v11388_v15  ;;  %8525 = vmatpush1.bf16.msra.mxu1 %v11390_v56  ;;  %v11436_v15 = vcombine.low %v8073_v24, %v8077_v45  ;;  %v11438_v56 = vcombine.low %v8074_v46, %v8078_v22 }
 0xef9   :  { %8485 = vmatprep.subr.bf16.mxu0 %v11397_v31  ;;  %8526 = vmatprep.subr.bf16.mxu1 %v11399_v50  ;;  %v8615_v31 = vld [vmem:[#allocation8 + $0x1c00] sm:$0xff] }
 0xefa   :  { %v8619_v50 = vld [vmem:[#allocation8 + $0x1c20] sm:$0xff] }
 0xefb   :  { %v11440_v57 = vcombine.low %v8615_v31, %v8619_v50  ;;  %v11441_v52 = vcombine.high %v8615_v31, %v8619_v50  ;;  %v8663_v50 = vld [vmem:[#allocation8 + $0x1d80] sm:$0xff] }
 0xefc   :  { %8486 = vmatpush1.bf16.msra.mxu0 %v11396_v37  ;;  %8527 = vmatpush1.bf16.msra.mxu1 %v11398_v36  ;;  %v8623_v37 = vld [vmem:[#allocation8 + $0x1c40] sm:$0xff] }
 0xefd   :  { %8487 = vmatprep.subr.bf16.mxu0 %v11405_v34  ;;  %8528 = vmatprep.subr.bf16.mxu1 %v11407_v55  ;;  %v8627_v36 = vld [vmem:[#allocation8 + $0x1c60] sm:$0xff]  ;;  %v11442_v34 = vcombine.low %v8616_v47, %v8620_v58  ;;  %v11443_v55 = vcombine.high %v8616_v47, %v8620_v58 }
 0xefe   :  { %v11449_v35 = vcombine.high %v8623_v37, %v8627_v36  ;;  %v11448_v6 = vcombine.low %v8623_v37, %v8627_v36  ;;  %v8667_v47 = vld [vmem:[#allocation8 + $0x1da0] sm:$0xff] }
 0xeff   :  { %v11489_v36 = vcombine.high %v8663_v50, %v8667_v47 }
 0xf00   :  { %8488 = vmatpush1.bf16.msra.mxu0 %v11404_v44  ;;  %8529 = vmatpush1.bf16.msra.mxu1 %v11406_v11  ;;  %v11451_v44 = vcombine.high %v8624_v49, %v8628_v3  ;;  %v8635_v11 = vld [vmem:[#allocation8 + $0x1ca0] sm:$0xff] }
 0xf01   :  { %8489 = vmatprep.subr.bf16.mxu0 %v11413_v40  ;;  %8530 = vmatprep.subr.bf16.mxu1 %v11415_v63  ;;  %v8632_v40 = vld [vmem:[#allocation8 + $0x1c88] sm:$0xff]  ;;  %v11457_v61 = vcombine.high %v8631_v1, %v8635_v11  ;;  %v11456_v16 = vcombine.low %v8631_v1, %v8635_v11  ;;  %v8671_v49 = vld [vmem:[#allocation8 + $0x1dc0] sm:$0xff] }
 0xf02   :  { %v8636_v63 = vld [vmem:[#allocation8 + $0x1ca8] sm:$0xff]  ;;  %v8675_v3 = vld [vmem:[#allocation8 + $0x1de0] sm:$0xff] }
 0xf03   :  { %v11459_v25 = vcombine.high %v8632_v40, %v8636_v63  ;;  %v11458_v9 = vcombine.low %v8632_v40, %v8636_v63  ;;  %v8672_v1 = vld [vmem:[#allocation8 + $0x1dc8] sm:$0xff]  ;;  %v11496_v40 = vcombine.low %v8671_v49, %v8675_v3 }
 0xf04   :  { %8490 = vmatpush1.bf16.msra.mxu0 %v11412_v48  ;;  %8531 = vmatpush1.bf16.msra.mxu1 %v11414_v19  ;;  %v8639_v48 = vld [vmem:[#allocation8 + $0x1cc0] sm:$0xff]  ;;  %v8676_v11 = vld [vmem:[#allocation8 + $0x1de8] sm:$0xff] }
 0xf05   :  { %8491 = vmatprep.subr.bf16.mxu0 %v11421_v13  ;;  %8532 = vmatprep.subr.bf16.mxu1 %v11423_v17  ;;  %v8643_v19 = vld [vmem:[#allocation8 + $0x1ce0] sm:$0xff]  ;;  %v8640_v13 = vld [vmem:[#allocation8 + $0x1cc8] sm:$0xff]  ;;  %v11498_v63 = vcombine.low %v8672_v1, %v8676_v11 }
 0xf06   :  { %v8644_v17 = vld [vmem:[#allocation8 + $0x1ce8] sm:$0xff]  ;;  %v11465_v12 = vcombine.high %v8639_v48, %v8643_v19  ;;  %v11464_v24 = vcombine.low %v8639_v48, %v8643_v19  ;;  %v8622_v19 = vld [vmem:[#allocation8 + $0x1c38] sm:$0xff] }
 0xf07   :  { %v11467_v59 = vcombine.high %v8640_v13, %v8644_v17  ;;  %v11466_v45 = vcombine.low %v8640_v13, %v8644_v17 }
 0xf08   :  { %8492 = vmatpush1.bf16.msra.mxu0 %v11420_v29  ;;  %8533 = vmatpush1.bf16.msra.mxu1 %v11422_v32  ;;  %v8647_v29 = vld [vmem:[#allocation8 + $0x1d00] sm:$0xff] }
 0xf09   :  { %8493 = vmatprep.subr.bf16.mxu0 %v11429_v8  ;;  %8534 = vmatprep.subr.bf16.mxu1 %v11431_v18  ;;  %v8651_v32 = vld [vmem:[#allocation8 + $0x1d20] sm:$0xff]  ;;  %v8648_v8 = vld [vmem:[#allocation8 + $0x1d08] sm:$0xff] }
 0xf0a   :  { %v8652_v18 = vld [vmem:[#allocation8 + $0x1d28] sm:$0xff]  ;;  %v11473_v46 = vcombine.high %v8647_v29, %v8651_v32 }
 0xf0b   :  { %v11475_v22 = vcombine.high %v8648_v8, %v8652_v18 }
 0xf0c   :  { %8494 = vmatpush1.bf16.msra.mxu0 %v11428_v51  ;;  %8535 = vmatpush1.bf16.msra.mxu1 %v11430_v14  ;;  %v8655_v51 = vld [vmem:[#allocation8 + $0x1d40] sm:$0xff] }
 0xf0d   :  { %8495 = vmatprep.subr.bf16.mxu0 %v11437_v26  ;;  %8536 = vmatprep.subr.bf16.mxu1 %v11439_v27  ;;  %v8659_v14 = vld [vmem:[#allocation8 + $0x1d60] sm:$0xff]  ;;  %v8656_v26 = vld [vmem:[#allocation8 + $0x1d48] sm:$0xff] }
 0xf0e   :  { %v8660_v27 = vld [vmem:[#allocation8 + $0x1d68] sm:$0xff]  ;;  %v11480_v58 = vcombine.low %v8655_v51, %v8659_v14 }
 0xf0f   :  { %v11483_v31 = vcombine.high %v8656_v26, %v8660_v27  ;;  %v11482_v37 = vcombine.low %v8656_v26, %v8660_v27 }
 0xf10   :  { %8496 = vmatpush1.bf16.msra.mxu0 %v11436_v15  ;;  %8537 = vmatpush1.bf16.msra.mxu1 %v11438_v56  ;;  %v11472_v15 = vcombine.low %v8647_v29, %v8651_v32  ;;  %v11474_v56 = vcombine.low %v8648_v8, %v8652_v18 }
 0xf11   :  { %12145 = vmatprep.subr.bf16.mxu0 %v12514_v0  ;;  %8999 = vmatprep.subr.bf16.mxu1 %v11441_v52  ;;  %v8668_v52 = vld [vmem:[#allocation8 + $0x1da8] sm:$0xff] }
 0xf13   :  { %8514 = vmatmul.mubr.bf16.vlgmr.msra.gmra.mrb[136].mxu0 %v13420_v54  ;;  %8555 = vmatmul.mubr.bf16.vlgmr.msra.gmra.mrb[136].mxu1 %v13420_v54  ;;  %v8572_v54 = vld [vmem:[#allocation2 + $0x38] sm:$0xf] }
 0xf14   :  { %12146 = vmatpush3.bf16.msra.mxu0 %v13360_v43  ;;  %12161 = vmatprep.mubr.msk.bf16.mxu0 %vm12515_vm0, %v12514_v0 }
 0xf15   :  { %12147 = vmatprep.subr.bf16.mxu0 %v12514_v0  ;;  %9031 = vmatprep.mubr.bf16.mxu1 %v12516_v20 }
 0xf16   :  { %9000 = vmatpush1.bf16.msra.mxu1 %v11440_v57  ;;  %v8664_v57 = vld [vmem:[#allocation8 + $0x1d88] sm:$0xff] }
 0xf17   :  { %9001 = vmatprep.subr.bf16.mxu1 %v11449_v35  ;;  %v11490_v35 = vcombine.low %v8664_v57, %v8668_v52 }
 0xf18   :  { %12148 = vmatpush3.bf16.msra.mxu0 %v13367_v60 }
 0xf19   :  { %12149 = vmatprep.subr.bf16.mxu0 %v12514_v0 }
 0xf1a   :  { %9002 = vmatpush1.bf16.msra.mxu1 %v11448_v6  ;;  %v11499_v6 = vcombine.high %v8672_v1, %v8676_v11  ;;  %v8634_v1 = vld [vmem:[#allocation8 + $0x1c98] sm:$0xff] }
 0xf1b   :  { %9003 = vmatprep.subr.bf16.mxu1 %v11457_v61  ;;  %v8621_v61 = vld [vmem:[#allocation8 + $0x1c30] sm:$0xff] }
 0xf1c   :  { %12150 = vmatpush3.bf16.msra.mxu0 %v13371_v23 }
 0xf1d   :  { %12151 = vmatprep.subr.bf16.mxu0 %v12514_v0 }
 0xf1e   :  { %9004 = vmatpush1.bf16.msra.mxu1 %v11456_v16 }
 0xf1f   :  { %9005 = vmatprep.subr.bf16.mxu1 %v11465_v12 }
 0xf20   :  { %12152 = vmatpush3.bf16.msra.mxu0 %v13375_v62 }
 0xf21   :  { %12153 = vmatprep.subr.bf16.mxu0 %v12514_v0 }
 0xf22   :  { %9006 = vmatpush1.bf16.msra.mxu1 %v11464_v24 }
 0xf23   :  { %9007 = vmatprep.subr.bf16.mxu1 %v11473_v46 }
 0xf24   :  { %12154 = vmatpush3.bf16.msra.mxu0 %v13379_v41 }
 0xf25   :  { %12155 = vmatprep.subr.bf16.mxu0 %v12514_v0 }
 0xf26   :  { %9008 = vmatpush1.bf16.msra.mxu1 %v11472_v15 }
 0xf28   :  { %12156 = vmatpush3.bf16.msra.mxu0 %v13383_v42 }
 0xf29   :  { %12157 = vmatprep.subr.bf16.mxu0 %v12514_v0 }
 0xf2c   :  { %12158 = vmatpush3.bf16.msra.mxu0 %v13387_v28 }
 0xf2d   :  { %12159 = vmatprep.subr.bf16.mxu0 %v12514_v0 }
 0xf30   :  { %12160 = vmatpush3.bf16.msra.mxu0 %v13391_v10 }
 0xf31   :  { %9040 = vmatprep.subr.bf16.mxu0 %v11443_v55  ;;  %v11488_v55 = vcombine.low %v8663_v50, %v8667_v47 }
 0xf33   :  { %12162 = vmatmul.mubr.bf16.vlgmr.msra.gmra.mrb[140].mxu0 %v8572_v54  ;;  %v11481_v54 = vcombine.high %v8655_v51, %v8659_v14 }
 0xf34   :  { %9072 = vmatprep.mubr.bf16.mxu0 %v12516_v20  ;;  %9041 = vmatpush1.bf16.msra.mxu0 %v11442_v34  ;;  %v11491_v34 = vcombine.high %v8664_v57, %v8668_v52  ;;  %v8625_v52 = vld [vmem:[#allocation8 + $0x1c50] sm:$0xff] }
 0xf35   :  { %9042 = vmatprep.subr.bf16.mxu0 %v11451_v44  ;;  %9009 = vmatprep.subr.bf16.mxu1 %v11481_v54  ;;  %v11497_v44 = vcombine.high %v8671_v49, %v8675_v3  ;;  %v8633_v49 = vld [vmem:[#allocation8 + $0x1c90] sm:$0xff] }
 0xf36   :  { %9010 = vmatpush1.bf16.msra.mxu1 %v11480_v58  ;;  %v8637_v3 = vld [vmem:[#allocation8 + $0x1cb0] sm:$0xff] }
 0xf37   :  { %9011 = vmatprep.subr.bf16.mxu1 %v11489_v36  ;;  %v8630_v36 = vld [vmem:[#allocation8 + $0x1c78] sm:$0xff] }
 0xf38   :  { %9043 = vmatpush1.bf16.msra.mxu0 %v11450_v21  ;;  %v8617_v21 = vld [vmem:[#allocation8 + $0x1c10] sm:$0xff] }
 0xf39   :  { %9044 = vmatprep.subr.bf16.mxu0 %v11459_v25  ;;  %v8618_v25 = vld [vmem:[#allocation8 + $0x1c18] sm:$0xff]  ;;  %v11445_v48 = vcombine.high %v8617_v21, %v8621_v61  ;;  %v11444_v13 = vcombine.low %v8617_v21, %v8621_v61  ;;  %v8645_v21 = vld [vmem:[#allocation8 + $0x1cf0] sm:$0xff] }
 0xf3a   :  { %9012 = vmatpush1.bf16.msra.mxu1 %v11488_v55  ;;  %v11446_v17 = vcombine.low %v8618_v25, %v8622_v19  ;;  %v11447_v16 = vcombine.high %v8618_v25, %v8622_v19  ;;  %v8642_v61 = vld [vmem:[#allocation8 + $0x1cd8] sm:$0xff] }
 0xf3b   :  { %9013 = vmatprep.subr.bf16.mxu1 %v11497_v44  ;;  %v8638_v44 = vld [vmem:[#allocation8 + $0x1cb8] sm:$0xff] }
 0xf3c   :  { %9045 = vmatpush1.bf16.msra.mxu0 %v11458_v9  ;;  %v8646_v25 = vld [vmem:[#allocation8 + $0x1cf8] sm:$0xff]  ;;  %v11462_v19 = vcombine.low %v8634_v1, %v8638_v44 }
 0xf3d   :  { %9046 = vmatprep.subr.bf16.mxu0 %v11467_v59 }
 0xf3e   :  { %9014 = vmatpush1.bf16.msra.mxu1 %v11496_v40  ;;  %v11461_v40 = vcombine.high %v8633_v49, %v8637_v3 }
 0xf3f   :  { %9081 = vmatprep.subr.bf16.mxu1 %v11445_v48  ;;  %v11460_v48 = vcombine.low %v8633_v49, %v8637_v3 }
 0xf40   :  { %9047 = vmatpush1.bf16.msra.mxu0 %v11466_v45 }
 0xf41   :  { %9048 = vmatprep.subr.bf16.mxu0 %v11475_v22 }
 0xf44   :  { %9049 = vmatpush1.bf16.msra.mxu0 %v11474_v56 }
 0xf45   :  { %9050 = vmatprep.subr.bf16.mxu0 %v11483_v31 }
 0xf48   :  { %9051 = vmatpush1.bf16.msra.mxu0 %v11482_v37  ;;  %v8626_v37 = vld [vmem:[#allocation8 + $0x1c58] sm:$0xff] }
 0xf49   :  { %9052 = vmatprep.subr.bf16.mxu0 %v11491_v34  ;;  %v11454_v11 = vcombine.low %v8626_v37, %v8630_v36 }
 0xf4c   :  { %9053 = vmatpush1.bf16.msra.mxu0 %v11490_v35 }
 0xf4d   :  { %9054 = vmatprep.subr.bf16.mxu0 %v11499_v6  ;;  %v8641_v6 = vld [vmem:[#allocation8 + $0x1cd0] sm:$0xff] }
 0xf50   :  { %9055 = vmatpush1.bf16.msra.mxu0 %v11498_v63  ;;  %v11463_v63 = vcombine.high %v8634_v1, %v8638_v44 }
 0xf51   :  { %9122 = vmatprep.subr.bf16.mxu0 %v11447_v16  ;;  %v8649_v16 = vld [vmem:[#allocation8 + $0x1d10] sm:$0xff] }
 0xfc6   :  { %v8433_v9 = vpop.f32.mrb[132].mxu0  ;;  %v8474_v12 = vpop.f32.mrb[132].mxu1 }
 0xfc7   :  { %v13449_v59 = vadd.f32 %v8433_v9, %v13396_v5  ;;  %v13452_v29 = vadd.f32 %v8474_v12, %v13399_v2  ;;  %v8435_v32 = vpop.f32.mrb[133].mxu0  ;;  %v8476_v8 = vpop.f32.mrb[133].mxu1  ;;  %v8653_v9 = vld [vmem:[#allocation8 + $0x1d30] sm:$0xff]  ;;  %v8650_v12 = vld [vmem:[#allocation8 + $0x1d18] sm:$0xff] }
 0xfc8   :  { %v13455_v18 = vadd.f32 %v8435_v32, %v13402_v7  ;;  %v13458_v24 = vadd.f32 %v8476_v8, %v13405_v4  ;;  %v8437_v45 = vpop.f32.mrb[134].mxu0  ;;  %v8478_v46 = vpop.f32.mrb[134].mxu1  ;;  %v8654_v32 = vld [vmem:[#allocation8 + $0x1d38] sm:$0xff]  ;;  %v11468_v8 = vcombine.low %v8641_v6, %v8645_v21 }
 0xfc9   :  { %v8438_v22 = vpop.f32.mrb[135].mxu0  ;;  %v8479_v51 = vpop.f32.mrb[135].mxu1  ;;  %v11470_v45 = vcombine.low %v8642_v61, %v8646_v25  ;;  %v11477_v46 = vcombine.high %v8649_v16, %v8653_v9 }
 0xfca   :  { %v11479_v22 = vcombine.high %v8650_v12, %v8654_v32  ;;  %v8657_v51 = vld [vmem:[#allocation8 + $0x1d50] sm:$0xff] }
 0xfe6   :  { %v8515_v14 = vpop.f32.mrb[136].mxu0  ;;  %v8556_v26 = vpop.f32.mrb[136].mxu1 }
 0xfe7   :  { %v13461_v5 = vadd.f32 %v8515_v14, %v13408_v53  ;;  %v13464_v2 = vadd.f32 %v8556_v26, %v13411_v30  ;;  %v8517_v27 = vpop.f32.mrb[137].mxu0  ;;  %v8558_v15 = vpop.f32.mrb[137].mxu1  ;;  %v8629_v30 = vld [vmem:[#allocation8 + $0x1c70] sm:$0xff]  ;;  %v8658_v26 = vld [vmem:[#allocation8 + $0x1d58] sm:$0xff] }
 0xfe8   :  { %v13467_v7 = vadd.f32 %v8517_v27, %v13414_v33  ;;  %v13470_v4 = vadd.f32 %v8558_v15, %v13417_v39  ;;  %v8519_v56 = vpop.f32.mrb[138].mxu0  ;;  %v8560_v54 = vpop.f32.mrb[138].mxu1  ;;  %v11453_v35 = vcombine.high %v8625_v52, %v8629_v30  ;;  %v11455_v39 = vcombine.high %v8626_v37, %v8630_v36  ;;  %v8661_v14 = vld [vmem:[#allocation8 + $0x1d70] sm:$0xff]  ;;  %v8662_v27 = vld [vmem:[#allocation8 + $0x1d78] sm:$0xff] }
 0xfe9   :  { %v8520_v31 = vpop.f32.mrb[139].mxu0  ;;  %v8561_v50 = vpop.f32.mrb[139].mxu1  ;;  %v11476_v15 = vcombine.low %v8649_v16, %v8653_v9  ;;  %v11478_v56 = vcombine.low %v8650_v12, %v8654_v32  ;;  %v11485_v54 = vcombine.high %v8657_v51, %v8661_v14  ;;  %v8673_v36 = vld [vmem:[#allocation8 + $0x1dd0] sm:$0xff]  ;;  %v9239_v12 = vld [vmem:[#allocation8 + $0x1ec0] sm:$0xff] }
 0xfea   :  { %v11487_v31 = vcombine.high %v8658_v26, %v8662_v27  ;;  %v8665_v50 = vld [vmem:[#allocation8 + $0x1d90] sm:$0xff]  ;;  %v9243_v32 = vld [vmem:[#allocation8 + $0x1ee0] sm:$0xff] }
0x1006   :  { %v8607_v47 = vpop.f32.mrb[140].mxu0 }
0x1007   :  { %v8608_v57 = vadd.f32 %v13348_v38, %v8607_v47  ;;  %v12163_v53 = vpop.f32.mrb[141].mxu0  ;;  %v11452_v38 = vcombine.low %v8625_v52, %v8629_v30  ;;  %v8669_v47 = vld [vmem:[#allocation8 + $0x1db0] sm:$0xff]  ;;  %v11484_v52 = vcombine.low %v8657_v51, %v8661_v14  ;;  %v11529_v51 = vcombine.high %v9239_v12, %v9243_v32 }
0x1008   :  { %v8610_v58 = vpop.f32.mrb[142].mxu0  ;;  %v8670_v53 = vld [vmem:[#allocation8 + $0x1db8] sm:$0xff]  ;;  %v11493_v30 = vcombine.high %v8665_v50, %v8669_v47 }
0x1009   :  { %v8613_v34 = vmax.f32 %v8608_v57, 0.0  ;;  %v12164_v55 = vpop.f32.mrb[143].mxu0  ;;  %v8666_v57 = vld [vmem:[#allocation8 + $0x1d98] sm:$0xff]  ;;  %v11486_v58 = vcombine.low %v8658_v26, %v8662_v27  ;;  %v9247_v26 = vld [vmem:[#allocation8 + $0x1f00] sm:$0xff] }
0x100a   :  { %v11495_v37 = vcombine.high %v8666_v57, %v8670_v53  ;;  %v8674_v55 = vld [vmem:[#allocation8 + $0x1dd8] sm:$0xff]  ;;  %v11494_v49 = vcombine.low %v8666_v57, %v8670_v53  ;;  %v9251_v27 = vld [vmem:[#allocation8 + $0x1f20] sm:$0xff] }
0x100b   :  { %v13473_v33 = vpack.c.bf16 %v8613_v34, %v8613_v34  ;;  %v8677_v34 = vld [vmem:[#allocation8 + $0x1df0] sm:$0xff]  ;;  %v9255_v57 = vld [vmem:[#allocation8 + $0x1f40] sm:$0xff] }
0x100c   :  { %v11501_v3 = vcombine.high %v8673_v36, %v8677_v34  ;;  %v11500_v44 = vcombine.low %v8673_v36, %v8677_v34  ;;  %v9259_v53 = vld [vmem:[#allocation8 + $0x1f60] sm:$0xff] }
0x100d   :  { %9032 = vmatmul.mubr.bf16.vlgmr.msra.gmra.mrb[140].mxu1 %v13473_v33  ;;  %9073 = vmatmul.mubr.bf16.vlgmr.msra.gmra.mrb[144].mxu0 %v13473_v33  ;;  %v11545_v36 = vcombine.high %v9255_v57, %v9259_v53 }
0x100e   :  { %9082 = vmatpush1.bf16.msra.mxu1 %v11444_v13  ;;  %9123 = vmatpush1.bf16.msra.mxu0 %v11446_v17  ;;  %v11469_v13 = vcombine.high %v8641_v6, %v8645_v21  ;;  %v11471_v17 = vcombine.high %v8642_v61, %v8646_v25  ;;  %v9228_v61 = vld [vmem:[#allocation8 + $0x1e68] sm:$0xff]  ;;  %v9235_v25 = vld [vmem:[#allocation8 + $0x1ea0] sm:$0xff] }
0x100f   :  { %9083 = vmatprep.subr.bf16.mxu1 %v11453_v35  ;;  %9124 = vmatprep.subr.bf16.mxu0 %v11455_v39  ;;  %v8678_v35 = vld [vmem:[#allocation8 + $0x1df8] sm:$0xff]  ;;  %v11492_v39 = vcombine.low %v8665_v50, %v8669_v47  ;;  %v11537_v50 = vcombine.high %v9247_v26, %v9251_v27 }
0x1010   :  { %9113 = vmatprep.mubr.bf16.mxu1 %v12516_v20  ;;  %9154 = vmatprep.mubr.bf16.mxu0 %v12516_v20  ;;  %v11503_v1 = vcombine.high %v8674_v55, %v8678_v35 }
0x1012   :  { %9084 = vmatpush1.bf16.msra.mxu1 %v11452_v38  ;;  %9125 = vmatpush1.bf16.msra.mxu0 %v11454_v11  ;;  %v11502_v38 = vcombine.low %v8674_v55, %v8678_v35  ;;  %v9220_v11 = vld [vmem:[#allocation8 + $0x1e28] sm:$0xff]  ;;  %v9263_v55 = vld [vmem:[#allocation8 + $0x1f80] sm:$0xff] }
0x1013   :  { %9085 = vmatprep.subr.bf16.mxu1 %v11461_v40  ;;  %9126 = vmatprep.subr.bf16.mxu0 %v11463_v63  ;;  %v9223_v40 = vld [vmem:[#allocation8 + $0x1e40] sm:$0xff] }
0x1014   :  { %v9267_v35 = vld [vmem:[#allocation8 + $0x1fa0] sm:$0xff] }
0x1016   :  { %9086 = vmatpush1.bf16.msra.mxu1 %v11460_v48  ;;  %9127 = vmatpush1.bf16.msra.mxu0 %v11462_v19  ;;  %v9232_v48 = vld [vmem:[#allocation8 + $0x1e88] sm:$0xff] }
0x1017   :  { %9087 = vmatprep.subr.bf16.mxu1 %v11469_v13  ;;  %9128 = vmatprep.subr.bf16.mxu0 %v11471_v17  ;;  %v9236_v19 = vld [vmem:[#allocation8 + $0x1ea8] sm:$0xff] }
0x1018   :  { %v11523_v9 = vcombine.high %v9232_v48, %v9236_v19 }
0x101a   :  { %9088 = vmatpush1.bf16.msra.mxu1 %v11468_v8  ;;  %9129 = vmatpush1.bf16.msra.mxu0 %v11470_v45  ;;  %v9240_v8 = vld [vmem:[#allocation8 + $0x1ec8] sm:$0xff] }
0x101b   :  { %9089 = vmatprep.subr.bf16.mxu1 %v11477_v46  ;;  %9130 = vmatprep.subr.bf16.mxu0 %v11479_v22  ;;  %v9244_v45 = vld [vmem:[#allocation8 + $0x1ee8] sm:$0xff]  ;;  %v11522_v22 = vcombine.low %v9232_v48, %v9236_v19 }
0x101c   :  { %v11531_v14 = vcombine.high %v9240_v8, %v9244_v45 }
0x101e   :  { %9090 = vmatpush1.bf16.msra.mxu1 %v11476_v15  ;;  %9131 = vmatpush1.bf16.msra.mxu0 %v11478_v56  ;;  %v9248_v15 = vld [vmem:[#allocation8 + $0x1f08] sm:$0xff] }
0x101f   :  { %9091 = vmatprep.subr.bf16.mxu1 %v11485_v54  ;;  %9132 = vmatprep.subr.bf16.mxu0 %v11487_v31  ;;  %v9252_v56 = vld [vmem:[#allocation8 + $0x1f28] sm:$0xff]  ;;  %v11528_v54 = vcombine.low %v9239_v12, %v9243_v32  ;;  %v11530_v31 = vcombine.low %v9240_v8, %v9244_v45 }
0x1020   :  { %v11539_v47 = vcombine.high %v9248_v15, %v9252_v56 }
0x1022   :  { %9092 = vmatpush1.bf16.msra.mxu1 %v11484_v52  ;;  %9133 = vmatpush1.bf16.msra.mxu0 %v11486_v58  ;;  %v9256_v52 = vld [vmem:[#allocation8 + $0x1f48] sm:$0xff] }
0x1023   :  { %9093 = vmatprep.subr.bf16.mxu1 %v11493_v30  ;;  %9134 = vmatprep.subr.bf16.mxu0 %v11495_v37  ;;  %v9260_v58 = vld [vmem:[#allocation8 + $0x1f68] sm:$0xff]  ;;  %v11536_v30 = vcombine.low %v9247_v26, %v9251_v27  ;;  %v11538_v37 = vcombine.low %v9248_v15, %v9252_v56 }
0x1024   :  { %v11547_v34 = vcombine.high %v9256_v52, %v9260_v58 }
0x1026   :  { %9094 = vmatpush1.bf16.msra.mxu1 %v11492_v39  ;;  %9135 = vmatpush1.bf16.msra.mxu0 %v11494_v49  ;;  %v9264_v39 = vld [vmem:[#allocation8 + $0x1f88] sm:$0xff] }
0x1027   :  { %9095 = vmatprep.subr.bf16.mxu1 %v11501_v3  ;;  %9136 = vmatprep.subr.bf16.mxu0 %v11503_v1  ;;  %v9268_v49 = vld [vmem:[#allocation8 + $0x1fa8] sm:$0xff]  ;;  %v11544_v3 = vcombine.low %v9255_v57, %v9259_v53  ;;  %v11546_v1 = vcombine.low %v9256_v52, %v9260_v58  ;;  %v12316_v57 = vld [vmem:[#allocation7] ss:$0 sm:$0xff]  ;;  %v9225_v52 = vld [vmem:[#allocation8 + $0x1e50] sm:$0xff] }
0x102a   :  { %9096 = vmatpush1.bf16.msra.mxu1 %v11500_v44  ;;  %9137 = vmatpush1.bf16.msra.mxu0 %v11502_v38  ;;  %v11553_v44 = vcombine.high %v9263_v55, %v9267_v35  ;;  %v11555_v38 = vcombine.high %v9264_v39, %v9268_v49 }
0x102b   :  { %12165 = vmatprep.subr.bf16.mxu1 %v12514_v0 }
0x102d   :  { %9114 = vmatmul.mubr.bf16.vlgmr.msra.gmra.mrb[144].mxu1 %v13473_v33  ;;  %9155 = vmatmul.mubr.bf16.vlgmr.msra.gmra.mrb[148].mxu0 %v13473_v33 }
0x102e   :  { %12166 = vmatpush3.bf16.msra.mxu1 %v13360_v43  ;;  %12181 = vmatprep.mubr.msk.bf16.mxu1 %vm12515_vm0, %v12514_v0  ;;  %v9172_v43 = vld [vmem:[#allocation2 + $0x3c] sm:$0xf] }
0x102f   :  { %12167 = vmatprep.subr.bf16.mxu1 %v12514_v0  ;;  %9631 = vmatprep.mubr.bf16.mxu0 %v12516_v20 }
0x1032   :  { %12168 = vmatpush3.bf16.msra.mxu1 %v13367_v60  ;;  %v9215_v60 = vld [vmem:[#allocation8 + $0x1e00] sm:$0xff] }
0x1033   :  { %12169 = vmatprep.subr.bf16.mxu1 %v12514_v0 }
0x1036   :  { %12170 = vmatpush3.bf16.msra.mxu1 %v13371_v23  ;;  %v9219_v23 = vld [vmem:[#allocation8 + $0x1e20] sm:$0xff] }
0x1037   :  { %12171 = vmatprep.subr.bf16.mxu1 %v12514_v0  ;;  %v11505_v33 = vcombine.high %v9215_v60, %v9219_v23 }
0x1039   :  { %9599 = vmatprep.subr.bf16.mxu0 %v11505_v33 }
0x103a   :  { %12172 = vmatpush3.bf16.msra.mxu1 %v13375_v62  ;;  %v9216_v62 = vld [vmem:[#allocation8 + $0x1e08] sm:$0xff] }
0x103b   :  { %12173 = vmatprep.subr.bf16.mxu1 %v12514_v0  ;;  %v11506_v63 = vcombine.low %v9216_v62, %v9220_v11  ;;  %v11507_v6 = vcombine.high %v9216_v62, %v9220_v11  ;;  %v9275_v62 = vld [vmem:[#allocation8 + $0x1fe0] sm:$0xff]  ;;  %v9276_v11 = vld [vmem:[#allocation8 + $0x1fe8] sm:$0xff] }
0x103e   :  { %12174 = vmatpush3.bf16.msra.mxu1 %v13379_v41  ;;  %v11504_v41 = vcombine.low %v9215_v60, %v9219_v23  ;;  %v11554_v60 = vcombine.low %v9264_v39, %v9268_v49  ;;  %v9271_v23 = vld [vmem:[#allocation8 + $0x1fc0] sm:$0xff]  ;;  %v9237_v39 = vld [vmem:[#allocation8 + $0x1eb0] sm:$0xff]  ;;  %v9234_v49 = vld [vmem:[#allocation8 + $0x1e98] sm:$0xff] }
0x103f   :  { %12175 = vmatprep.subr.bf16.mxu1 %v12514_v0  ;;  %v11561_v33 = vcombine.high %v9271_v23, %v9275_v62 }
0x1040   :  { %9600 = vmatpush1.bf16.msra.mxu0 %v11504_v41  ;;  %v9272_v41 = vld [vmem:[#allocation8 + $0x1fc8] sm:$0xff] }
0x1042   :  { %12176 = vmatpush3.bf16.msra.mxu1 %v13383_v42  ;;  %v9227_v42 = vld [vmem:[#allocation8 + $0x1e60] sm:$0xff] }
0x1043   :  { %12177 = vmatprep.subr.bf16.mxu1 %v12514_v0  ;;  %v11513_v21 = vcombine.high %v9223_v40, %v9227_v42  ;;  %v11512_v13 = vcombine.low %v9223_v40, %v9227_v42  ;;  %v11560_v40 = vcombine.low %v9271_v23, %v9275_v62  ;;  %v11562_v42 = vcombine.low %v9272_v41, %v9276_v11  ;;  %v9245_v23 = vld [vmem:[#allocation8 + $0x1ef0] sm:$0xff]  ;;  %v9242_v62 = vld [vmem:[#allocation8 + $0x1ed8] sm:$0xff] }
0x1045   :  { %9601 = vmatprep.subr.bf16.mxu0 %v11513_v21  ;;  %v9221_v21 = vld [vmem:[#allocation8 + $0x1e30] sm:$0xff] }
0x1046   :  { %12178 = vmatpush3.bf16.msra.mxu1 %v13387_v28  ;;  %v9224_v28 = vld [vmem:[#allocation8 + $0x1e48] sm:$0xff]  ;;  %9602 = vmatpush1.bf16.msra.mxu0 %v11512_v13 }
0x1047   :  { %12179 = vmatprep.subr.bf16.mxu1 %v12514_v0  ;;  %v9231_v0 = vld [vmem:[#allocation8 + $0x1e80] sm:$0xff]  ;;  %v11514_v17 = vcombine.low %v9224_v28, %v9228_v61 }
0x1048   :  { %v11521_v16 = vcombine.high %v9231_v0, %v9235_v25  ;;  %v11520_v46 = vcombine.low %v9231_v0, %v9235_v25  ;;  %v9222_v0 = vld [vmem:[#allocation8 + $0x1e38] sm:$0xff] }
0x104a   :  { %12180 = vmatpush3.bf16.msra.mxu1 %v13391_v10  ;;  %v11515_v10 = vcombine.high %v9224_v28, %v9228_v61  ;;  %9603 = vmatprep.subr.bf16.mxu0 %v11521_v16  ;;  %v9218_v28 = vld [vmem:[#allocation8 + $0x1e18] sm:$0xff] }
0x104b   :  { %9640 = vmatprep.subr.bf16.mxu1 %v11507_v6  ;;  %9604 = vmatpush1.bf16.msra.mxu0 %v11520_v46  ;;  %v9217_v6 = vld [vmem:[#allocation8 + $0x1e10] sm:$0xff]  ;;  %v11510_v25 = vcombine.low %v9218_v28, %v9222_v0  ;;  %v11511_v48 = vcombine.high %v9218_v28, %v9222_v0  ;;  %v9254_v28 = vld [vmem:[#allocation8 + $0x1f38] sm:$0xff] }
0x104c   :  { %9605 = vmatprep.subr.bf16.mxu0 %v11529_v51  ;;  %v11509_v61 = vcombine.high %v9217_v6, %v9221_v21 }
0x104d   :  { %12182 = vmatmul.mubr.bf16.vlgmr.msra.gmra.mrb[148].mxu1 %v9172_v43  ;;  %v11552_v43 = vcombine.low %v9263_v55, %v9267_v35  ;;  %v9233_v35 = vld [vmem:[#allocation8 + $0x1e90] sm:$0xff] }
0x104e   :  { %9672 = vmatprep.mubr.bf16.mxu1 %v12516_v20  ;;  %9641 = vmatpush1.bf16.msra.mxu1 %v11506_v63  ;;  %v11563_v63 = vcombine.high %v9272_v41, %v9276_v11  ;;  %v9246_v41 = vld [vmem:[#allocation8 + $0x1ef8] sm:$0xff] }
0x104f   :  { %9642 = vmatprep.subr.bf16.mxu1 %v11515_v10  ;;  %9606 = vmatpush1.bf16.msra.mxu0 %v11528_v54  ;;  %v11508_v10 = vcombine.low %v9217_v6, %v9221_v21  ;;  %v9253_v6 = vld [vmem:[#allocation8 + $0x1f30] sm:$0xff]  ;;  %v9250_v21 = vld [vmem:[#allocation8 + $0x1f18] sm:$0xff]  ;;  %v11534_v0 = vcombine.low %v9242_v62, %v9246_v41 }
0x1050   :  { %9607 = vmatprep.subr.bf16.mxu0 %v11537_v50 }
0x1052   :  { %9643 = vmatpush1.bf16.msra.mxu1 %v11514_v17 }
0x1053   :  { %9644 = vmatprep.subr.bf16.mxu1 %v11523_v9  ;;  %9608 = vmatpush1.bf16.msra.mxu0 %v11536_v30  ;;  %v9226_v30 = vld [vmem:[#allocation8 + $0x1e58] sm:$0xff] }
0x1054   :  { %9609 = vmatprep.subr.bf16.mxu0 %v11545_v36 }
0x1056   :  { %9645 = vmatpush1.bf16.msra.mxu1 %v11522_v22 }
0x1057   :  { %9646 = vmatprep.subr.bf16.mxu1 %v11531_v14  ;;  %9610 = vmatpush1.bf16.msra.mxu0 %v11544_v3  ;;  %v9238_v3 = vld [vmem:[#allocation8 + $0x1eb8] sm:$0xff] }
0x1058   :  { %9611 = vmatprep.subr.bf16.mxu0 %v11553_v44  ;;  %v11526_v11 = vcombine.low %v9234_v49, %v9238_v3 }
0x105a   :  { %9647 = vmatpush1.bf16.msra.mxu1 %v11530_v31 }
0x105b   :  { %9648 = vmatprep.subr.bf16.mxu1 %v11539_v47  ;;  %9612 = vmatpush1.bf16.msra.mxu0 %v11552_v43  ;;  %v11527_v43 = vcombine.high %v9234_v49, %v9238_v3  ;;  %v12215_v49 = vld [vmem:[#allocation11 + $0x88] sm:$0xff]   ;;  %v12216_v3 = vld [vmem:[#allocation11 + $0x50] sm:$0xff]  }
0x105c   :  { %9613 = vmatprep.subr.bf16.mxu0 %v11561_v33  ;;  %v11524_v33 = vcombine.low %v9233_v35, %v9237_v39 }
0x105e   :  { %9649 = vmatpush1.bf16.msra.mxu1 %v11538_v37  ;;  %v9230_v37 = vld [vmem:[#allocation8 + $0x1e78] sm:$0xff] }
0x105f   :  { %9650 = vmatprep.subr.bf16.mxu1 %v11547_v34  ;;  %9614 = vmatpush1.bf16.msra.mxu0 %v11560_v40  ;;  %v11518_v44 = vcombine.low %v9226_v30, %v9230_v37 }
0x1060   :  { %9681 = vmatprep.subr.bf16.mxu0 %v11509_v61 }
0x1062   :  { %9651 = vmatpush1.bf16.msra.mxu1 %v11546_v1 }
0x1063   :  { %9652 = vmatprep.subr.bf16.mxu1 %v11555_v38  ;;  %v11525_v38 = vcombine.high %v9233_v35, %v9237_v39  ;;  %v12213_v35 = vld [vmem:[#allocation11 + $0xc8] sm:$0xff]  }
0x1064   :  { %v12214_v39 = vld [vmem:[#allocation11 + $0x8] sm:$0xff]  }
0x1066   :  { %9653 = vmatpush1.bf16.msra.mxu1 %v11554_v60  ;;  %v9241_v60 = vld [vmem:[#allocation8 + $0x1ed0] sm:$0xff] }
0x1067   :  { %9654 = vmatprep.subr.bf16.mxu1 %v11563_v63  ;;  %v11533_v40 = vcombine.high %v9241_v60, %v9245_v23  ;;  %v9249_v63 = vld [vmem:[#allocation8 + $0x1f10] sm:$0xff]  ;;  %v11532_v61 = vcombine.low %v9241_v60, %v9245_v23  ;;  %v12221_v60 = vld [vmem:[#allocation11 + $0xd8] sm:$0xff]  }
0x1068   :  { %v12222_v23 = vld [vmem:[#allocation11 + $0x18] sm:$0xff]  }
0x106a   :  { %9655 = vmatpush1.bf16.msra.mxu1 %v11562_v42  ;;  %v11535_v42 = vcombine.high %v9242_v62, %v9246_v41  ;;  %v12224_v62 = vld [vmem:[#allocation11 + $0x60] sm:$0xff]  }
0x106b   :  { %9722 = vmatprep.subr.bf16.mxu1 %v11511_v48  ;;  %v9261_v48 = vld [vmem:[#allocation8 + $0x1f70] sm:$0xff]  ;;  %v12225_v41 = vld [vmem:[#allocation11 + $0xe0] sm:$0xff]  }
0x10e0   :  { %v9033_v19 = vpop.f32.mrb[140].mxu1  ;;  %v9074_v13 = vpop.f32.mrb[144].mxu0 }
0x10e1   :  { %v13502_v17 = vadd.f32 %v9033_v19, %v13449_v59  ;;  %v13505_v16 = vadd.f32 %v9074_v13, %v13452_v29  ;;  %v9035_v9 = vpop.f32.mrb[141].mxu1  ;;  %v9076_v12 = vpop.f32.mrb[145].mxu0  ;;  %v9258_v19 = vld [vmem:[#allocation8 + $0x1f58] sm:$0xff] }
0x10e2   :  { %v13508_v32 = vadd.f32 %v9035_v9, %v13455_v18  ;;  %v13511_v8 = vadd.f32 %v9076_v12, %v13458_v24  ;;  %v9037_v45 = vpop.f32.mrb[142].mxu1  ;;  %v9078_v46 = vpop.f32.mrb[146].mxu0  ;;  %v9262_v13 = vld [vmem:[#allocation8 + $0x1f78] sm:$0xff]  ;;  %v11540_v9 = vcombine.low %v9249_v63, %v9253_v6  ;;  %v11542_v12 = vcombine.low %v9250_v21, %v9254_v28 }
0x10e3   :  { %v9038_v22 = vpop.f32.mrb[143].mxu1  ;;  %v9079_v51 = vpop.f32.mrb[147].mxu0  ;;  %v11551_v46 = vcombine.high %v9258_v19, %v9262_v13 }
0x10e4   :  { %v9265_v22 = vld [vmem:[#allocation8 + $0x1f90] sm:$0xff] }
0x10e5   :  { %v9269_v51 = vld [vmem:[#allocation8 + $0x1fb0] sm:$0xff] }
0x1100   :  { %v9115_v14 = vpop.f32.mrb[144].mxu1  ;;  %v9156_v26 = vpop.f32.mrb[148].mxu0 }
0x1101   :  { %v13514_v59 = vadd.f32 %v9115_v14, %v13461_v5  ;;  %v13517_v29 = vadd.f32 %v9156_v26, %v13464_v2  ;;  %v9117_v27 = vpop.f32.mrb[145].mxu1  ;;  %v9158_v15 = vpop.f32.mrb[149].mxu0  ;;  %v9229_v2 = vld [vmem:[#allocation8 + $0x1e70] sm:$0xff]  ;;  %v9266_v14 = vld [vmem:[#allocation8 + $0x1f98] sm:$0xff] }
0x1102   :  { %v13520_v18 = vadd.f32 %v9117_v27, %v13467_v7  ;;  %v13523_v24 = vadd.f32 %v9158_v15, %v13470_v4  ;;  %v9119_v56 = vpop.f32.mrb[146].mxu1  ;;  %v9160_v54 = vpop.f32.mrb[150].mxu0  ;;  %v11517_v55 = vcombine.high %v9225_v52, %v9229_v2  ;;  %v11519_v4 = vcombine.high %v9226_v30, %v9230_v37  ;;  %v9270_v26 = vld [vmem:[#allocation8 + $0x1fb8] sm:$0xff]  ;;  %v12208_v37 = vld [vmem:[#allocation11 + $0x40] sm:$0xff]  }
0x1103   :  { %v9120_v31 = vpop.f32.mrb[147].mxu1  ;;  %v9161_v50 = vpop.f32.mrb[151].mxu0  ;;  %v11516_v1 = vcombine.low %v9225_v52, %v9229_v2  ;;  %v11550_v15 = vcombine.low %v9258_v19, %v9262_v13  ;;  %v11557_v56 = vcombine.high %v9265_v22, %v9269_v51  ;;  %v11559_v54 = vcombine.high %v9266_v14, %v9270_v26  ;;  %v12240_v19 = vld [vmem:[#allocation11 + $0x140] sm:$0xff]  }
0x1104   :  { %v9273_v31 = vld [vmem:[#allocation8 + $0x1fd0] sm:$0xff]  ;;  %v12241_v13 = vld [vmem:[#allocation11 + $0x1c0] sm:$0xff]  }
0x1105   :  { %v9277_v50 = vld [vmem:[#allocation8 + $0x1ff0] sm:$0xff] }
0x1106   :  { %v11565_v52 = vcombine.high %v9273_v31, %v9277_v50  ;;  %v11564_v2 = vcombine.low %v9273_v31, %v9277_v50 }
0x1120   :  { %v9207_v47 = vpop.f32.mrb[148].mxu1 }
0x1121   :  { %v9208_v53 = vadd.f32 %v12316_v57, %v9207_v47  ;;  %v12183_v5 = vpop.f32.mrb[149].mxu1  ;;  %v9274_v47 = vld [vmem:[#allocation8 + $0x1fd8] sm:$0xff] }
0x1122   :  { %v9210_v58 = vpop.f32.mrb[150].mxu1  ;;  %v9278_v57 = vld [vmem:[#allocation8 + $0x1ff8] sm:$0xff]  ;;  %v11558_v5 = vcombine.low %v9266_v14, %v9270_v26 }
0x1123   :  { %v9213_v36 = vmax.f32 %v9208_v53, 0.0  ;;  %v12184_v34 = vpop.f32.mrb[151].mxu1  ;;  %v11556_v53 = vcombine.low %v9265_v22, %v9269_v51  ;;  %v11567_v58 = vcombine.high %v9274_v47, %v9278_v57  ;;  %v11566_v30 = vcombine.low %v9274_v47, %v9278_v57  ;;  %v13537_v22 = vld [vmem:[#allocation10] sm:$0xff] }
0x1124   :  { %v12210_v34 = vld [vmem:[#allocation11] sm:$0xff]  }
0x1125   :  { %v13525_v7 = vpack.c.bf16 %v9213_v36, %v9213_v36  ;;  %v12209_v36 = vld [vmem:[#allocation11 + $0xc0] sm:$0xff]  }
0x1127   :  { %9632 = vmatmul.mubr.bf16.vlgmr.msra.gmra.mrb[152].mxu0 %v13525_v7  ;;  %9673 = vmatmul.mubr.bf16.vlgmr.msra.gmra.mrb[152].mxu1 %v13525_v7 }
0x1128   :  { %9682 = vmatpush1.bf16.msra.mxu0 %v11508_v10  ;;  %9723 = vmatpush1.bf16.msra.mxu1 %v11510_v25  ;;  %v11541_v10 = vcombine.high %v9249_v63, %v9253_v6  ;;  %v9257_v25 = vld [vmem:[#allocation8 + $0x1f50] sm:$0xff] }
0x1129   :  { %9683 = vmatprep.subr.bf16.mxu0 %v11517_v55  ;;  %9724 = vmatprep.subr.bf16.mxu1 %v11519_v4  ;;  %v11549_v45 = vcombine.high %v9257_v25, %v9261_v48  ;;  %v11548_v27 = vcombine.low %v9257_v25, %v9261_v48  ;;  %v12211_v55 = vld [vmem:[#allocation11 + $0x80] sm:$0xff]   ;;  %v12212_v4 = vld [vmem:[#allocation11 + $0x48] sm:$0xff]   ;;  %v12238_v25 = vld [vmem:[#allocation11 + $0x38] sm:$0xff]  }
0x112a   :  { %9713 = vmatprep.mubr.bf16.mxu0 %v12516_v20  ;;  %9754 = vmatprep.mubr.bf16.mxu1 %v12516_v20  ;;  %v11543_v20 = vcombine.high %v9250_v21, %v9254_v28  ;;  %v12230_v63 = vld [vmem:[#allocation11 + $0x28] sm:$0xff]   ;;  %v12232_v21 = vld [vmem:[#allocation11 + $0x70] sm:$0xff]   ;;  %v12239_v48 = vld [vmem:[#allocation11 + $0xb8] sm:$0xff]  }
0x112b   :  { %v12231_v6 = vld [vmem:[#allocation11 + $0xa8] sm:$0xff]   ;;  %v12233_v28 = vld [vmem:[#allocation11 + $0xf0] sm:$0xff]  }
0x112c   :  { %9684 = vmatpush1.bf16.msra.mxu0 %v11516_v1  ;;  %9725 = vmatpush1.bf16.msra.mxu1 %v11518_v44  ;;  %v12217_v1 = vld [vmem:[#allocation11 + $0xd0] sm:$0xff]  }
0x112d   :  { %9685 = vmatprep.subr.bf16.mxu0 %v11525_v38  ;;  %9726 = vmatprep.subr.bf16.mxu1 %v11527_v43  ;;  %v12218_v44 = vld [vmem:[#allocation11 + $0x10] sm:$0xff]   ;;  %v12220_v43 = vld [vmem:[#allocation11 + $0x58] sm:$0xff]  }
0x112e   :  { %v12219_v38 = vld [vmem:[#allocation11 + $0x90] sm:$0xff]  }
0x1130   :  { %9686 = vmatpush1.bf16.msra.mxu0 %v11524_v33  ;;  %9727 = vmatpush1.bf16.msra.mxu1 %v11526_v11  ;;  %v12226_v33 = vld [vmem:[#allocation11 + $0x20] sm:$0xff]  }
0x1131   :  { %9687 = vmatprep.subr.bf16.mxu0 %v11533_v40  ;;  %9728 = vmatprep.subr.bf16.mxu1 %v11535_v42  ;;  %v12227_v11 = vld [vmem:[#allocation11 + $0xa0] sm:$0xff]   ;;  %v12228_v40 = vld [vmem:[#allocation11 + $0x68] sm:$0xff]  }
0x1132   :  { %v12229_v42 = vld [vmem:[#allocation11 + $0xe8] sm:$0xff]  }
0x1134   :  { %9688 = vmatpush1.bf16.msra.mxu0 %v11532_v61  ;;  %9729 = vmatpush1.bf16.msra.mxu1 %v11534_v0  ;;  %v12234_v61 = vld [vmem:[#allocation11 + $0x30] sm:$0xff]  }
0x1135   :  { %9689 = vmatprep.subr.bf16.mxu0 %v11541_v10  ;;  %9730 = vmatprep.subr.bf16.mxu1 %v11543_v20  ;;  %v12235_v0 = vld [vmem:[#allocation11 + $0xb0] sm:$0xff]   ;;  %v12236_v10 = vld [vmem:[#allocation11 + $0x78] sm:$0xff]  }
0x1136   :  { %v12237_v20 = vld [vmem:[#allocation11 + $0xf8] sm:$0xff]  }
0x1138   :  { %9690 = vmatpush1.bf16.msra.mxu0 %v11540_v9  ;;  %9731 = vmatpush1.bf16.msra.mxu1 %v11542_v12  ;;  %v9773_v9 = vlaneseq }
0x1139   :  { %9691 = vmatprep.subr.bf16.mxu0 %v11549_v45  ;;  %9732 = vmatprep.subr.bf16.mxu1 %v11551_v46 }
0x113a   :  { %v13533_v12 = vshrl.u32 %v9773_v9, 7 }
0x113c   :  { %9692 = vmatpush1.bf16.msra.mxu0 %v11548_v27  ;;  %9733 = vmatpush1.bf16.msra.mxu1 %v11550_v15  ;;  %v9775_v45 = vsub.s32 0, %v13533_v12  ;;  %v9783_v46 = vsub.s32 2, %v13533_v12  ;;  %v9779_v51 = vsub.s32 1, %v13533_v12  ;;  %v9787_v14 = vsub.s32 3, %v13533_v12 }
0x113d   :  { %9693 = vmatprep.subr.bf16.mxu0 %v11557_v56  ;;  %9734 = vmatprep.subr.bf16.mxu1 %v11559_v54  ;;  %v9803_v9 = vsub.s32 7, %v13533_v12 }
0x113e   :  { %v9776_v26 = vrot.slane %v13537_v22, %v9775_v45  ;;  %v9784_v27 = vrot.slane %v13537_v22, %v9783_v46  ;;  %v9780_v54 = vrot.slane %v13537_v22, %v9779_v51  ;;  %v9788_v31 = vrot.slane %v13537_v22, %v9787_v14  ;;  %v12264_v45 = vld [vmem:[#allocation11 + $0x170] sm:$0xff]  }
0x113f   :  { %v12265_v46 = vld [vmem:[#allocation11 + $0x1f0] sm:$0xff]  }
0x1140   :  { %9694 = vmatpush1.bf16.msra.mxu0 %v11556_v53  ;;  %9735 = vmatpush1.bf16.msra.mxu1 %v11558_v5 }
0x1141   :  { %9695 = vmatprep.subr.bf16.mxu0 %v11565_v52  ;;  %9736 = vmatprep.subr.bf16.mxu1 %v11567_v58 }
0x1144   :  { %9696 = vmatpush1.bf16.msra.mxu0 %v11564_v2  ;;  %9737 = vmatpush1.bf16.msra.mxu1 %v11566_v30 }
0x1145   :  { %11777 = vmatprep.subr.bf16.mxu0 %v12208_v37  ;;  %11799 = vmatprep.subr.bf16.mxu1 %v12209_v36 }
0x1147   :  { %9714 = vmatmul.mubr.bf16.vlgmr.msra.gmra.mrb[156].mxu0 %v13525_v7  ;;  %9755 = vmatmul.mubr.bf16.vlgmr.msra.gmra.mrb[156].mxu1 %v13525_v7  ;;  %v12223_v7 = vld [vmem:[#allocation11 + $0x98] sm:$0xff]  }
0x1148   :  { %11778 = vmatpush3.bf16.msra.mxu0 %v12210_v34  ;;  %11800 = vmatpush3.bf16.msra.mxu1 %v12211_v55 }
0x1149   :  { %11779 = vmatprep.subr.bf16.mxu0 %v12212_v4  ;;  %11801 = vmatprep.subr.bf16.mxu1 %v12213_v35 }
0x114c   :  { %11780 = vmatpush3.bf16.msra.mxu0 %v12214_v39  ;;  %11802 = vmatpush3.bf16.msra.mxu1 %v12215_v49 }
0x114d   :  { %11781 = vmatprep.subr.bf16.mxu0 %v12216_v3  ;;  %11803 = vmatprep.subr.bf16.mxu1 %v12217_v1  ;;  %v12242_v1 = vld [vmem:[#allocation11 + $0x100] sm:$0xff]  }
0x1150   :  { %11782 = vmatpush3.bf16.msra.mxu0 %v12218_v44  ;;  %11804 = vmatpush3.bf16.msra.mxu1 %v12219_v38  ;;  %v12243_v44 = vld [vmem:[#allocation11 + $0x180] sm:$0xff]  }
0x1151   :  { %11783 = vmatprep.subr.bf16.mxu0 %v12220_v43  ;;  %11805 = vmatprep.subr.bf16.mxu1 %v12221_v60  ;;  %v12244_v43 = vld [vmem:[#allocation11 + $0x148] sm:$0xff]  }
0x1152   :  { %v12246_v60 = vld [vmem:[#allocation11 + $0x108] sm:$0xff]  }
0x1154   :  { %11784 = vmatpush3.bf16.msra.mxu0 %v12222_v23  ;;  %11806 = vmatpush3.bf16.msra.mxu1 %v12223_v7  ;;  %v12247_v23 = vld [vmem:[#allocation11 + $0x188] sm:$0xff]   ;;  %v12248_v7 = vld [vmem:[#allocation11 + $0x150] sm:$0xff]  }
0x1155   :  { %11785 = vmatprep.subr.bf16.mxu0 %v12224_v62  ;;  %11807 = vmatprep.subr.bf16.mxu1 %v12225_v41  ;;  %v12249_v62 = vld [vmem:[#allocation11 + $0x1d0] sm:$0xff]  }
0x1156   :  { %v12250_v41 = vld [vmem:[#allocation11 + $0x110] sm:$0xff]  }
0x1158   :  { %11786 = vmatpush3.bf16.msra.mxu0 %v12226_v33  ;;  %11808 = vmatpush3.bf16.msra.mxu1 %v12227_v11  ;;  %v12251_v33 = vld [vmem:[#allocation11 + $0x190] sm:$0xff]   ;;  %v12252_v11 = vld [vmem:[#allocation11 + $0x158] sm:$0xff]  }
0x1159   :  { %11787 = vmatprep.subr.bf16.mxu0 %v12228_v40  ;;  %11809 = vmatprep.subr.bf16.mxu1 %v12229_v42  ;;  %v12253_v40 = vld [vmem:[#allocation11 + $0x1d8] sm:$0xff]  }
0x115a   :  { %v12254_v42 = vld [vmem:[#allocation11 + $0x118] sm:$0xff]  }
0x115c   :  { %11788 = vmatpush3.bf16.msra.mxu0 %v12230_v63  ;;  %11810 = vmatpush3.bf16.msra.mxu1 %v12231_v6  ;;  %v12255_v63 = vld [vmem:[#allocation11 + $0x198] sm:$0xff]   ;;  %v12256_v6 = vld [vmem:[#allocation11 + $0x160] sm:$0xff]  }
0x115d   :  { %11789 = vmatprep.subr.bf16.mxu0 %v12232_v21  ;;  %11811 = vmatprep.subr.bf16.mxu1 %v12233_v28  ;;  %v12257_v21 = vld [vmem:[#allocation11 + $0x1e0] sm:$0xff]  }
0x115e   :  { %v12258_v28 = vld [vmem:[#allocation11 + $0x120] sm:$0xff]  }
0x1160   :  { %11790 = vmatpush3.bf16.msra.mxu0 %v12234_v61  ;;  %11812 = vmatpush3.bf16.msra.mxu1 %v12235_v0  ;;  %v12259_v61 = vld [vmem:[#allocation11 + $0x1a0] sm:$0xff]   ;;  %v12260_v0 = vld [vmem:[#allocation11 + $0x168] sm:$0xff]  }
0x1161   :  { %11791 = vmatprep.subr.bf16.mxu0 %v12236_v10  ;;  %11813 = vmatprep.subr.bf16.mxu1 %v12237_v20  ;;  %v12261_v10 = vld [vmem:[#allocation11 + $0x1e8] sm:$0xff]   ;;  %v9791_v20 = vsub.s32 4, %v13533_v12 }
0x1163   :  { %v9792_v51 = vrot.slane %v13537_v22, %v9791_v20 }
0x1164   :  { %11792 = vmatpush3.bf16.msra.mxu0 %v12238_v25  ;;  %11814 = vmatpush3.bf16.msra.mxu1 %v12239_v48  ;;  %v9799_v25 = vsub.s32 6, %v13533_v12  ;;  %v12262_v48 = vld [vmem:[#allocation11 + $0x128] sm:$0xff]  }
0x1165   :  { %11821 = vmatprep.subr.bf16.mxu0 %v12240_v19  ;;  %11843 = vmatprep.subr.bf16.mxu1 %v12241_v13  ;;  %v12263_v19 = vld [vmem:[#allocation11 + $0x1a8] sm:$0xff]   ;;  %v9795_v13 = vsub.s32 5, %v13533_v12 }
0x1166   :  { %v9800_v14 = vrot.slane %v13537_v22, %v9799_v25 }
0x11fa   :  { %v9633_v15 = vpop.f32.mrb[152].mxu0  ;;  %v9674_v56 = vpop.f32.mrb[152].mxu1 }
0x11fb   :  { %v9763_v50 = vadd.f32 %v9633_v15, %v13502_v17  ;;  %v9765_v47 = vadd.f32 %v9674_v56, %v13505_v16  ;;  %v9635_v57 = vpop.f32.mrb[153].mxu0  ;;  %v9676_v53 = vpop.f32.mrb[153].mxu1  ;;  %v9796_v15 = vrot.slane %v13537_v22, %v9795_v13  ;;  %v9804_v56 = vrot.slane %v13537_v22, %v9803_v9 }
0x11fc   :  { %v9764_v5 = vadd.f32 %v9635_v57, %v13508_v32  ;;  %v9766_v52 = vadd.f32 %v9676_v53, %v13511_v8  ;;  %v9637_v58 = vpop.f32.mrb[154].mxu0  ;;  %v9678_v2 = vpop.f32.mrb[154].mxu1  ;;  %v12245_v8 = vld [vmem:[#allocation11 + $0x1c8] sm:$0xff]   ;;  %v12268_v53 = vld [vmem:[#allocation11 + $0x178] sm:$0xff]  }
0x11fd   :  { %v9813_v30 = vadd.f32 %v9776_v26, %v9763_v50  ;;  %v9815_v37 = vadd.f32 %v9784_v27, %v9765_v47  ;;  %v9638_v36 = vpop.f32.mrb[155].mxu0  ;;  %v9679_v34 = vpop.f32.mrb[155].mxu1 }
0x11fe   :  { %v9814_v55 = vadd.f32 %v9780_v54, %v9764_v5  ;;  %v9816_v4 = vadd.f32 %v9788_v31, %v9766_v52  ;;  %v12266_v54 = vld [vmem:[#allocation11 + $0x130] sm:$0xff]   ;;  %v12269_v5 = vld [vmem:[#allocation11 + $0x1f8] sm:$0xff]  }
0x11ff   :  { %v9821_v35 = vmax.f32 %v9813_v30, 0.0  ;;  %v9823_v39 = vmax.f32 %v9815_v37, 0.0  ;;  %v12267_v31 = vld [vmem:[#allocation11 + $0x1b0] sm:$0xff]  }
0x1200   :  { %v9822_v49 = vmax.f32 %v9814_v55, 0.0  ;;  %v9824_v17 = vmax.f32 %v9816_v4, 0.0  ;;  %v12271_v4 = vld [vmem:[#allocation11 + $0x1b8] sm:$0xff]  }
0x1201   :  { %v9829_v38 = vpack.c.bf16 %v9821_v35, %v9821_v35  ;;  %v9831_v32 = vpack.c.bf16 %v9823_v39, %v9823_v39 }
0x1202   :  { %v9830_v3 = vpack.c.bf16 %v9822_v49, %v9822_v49  ;;  %v9832_v16 = vpack.c.bf16 %v9824_v17, %v9824_v17 }
0x1204   :  { %10388 = vmatprep.mubr.bf16.mxu0 %v9830_v3  ;;  %10428 = vmatprep.mubr.bf16.mxu1 %v9832_v16 }
0x1205   :  { %10389 = vmatmul.mubr.bf16.vlgmr.msra.gmra.mrb[160].mxu0 %v9829_v38  ;;  %10429 = vmatmul.mubr.bf16.vlgmr.msra.gmra.mrb[160].mxu1 %v9831_v32  ;;  %v11568_v38 = vld [vmem:[#allocation13] ss:$0 sm:$0xff] }
0x1206   :  { %11822 = vmatpush3.bf16.msra.mxu0 %v12242_v1  ;;  %11844 = vmatpush3.bf16.msra.mxu1 %v12243_v44 }
0x1207   :  { %11823 = vmatprep.subr.bf16.mxu0 %v12244_v43  ;;  %11845 = vmatprep.subr.bf16.mxu1 %v12245_v8 }
0x120a   :  { %11824 = vmatpush3.bf16.msra.mxu0 %v12246_v60  ;;  %11846 = vmatpush3.bf16.msra.mxu1 %v12247_v23 }
0x120b   :  { %11825 = vmatprep.subr.bf16.mxu0 %v12248_v7  ;;  %11847 = vmatprep.subr.bf16.mxu1 %v12249_v62 }
0x120e   :  { %11826 = vmatpush3.bf16.msra.mxu0 %v12250_v41  ;;  %11848 = vmatpush3.bf16.msra.mxu1 %v12251_v33 }
0x120f   :  { %11827 = vmatprep.subr.bf16.mxu0 %v12252_v11  ;;  %11849 = vmatprep.subr.bf16.mxu1 %v12253_v40 }
0x1212   :  { %11828 = vmatpush3.bf16.msra.mxu0 %v12254_v42  ;;  %11850 = vmatpush3.bf16.msra.mxu1 %v12255_v63 }
0x1213   :  { %11829 = vmatprep.subr.bf16.mxu0 %v12256_v6  ;;  %11851 = vmatprep.subr.bf16.mxu1 %v12257_v21 }
0x1216   :  { %11830 = vmatpush3.bf16.msra.mxu0 %v12258_v28  ;;  %11852 = vmatpush3.bf16.msra.mxu1 %v12259_v61 }
0x1217   :  { %11831 = vmatprep.subr.bf16.mxu0 %v12260_v0  ;;  %11853 = vmatprep.subr.bf16.mxu1 %v12261_v10 }
0x121a   :  { %v9715_v26 = vpop.f32.mrb[156].mxu0  ;;  %v9756_v27 = vpop.f32.mrb[156].mxu1  ;;  %11832 = vmatpush3.bf16.msra.mxu0 %v12262_v48  ;;  %11854 = vmatpush3.bf16.msra.mxu1 %v12263_v19 }
0x121b   :  { %v9767_v12 = vadd.f32 %v9715_v26, %v13514_v59  ;;  %v9769_v50 = vadd.f32 %v9756_v27, %v13517_v29  ;;  %v9717_v47 = vpop.f32.mrb[157].mxu0  ;;  %v9758_v57 = vpop.f32.mrb[157].mxu1  ;;  %11833 = vmatprep.subr.bf16.mxu0 %v12264_v45  ;;  %11855 = vmatprep.subr.bf16.mxu1 %v12265_v46  ;;  %v12270_v29 = vld [vmem:[#allocation11 + $0x138] sm:$0xff]  }
0x121c   :  { %v9768_v52 = vadd.f32 %v9717_v47, %v13520_v18  ;;  %v9770_v58 = vadd.f32 %v9758_v57, %v13523_v24  ;;  %v9719_v2 = vpop.f32.mrb[158].mxu0  ;;  %v9760_v30 = vpop.f32.mrb[158].mxu1 }
0x121d   :  { %v9817_v37 = vadd.f32 %v9792_v51, %v9767_v12  ;;  %v9819_v22 = vadd.f32 %v9800_v14, %v9769_v50  ;;  %v9720_v36 = vpop.f32.mrb[159].mxu0  ;;  %v9761_v34 = vpop.f32.mrb[159].mxu1 }
0x121e   :  { %v9818_v55 = vadd.f32 %v9796_v15, %v9768_v52  ;;  %v9820_v59 = vadd.f32 %v9804_v56, %v9770_v58  ;;  %11834 = vmatpush3.bf16.msra.mxu0 %v12266_v54  ;;  %11856 = vmatpush3.bf16.msra.mxu1 %v12267_v31 }
0x121f   :  { %v9825_v35 = vmax.f32 %v9817_v37, 0.0  ;;  %v9827_v39 = vmax.f32 %v9819_v22, 0.0  ;;  %11835 = vmatprep.subr.bf16.mxu0 %v12268_v53  ;;  %11857 = vmatprep.subr.bf16.mxu1 %v12269_v5 }
0x1220   :  { %v9826_v49 = vmax.f32 %v9818_v55, 0.0  ;;  %v9828_v18 = vmax.f32 %v9820_v59, 0.0 }
0x1221   :  { %v9833_v3 = vpack.c.bf16 %v9825_v35, %v9825_v35  ;;  %v9835_v16 = vpack.c.bf16 %v9827_v39, %v9827_v39 }
0x1222   :  { %v9834_v17 = vpack.c.bf16 %v9826_v49, %v9826_v49  ;;  %v9836_v24 = vpack.c.bf16 %v9828_v18, %v9828_v18  ;;  %11836 = vmatpush3.bf16.msra.mxu0 %v12270_v29  ;;  %11858 = vmatpush3.bf16.msra.mxu1 %v12271_v4 }
0x1224   :  { %10468 = vmatprep.mubr.bf16.mxu0 %v9834_v17  ;;  %10508 = vmatprep.mubr.bf16.mxu1 %v9836_v24 }
0x1225   :  { %10469 = vmatmul.mubr.bf16.vlgmr.msra.gmra.mrb[164].mxu0 %v9833_v3  ;;  %10509 = vmatmul.mubr.bf16.vlgmr.msra.gmra.mrb[164].mxu1 %v9835_v16 }
0x12d8   :  { %v11793_v1 = vpop.f32.mrb[160].mxu0  ;;  %v11815_v44 = vpop.f32.mrb[160].mxu1 }
0x12d9   :  { %v11794_v32 = vpop.f32.mrb[161].mxu0  ;;  %v11816_v43 = vpop.f32.mrb[161].mxu1 }
0x12da   :  { %v11795_v8 = vadd.f32 %v11794_v32, %v11793_v1  ;;  %v11817_v60 = vadd.f32 %v11816_v43, %v11815_v44  ;;  %v11796_v23 = vpop.f32.mrb[162].mxu0  ;;  %v11818_v7 = vpop.f32.mrb[162].mxu1 }
0x12db   :  { %v11797_v62 = vpop.f32.mrb[163].mxu0  ;;  %v11819_v41 = vpop.f32.mrb[163].mxu1 }
0x12dc   :  { %v10391_v33 = vadd.f32 %v11795_v8, %v11568_v38 }
0x12de   :  { %v10431_v11 = vadd.f32 %v11817_v60, %v10391_v33 }
0x12f8   :  { %v11837_v40 = vpop.f32.mrb[164].mxu0  ;;  %v11859_v42 = vpop.f32.mrb[164].mxu1 }
0x12f9   :  { %v11838_v63 = vpop.f32.mrb[165].mxu0  ;;  %v11860_v6 = vpop.f32.mrb[165].mxu1 }
0x12fa   :  { %v11839_v21 = vadd.f32 %v11838_v63, %v11837_v40  ;;  %v11861_v28 = vadd.f32 %v11860_v6, %v11859_v42  ;;  %v11840_v61 = vpop.f32.mrb[166].mxu0  ;;  %v11862_v0 = vpop.f32.mrb[166].mxu1 }
0x12fb   :  { %v11841_v10 = vpop.f32.mrb[167].mxu0  ;;  %v11863_v20 = vpop.f32.mrb[167].mxu1 }
0x12fc   :  { %v10471_v25 = vadd.f32 %v11839_v21, %v10431_v11 }
0x12fe   :  { %v10511_v48 = vadd.f32 %v11861_v28, %v10471_v25 }
0x1300   :  { %10516 = vst [vmem:[#allocation14] sm:$0xff] %v10511_v48 }
0x1301   :  { %12482 = shalt.err (!%p12479_p4)
}
0x1302   :  { %s12483_s14 = scalar_lea.hbm %s13580_s7, 128 }
0x1303   :  { %p12484_p5 = scmp.ne.s32.totalorder %s13580_s7, %s12483_s14  ;;  %p12487_p6 = scmp.lt.u32.totalorder %s12483_s14, %s13580_s7 }
0x1305   :  { %p12489_p7 = pnand %p12487_p6, %p12484_p5 }
0x1307   :  { %12492 = shalt.err (!%p12489_p7)
}
0x1308   :  { %10526 = dma.vmem_to_hbm [thread:$0]  %s10524_s18, 128, %s13580_s7, [#allocation4]  }
0x1309   :  { %12501 = dma.done.wait [#allocation4], 128  }
0x130a   :  { %12502 = vsyncadd [#allocation4], 4294967168 }
0x130b   :  { %10530 = vsyncpa [#allocation3], 1 }
0x130c   :  { %10531 = vsyncpa [#allocation6], 1 }
0x130d   :  { %10532 = vsyncpa [#allocation9], 1 }
0x130e   :  { %10533 = vsyncpa [#allocation12], 1 }
0x130f   :  { %10534 = vsyncpa [#allocation4], 1 }

</bundles_post_ra>
